<compile_context>
chip_gen: v5e
topology: v5e:2x2
jax: 0.10.0
libtpu: 0.0.40
codegen_flags: <defaults>
</compile_context>

<pallas_src>
import functools

import numpy as np
import jax
import jax.numpy as jnp
from jax.experimental import pallas as pl
from jax.experimental.pallas import tpu as pltpu

_VMEM_LIMIT = 48 * 1024 * 1024


# ----------------------------------------------------------------------------
# Pallas kernels
# ----------------------------------------------------------------------------
def _deconv_plane_kernel(x_ref, w_ref, scale_ref, shift_ref, o_ref, acc_ref,
                         *, m_rows, wp):
    """One (batch, coarse-D, d-tap) step of ConvTranspose3d + BN + LeakyReLU.

    x_ref   : (1, 1, Hp*Wp, Cin) bf16   one padded, plane-flattened D-slice
    w_ref   : (27, Cin, Nout)    bf16   merged union-tap weight (VMEM-resident)
    acc_ref : (M, Nout)          f32    M = Hq*Wp (garbage cols sliced later)
    o_ref   : (1, 1, M, Nout)    bf16   coarse, phase-major channel output
    """
    t = pl.program_id(2)

    @pl.when(t == 0)
    def _init():
        acc_ref[...] = jnp.zeros_like(acc_ref)

    for uh in range(3):
        for uw in range(3):
            off = uh * wp + uw
            xs = x_ref[0, 0, off:off + m_rows, :]
            wt = w_ref[t * 9 + uh * 3 + uw]
            acc_ref[...] += jnp.dot(xs, wt, preferred_element_type=jnp.float32)

    @pl.when(t == pl.num_programs(2) - 1)
    def _epilogue():
        # BN scale/shift in f32 (scale is NOT folded into the bf16 weights).
        a = acc_ref[...] * scale_ref[...] + shift_ref[...]
        o_ref[0, 0] = jnp.where(a >= 0, a, 0.2 * a).astype(o_ref.dtype)


def _deconv_final_kernel(x_ref, w_ref, scale_ref, shift_ref, w4_ref, b4_ref,
                         o_ref, s_ref, acc_ref, *, m_rows, wp, pack):
    """Fused d3 (k=3,s=1) + BN + LeakyReLU + 1x1x1 conv + bias + sigmoid.
    The d3 activation never leaves VMEM; outputs are stored lane-dense."""
    t = pl.program_id(2)

    @pl.when(t == 0)
    def _init():
        acc_ref[...] = jnp.zeros_like(acc_ref)

    for uh in range(3):
        for uw in range(3):
            off = uh * wp + uw
            xs = x_ref[0, 0, off:off + m_rows, :]
            wt = w_ref[t * 9 + uh * 3 + uw]
            acc_ref[...] += jnp.dot(xs, wt, preferred_element_type=jnp.float32)

    @pl.when(t == pl.num_programs(2) - 1)
    def _epilogue():
        a = acc_ref[...] * scale_ref[...] + shift_ref[...]
        a = jnp.where(a >= 0, a, 0.2 * a)                       # LeakyReLU(0.2)
        fin = jnp.dot(a, w4_ref[...],                            # 1x1x1 conv
                      preferred_element_type=jnp.float32) + b4_ref[0, 0]
        sig = pl.reciprocal(1.0 + jnp.exp(-fin), approx=True)    # sigmoid (EUP)
        o_ref[0, 0] = fin.reshape(pack)                          # lane-dense
        s_ref[0, 0] = sig.reshape(pack)


def _encoder_kernel(x_ref, w_ref, b_ref, o_ref, acc_ref):
    """K-tiled linear image encoder:  z = x @ We + be  (f32 accumulation)."""
    k = pl.program_id(0)

    @pl.when(k == 0)
    def _init():
        acc_ref[...] = jnp.zeros_like(acc_ref)

    acc_ref[...] += jnp.dot(x_ref[...], w_ref[...],
                            preferred_element_type=jnp.float32)

    @pl.when(k == pl.num_programs(0) - 1)
    def _fin():
        o_ref[...] = acc_ref[...] + b_ref[...]


# ----------------------------------------------------------------------------
# Host-side helpers
# ----------------------------------------------------------------------------
def _merged_weight(w_t, stride, pad):
    """ConvTranspose3d weight (Cin,Cout,k,k,k) -> merged union-tap matrix
    (27, Cin, s^3*Cout) bf16, phase-major output channels, zero-filled taps."""
    cin, cout, k = int(w_t.shape[0]), int(w_t.shape[1]), int(w_t.shape[2])
    s = stride
    L = max((k - 1 - f - pad) // s for f in range(s))
    R = max((f + pad) // s for f in range(s))
    assert L == 1 and R == 1, "union tap extent must be 3"

    def kk(u, f):
        v = s * (L - u) + f + pad
        return v if 0 <= v < k else None

    zero = jnp.zeros((cin, cout), w_t.dtype)
    taps = []
    for ud in range(3):
        for uh in range(3):
            for uw in range(3):
                cols = []
                for pd in range(s):
                    for ph in range(s):
                        for pw in range(s):
                            kd, kh, kw = kk(ud, pd), kk(uh, ph), kk(uw, pw)
                            if kd is None or kh is None or kw is None:
                                cols.append(zero)
                            else:
                                cols.append(w_t[:, :, kd, kh, kw])
                taps.append(jnp.concatenate(cols, axis=1))
    return jnp.stack(taps, axis=0).astype(jnp.bfloat16)


def _pad_and_flatten(x):
    """NDHWC -> padded, plane-flattened (B, D+2, (H+3)*(W+2), C) bf16.
    Extra bottom H row so in-plane tap row-slices never run past the plane."""
    B, D, H, W, C = x.shape
    xp = jnp.pad(x, ((0, 0), (1, 1), (1, 2), (1, 1), (0, 0)))
    return xp.reshape(B, D + 2, (H + 3) * (W + 2), C)


def _bn_fold(d, eps=1e-5):
    scale = d["g"] / jnp.sqrt(d["v"] + eps)
    shift = d["bt"] + scale * (d["b"] - d["m"])
    return scale, shift


# ----------------------------------------------------------------------------
# Layer wrappers
# ----------------------------------------------------------------------------
def deconv_bn_lrelu(x, w_t, scale, shift, stride):
    """ConvTranspose3d (k=4,s=2,p=1 or k=3,s=1,p=1) + BN (eval) + LeakyReLU."""
    B, D, H, W, cin = map(int, x.shape)
    s = stride
    cout = int(w_t.shape[1])
    nout = (s ** 3) * cout
    wm = _merged_weight(w_t, s, 1)
    xp = _pad_and_flatten(x)
    wp = W + 2
    m_rows = H * wp
    hwp = (H + 3) * wp
    scale_m = jnp.tile(scale, s ** 3).reshape(1, nout).astype(jnp.float32)
    shift_m = jnp.tile(shift, s ** 3).reshape(1, nout).astype(jnp.float32)

    out = pl.pallas_call(
        functools.partial(_deconv_plane_kernel, m_rows=m_rows, wp=wp),
        out_shape=jax.ShapeDtypeStruct((B, D, m_rows, nout), jnp.bfloat16),
        grid_spec=pltpu.PrefetchScalarGridSpec(
            num_scalar_prefetch=0,
            grid=(B, D, 3),
            in_specs=[
                pl.BlockSpec((1, 1, hwp, cin), lambda b, d, t: (b, d + t, 0, 0)),
                pl.BlockSpec((27, cin, nout), lambda b, d, t: (0, 0, 0)),
                pl.BlockSpec((1, nout), lambda b, d, t: (0, 0)),
                pl.BlockSpec((1, nout), lambda b, d, t: (0, 0)),
            ],
            out_specs=pl.BlockSpec((1, 1, m_rows, nout),
                                   lambda b, d, t: (b, d, 0, 0)),
            scratch_shapes=[pltpu.VMEM((m_rows, nout), jnp.float32)]),
        compiler_params=pltpu.CompilerParams(
            dimension_semantics=("parallel", "parallel", "arbitrary"),
            vmem_limit_bytes=_VMEM_LIMIT),
    )(xp, wm, scale_m, shift_m)

    out = out.reshape(B, D, H, wp, s, s, s, cout)[:, :, :, :W]
    if s == 1:
        return out.reshape(B, D, H, W, cout)
    out = jnp.transpose(out, (0, 1, 4, 2, 5, 3, 6, 7))   # sub-pixel interleave
    return out.reshape(B, s * D, s * H, s * W, cout)


def deconv3_final_fused(x, w3_t, scale3, shift3, w4_t, b4):
    """d3 (k=3,s=1,p=1) + BN + LeakyReLU fused with the final 1x1x1 conv,
    bias and sigmoid; returns (out, sigmoid(out)) in NDHWC."""
    B, D, H, W, cin = map(int, x.shape)
    c3 = int(w3_t.shape[1])
    wm = _merged_weight(w3_t, 1, 1)
    xp = _pad_and_flatten(x)
    wp = W + 2
    m_rows = H * wp
    hwp = (H + 3) * wp
    pack = (m_rows // 128, 128) if m_rows % 128 == 0 else (H, wp)

    out, sig = pl.pallas_call(
        functools.partial(_deconv_final_kernel, m_rows=m_rows, wp=wp, pack=pack),
        out_shape=(jax.ShapeDtypeStruct((B, D) + pack, jnp.float32),
                   jax.ShapeDtypeStruct((B, D) + pack, jnp.float32)),
        grid_spec=pltpu.PrefetchScalarGridSpec(
            num_scalar_prefetch=0,
            grid=(B, D, 3),
            in_specs=[
                pl.BlockSpec((1, 1, hwp, cin), lambda b, d, t: (b, d + t, 0, 0)),
                pl.BlockSpec((27, cin, c3), lambda b, d, t: (0, 0, 0)),
                pl.BlockSpec((1, c3), lambda b, d, t: (0, 0)),
                pl.BlockSpec((1, c3), lambda b, d, t: (0, 0)),
                pl.BlockSpec((c3, 1), lambda b, d, t: (0, 0)),
                pl.BlockSpec((1, 1), lambda b, d, t: (0, 0)),
            ],
            out_specs=[
                pl.BlockSpec((1, 1) + pack, lambda b, d, t: (b, d, 0, 0)),
                pl.BlockSpec((1, 1) + pack, lambda b, d, t: (b, d, 0, 0)),
            ],
            scratch_shapes=[pltpu.VMEM((m_rows, c3), jnp.float32)]),
        compiler_params=pltpu.CompilerParams(
            dimension_semantics=("parallel", "parallel", "arbitrary"),
            vmem_limit_bytes=_VMEM_LIMIT),
    )(xp, wm,
      scale3.reshape(1, c3).astype(jnp.float32),
      shift3.reshape(1, c3).astype(jnp.float32),
      w4_t.reshape(c3, 1).astype(jnp.float32),
      jnp.reshape(b4, (1, 1)).astype(jnp.float32))

    out = out.reshape(B, D, H, wp)[:, :, :, :W]
    sig = sig.reshape(B, D, H, wp)[:, :, :, :W]
    return out[..., None], sig[..., None]


def encode_image(img, We, be, tk=256):
    """Injected linear image encoder: flatten(img[:, :3]) @ We + be,
    K (image-feature) axis tiled with an f32 VMEM accumulator."""
    z_dim = int(We.shape[1])
    feat = int(We.shape[0])
    flat = img[:, :3, :, :].reshape(1, -1)
    kp = -(-feat // tk) * tk
    flat = jnp.pad(flat, ((0, 7), (0, kp - feat))).astype(jnp.bfloat16)
    We_p = jnp.pad(We, ((0, kp - feat), (0, 0))).astype(jnp.bfloat16)

    z = pl.pallas_call(
        _encoder_kernel,
        out_shape=jax.ShapeDtypeStruct((8, z_dim), jnp.float32),
        grid_spec=pltpu.PrefetchScalarGridSpec(
            num_scalar_prefetch=0,
            grid=(kp // tk,),
            in_specs=[pl.BlockSpec((8, tk), lambda k: (0, k)),
                      pl.BlockSpec((tk, z_dim), lambda k: (k, 0)),
                      pl.BlockSpec((1, z_dim), lambda k: (0, 0))],
            out_specs=pl.BlockSpec((8, z_dim), lambda k: (0, 0)),
            scratch_shapes=[pltpu.VMEM((8, z_dim), jnp.float32)]),
        compiler_params=pltpu.CompilerParams(
            dimension_semantics=("arbitrary",),
            vmem_limit_bytes=_VMEM_LIMIT),
    )(flat, We_p, be.reshape(1, z_dim).astype(jnp.float32))
    return z[0:1, :]                                      # (1, z_dim) f32


# ----------------------------------------------------------------------------
# Parameters (deterministic init)
# ----------------------------------------------------------------------------
def init_params(key, z_dim, gf_dim, img_feat):
    ks = list(jax.random.split(key, 24))

    def n(k, shape, s=0.05):
        return (s * jax.random.normal(k, shape)).astype(jnp.float32)

    def deconv_bn(i, cin, cout, kk):
        return {"w": n(ks[i], (cin, cout, kk, kk, kk)),
                "b": n(ks[i + 1], (cout,)),
                "g": 1.0 + n(ks[i + 2], (cout,), 0.1),
                "bt": n(ks[i + 3], (cout,), 0.1),
                "m": n(ks[i + 4], (cout,), 0.1),
                "v": 1.0 + jnp.abs(n(ks[i + 5], (cout,), 0.1))}

    p = {"We": n(ks[0], (img_feat, z_dim)), "be": n(ks[1], (z_dim,))}
    p["d1"] = deconv_bn(2, 1 + z_dim, gf_dim, 4)
    p["d2"] = deconv_bn(8, gf_dim, gf_dim // 2, 4)
    p["d3"] = deconv_bn(14, gf_dim // 2, gf_dim // 4, 3)
    p["w4"] = n(ks[20], (gf_dim // 4, 1, 1, 1, 1))
    p["b4"] = n(ks[21], (1,))
    return p


# ----------------------------------------------------------------------------
# Forward pass (Pallas path)
# ----------------------------------------------------------------------------
def forward(params, img, vox_patch):
    z_dim = int(params["We"].shape[1])
    z = encode_image(img, params["We"], params["be"])          # (1, z_dim) f32

    B, _, D, H, W = vox_patch.shape
    vox = jnp.transpose(vox_patch, (0, 2, 3, 4, 1))
    zb = jnp.broadcast_to(z.reshape(1, 1, 1, 1, z_dim), (B, D, H, W, z_dim))
    net = jnp.concatenate([vox, zb], axis=-1).astype(jnp.bfloat16)

    s1, sh1 = _bn_fold(params["d1"])
    s2, sh2 = _bn_fold(params["d2"])
    s3, sh3 = _bn_fold(params["d3"])

    net = deconv_bn_lrelu(net, params["d1"]["w"], s1, sh1, stride=2)
    net = deconv_bn_lrelu(net, params["d2"]["w"], s2, sh2, stride=2)
    out, sig = deconv3_final_fused(net, params["d3"]["w"], s3, sh3,
                                   params["w4"], params["b4"])

    out = jnp.transpose(out, (0, 4, 1, 2, 3))                  # back to NCDHW
    sig = jnp.transpose(sig, (0, 4, 1, 2, 3))
    return out, sig


# ----------------------------------------------------------------------------
# Pure-JAX f32 reference (lax.conv_general_dilated) for correctness check
# ----------------------------------------------------------------------------
def ref_forward(params, img, vox_patch):
    z_dim = params["We"].shape[1]
    z = img[:, :3, :, :].reshape(1, -1) @ params["We"] + params["be"]
    B, _, D, H, W = vox_patch.shape
    x = jnp.transpose(vox_patch, (0, 2, 3, 4, 1))
    zb = jnp.broadcast_to(z.reshape(1, 1, 1, 1, z_dim), (B, D, H, W, z_dim))
    net = jnp.concatenate([x, zb], axis=-1)

    def conv_t(x, w_t, stride, pad):
        kd = w_t.shape[2]
        rhs = jnp.transpose(w_t[:, :, ::-1, ::-1, ::-1], (2, 3, 4, 0, 1))
        return jax.lax.conv_general_dilated(
            x, rhs, window_strides=(1, 1, 1),
            padding=[(kd - 1 - pad, kd - 1 - pad)] * 3,
            lhs_dilation=(stride,) * 3,
            dimension_numbers=("NDHWC", "DHWIO", "NDHWC"),
            precision=jax.lax.Precision.HIGHEST)

    def layer(x, d, stride, pad):
        y = conv_t(x, d["w"], stride, pad) + d["b"]
        y = d["g"] * (y - d["m"]) / jnp.sqrt(d["v"] + 1e-5) + d["bt"]
        return jnp.where(y >= 0, y, 0.2 * y)

    net = layer(net, params["d1"], 2, 1)
    net = layer(net, params["d2"], 2, 1)
    net = layer(net, params["d3"], 1, 1)
    out = conv_t(net, params["w4"], 1, 0) + params["b4"]
    sig = 1.0 / (1.0 + jnp.exp(-out))
    return (jnp.transpose(out, (0, 4, 1, 2, 3)),
            jnp.transpose(sig, (0, 4, 1, 2, 3)))


# ----------------------------------------------------------------------------
if __name__ == "__main__":
    key = jax.random.PRNGKey(0)
    k_img, k_vox, k_par = jax.random.split(key, 3)

    # Small shapes consistent with the module (img batch must be 1).
    z_dim, gf_dim = 8, 16
    img = jax.random.normal(k_img, (1, 4, 16, 16), jnp.float32)         # NCHW
    vox_patch = jax.random.normal(k_vox, (2, 1, 4, 4, 4), jnp.float32)  # NCDHW

    params = init_params(k_par, z_dim, gf_dim, img_feat=3 * 16 * 16)

    fwd = jax.jit(forward)
    vox, vox_sigmoid = fwd(params, img, vox_patch)
    jax.block_until_ready(vox)
    jax.block_until_ready(vox_sigmoid)

    ref_vox, ref_sig = jax.jit(ref_forward)(params, img, vox_patch)
    np.testing.assert_allclose(np.asarray(vox), np.asarray(ref_vox),
                               rtol=5e-2, atol=5e-2)
    np.testing.assert_allclose(np.asarray(vox_sigmoid), np.asarray(ref_sig),
                               rtol=5e-2, atol=2e-2)
    assert vox.shape == (2, 1, 16, 16, 16)
    assert vox_sigmoid.shape == (2, 1, 16, 16, 16)

    print("KERNEL_OK")
</pallas_src>

<mosaic_0001>
module attributes {stable_mosaic.version = 11 : i64} {
  func.func @_encoder_kernel(%arg0: i32, %arg1: memref<8x256xbf16, #tpu.memory_space<vmem>>, %arg2: memref<256x8xbf16, #tpu.memory_space<vmem>>, %arg3: memref<1x8xf32, #tpu.memory_space<vmem>>, %arg4: memref<8x8xf32, #tpu.memory_space<vmem>>, %arg5: memref<8x8xf32, #tpu.memory_space<vmem>>) attributes {dimension_semantics = [#tpu.dimension_semantics<arbitrary>], iteration_bounds = array<i64: 3>, scalar_prefetch = 0 : i64, scratch_operands = 1 : i64, tpu.core_type = #tpu.core_type<tc>, window_params = [{transform_indices = @transform_0, window_bounds = array<i64: 8, 256>}, {transform_indices = @transform_1, window_bounds = array<i64: 256, 8>}, {pipeline_mode = #tpu.pipeline_mode<synchronous>, transform_indices = @transform_2, window_bounds = array<i64: 1, 8>}, {pipeline_mode = #tpu.pipeline_mode<synchronous>, transform_indices = @transform_3, window_bounds = array<i64: 8, 8>}]} {
    %c0_i32 = arith.constant 0 : i32
    %0 = arith.cmpi eq, %arg0, %c0_i32 : i32
    %1 = arith.extui %0 : i1 to i32
    %c0_i32_0 = arith.constant 0 : i32
    %2 = arith.cmpi ne, %1, %c0_i32_0 : i32
    scf.if %2 {
      %cst_9 = arith.constant 0.000000e+00 : f32
      %12 = vector.broadcast %cst_9 : f32 to vector<8x8xf32>
      %c0_10 = arith.constant 0 : index
      %c0_11 = arith.constant 0 : index
      %13 = vector.load %arg5[%c0_10, %c0_11] : memref<8x8xf32, #tpu.memory_space<vmem>>, vector<8x8xf32>
      tpu.vector_store %arg5[%c0_10, %c0_11], %12 {strides = array<i32>} : memref<8x8xf32, #tpu.memory_space<vmem>>, vector<8x8xf32>,
    } else {
    }
    %c0 = arith.constant 0 : index
    %c0_1 = arith.constant 0 : index
    %3 = vector.load %arg5[%c0, %c0_1] : memref<8x8xf32, #tpu.memory_space<vmem>>, vector<8x8xf32>
    %c0_2 = arith.constant 0 : index
    %c0_3 = arith.constant 0 : index
    %4 = vector.load %arg1[%c0_2, %c0_3] : memref<8x256xbf16, #tpu.memory_space<vmem>>, vector<8x256xbf16>
    %c0_4 = arith.constant 0 : index
    %c0_5 = arith.constant 0 : index
    %5 = vector.load %arg2[%c0_4, %c0_5] : memref<256x8xbf16, #tpu.memory_space<vmem>>, vector<256x8xbf16>
    %cst = arith.constant dense<0.000000e+00> : vector<8x8xf32>
    %6 = tpu.matmul %4, %5, %cst {dimension_numbers = #tpu.dot_dimension_numbers<[1], [0], [0], [1], [0, 0, 1, 1], [], []>} : vector<8x256xbf16>, vector<256x8xbf16>, vector<8x8xf32> -> vector<8x8xf32>
    %7 = arith.addf %3, %6 : vector<8x8xf32>
    %c0_6 = arith.constant 0 : index
    %c0_7 = arith.constant 0 : index
    %8 = vector.load %arg5[%c0_6, %c0_7] : memref<8x8xf32, #tpu.memory_space<vmem>>, vector<8x8xf32>
    tpu.vector_store %arg5[%c0_6, %c0_7], %7 {strides = array<i32>} : memref<8x8xf32, #tpu.memory_space<vmem>>, vector<8x8xf32>,
    %c2_i32 = arith.constant 2 : i32
    %9 = arith.cmpi eq, %arg0, %c2_i32 : i32
    %10 = arith.extui %9 : i1 to i32
    %c0_i32_8 = arith.constant 0 : i32
    %11 = arith.cmpi ne, %10, %c0_i32_8 : i32
    scf.if %11 {
      %c0_9 = arith.constant 0 : index
      %c0_10 = arith.constant 0 : index
      %12 = vector.load %arg5[%c0_9, %c0_10] : memref<8x8xf32, #tpu.memory_space<vmem>>, vector<8x8xf32>
      %c0_11 = arith.constant 0 : index
      %c0_12 = arith.constant 0 : index
      %13 = vector.load %arg3[%c0_11, %c0_12] : memref<1x8xf32, #tpu.memory_space<vmem>>, vector<1x8xf32>
      %14 = vector.broadcast %13 : vector<1x8xf32> to vector<8x8xf32>
      %15 = arith.addf %12, %14 : vector<8x8xf32>
      %c0_13 = arith.constant 0 : index
      %c0_14 = arith.constant 0 : index
      %16 = vector.load %arg4[%c0_13, %c0_14] : memref<8x8xf32, #tpu.memory_space<vmem>>, vector<8x8xf32>
      tpu.vector_store %arg4[%c0_13, %c0_14], %15 {strides = array<i32>} : memref<8x8xf32, #tpu.memory_space<vmem>>, vector<8x8xf32>,
    } else {
    }
    return
  }
  func.func @transform_0(%arg0: i32) -> (i32, i32) {
    %c0_i32 = arith.constant 0 : i32
    %c0_i32_0 = arith.constant 0 : i32
    return %c0_i32, %arg0 : i32, i32
  }
  func.func @transform_1(%arg0: i32) -> (i32, i32) {
    %c0_i32 = arith.constant 0 : i32
    %c0_i32_0 = arith.constant 0 : i32
    return %arg0, %c0_i32 : i32, i32
  }
  func.func @transform_2(%arg0: i32) -> (i32, i32) {
    %c0_i32 = arith.constant 0 : i32
    %c0_i32_0 = arith.constant 0 : i32
    %c0_i32_1 = arith.constant 0 : i32
    return %c0_i32, %c0_i32_0 : i32, i32
  }
  func.func @transform_3(%arg0: i32) -> (i32, i32) {
    %c0_i32 = arith.constant 0 : i32
    %c0_i32_0 = arith.constant 0 : i32
    %c0_i32_1 = arith.constant 0 : i32
    return %c0_i32, %c0_i32_0 : i32, i32
  }
}

module attributes {stable_mosaic.version = 11 : i64} {
  func.func @_deconv_plane_kernel(%arg0: i32, %arg1: i32, %arg2: i32, %arg3: memref<1x1x42x9xbf16, #tpu.memory_space<vmem>>, %arg4: memref<27x9x128xbf16, #tpu.memory_space<vmem>>, %arg5: memref<1x128xf32, #tpu.memory_space<vmem>>, %arg6: memref<1x128xf32, #tpu.memory_space<vmem>>, %arg7: memref<1x1x24x128xbf16, #tpu.memory_space<vmem>>, %arg8: memref<24x128xf32, #tpu.memory_space<vmem>>) attributes {dimension_semantics = [#tpu.dimension_semantics<parallel>, #tpu.dimension_semantics<parallel>, #tpu.dimension_semantics<arbitrary>], iteration_bounds = array<i64: 2, 4, 3>, scalar_prefetch = 0 : i64, scratch_operands = 1 : i64, tpu.core_type = #tpu.core_type<tc>, window_params = [{transform_indices = @transform_0, window_bounds = array<i64: 1, 1, 42, 9>}, {pipeline_mode = #tpu.pipeline_mode<synchronous>, transform_indices = @transform_1, window_bounds = array<i64: 27, 9, 128>}, {pipeline_mode = #tpu.pipeline_mode<synchronous>, transform_indices = @transform_2, window_bounds = array<i64: 1, 128>}, {pipeline_mode = #tpu.pipeline_mode<synchronous>, transform_indices = @transform_3, window_bounds = array<i64: 1, 128>}, {transform_indices = @transform_4, window_bounds = array<i64: 1, 1, 24, 128>}]} {
    %c0_i32 = arith.constant 0 : i32
    %0 = arith.cmpi eq, %arg2, %c0_i32 : i32
    %1 = arith.extui %0 : i1 to i32
    %c0_i32_0 = arith.constant 0 : i32
    %2 = arith.cmpi ne, %1, %c0_i32_0 : i32
    scf.if %2 {
      %cst_114 = arith.constant 0.000000e+00 : f32
      %114 = vector.broadcast %cst_114 : f32 to vector<24x128xf32>
      %c0_115 = arith.constant 0 : index
      %c0_116 = arith.constant 0 : index
      %115 = vector.load %arg8[%c0_115, %c0_116] : memref<24x128xf32, #tpu.memory_space<vmem>>, vector<24x128xf32>
      tpu.vector_store %arg8[%c0_115, %c0_116], %114 {strides = array<i32>} : memref<24x128xf32, #tpu.memory_space<vmem>>, vector<24x128xf32>,
    } else {
    }
    %c0 = arith.constant 0 : index
    %c0_1 = arith.constant 0 : index
    %c0_2 = arith.constant 0 : index
    %c0_3 = arith.constant 0 : index
    %3 = vector.load %arg3[%c0, %c0_1, %c0_2, %c0_3] : memref<1x1x42x9xbf16, #tpu.memory_space<vmem>>, vector<1x1x24x9xbf16>
    %4 = vector.shape_cast %3 : vector<1x1x24x9xbf16> to vector<24x9xbf16>
    %c9_i32 = arith.constant 9 : i32
    %5 = arith.muli %arg2, %c9_i32 : i32
    %c0_i32_4 = arith.constant 0 : i32
    %6 = arith.addi %5, %c0_i32_4 : i32
    %c0_i32_5 = arith.constant 0 : i32
    %7 = arith.addi %6, %c0_i32_5 : i32
    %8 = arith.index_cast %7 : i32 to index
    %c0_6 = arith.constant 0 : index
    %c0_7 = arith.constant 0 : index
    %9 = vector.load %arg4[%8, %c0_6, %c0_7] : memref<27x9x128xbf16, #tpu.memory_space<vmem>>, vector<1x9x128xbf16>
    %10 = vector.shape_cast %9 : vector<1x9x128xbf16> to vector<9x128xbf16>
    %c0_8 = arith.constant 0 : index
    %c0_9 = arith.constant 0 : index
    %11 = vector.load %arg8[%c0_8, %c0_9] : memref<24x128xf32, #tpu.memory_space<vmem>>, vector<24x128xf32>
    %cst = arith.constant dense<0.000000e+00> : vector<24x128xf32>
    %12 = tpu.matmul %4, %10, %cst {dimension_numbers = #tpu.dot_dimension_numbers<[1], [0], [0], [1], [0, 0, 1, 1], [], []>} : vector<24x9xbf16>, vector<9x128xbf16>, vector<24x128xf32> -> vector<24x128xf32>
    %13 = arith.addf %11, %12 : vector<24x128xf32>
    %c0_10 = arith.constant 0 : index
    %c0_11 = arith.constant 0 : index
    %14 = vector.load %arg8[%c0_10, %c0_11] : memref<24x128xf32, #tpu.memory_space<vmem>>, vector<24x128xf32>
    tpu.vector_store %arg8[%c0_10, %c0_11], %13 {strides = array<i32>} : memref<24x128xf32, #tpu.memory_space<vmem>>, vector<24x128xf32>,
    %c0_12 = arith.constant 0 : index
    %c0_13 = arith.constant 0 : index
    %c1 = arith.constant 1 : index
    %c0_14 = arith.constant 0 : index
    %15 = vector.load %arg3[%c0_12, %c0_13, %c1, %c0_14] : memref<1x1x42x9xbf16, #tpu.memory_space<vmem>>, vector<1x1x24x9xbf16>
    %16 = vector.shape_cast %15 : vector<1x1x24x9xbf16> to vector<24x9xbf16>
    %c9_i32_15 = arith.constant 9 : i32
    %17 = arith.muli %arg2, %c9_i32_15 : i32
    %c0_i32_16 = arith.constant 0 : i32
    %18 = arith.addi %17, %c0_i32_16 : i32
    %c1_i32 = arith.constant 1 : i32
    %19 = arith.addi %18, %c1_i32 : i32
    %20 = arith.index_cast %19 : i32 to index
    %c0_17 = arith.constant 0 : index
    %c0_18 = arith.constant 0 : index
    %21 = vector.load %arg4[%20, %c0_17, %c0_18] : memref<27x9x128xbf16, #tpu.memory_space<vmem>>, vector<1x9x128xbf16>
    %22 = vector.shape_cast %21 : vector<1x9x128xbf16> to vector<9x128xbf16>
    %c0_19 = arith.constant 0 : index
    %c0_20 = arith.constant 0 : index
    %23 = vector.load %arg8[%c0_19, %c0_20] : memref<24x128xf32, #tpu.memory_space<vmem>>, vector<24x128xf32>
    %cst_21 = arith.constant dense<0.000000e+00> : vector<24x128xf32>
    %24 = tpu.matmul %16, %22, %cst_21 {dimension_numbers = #tpu.dot_dimension_numbers<[1], [0], [0], [1], [0, 0, 1, 1], [], []>} : vector<24x9xbf16>, vector<9x128xbf16>, vector<24x128xf32> -> vector<24x128xf32>
    %25 = arith.addf %23, %24 : vector<24x128xf32>
    %c0_22 = arith.constant 0 : index
    %c0_23 = arith.constant 0 : index
    %26 = vector.load %arg8[%c0_22, %c0_23] : memref<24x128xf32, #tpu.memory_space<vmem>>, vector<24x128xf32>
    tpu.vector_store %arg8[%c0_22, %c0_23], %25 {strides = array<i32>} : memref<24x128xf32, #tpu.memory_space<vmem>>, vector<24x128xf32>,
    %c0_24 = arith.constant 0 : index
    %c0_25 = arith.constant 0 : index
    %c2 = arith.constant 2 : index
    %c0_26 = arith.constant 0 : index
    %27 = vector.load %arg3[%c0_24, %c0_25, %c2, %c0_26] : memref<1x1x42x9xbf16, #tpu.memory_space<vmem>>, vector<1x1x24x9xbf16>
    %28 = vector.shape_cast %27 : vector<1x1x24x9xbf16> to vector<24x9xbf16>
    %c9_i32_27 = arith.constant 9 : i32
    %29 = arith.muli %arg2, %c9_i32_27 : i32
    %c0_i32_28 = arith.constant 0 : i32
    %30 = arith.addi %29, %c0_i32_28 : i32
    %c2_i32 = arith.constant 2 : i32
    %31 = arith.addi %30, %c2_i32 : i32
    %32 = arith.index_cast %31 : i32 to index
    %c0_29 = arith.constant 0 : index
    %c0_30 = arith.constant 0 : index
    %33 = vector.load %arg4[%32, %c0_29, %c0_30] : memref<27x9x128xbf16, #tpu.memory_space<vmem>>, vector<1x9x128xbf16>
    %34 = vector.shape_cast %33 : vector<1x9x128xbf16> to vector<9x128xbf16>
    %c0_31 = arith.constant 0 : index
    %c0_32 = arith.constant 0 : index
    %35 = vector.load %arg8[%c0_31, %c0_32] : memref<24x128xf32, #tpu.memory_space<vmem>>, vector<24x128xf32>
    %cst_33 = arith.constant dense<0.000000e+00> : vector<24x128xf32>
    %36 = tpu.matmul %28, %34, %cst_33 {dimension_numbers = #tpu.dot_dimension_numbers<[1], [0], [0], [1], [0, 0, 1, 1], [], []>} : vector<24x9xbf16>, vector<9x128xbf16>, vector<24x128xf32> -> vector<24x128xf32>
    %37 = arith.addf %35, %36 : vector<24x128xf32>
    %c0_34 = arith.constant 0 : index
    %c0_35 = arith.constant 0 : index
    %38 = vector.load %arg8[%c0_34, %c0_35] : memref<24x128xf32, #tpu.memory_space<vmem>>, vector<24x128xf32>
    tpu.vector_store %arg8[%c0_34, %c0_35], %37 {strides = array<i32>} : memref<24x128xf32, #tpu.memory_space<vmem>>, vector<24x128xf32>,
    %c0_36 = arith.constant 0 : index
    %c0_37 = arith.constant 0 : index
    %c6 = arith.constant 6 : index
    %c0_38 = arith.constant 0 : index
    %39 = vector.load %arg3[%c0_36, %c0_37, %c6, %c0_38] : memref<1x1x42x9xbf16, #tpu.memory_space<vmem>>, vector<1x1x24x9xbf16>
    %40 = vector.shape_cast %39 : vector<1x1x24x9xbf16> to vector<24x9xbf16>
    %c9_i32_39 = arith.constant 9 : i32
    %41 = arith.muli %arg2, %c9_i32_39 : i32
    %c3_i32 = arith.constant 3 : i32
    %42 = arith.addi %41, %c3_i32 : i32
    %c0_i32_40 = arith.constant 0 : i32
    %43 = arith.addi %42, %c0_i32_40 : i32
    %44 = arith.index_cast %43 : i32 to index
    %c0_41 = arith.constant 0 : index
    %c0_42 = arith.constant 0 : index
    %45 = vector.load %arg4[%44, %c0_41, %c0_42] : memref<27x9x128xbf16, #tpu.memory_space<vmem>>, vector<1x9x128xbf16>
    %46 = vector.shape_cast %45 : vector<1x9x128xbf16> to vector<9x128xbf16>
    %c0_43 = arith.constant 0 : index
    %c0_44 = arith.constant 0 : index
    %47 = vector.load %arg8[%c0_43, %c0_44] : memref<24x128xf32, #tpu.memory_space<vmem>>, vector<24x128xf32>
    %cst_45 = arith.constant dense<0.000000e+00> : vector<24x128xf32>
    %48 = tpu.matmul %40, %46, %cst_45 {dimension_numbers = #tpu.dot_dimension_numbers<[1], [0], [0], [1], [0, 0, 1, 1], [], []>} : vector<24x9xbf16>, vector<9x128xbf16>, vector<24x128xf32> -> vector<24x128xf32>
    %49 = arith.addf %47, %48 : vector<24x128xf32>
    %c0_46 = arith.constant 0 : index
    %c0_47 = arith.constant 0 : index
    %50 = vector.load %arg8[%c0_46, %c0_47] : memref<24x128xf32, #tpu.memory_space<vmem>>, vector<24x128xf32>
    tpu.vector_store %arg8[%c0_46, %c0_47], %49 {strides = array<i32>} : memref<24x128xf32, #tpu.memory_space<vmem>>, vector<24x128xf32>,
    %c0_48 = arith.constant 0 : index
    %c0_49 = arith.constant 0 : index
    %c7 = arith.constant 7 : index
    %c0_50 = arith.constant 0 : index
    %51 = vector.load %arg3[%c0_48, %c0_49, %c7, %c0_50] : memref<1x1x42x9xbf16, #tpu.memory_space<vmem>>, vector<1x1x24x9xbf16>
    %52 = vector.shape_cast %51 : vector<1x1x24x9xbf16> to vector<24x9xbf16>
    %c9_i32_51 = arith.constant 9 : i32
    %53 = arith.muli %arg2, %c9_i32_51 : i32
    %c3_i32_52 = arith.constant 3 : i32
    %54 = arith.addi %53, %c3_i32_52 : i32
    %c1_i32_53 = arith.constant 1 : i32
    %55 = arith.addi %54, %c1_i32_53 : i32
    %56 = arith.index_cast %55 : i32 to index
    %c0_54 = arith.constant 0 : index
    %c0_55 = arith.constant 0 : index
    %57 = vector.load %arg4[%56, %c0_54, %c0_55] : memref<27x9x128xbf16, #tpu.memory_space<vmem>>, vector<1x9x128xbf16>
    %58 = vector.shape_cast %57 : vector<1x9x128xbf16> to vector<9x128xbf16>
    %c0_56 = arith.constant 0 : index
    %c0_57 = arith.constant 0 : index
    %59 = vector.load %arg8[%c0_56, %c0_57] : memref<24x128xf32, #tpu.memory_space<vmem>>, vector<24x128xf32>
    %cst_58 = arith.constant dense<0.000000e+00> : vector<24x128xf32>
    %60 = tpu.matmul %52, %58, %cst_58 {dimension_numbers = #tpu.dot_dimension_numbers<[1], [0], [0], [1], [0, 0, 1, 1], [], []>} : vector<24x9xbf16>, vector<9x128xbf16>, vector<24x128xf32> -> vector<24x128xf32>
    %61 = arith.addf %59, %60 : vector<24x128xf32>
    %c0_59 = arith.constant 0 : index
    %c0_60 = arith.constant 0 : index
    %62 = vector.load %arg8[%c0_59, %c0_60] : memref<24x128xf32, #tpu.memory_space<vmem>>, vector<24x128xf32>
    tpu.vector_store %arg8[%c0_59, %c0_60], %61 {strides = array<i32>} : memref<24x128xf32, #tpu.memory_space<vmem>>, vector<24x128xf32>,
    %c0_61 = arith.constant 0 : index
    %c0_62 = arith.constant 0 : index
    %c8 = arith.constant 8 : index
    %c0_63 = arith.constant 0 : index
    %63 = vector.load %arg3[%c0_61, %c0_62, %c8, %c0_63] : memref<1x1x42x9xbf16, #tpu.memory_space<vmem>>, vector<1x1x24x9xbf16>
    %64 = vector.shape_cast %63 : vector<1x1x24x9xbf16> to vector<24x9xbf16>
    %c9_i32_64 = arith.constant 9 : i32
    %65 = arith.muli %arg2, %c9_i32_64 : i32
    %c3_i32_65 = arith.constant 3 : i32
    %66 = arith.addi %65, %c3_i32_65 : i32
    %c2_i32_66 = arith.constant 2 : i32
    %67 = arith.addi %66, %c2_i32_66 : i32
    %68 = arith.index_cast %67 : i32 to index
    %c0_67 = arith.constant 0 : index
    %c0_68 = arith.constant 0 : index
    %69 = vector.load %arg4[%68, %c0_67, %c0_68] : memref<27x9x128xbf16, #tpu.memory_space<vmem>>, vector<1x9x128xbf16>
    %70 = vector.shape_cast %69 : vector<1x9x128xbf16> to vector<9x128xbf16>
    %c0_69 = arith.constant 0 : index
    %c0_70 = arith.constant 0 : index
    %71 = vector.load %arg8[%c0_69, %c0_70] : memref<24x128xf32, #tpu.memory_space<vmem>>, vector<24x128xf32>
    %cst_71 = arith.constant dense<0.000000e+00> : vector<24x128xf32>
    %72 = tpu.matmul %64, %70, %cst_71 {dimension_numbers = #tpu.dot_dimension_numbers<[1], [0], [0], [1], [0, 0, 1, 1], [], []>} : vector<24x9xbf16>, vector<9x128xbf16>, vector<24x128xf32> -> vector<24x128xf32>
    %73 = arith.addf %71, %72 : vector<24x128xf32>
    %c0_72 = arith.constant 0 : index
    %c0_73 = arith.constant 0 : index
    %74 = vector.load %arg8[%c0_72, %c0_73] : memref<24x128xf32, #tpu.memory_space<vmem>>, vector<24x128xf32>
    tpu.vector_store %arg8[%c0_72, %c0_73], %73 {strides = array<i32>} : memref<24x128xf32, #tpu.memory_space<vmem>>, vector<24x128xf32>,
    %c0_74 = arith.constant 0 : index
    %c0_75 = arith.constant 0 : index
    %c12 = arith.constant 12 : index
    %c0_76 = arith.constant 0 : index
    %75 = vector.load %arg3[%c0_74, %c0_75, %c12, %c0_76] : memref<1x1x42x9xbf16, #tpu.memory_space<vmem>>, vector<1x1x24x9xbf16>
    %76 = vector.shape_cast %75 : vector<1x1x24x9xbf16> to vector<24x9xbf16>
    %c9_i32_77 = arith.constant 9 : i32
    %77 = arith.muli %arg2, %c9_i32_77 : i32
    %c6_i32 = arith.constant 6 : i32
    %78 = arith.addi %77, %c6_i32 : i32
    %c0_i32_78 = arith.constant 0 : i32
    %79 = arith.addi %78, %c0_i32_78 : i32
    %80 = arith.index_cast %79 : i32 to index
    %c0_79 = arith.constant 0 : index
    %c0_80 = arith.constant 0 : index
    %81 = vector.load %arg4[%80, %c0_79, %c0_80] : memref<27x9x128xbf16, #tpu.memory_space<vmem>>, vector<1x9x128xbf16>
    %82 = vector.shape_cast %81 : vector<1x9x128xbf16> to vector<9x128xbf16>
    %c0_81 = arith.constant 0 : index
    %c0_82 = arith.constant 0 : index
    %83 = vector.load %arg8[%c0_81, %c0_82] : memref<24x128xf32, #tpu.memory_space<vmem>>, vector<24x128xf32>
    %cst_83 = arith.constant dense<0.000000e+00> : vector<24x128xf32>
    %84 = tpu.matmul %76, %82, %cst_83 {dimension_numbers = #tpu.dot_dimension_numbers<[1], [0], [0], [1], [0, 0, 1, 1], [], []>} : vector<24x9xbf16>, vector<9x128xbf16>, vector<24x128xf32> -> vector<24x128xf32>
    %85 = arith.addf %83, %84 : vector<24x128xf32>
    %c0_84 = arith.constant 0 : index
    %c0_85 = arith.constant 0 : index
    %86 = vector.load %arg8[%c0_84, %c0_85] : memref<24x128xf32, #tpu.memory_space<vmem>>, vector<24x128xf32>
    tpu.vector_store %arg8[%c0_84, %c0_85], %85 {strides = array<i32>} : memref<24x128xf32, #tpu.memory_space<vmem>>, vector<24x128xf32>,
    %c0_86 = arith.constant 0 : index
    %c0_87 = arith.constant 0 : index
    %c13 = arith.constant 13 : index
    %c0_88 = arith.constant 0 : index
    %87 = vector.load %arg3[%c0_86, %c0_87, %c13, %c0_88] : memref<1x1x42x9xbf16, #tpu.memory_space<vmem>>, vector<1x1x24x9xbf16>
    %88 = vector.shape_cast %87 : vector<1x1x24x9xbf16> to vector<24x9xbf16>
    %c9_i32_89 = arith.constant 9 : i32
    %89 = arith.muli %arg2, %c9_i32_89 : i32
    %c6_i32_90 = arith.constant 6 : i32
    %90 = arith.addi %89, %c6_i32_90 : i32
    %c1_i32_91 = arith.constant 1 : i32
    %91 = arith.addi %90, %c1_i32_91 : i32
    %92 = arith.index_cast %91 : i32 to index
    %c0_92 = arith.constant 0 : index
    %c0_93 = arith.constant 0 : index
    %93 = vector.load %arg4[%92, %c0_92, %c0_93] : memref<27x9x128xbf16, #tpu.memory_space<vmem>>, vector<1x9x128xbf16>
    %94 = vector.shape_cast %93 : vector<1x9x128xbf16> to vector<9x128xbf16>
    %c0_94 = arith.constant 0 : index
    %c0_95 = arith.constant 0 : index
    %95 = vector.load %arg8[%c0_94, %c0_95] : memref<24x128xf32, #tpu.memory_space<vmem>>, vector<24x128xf32>
    %cst_96 = arith.constant dense<0.000000e+00> : vector<24x128xf32>
    %96 = tpu.matmul %88, %94, %cst_96 {dimension_numbers = #tpu.dot_dimension_numbers<[1], [0], [0], [1], [0, 0, 1, 1], [], []>} : vector<24x9xbf16>, vector<9x128xbf16>, vector<24x128xf32> -> vector<24x128xf32>
    %97 = arith.addf %95, %96 : vector<24x128xf32>
    %c0_97 = arith.constant 0 : index
    %c0_98 = arith.constant 0 : index
    %98 = vector.load %arg8[%c0_97, %c0_98] : memref<24x128xf32, #tpu.memory_space<vmem>>, vector<24x128xf32>
    tpu.vector_store %arg8[%c0_97, %c0_98], %97 {strides = array<i32>} : memref<24x128xf32, #tpu.memory_space<vmem>>, vector<24x128xf32>,
    %c0_99 = arith.constant 0 : index
    %c0_100 = arith.constant 0 : index
    %c14 = arith.constant 14 : index
    %c0_101 = arith.constant 0 : index
    %99 = vector.load %arg3[%c0_99, %c0_100, %c14, %c0_101] : memref<1x1x42x9xbf16, #tpu.memory_space<vmem>>, vector<1x1x24x9xbf16>
    %100 = vector.shape_cast %99 : vector<1x1x24x9xbf16> to vector<24x9xbf16>
    %c9_i32_102 = arith.constant 9 : i32
    %101 = arith.muli %arg2, %c9_i32_102 : i32
    %c6_i32_103 = arith.constant 6 : i32
    %102 = arith.addi %101, %c6_i32_103 : i32
    %c2_i32_104 = arith.constant 2 : i32
    %103 = arith.addi %102, %c2_i32_104 : i32
    %104 = arith.index_cast %103 : i32 to index
    %c0_105 = arith.constant 0 : index
    %c0_106 = arith.constant 0 : index
    %105 = vector.load %arg4[%104, %c0_105, %c0_106] : memref<27x9x128xbf16, #tpu.memory_space<vmem>>, vector<1x9x128xbf16>
    %106 = vector.shape_cast %105 : vector<1x9x128xbf16> to vector<9x128xbf16>
    %c0_107 = arith.constant 0 : index
    %c0_108 = arith.constant 0 : index
    %107 = vector.load %arg8[%c0_107, %c0_108] : memref<24x128xf32, #tpu.memory_space<vmem>>, vector<24x128xf32>
    %cst_109 = arith.constant dense<0.000000e+00> : vector<24x128xf32>
    %108 = tpu.matmul %100, %106, %cst_109 {dimension_numbers = #tpu.dot_dimension_numbers<[1], [0], [0], [1], [0, 0, 1, 1], [], []>} : vector<24x9xbf16>, vector<9x128xbf16>, vector<24x128xf32> -> vector<24x128xf32>
    %109 = arith.addf %107, %108 : vector<24x128xf32>
    %c0_110 = arith.constant 0 : index
    %c0_111 = arith.constant 0 : index
    %110 = vector.load %arg8[%c0_110, %c0_111] : memref<24x128xf32, #tpu.memory_space<vmem>>, vector<24x128xf32>
    tpu.vector_store %arg8[%c0_110, %c0_111], %109 {strides = array<i32>} : memref<24x128xf32, #tpu.memory_space<vmem>>, vector<24x128xf32>,
    %c2_i32_112 = arith.constant 2 : i32
    %111 = arith.cmpi eq, %arg2, %c2_i32_112 : i32
    %112 = arith.extui %111 : i1 to i32
    %c0_i32_113 = arith.constant 0 : i32
    %113 = arith.cmpi ne, %112, %c0_i32_113 : i32
    scf.if %113 {
      %c0_114 = arith.constant 0 : index
      %c0_115 = arith.constant 0 : index
      %114 = vector.load %arg8[%c0_114, %c0_115] : memref<24x128xf32, #tpu.memory_space<vmem>>, vector<24x128xf32>
      %c0_116 = arith.constant 0 : index
      %c0_117 = arith.constant 0 : index
      %115 = vector.load %arg5[%c0_116, %c0_117] : memref<1x128xf32, #tpu.memory_space<vmem>>, vector<1x128xf32>
      %116 = vector.broadcast %115 : vector<1x128xf32> to vector<24x128xf32>
      %117 = arith.mulf %114, %116 : vector<24x128xf32>
      %c0_118 = arith.constant 0 : index
      %c0_119 = arith.constant 0 : index
      %118 = vector.load %arg6[%c0_118, %c0_119] : memref<1x128xf32, #tpu.memory_space<vmem>>, vector<1x128xf32>
      %119 = vector.broadcast %118 : vector<1x128xf32> to vector<24x128xf32>
      %120 = arith.addf %117, %119 : vector<24x128xf32>
      %cst_120 = arith.constant 0.000000e+00 : f32
      %121 = vector.broadcast %cst_120 : f32 to vector<24x128xf32>
      %122 = arith.cmpf oge, %120, %121 : vector<24x128xf32>
      %cst_121 = arith.constant 2.000000e-01 : f32
      %123 = vector.broadcast %cst_121 : f32 to vector<24x128xf32>
      %124 = arith.mulf %123, %120 : vector<24x128xf32>
      %125 = arith.select %122, %120, %124 : vector<24x128xi1>, vector<24x128xf32>
      %126 = arith.truncf %125 : vector<24x128xf32> to vector<24x128xbf16>
      %c0_122 = arith.constant 0 : index
      %c0_123 = arith.constant 0 : index
      %c0_124 = arith.constant 0 : index
      %c0_125 = arith.constant 0 : index
      %127 = vector.load %arg7[%c0_122, %c0_123, %c0_124, %c0_125] : memref<1x1x24x128xbf16, #tpu.memory_space<vmem>>, vector<1x1x24x128xbf16>
      %128 = vector.shape_cast %127 : vector<1x1x24x128xbf16> to vector<24x128xbf16>
      %129 = vector.shape_cast %126 : vector<24x128xbf16> to vector<1x1x24x128xbf16>
      tpu.vector_store %arg7[%c0_122, %c0_123, %c0_124, %c0_125], %129 {strides = array<i32>} : memref<1x1x24x128xbf16, #tpu.memory_space<vmem>>, vector<1x1x24x128xbf16>,
    } else {
    }
    return
  }
  func.func @transform_0(%arg0: i32, %arg1: i32, %arg2: i32) -> (i32, i32, i32, i32) {
    %0 = arith.addi %arg1, %arg2 : i32
    %c0_i32 = arith.constant 0 : i32
    %c0_i32_0 = arith.constant 0 : i32
    %c0_i32_1 = arith.constant 0 : i32
    return %arg0, %0, %c0_i32, %c0_i32_0 : i32, i32, i32, i32
  }
  func.func @transform_1(%arg0: i32, %arg1: i32, %arg2: i32) -> (i32, i32, i32) {
    %c0_i32 = arith.constant 0 : i32
    %c0_i32_0 = arith.constant 0 : i32
    %c0_i32_1 = arith.constant 0 : i32
    %c0_i32_2 = arith.constant 0 : i32
    return %c0_i32, %c0_i32_0, %c0_i32_1 : i32, i32, i32
  }
  func.func @transform_2(%arg0: i32, %arg1: i32, %arg2: i32) -> (i32, i32) {
    %c0_i32 = arith.constant 0 : i32
    %c0_i32_0 = arith.constant 0 : i32
    %c0_i32_1 = arith.constant 0 : i32
    return %c0_i32, %c0_i32_0 : i32, i32
  }
  func.func @transform_3(%arg0: i32, %arg1: i32, %arg2: i32) -> (i32, i32) {
    %c0_i32 = arith.constant 0 : i32
    %c0_i32_0 = arith.constant 0 : i32
    %c0_i32_1 = arith.constant 0 : i32
    return %c0_i32, %c0_i32_0 : i32, i32
  }
  func.func @transform_4(%arg0: i32, %arg1: i32, %arg2: i32) -> (i32, i32, i32, i32) {
    %c0_i32 = arith.constant 0 : i32
    %c0_i32_0 = arith.constant 0 : i32
    %c0_i32_1 = arith.constant 0 : i32
    return %arg0, %arg1, %c0_i32, %c0_i32_0 : i32, i32, i32, i32
  }
}

module attributes {stable_mosaic.version = 11 : i64} {
  func.func @_deconv_plane_kernel(%arg0: i32, %arg1: i32, %arg2: i32, %arg3: memref<1x1x110x16xbf16, #tpu.memory_space<vmem>>, %arg4: memref<27x16x64xbf16, #tpu.memory_space<vmem>>, %arg5: memref<1x64xf32, #tpu.memory_space<vmem>>, %arg6: memref<1x64xf32, #tpu.memory_space<vmem>>, %arg7: memref<1x1x80x64xbf16, #tpu.memory_space<vmem>>, %arg8: memref<80x64xf32, #tpu.memory_space<vmem>>) attributes {dimension_semantics = [#tpu.dimension_semantics<parallel>, #tpu.dimension_semantics<parallel>, #tpu.dimension_semantics<arbitrary>], iteration_bounds = array<i64: 2, 8, 3>, scalar_prefetch = 0 : i64, scratch_operands = 1 : i64, tpu.core_type = #tpu.core_type<tc>, window_params = [{transform_indices = @transform_0, window_bounds = array<i64: 1, 1, 110, 16>}, {pipeline_mode = #tpu.pipeline_mode<synchronous>, transform_indices = @transform_1, window_bounds = array<i64: 27, 16, 64>}, {pipeline_mode = #tpu.pipeline_mode<synchronous>, transform_indices = @transform_2, window_bounds = array<i64: 1, 64>}, {pipeline_mode = #tpu.pipeline_mode<synchronous>, transform_indices = @transform_3, window_bounds = array<i64: 1, 64>}, {transform_indices = @transform_4, window_bounds = array<i64: 1, 1, 80, 64>}]} {
    %c0_i32 = arith.constant 0 : i32
    %0 = arith.cmpi eq, %arg2, %c0_i32 : i32
    %1 = arith.extui %0 : i1 to i32
    %c0_i32_0 = arith.constant 0 : i32
    %2 = arith.cmpi ne, %1, %c0_i32_0 : i32
    scf.if %2 {
      %cst_114 = arith.constant 0.000000e+00 : f32
      %114 = vector.broadcast %cst_114 : f32 to vector<80x64xf32>
      %c0_115 = arith.constant 0 : index
      %c0_116 = arith.constant 0 : index
      %115 = vector.load %arg8[%c0_115, %c0_116] : memref<80x64xf32, #tpu.memory_space<vmem>>, vector<80x64xf32>
      tpu.vector_store %arg8[%c0_115, %c0_116], %114 {strides = array<i32>} : memref<80x64xf32, #tpu.memory_space<vmem>>, vector<80x64xf32>,
    } else {
    }
    %c0 = arith.constant 0 : index
    %c0_1 = arith.constant 0 : index
    %c0_2 = arith.constant 0 : index
    %c0_3 = arith.constant 0 : index
    %3 = vector.load %arg3[%c0, %c0_1, %c0_2, %c0_3] : memref<1x1x110x16xbf16, #tpu.memory_space<vmem>>, vector<1x1x80x16xbf16>
    %4 = vector.shape_cast %3 : vector<1x1x80x16xbf16> to vector<80x16xbf16>
    %c9_i32 = arith.constant 9 : i32
    %5 = arith.muli %arg2, %c9_i32 : i32
    %c0_i32_4 = arith.constant 0 : i32
    %6 = arith.addi %5, %c0_i32_4 : i32
    %c0_i32_5 = arith.constant 0 : i32
    %7 = arith.addi %6, %c0_i32_5 : i32
    %8 = arith.index_cast %7 : i32 to index
    %c0_6 = arith.constant 0 : index
    %c0_7 = arith.constant 0 : index
    %9 = vector.load %arg4[%8, %c0_6, %c0_7] : memref<27x16x64xbf16, #tpu.memory_space<vmem>>, vector<1x16x64xbf16>
    %10 = vector.shape_cast %9 : vector<1x16x64xbf16> to vector<16x64xbf16>
    %c0_8 = arith.constant 0 : index
    %c0_9 = arith.constant 0 : index
    %11 = vector.load %arg8[%c0_8, %c0_9] : memref<80x64xf32, #tpu.memory_space<vmem>>, vector<80x64xf32>
    %cst = arith.constant dense<0.000000e+00> : vector<80x64xf32>
    %12 = tpu.matmul %4, %10, %cst {dimension_numbers = #tpu.dot_dimension_numbers<[1], [0], [0], [1], [0, 0, 1, 1], [], []>} : vector<80x16xbf16>, vector<16x64xbf16>, vector<80x64xf32> -> vector<80x64xf32>
    %13 = arith.addf %11, %12 : vector<80x64xf32>
    %c0_10 = arith.constant 0 : index
    %c0_11 = arith.constant 0 : index
    %14 = vector.load %arg8[%c0_10, %c0_11] : memref<80x64xf32, #tpu.memory_space<vmem>>, vector<80x64xf32>
    tpu.vector_store %arg8[%c0_10, %c0_11], %13 {strides = array<i32>} : memref<80x64xf32, #tpu.memory_space<vmem>>, vector<80x64xf32>,
    %c0_12 = arith.constant 0 : index
    %c0_13 = arith.constant 0 : index
    %c1 = arith.constant 1 : index
    %c0_14 = arith.constant 0 : index
    %15 = vector.load %arg3[%c0_12, %c0_13, %c1, %c0_14] : memref<1x1x110x16xbf16, #tpu.memory_space<vmem>>, vector<1x1x80x16xbf16>
    %16 = vector.shape_cast %15 : vector<1x1x80x16xbf16> to vector<80x16xbf16>
    %c9_i32_15 = arith.constant 9 : i32
    %17 = arith.muli %arg2, %c9_i32_15 : i32
    %c0_i32_16 = arith.constant 0 : i32
    %18 = arith.addi %17, %c0_i32_16 : i32
    %c1_i32 = arith.constant 1 : i32
    %19 = arith.addi %18, %c1_i32 : i32
    %20 = arith.index_cast %19 : i32 to index
    %c0_17 = arith.constant 0 : index
    %c0_18 = arith.constant 0 : index
    %21 = vector.load %arg4[%20, %c0_17, %c0_18] : memref<27x16x64xbf16, #tpu.memory_space<vmem>>, vector<1x16x64xbf16>
    %22 = vector.shape_cast %21 : vector<1x16x64xbf16> to vector<16x64xbf16>
    %c0_19 = arith.constant 0 : index
    %c0_20 = arith.constant 0 : index
    %23 = vector.load %arg8[%c0_19, %c0_20] : memref<80x64xf32, #tpu.memory_space<vmem>>, vector<80x64xf32>
    %cst_21 = arith.constant dense<0.000000e+00> : vector<80x64xf32>
    %24 = tpu.matmul %16, %22, %cst_21 {dimension_numbers = #tpu.dot_dimension_numbers<[1], [0], [0], [1], [0, 0, 1, 1], [], []>} : vector<80x16xbf16>, vector<16x64xbf16>, vector<80x64xf32> -> vector<80x64xf32>
    %25 = arith.addf %23, %24 : vector<80x64xf32>
    %c0_22 = arith.constant 0 : index
    %c0_23 = arith.constant 0 : index
    %26 = vector.load %arg8[%c0_22, %c0_23] : memref<80x64xf32, #tpu.memory_space<vmem>>, vector<80x64xf32>
    tpu.vector_store %arg8[%c0_22, %c0_23], %25 {strides = array<i32>} : memref<80x64xf32, #tpu.memory_space<vmem>>, vector<80x64xf32>,
    %c0_24 = arith.constant 0 : index
    %c0_25 = arith.constant 0 : index
    %c2 = arith.constant 2 : index
    %c0_26 = arith.constant 0 : index
    %27 = vector.load %arg3[%c0_24, %c0_25, %c2, %c0_26] : memref<1x1x110x16xbf16, #tpu.memory_space<vmem>>, vector<1x1x80x16xbf16>
    %28 = vector.shape_cast %27 : vector<1x1x80x16xbf16> to vector<80x16xbf16>
    %c9_i32_27 = arith.constant 9 : i32
    %29 = arith.muli %arg2, %c9_i32_27 : i32
    %c0_i32_28 = arith.constant 0 : i32
    %30 = arith.addi %29, %c0_i32_28 : i32
    %c2_i32 = arith.constant 2 : i32
    %31 = arith.addi %30, %c2_i32 : i32
    %32 = arith.index_cast %31 : i32 to index
    %c0_29 = arith.constant 0 : index
    %c0_30 = arith.constant 0 : index
    %33 = vector.load %arg4[%32, %c0_29, %c0_30] : memref<27x16x64xbf16, #tpu.memory_space<vmem>>, vector<1x16x64xbf16>
    %34 = vector.shape_cast %33 : vector<1x16x64xbf16> to vector<16x64xbf16>
    %c0_31 = arith.constant 0 : index
    %c0_32 = arith.constant 0 : index
    %35 = vector.load %arg8[%c0_31, %c0_32] : memref<80x64xf32, #tpu.memory_space<vmem>>, vector<80x64xf32>
    %cst_33 = arith.constant dense<0.000000e+00> : vector<80x64xf32>
    %36 = tpu.matmul %28, %34, %cst_33 {dimension_numbers = #tpu.dot_dimension_numbers<[1], [0], [0], [1], [0, 0, 1, 1], [], []>} : vector<80x16xbf16>, vector<16x64xbf16>, vector<80x64xf32> -> vector<80x64xf32>
    %37 = arith.addf %35, %36 : vector<80x64xf32>
    %c0_34 = arith.constant 0 : index
    %c0_35 = arith.constant 0 : index
    %38 = vector.load %arg8[%c0_34, %c0_35] : memref<80x64xf32, #tpu.memory_space<vmem>>, vector<80x64xf32>
    tpu.vector_store %arg8[%c0_34, %c0_35], %37 {strides = array<i32>} : memref<80x64xf32, #tpu.memory_space<vmem>>, vector<80x64xf32>,
    %c0_36 = arith.constant 0 : index
    %c0_37 = arith.constant 0 : index
    %c10 = arith.constant 10 : index
    %c0_38 = arith.constant 0 : index
    %39 = vector.load %arg3[%c0_36, %c0_37, %c10, %c0_38] : memref<1x1x110x16xbf16, #tpu.memory_space<vmem>>, vector<1x1x80x16xbf16>
    %40 = vector.shape_cast %39 : vector<1x1x80x16xbf16> to vector<80x16xbf16>
    %c9_i32_39 = arith.constant 9 : i32
    %41 = arith.muli %arg2, %c9_i32_39 : i32
    %c3_i32 = arith.constant 3 : i32
    %42 = arith.addi %41, %c3_i32 : i32
    %c0_i32_40 = arith.constant 0 : i32
    %43 = arith.addi %42, %c0_i32_40 : i32
    %44 = arith.index_cast %43 : i32 to index
    %c0_41 = arith.constant 0 : index
    %c0_42 = arith.constant 0 : index
    %45 = vector.load %arg4[%44, %c0_41, %c0_42] : memref<27x16x64xbf16, #tpu.memory_space<vmem>>, vector<1x16x64xbf16>
    %46 = vector.shape_cast %45 : vector<1x16x64xbf16> to vector<16x64xbf16>
    %c0_43 = arith.constant 0 : index
    %c0_44 = arith.constant 0 : index
    %47 = vector.load %arg8[%c0_43, %c0_44] : memref<80x64xf32, #tpu.memory_space<vmem>>, vector<80x64xf32>
    %cst_45 = arith.constant dense<0.000000e+00> : vector<80x64xf32>
    %48 = tpu.matmul %40, %46, %cst_45 {dimension_numbers = #tpu.dot_dimension_numbers<[1], [0], [0], [1], [0, 0, 1, 1], [], []>} : vector<80x16xbf16>, vector<16x64xbf16>, vector<80x64xf32> -> vector<80x64xf32>
    %49 = arith.addf %47, %48 : vector<80x64xf32>
    %c0_46 = arith.constant 0 : index
    %c0_47 = arith.constant 0 : index
    %50 = vector.load %arg8[%c0_46, %c0_47] : memref<80x64xf32, #tpu.memory_space<vmem>>, vector<80x64xf32>
    tpu.vector_store %arg8[%c0_46, %c0_47], %49 {strides = array<i32>} : memref<80x64xf32, #tpu.memory_space<vmem>>, vector<80x64xf32>,
    %c0_48 = arith.constant 0 : index
    %c0_49 = arith.constant 0 : index
    %c11 = arith.constant 11 : index
    %c0_50 = arith.constant 0 : index
    %51 = vector.load %arg3[%c0_48, %c0_49, %c11, %c0_50] : memref<1x1x110x16xbf16, #tpu.memory_space<vmem>>, vector<1x1x80x16xbf16>
    %52 = vector.shape_cast %51 : vector<1x1x80x16xbf16> to vector<80x16xbf16>
    %c9_i32_51 = arith.constant 9 : i32
    %53 = arith.muli %arg2, %c9_i32_51 : i32
    %c3_i32_52 = arith.constant 3 : i32
    %54 = arith.addi %53, %c3_i32_52 : i32
    %c1_i32_53 = arith.constant 1 : i32
    %55 = arith.addi %54, %c1_i32_53 : i32
    %56 = arith.index_cast %55 : i32 to index
    %c0_54 = arith.constant 0 : index
    %c0_55 = arith.constant 0 : index
    %57 = vector.load %arg4[%56, %c0_54, %c0_55] : memref<27x16x64xbf16, #tpu.memory_space<vmem>>, vector<1x16x64xbf16>
    %58 = vector.shape_cast %57 : vector<1x16x64xbf16> to vector<16x64xbf16>
    %c0_56 = arith.constant 0 : index
    %c0_57 = arith.constant 0 : index
    %59 = vector.load %arg8[%c0_56, %c0_57] : memref<80x64xf32, #tpu.memory_space<vmem>>, vector<80x64xf32>
    %cst_58 = arith.constant dense<0.000000e+00> : vector<80x64xf32>
    %60 = tpu.matmul %52, %58, %cst_58 {dimension_numbers = #tpu.dot_dimension_numbers<[1], [0], [0], [1], [0, 0, 1, 1], [], []>} : vector<80x16xbf16>, vector<16x64xbf16>, vector<80x64xf32> -> vector<80x64xf32>
    %61 = arith.addf %59, %60 : vector<80x64xf32>
    %c0_59 = arith.constant 0 : index
    %c0_60 = arith.constant 0 : index
    %62 = vector.load %arg8[%c0_59, %c0_60] : memref<80x64xf32, #tpu.memory_space<vmem>>, vector<80x64xf32>
    tpu.vector_store %arg8[%c0_59, %c0_60], %61 {strides = array<i32>} : memref<80x64xf32, #tpu.memory_space<vmem>>, vector<80x64xf32>,
    %c0_61 = arith.constant 0 : index
    %c0_62 = arith.constant 0 : index
    %c12 = arith.constant 12 : index
    %c0_63 = arith.constant 0 : index
    %63 = vector.load %arg3[%c0_61, %c0_62, %c12, %c0_63] : memref<1x1x110x16xbf16, #tpu.memory_space<vmem>>, vector<1x1x80x16xbf16>
    %64 = vector.shape_cast %63 : vector<1x1x80x16xbf16> to vector<80x16xbf16>
    %c9_i32_64 = arith.constant 9 : i32
    %65 = arith.muli %arg2, %c9_i32_64 : i32
    %c3_i32_65 = arith.constant 3 : i32
    %66 = arith.addi %65, %c3_i32_65 : i32
    %c2_i32_66 = arith.constant 2 : i32
    %67 = arith.addi %66, %c2_i32_66 : i32
    %68 = arith.index_cast %67 : i32 to index
    %c0_67 = arith.constant 0 : index
    %c0_68 = arith.constant 0 : index
    %69 = vector.load %arg4[%68, %c0_67, %c0_68] : memref<27x16x64xbf16, #tpu.memory_space<vmem>>, vector<1x16x64xbf16>
    %70 = vector.shape_cast %69 : vector<1x16x64xbf16> to vector<16x64xbf16>
    %c0_69 = arith.constant 0 : index
    %c0_70 = arith.constant 0 : index
    %71 = vector.load %arg8[%c0_69, %c0_70] : memref<80x64xf32, #tpu.memory_space<vmem>>, vector<80x64xf32>
    %cst_71 = arith.constant dense<0.000000e+00> : vector<80x64xf32>
    %72 = tpu.matmul %64, %70, %cst_71 {dimension_numbers = #tpu.dot_dimension_numbers<[1], [0], [0], [1], [0, 0, 1, 1], [], []>} : vector<80x16xbf16>, vector<16x64xbf16>, vector<80x64xf32> -> vector<80x64xf32>
    %73 = arith.addf %71, %72 : vector<80x64xf32>
    %c0_72 = arith.constant 0 : index
    %c0_73 = arith.constant 0 : index
    %74 = vector.load %arg8[%c0_72, %c0_73] : memref<80x64xf32, #tpu.memory_space<vmem>>, vector<80x64xf32>
    tpu.vector_store %arg8[%c0_72, %c0_73], %73 {strides = array<i32>} : memref<80x64xf32, #tpu.memory_space<vmem>>, vector<80x64xf32>,
    %c0_74 = arith.constant 0 : index
    %c0_75 = arith.constant 0 : index
    %c20 = arith.constant 20 : index
    %c0_76 = arith.constant 0 : index
    %75 = vector.load %arg3[%c0_74, %c0_75, %c20, %c0_76] : memref<1x1x110x16xbf16, #tpu.memory_space<vmem>>, vector<1x1x80x16xbf16>
    %76 = vector.shape_cast %75 : vector<1x1x80x16xbf16> to vector<80x16xbf16>
    %c9_i32_77 = arith.constant 9 : i32
    %77 = arith.muli %arg2, %c9_i32_77 : i32
    %c6_i32 = arith.constant 6 : i32
    %78 = arith.addi %77, %c6_i32 : i32
    %c0_i32_78 = arith.constant 0 : i32
    %79 = arith.addi %78, %c0_i32_78 : i32
    %80 = arith.index_cast %79 : i32 to index
    %c0_79 = arith.constant 0 : index
    %c0_80 = arith.constant 0 : index
    %81 = vector.load %arg4[%80, %c0_79, %c0_80] : memref<27x16x64xbf16, #tpu.memory_space<vmem>>, vector<1x16x64xbf16>
    %82 = vector.shape_cast %81 : vector<1x16x64xbf16> to vector<16x64xbf16>
    %c0_81 = arith.constant 0 : index
    %c0_82 = arith.constant 0 : index
    %83 = vector.load %arg8[%c0_81, %c0_82] : memref<80x64xf32, #tpu.memory_space<vmem>>, vector<80x64xf32>
    %cst_83 = arith.constant dense<0.000000e+00> : vector<80x64xf32>
    %84 = tpu.matmul %76, %82, %cst_83 {dimension_numbers = #tpu.dot_dimension_numbers<[1], [0], [0], [1], [0, 0, 1, 1], [], []>} : vector<80x16xbf16>, vector<16x64xbf16>, vector<80x64xf32> -> vector<80x64xf32>
    %85 = arith.addf %83, %84 : vector<80x64xf32>
    %c0_84 = arith.constant 0 : index
    %c0_85 = arith.constant 0 : index
    %86 = vector.load %arg8[%c0_84, %c0_85] : memref<80x64xf32, #tpu.memory_space<vmem>>, vector<80x64xf32>
    tpu.vector_store %arg8[%c0_84, %c0_85], %85 {strides = array<i32>} : memref<80x64xf32, #tpu.memory_space<vmem>>, vector<80x64xf32>,
    %c0_86 = arith.constant 0 : index
    %c0_87 = arith.constant 0 : index
    %c21 = arith.constant 21 : index
    %c0_88 = arith.constant 0 : index
    %87 = vector.load %arg3[%c0_86, %c0_87, %c21, %c0_88] : memref<1x1x110x16xbf16, #tpu.memory_space<vmem>>, vector<1x1x80x16xbf16>
    %88 = vector.shape_cast %87 : vector<1x1x80x16xbf16> to vector<80x16xbf16>
    %c9_i32_89 = arith.constant 9 : i32
    %89 = arith.muli %arg2, %c9_i32_89 : i32
    %c6_i32_90 = arith.constant 6 : i32
    %90 = arith.addi %89, %c6_i32_90 : i32
    %c1_i32_91 = arith.constant 1 : i32
    %91 = arith.addi %90, %c1_i32_91 : i32
    %92 = arith.index_cast %91 : i32 to index
    %c0_92 = arith.constant 0 : index
    %c0_93 = arith.constant 0 : index
    %93 = vector.load %arg4[%92, %c0_92, %c0_93] : memref<27x16x64xbf16, #tpu.memory_space<vmem>>, vector<1x16x64xbf16>
    %94 = vector.shape_cast %93 : vector<1x16x64xbf16> to vector<16x64xbf16>
    %c0_94 = arith.constant 0 : index
    %c0_95 = arith.constant 0 : index
    %95 = vector.load %arg8[%c0_94, %c0_95] : memref<80x64xf32, #tpu.memory_space<vmem>>, vector<80x64xf32>
    %cst_96 = arith.constant dense<0.000000e+00> : vector<80x64xf32>
    %96 = tpu.matmul %88, %94, %cst_96 {dimension_numbers = #tpu.dot_dimension_numbers<[1], [0], [0], [1], [0, 0, 1, 1], [], []>} : vector<80x16xbf16>, vector<16x64xbf16>, vector<80x64xf32> -> vector<80x64xf32>
    %97 = arith.addf %95, %96 : vector<80x64xf32>
    %c0_97 = arith.constant 0 : index
    %c0_98 = arith.constant 0 : index
    %98 = vector.load %arg8[%c0_97, %c0_98] : memref<80x64xf32, #tpu.memory_space<vmem>>, vector<80x64xf32>
    tpu.vector_store %arg8[%c0_97, %c0_98], %97 {strides = array<i32>} : memref<80x64xf32, #tpu.memory_space<vmem>>, vector<80x64xf32>,
    %c0_99 = arith.constant 0 : index
    %c0_100 = arith.constant 0 : index
    %c22 = arith.constant 22 : index
    %c0_101 = arith.constant 0 : index
    %99 = vector.load %arg3[%c0_99, %c0_100, %c22, %c0_101] : memref<1x1x110x16xbf16, #tpu.memory_space<vmem>>, vector<1x1x80x16xbf16>
    %100 = vector.shape_cast %99 : vector<1x1x80x16xbf16> to vector<80x16xbf16>
    %c9_i32_102 = arith.constant 9 : i32
    %101 = arith.muli %arg2, %c9_i32_102 : i32
    %c6_i32_103 = arith.constant 6 : i32
    %102 = arith.addi %101, %c6_i32_103 : i32
    %c2_i32_104 = arith.constant 2 : i32
    %103 = arith.addi %102, %c2_i32_104 : i32
    %104 = arith.index_cast %103 : i32 to index
    %c0_105 = arith.constant 0 : index
    %c0_106 = arith.constant 0 : index
    %105 = vector.load %arg4[%104, %c0_105, %c0_106] : memref<27x16x64xbf16, #tpu.memory_space<vmem>>, vector<1x16x64xbf16>
    %106 = vector.shape_cast %105 : vector<1x16x64xbf16> to vector<16x64xbf16>
    %c0_107 = arith.constant 0 : index
    %c0_108 = arith.constant 0 : index
    %107 = vector.load %arg8[%c0_107, %c0_108] : memref<80x64xf32, #tpu.memory_space<vmem>>, vector<80x64xf32>
    %cst_109 = arith.constant dense<0.000000e+00> : vector<80x64xf32>
    %108 = tpu.matmul %100, %106, %cst_109 {dimension_numbers = #tpu.dot_dimension_numbers<[1], [0], [0], [1], [0, 0, 1, 1], [], []>} : vector<80x16xbf16>, vector<16x64xbf16>, vector<80x64xf32> -> vector<80x64xf32>
    %109 = arith.addf %107, %108 : vector<80x64xf32>
    %c0_110 = arith.constant 0 : index
    %c0_111 = arith.constant 0 : index
    %110 = vector.load %arg8[%c0_110, %c0_111] : memref<80x64xf32, #tpu.memory_space<vmem>>, vector<80x64xf32>
    tpu.vector_store %arg8[%c0_110, %c0_111], %109 {strides = array<i32>} : memref<80x64xf32, #tpu.memory_space<vmem>>, vector<80x64xf32>,
    %c2_i32_112 = arith.constant 2 : i32
    %111 = arith.cmpi eq, %arg2, %c2_i32_112 : i32
    %112 = arith.extui %111 : i1 to i32
    %c0_i32_113 = arith.constant 0 : i32
    %113 = arith.cmpi ne, %112, %c0_i32_113 : i32
    scf.if %113 {
      %c0_114 = arith.constant 0 : index
      %c0_115 = arith.constant 0 : index
      %114 = vector.load %arg8[%c0_114, %c0_115] : memref<80x64xf32, #tpu.memory_space<vmem>>, vector<80x64xf32>
      %c0_116 = arith.constant 0 : index
      %c0_117 = arith.constant 0 : index
      %115 = vector.load %arg5[%c0_116, %c0_117] : memref<1x64xf32, #tpu.memory_space<vmem>>, vector<1x64xf32>
      %116 = vector.broadcast %115 : vector<1x64xf32> to vector<80x64xf32>
      %117 = arith.mulf %114, %116 : vector<80x64xf32>
      %c0_118 = arith.constant 0 : index
      %c0_119 = arith.constant 0 : index
      %118 = vector.load %arg6[%c0_118, %c0_119] : memref<1x64xf32, #tpu.memory_space<vmem>>, vector<1x64xf32>
      %119 = vector.broadcast %118 : vector<1x64xf32> to vector<80x64xf32>
      %120 = arith.addf %117, %119 : vector<80x64xf32>
      %cst_120 = arith.constant 0.000000e+00 : f32
      %121 = vector.broadcast %cst_120 : f32 to vector<80x64xf32>
      %122 = arith.cmpf oge, %120, %121 : vector<80x64xf32>
      %cst_121 = arith.constant 2.000000e-01 : f32
      %123 = vector.broadcast %cst_121 : f32 to vector<80x64xf32>
      %124 = arith.mulf %123, %120 : vector<80x64xf32>
      %125 = arith.select %122, %120, %124 : vector<80x64xi1>, vector<80x64xf32>
      %126 = arith.truncf %125 : vector<80x64xf32> to vector<80x64xbf16>
      %c0_122 = arith.constant 0 : index
      %c0_123 = arith.constant 0 : index
      %c0_124 = arith.constant 0 : index
      %c0_125 = arith.constant 0 : index
      %127 = vector.load %arg7[%c0_122, %c0_123, %c0_124, %c0_125] : memref<1x1x80x64xbf16, #tpu.memory_space<vmem>>, vector<1x1x80x64xbf16>
      %128 = vector.shape_cast %127 : vector<1x1x80x64xbf16> to vector<80x64xbf16>
      %129 = vector.shape_cast %126 : vector<80x64xbf16> to vector<1x1x80x64xbf16>
      tpu.vector_store %arg7[%c0_122, %c0_123, %c0_124, %c0_125], %129 {strides = array<i32>} : memref<1x1x80x64xbf16, #tpu.memory_space<vmem>>, vector<1x1x80x64xbf16>,
    } else {
    }
    return
  }
  func.func @transform_0(%arg0: i32, %arg1: i32, %arg2: i32) -> (i32, i32, i32, i32) {
    %0 = arith.addi %arg1, %arg2 : i32
    %c0_i32 = arith.constant 0 : i32
    %c0_i32_0 = arith.constant 0 : i32
    %c0_i32_1 = arith.constant 0 : i32
    return %arg0, %0, %c0_i32, %c0_i32_0 : i32, i32, i32, i32
  }
  func.func @transform_1(%arg0: i32, %arg1: i32, %arg2: i32) -> (i32, i32, i32) {
    %c0_i32 = arith.constant 0 : i32
    %c0_i32_0 = arith.constant 0 : i32
    %c0_i32_1 = arith.constant 0 : i32
    %c0_i32_2 = arith.constant 0 : i32
    return %c0_i32, %c0_i32_0, %c0_i32_1 : i32, i32, i32
  }
  func.func @transform_2(%arg0: i32, %arg1: i32, %arg2: i32) -> (i32, i32) {
    %c0_i32 = arith.constant 0 : i32
    %c0_i32_0 = arith.constant 0 : i32
    %c0_i32_1 = arith.constant 0 : i32
    return %c0_i32, %c0_i32_0 : i32, i32
  }
  func.func @transform_3(%arg0: i32, %arg1: i32, %arg2: i32) -> (i32, i32) {
    %c0_i32 = arith.constant 0 : i32
    %c0_i32_0 = arith.constant 0 : i32
    %c0_i32_1 = arith.constant 0 : i32
    return %c0_i32, %c0_i32_0 : i32, i32
  }
  func.func @transform_4(%arg0: i32, %arg1: i32, %arg2: i32) -> (i32, i32, i32, i32) {
    %c0_i32 = arith.constant 0 : i32
    %c0_i32_0 = arith.constant 0 : i32
    %c0_i32_1 = arith.constant 0 : i32
    return %arg0, %arg1, %c0_i32, %c0_i32_0 : i32, i32, i32, i32
  }
}

module attributes {stable_mosaic.version = 11 : i64} {
  func.func @_deconv_final_kernel(%arg0: i32, %arg1: i32, %arg2: i32, %arg3: memref<1x1x342x8xbf16, #tpu.memory_space<vmem>>, %arg4: memref<27x8x4xbf16, #tpu.memory_space<vmem>>, %arg5: memref<1x4xf32, #tpu.memory_space<vmem>>, %arg6: memref<1x4xf32, #tpu.memory_space<vmem>>, %arg7: memref<4x1xf32, #tpu.memory_space<vmem>>, %arg8: memref<1x1xf32, #tpu.memory_space<vmem>>, %arg9: memref<1x1x16x18xf32, #tpu.memory_space<vmem>>, %arg10: memref<1x1x16x18xf32, #tpu.memory_space<vmem>>, %arg11: memref<288x4xf32, #tpu.memory_space<vmem>>) attributes {dimension_semantics = [#tpu.dimension_semantics<parallel>, #tpu.dimension_semantics<parallel>, #tpu.dimension_semantics<arbitrary>], iteration_bounds = array<i64: 2, 16, 3>, scalar_prefetch = 0 : i64, scratch_operands = 1 : i64, tpu.core_type = #tpu.core_type<tc>, window_params = [{transform_indices = @transform_0, window_bounds = array<i64: 1, 1, 342, 8>}, {pipeline_mode = #tpu.pipeline_mode<synchronous>, transform_indices = @transform_1, window_bounds = array<i64: 27, 8, 4>}, {pipeline_mode = #tpu.pipeline_mode<synchronous>, transform_indices = @transform_2, window_bounds = array<i64: 1, 4>}, {pipeline_mode = #tpu.pipeline_mode<synchronous>, transform_indices = @transform_3, window_bounds = array<i64: 1, 4>}, {pipeline_mode = #tpu.pipeline_mode<synchronous>, transform_indices = @transform_4, window_bounds = array<i64: 4, 1>}, {pipeline_mode = #tpu.pipeline_mode<synchronous>, transform_indices = @transform_5, window_bounds = array<i64: 1, 1>}, {transform_indices = @transform_6, window_bounds = array<i64: 1, 1, 16, 18>}, {transform_indices = @transform_7, window_bounds = array<i64: 1, 1, 16, 18>}]} {
    %c0_i32 = arith.constant 0 : i32
    %0 = arith.cmpi eq, %arg2, %c0_i32 : i32
    %1 = arith.extui %0 : i1 to i32
    %c0_i32_0 = arith.constant 0 : i32
    %2 = arith.cmpi ne, %1, %c0_i32_0 : i32
    scf.if %2 {
      %cst_114 = arith.constant 0.000000e+00 : f32
      %114 = vector.broadcast %cst_114 : f32 to vector<288x4xf32>
      %c0_115 = arith.constant 0 : index
      %c0_116 = arith.constant 0 : index
      %115 = vector.load %arg11[%c0_115, %c0_116] : memref<288x4xf32, #tpu.memory_space<vmem>>, vector<288x4xf32>
      tpu.vector_store %arg11[%c0_115, %c0_116], %114 {strides = array<i32>} : memref<288x4xf32, #tpu.memory_space<vmem>>, vector<288x4xf32>,
    } else {
    }
    %c0 = arith.constant 0 : index
    %c0_1 = arith.constant 0 : index
    %c0_2 = arith.constant 0 : index
    %c0_3 = arith.constant 0 : index
    %3 = vector.load %arg3[%c0, %c0_1, %c0_2, %c0_3] : memref<1x1x342x8xbf16, #tpu.memory_space<vmem>>, vector<1x1x288x8xbf16>
    %4 = vector.shape_cast %3 : vector<1x1x288x8xbf16> to vector<288x8xbf16>
    %c9_i32 = arith.constant 9 : i32
    %5 = arith.muli %arg2, %c9_i32 : i32
    %c0_i32_4 = arith.constant 0 : i32
    %6 = arith.addi %5, %c0_i32_4 : i32
    %c0_i32_5 = arith.constant 0 : i32
    %7 = arith.addi %6, %c0_i32_5 : i32
    %8 = arith.index_cast %7 : i32 to index
    %c0_6 = arith.constant 0 : index
    %c0_7 = arith.constant 0 : index
    %9 = vector.load %arg4[%8, %c0_6, %c0_7] : memref<27x8x4xbf16, #tpu.memory_space<vmem>>, vector<1x8x4xbf16>
    %10 = vector.shape_cast %9 : vector<1x8x4xbf16> to vector<8x4xbf16>
    %c0_8 = arith.constant 0 : index
    %c0_9 = arith.constant 0 : index
    %11 = vector.load %arg11[%c0_8, %c0_9] : memref<288x4xf32, #tpu.memory_space<vmem>>, vector<288x4xf32>
    %cst = arith.constant dense<0.000000e+00> : vector<288x4xf32>
    %12 = tpu.matmul %4, %10, %cst {dimension_numbers = #tpu.dot_dimension_numbers<[1], [0], [0], [1], [0, 0, 1, 1], [], []>} : vector<288x8xbf16>, vector<8x4xbf16>, vector<288x4xf32> -> vector<288x4xf32>
    %13 = arith.addf %11, %12 : vector<288x4xf32>
    %c0_10 = arith.constant 0 : index
    %c0_11 = arith.constant 0 : index
    %14 = vector.load %arg11[%c0_10, %c0_11] : memref<288x4xf32, #tpu.memory_space<vmem>>, vector<288x4xf32>
    tpu.vector_store %arg11[%c0_10, %c0_11], %13 {strides = array<i32>} : memref<288x4xf32, #tpu.memory_space<vmem>>, vector<288x4xf32>,
    %c0_12 = arith.constant 0 : index
    %c0_13 = arith.constant 0 : index
    %c1 = arith.constant 1 : index
    %c0_14 = arith.constant 0 : index
    %15 = vector.load %arg3[%c0_12, %c0_13, %c1, %c0_14] : memref<1x1x342x8xbf16, #tpu.memory_space<vmem>>, vector<1x1x288x8xbf16>
    %16 = vector.shape_cast %15 : vector<1x1x288x8xbf16> to vector<288x8xbf16>
    %c9_i32_15 = arith.constant 9 : i32
    %17 = arith.muli %arg2, %c9_i32_15 : i32
    %c0_i32_16 = arith.constant 0 : i32
    %18 = arith.addi %17, %c0_i32_16 : i32
    %c1_i32 = arith.constant 1 : i32
    %19 = arith.addi %18, %c1_i32 : i32
    %20 = arith.index_cast %19 : i32 to index
    %c0_17 = arith.constant 0 : index
    %c0_18 = arith.constant 0 : index
    %21 = vector.load %arg4[%20, %c0_17, %c0_18] : memref<27x8x4xbf16, #tpu.memory_space<vmem>>, vector<1x8x4xbf16>
    %22 = vector.shape_cast %21 : vector<1x8x4xbf16> to vector<8x4xbf16>
    %c0_19 = arith.constant 0 : index
    %c0_20 = arith.constant 0 : index
    %23 = vector.load %arg11[%c0_19, %c0_20] : memref<288x4xf32, #tpu.memory_space<vmem>>, vector<288x4xf32>
    %cst_21 = arith.constant dense<0.000000e+00> : vector<288x4xf32>
    %24 = tpu.matmul %16, %22, %cst_21 {dimension_numbers = #tpu.dot_dimension_numbers<[1], [0], [0], [1], [0, 0, 1, 1], [], []>} : vector<288x8xbf16>, vector<8x4xbf16>, vector<288x4xf32> -> vector<288x4xf32>
    %25 = arith.addf %23, %24 : vector<288x4xf32>
    %c0_22 = arith.constant 0 : index
    %c0_23 = arith.constant 0 : index
    %26 = vector.load %arg11[%c0_22, %c0_23] : memref<288x4xf32, #tpu.memory_space<vmem>>, vector<288x4xf32>
    tpu.vector_store %arg11[%c0_22, %c0_23], %25 {strides = array<i32>} : memref<288x4xf32, #tpu.memory_space<vmem>>, vector<288x4xf32>,
    %c0_24 = arith.constant 0 : index
    %c0_25 = arith.constant 0 : index
    %c2 = arith.constant 2 : index
    %c0_26 = arith.constant 0 : index
    %27 = vector.load %arg3[%c0_24, %c0_25, %c2, %c0_26] : memref<1x1x342x8xbf16, #tpu.memory_space<vmem>>, vector<1x1x288x8xbf16>
    %28 = vector.shape_cast %27 : vector<1x1x288x8xbf16> to vector<288x8xbf16>
    %c9_i32_27 = arith.constant 9 : i32
    %29 = arith.muli %arg2, %c9_i32_27 : i32
    %c0_i32_28 = arith.constant 0 : i32
    %30 = arith.addi %29, %c0_i32_28 : i32
    %c2_i32 = arith.constant 2 : i32
    %31 = arith.addi %30, %c2_i32 : i32
    %32 = arith.index_cast %31 : i32 to index
    %c0_29 = arith.constant 0 : index
    %c0_30 = arith.constant 0 : index
    %33 = vector.load %arg4[%32, %c0_29, %c0_30] : memref<27x8x4xbf16, #tpu.memory_space<vmem>>, vector<1x8x4xbf16>
    %34 = vector.shape_cast %33 : vector<1x8x4xbf16> to vector<8x4xbf16>
    %c0_31 = arith.constant 0 : index
    %c0_32 = arith.constant 0 : index
    %35 = vector.load %arg11[%c0_31, %c0_32] : memref<288x4xf32, #tpu.memory_space<vmem>>, vector<288x4xf32>
    %cst_33 = arith.constant dense<0.000000e+00> : vector<288x4xf32>
    %36 = tpu.matmul %28, %34, %cst_33 {dimension_numbers = #tpu.dot_dimension_numbers<[1], [0], [0], [1], [0, 0, 1, 1], [], []>} : vector<288x8xbf16>, vector<8x4xbf16>, vector<288x4xf32> -> vector<288x4xf32>
    %37 = arith.addf %35, %36 : vector<288x4xf32>
    %c0_34 = arith.constant 0 : index
    %c0_35 = arith.constant 0 : index
    %38 = vector.load %arg11[%c0_34, %c0_35] : memref<288x4xf32, #tpu.memory_space<vmem>>, vector<288x4xf32>
    tpu.vector_store %arg11[%c0_34, %c0_35], %37 {strides = array<i32>} : memref<288x4xf32, #tpu.memory_space<vmem>>, vector<288x4xf32>,
    %c0_36 = arith.constant 0 : index
    %c0_37 = arith.constant 0 : index
    %c18 = arith.constant 18 : index
    %c0_38 = arith.constant 0 : index
    %39 = vector.load %arg3[%c0_36, %c0_37, %c18, %c0_38] : memref<1x1x342x8xbf16, #tpu.memory_space<vmem>>, vector<1x1x288x8xbf16>
    %40 = vector.shape_cast %39 : vector<1x1x288x8xbf16> to vector<288x8xbf16>
    %c9_i32_39 = arith.constant 9 : i32
    %41 = arith.muli %arg2, %c9_i32_39 : i32
    %c3_i32 = arith.constant 3 : i32
    %42 = arith.addi %41, %c3_i32 : i32
    %c0_i32_40 = arith.constant 0 : i32
    %43 = arith.addi %42, %c0_i32_40 : i32
    %44 = arith.index_cast %43 : i32 to index
    %c0_41 = arith.constant 0 : index
    %c0_42 = arith.constant 0 : index
    %45 = vector.load %arg4[%44, %c0_41, %c0_42] : memref<27x8x4xbf16, #tpu.memory_space<vmem>>, vector<1x8x4xbf16>
    %46 = vector.shape_cast %45 : vector<1x8x4xbf16> to vector<8x4xbf16>
    %c0_43 = arith.constant 0 : index
    %c0_44 = arith.constant 0 : index
    %47 = vector.load %arg11[%c0_43, %c0_44] : memref<288x4xf32, #tpu.memory_space<vmem>>, vector<288x4xf32>
    %cst_45 = arith.constant dense<0.000000e+00> : vector<288x4xf32>
    %48 = tpu.matmul %40, %46, %cst_45 {dimension_numbers = #tpu.dot_dimension_numbers<[1], [0], [0], [1], [0, 0, 1, 1], [], []>} : vector<288x8xbf16>, vector<8x4xbf16>, vector<288x4xf32> -> vector<288x4xf32>
    %49 = arith.addf %47, %48 : vector<288x4xf32>
    %c0_46 = arith.constant 0 : index
    %c0_47 = arith.constant 0 : index
    %50 = vector.load %arg11[%c0_46, %c0_47] : memref<288x4xf32, #tpu.memory_space<vmem>>, vector<288x4xf32>
    tpu.vector_store %arg11[%c0_46, %c0_47], %49 {strides = array<i32>} : memref<288x4xf32, #tpu.memory_space<vmem>>, vector<288x4xf32>,
    %c0_48 = arith.constant 0 : index
    %c0_49 = arith.constant 0 : index
    %c19 = arith.constant 19 : index
    %c0_50 = arith.constant 0 : index
    %51 = vector.load %arg3[%c0_48, %c0_49, %c19, %c0_50] : memref<1x1x342x8xbf16, #tpu.memory_space<vmem>>, vector<1x1x288x8xbf16>
    %52 = vector.shape_cast %51 : vector<1x1x288x8xbf16> to vector<288x8xbf16>
    %c9_i32_51 = arith.constant 9 : i32
    %53 = arith.muli %arg2, %c9_i32_51 : i32
    %c3_i32_52 = arith.constant 3 : i32
    %54 = arith.addi %53, %c3_i32_52 : i32
    %c1_i32_53 = arith.constant 1 : i32
    %55 = arith.addi %54, %c1_i32_53 : i32
    %56 = arith.index_cast %55 : i32 to index
    %c0_54 = arith.constant 0 : index
    %c0_55 = arith.constant 0 : index
    %57 = vector.load %arg4[%56, %c0_54, %c0_55] : memref<27x8x4xbf16, #tpu.memory_space<vmem>>, vector<1x8x4xbf16>
    %58 = vector.shape_cast %57 : vector<1x8x4xbf16> to vector<8x4xbf16>
    %c0_56 = arith.constant 0 : index
    %c0_57 = arith.constant 0 : index
    %59 = vector.load %arg11[%c0_56, %c0_57] : memref<288x4xf32, #tpu.memory_space<vmem>>, vector<288x4xf32>
    %cst_58 = arith.constant dense<0.000000e+00> : vector<288x4xf32>
    %60 = tpu.matmul %52, %58, %cst_58 {dimension_numbers = #tpu.dot_dimension_numbers<[1], [0], [0], [1], [0, 0, 1, 1], [], []>} : vector<288x8xbf16>, vector<8x4xbf16>, vector<288x4xf32> -> vector<288x4xf32>
    %61 = arith.addf %59, %60 : vector<288x4xf32>
    %c0_59 = arith.constant 0 : index
    %c0_60 = arith.constant 0 : index
    %62 = vector.load %arg11[%c0_59, %c0_60] : memref<288x4xf32, #tpu.memory_space<vmem>>, vector<288x4xf32>
    tpu.vector_store %arg11[%c0_59, %c0_60], %61 {strides = array<i32>} : memref<288x4xf32, #tpu.memory_space<vmem>>, vector<288x4xf32>,
    %c0_61 = arith.constant 0 : index
    %c0_62 = arith.constant 0 : index
    %c20 = arith.constant 20 : index
    %c0_63 = arith.constant 0 : index
    %63 = vector.load %arg3[%c0_61, %c0_62, %c20, %c0_63] : memref<1x1x342x8xbf16, #tpu.memory_space<vmem>>, vector<1x1x288x8xbf16>
    %64 = vector.shape_cast %63 : vector<1x1x288x8xbf16> to vector<288x8xbf16>
    %c9_i32_64 = arith.constant 9 : i32
    %65 = arith.muli %arg2, %c9_i32_64 : i32
    %c3_i32_65 = arith.constant 3 : i32
    %66 = arith.addi %65, %c3_i32_65 : i32
    %c2_i32_66 = arith.constant 2 : i32
    %67 = arith.addi %66, %c2_i32_66 : i32
    %68 = arith.index_cast %67 : i32 to index
    %c0_67 = arith.constant 0 : index
    %c0_68 = arith.constant 0 : index
    %69 = vector.load %arg4[%68, %c0_67, %c0_68] : memref<27x8x4xbf16, #tpu.memory_space<vmem>>, vector<1x8x4xbf16>
    %70 = vector.shape_cast %69 : vector<1x8x4xbf16> to vector<8x4xbf16>
    %c0_69 = arith.constant 0 : index
    %c0_70 = arith.constant 0 : index
    %71 = vector.load %arg11[%c0_69, %c0_70] : memref<288x4xf32, #tpu.memory_space<vmem>>, vector<288x4xf32>
    %cst_71 = arith.constant dense<0.000000e+00> : vector<288x4xf32>
    %72 = tpu.matmul %64, %70, %cst_71 {dimension_numbers = #tpu.dot_dimension_numbers<[1], [0], [0], [1], [0, 0, 1, 1], [], []>} : vector<288x8xbf16>, vector<8x4xbf16>, vector<288x4xf32> -> vector<288x4xf32>
    %73 = arith.addf %71, %72 : vector<288x4xf32>
    %c0_72 = arith.constant 0 : index
    %c0_73 = arith.constant 0 : index
    %74 = vector.load %arg11[%c0_72, %c0_73] : memref<288x4xf32, #tpu.memory_space<vmem>>, vector<288x4xf32>
    tpu.vector_store %arg11[%c0_72, %c0_73], %73 {strides = array<i32>} : memref<288x4xf32, #tpu.memory_space<vmem>>, vector<288x4xf32>,
    %c0_74 = arith.constant 0 : index
    %c0_75 = arith.constant 0 : index
    %c36 = arith.constant 36 : index
    %c0_76 = arith.constant 0 : index
    %75 = vector.load %arg3[%c0_74, %c0_75, %c36, %c0_76] : memref<1x1x342x8xbf16, #tpu.memory_space<vmem>>, vector<1x1x288x8xbf16>
    %76 = vector.shape_cast %75 : vector<1x1x288x8xbf16> to vector<288x8xbf16>
    %c9_i32_77 = arith.constant 9 : i32
    %77 = arith.muli %arg2, %c9_i32_77 : i32
    %c6_i32 = arith.constant 6 : i32
    %78 = arith.addi %77, %c6_i32 : i32
    %c0_i32_78 = arith.constant 0 : i32
    %79 = arith.addi %78, %c0_i32_78 : i32
    %80 = arith.index_cast %79 : i32 to index
    %c0_79 = arith.constant 0 : index
    %c0_80 = arith.constant 0 : index
    %81 = vector.load %arg4[%80, %c0_79, %c0_80] : memref<27x8x4xbf16, #tpu.memory_space<vmem>>, vector<1x8x4xbf16>
    %82 = vector.shape_cast %81 : vector<1x8x4xbf16> to vector<8x4xbf16>
    %c0_81 = arith.constant 0 : index
    %c0_82 = arith.constant 0 : index
    %83 = vector.load %arg11[%c0_81, %c0_82] : memref<288x4xf32, #tpu.memory_space<vmem>>, vector<288x4xf32>
    %cst_83 = arith.constant dense<0.000000e+00> : vector<288x4xf32>
    %84 = tpu.matmul %76, %82, %cst_83 {dimension_numbers = #tpu.dot_dimension_numbers<[1], [0], [0], [1], [0, 0, 1, 1], [], []>} : vector<288x8xbf16>, vector<8x4xbf16>, vector<288x4xf32> -> vector<288x4xf32>
    %85 = arith.addf %83, %84 : vector<288x4xf32>
    %c0_84 = arith.constant 0 : index
    %c0_85 = arith.constant 0 : index
    %86 = vector.load %arg11[%c0_84, %c0_85] : memref<288x4xf32, #tpu.memory_space<vmem>>, vector<288x4xf32>
    tpu.vector_store %arg11[%c0_84, %c0_85], %85 {strides = array<i32>} : memref<288x4xf32, #tpu.memory_space<vmem>>, vector<288x4xf32>,
    %c0_86 = arith.constant 0 : index
    %c0_87 = arith.constant 0 : index
    %c37 = arith.constant 37 : index
    %c0_88 = arith.constant 0 : index
    %87 = vector.load %arg3[%c0_86, %c0_87, %c37, %c0_88] : memref<1x1x342x8xbf16, #tpu.memory_space<vmem>>, vector<1x1x288x8xbf16>
    %88 = vector.shape_cast %87 : vector<1x1x288x8xbf16> to vector<288x8xbf16>
    %c9_i32_89 = arith.constant 9 : i32
    %89 = arith.muli %arg2, %c9_i32_89 : i32
    %c6_i32_90 = arith.constant 6 : i32
    %90 = arith.addi %89, %c6_i32_90 : i32
    %c1_i32_91 = arith.constant 1 : i32
    %91 = arith.addi %90, %c1_i32_91 : i32
    %92 = arith.index_cast %91 : i32 to index
    %c0_92 = arith.constant 0 : index
    %c0_93 = arith.constant 0 : index
    %93 = vector.load %arg4[%92, %c0_92, %c0_93] : memref<27x8x4xbf16, #tpu.memory_space<vmem>>, vector<1x8x4xbf16>
    %94 = vector.shape_cast %93 : vector<1x8x4xbf16> to vector<8x4xbf16>
    %c0_94 = arith.constant 0 : index
    %c0_95 = arith.constant 0 : index
    %95 = vector.load %arg11[%c0_94, %c0_95] : memref<288x4xf32, #tpu.memory_space<vmem>>, vector<288x4xf32>
    %cst_96 = arith.constant dense<0.000000e+00> : vector<288x4xf32>
    %96 = tpu.matmul %88, %94, %cst_96 {dimension_numbers = #tpu.dot_dimension_numbers<[1], [0], [0], [1], [0, 0, 1, 1], [], []>} : vector<288x8xbf16>, vector<8x4xbf16>, vector<288x4xf32> -> vector<288x4xf32>
    %97 = arith.addf %95, %96 : vector<288x4xf32>
    %c0_97 = arith.constant 0 : index
    %c0_98 = arith.constant 0 : index
    %98 = vector.load %arg11[%c0_97, %c0_98] : memref<288x4xf32, #tpu.memory_space<vmem>>, vector<288x4xf32>
    tpu.vector_store %arg11[%c0_97, %c0_98], %97 {strides = array<i32>} : memref<288x4xf32, #tpu.memory_space<vmem>>, vector<288x4xf32>,
    %c0_99 = arith.constant 0 : index
    %c0_100 = arith.constant 0 : index
    %c38 = arith.constant 38 : index
    %c0_101 = arith.constant 0 : index
    %99 = vector.load %arg3[%c0_99, %c0_100, %c38, %c0_101] : memref<1x1x342x8xbf16, #tpu.memory_space<vmem>>, vector<1x1x288x8xbf16>
    %100 = vector.shape_cast %99 : vector<1x1x288x8xbf16> to vector<288x8xbf16>
    %c9_i32_102 = arith.constant 9 : i32
    %101 = arith.muli %arg2, %c9_i32_102 : i32
    %c6_i32_103 = arith.constant 6 : i32
    %102 = arith.addi %101, %c6_i32_103 : i32
    %c2_i32_104 = arith.constant 2 : i32
    %103 = arith.addi %102, %c2_i32_104 : i32
    %104 = arith.index_cast %103 : i32 to index
    %c0_105 = arith.constant 0 : index
    %c0_106 = arith.constant 0 : index
    %105 = vector.load %arg4[%104, %c0_105, %c0_106] : memref<27x8x4xbf16, #tpu.memory_space<vmem>>, vector<1x8x4xbf16>
    %106 = vector.shape_cast %105 : vector<1x8x4xbf16> to vector<8x4xbf16>
    %c0_107 = arith.constant 0 : index
    %c0_108 = arith.constant 0 : index
    %107 = vector.load %arg11[%c0_107, %c0_108] : memref<288x4xf32, #tpu.memory_space<vmem>>, vector<288x4xf32>
    %cst_109 = arith.constant dense<0.000000e+00> : vector<288x4xf32>
    %108 = tpu.matmul %100, %106, %cst_109 {dimension_numbers = #tpu.dot_dimension_numbers<[1], [0], [0], [1], [0, 0, 1, 1], [], []>} : vector<288x8xbf16>, vector<8x4xbf16>, vector<288x4xf32> -> vector<288x4xf32>
    %109 = arith.addf %107, %108 : vector<288x4xf32>
    %c0_110 = arith.constant 0 : index
    %c0_111 = arith.constant 0 : index
    %110 = vector.load %arg11[%c0_110, %c0_111] : memref<288x4xf32, #tpu.memory_space<vmem>>, vector<288x4xf32>
    tpu.vector_store %arg11[%c0_110, %c0_111], %109 {strides = array<i32>} : memref<288x4xf32, #tpu.memory_space<vmem>>, vector<288x4xf32>,
    %c2_i32_112 = arith.constant 2 : i32
    %111 = arith.cmpi eq, %arg2, %c2_i32_112 : i32
    %112 = arith.extui %111 : i1 to i32
    %c0_i32_113 = arith.constant 0 : i32
    %113 = arith.cmpi ne, %112, %c0_i32_113 : i32
    scf.if %113 {
      %c0_114 = arith.constant 0 : index
      %c0_115 = arith.constant 0 : index
      %114 = vector.load %arg11[%c0_114, %c0_115] : memref<288x4xf32, #tpu.memory_space<vmem>>, vector<288x4xf32>
      %c0_116 = arith.constant 0 : index
      %c0_117 = arith.constant 0 : index
      %115 = vector.load %arg5[%c0_116, %c0_117] : memref<1x4xf32, #tpu.memory_space<vmem>>, vector<1x4xf32>
      %116 = vector.broadcast %115 : vector<1x4xf32> to vector<288x4xf32>
      %117 = arith.mulf %114, %116 : vector<288x4xf32>
      %c0_118 = arith.constant 0 : index
      %c0_119 = arith.constant 0 : index
      %118 = vector.load %arg6[%c0_118, %c0_119] : memref<1x4xf32, #tpu.memory_space<vmem>>, vector<1x4xf32>
      %119 = vector.broadcast %118 : vector<1x4xf32> to vector<288x4xf32>
      %120 = arith.addf %117, %119 : vector<288x4xf32>
      %cst_120 = arith.constant 0.000000e+00 : f32
      %121 = vector.broadcast %cst_120 : f32 to vector<288x4xf32>
      %122 = arith.cmpf oge, %120, %121 : vector<288x4xf32>
      %cst_121 = arith.constant 2.000000e-01 : f32
      %123 = vector.broadcast %cst_121 : f32 to vector<288x4xf32>
      %124 = arith.mulf %123, %120 : vector<288x4xf32>
      %125 = arith.select %122, %120, %124 : vector<288x4xi1>, vector<288x4xf32>
      %c0_122 = arith.constant 0 : index
      %c0_123 = arith.constant 0 : index
      %126 = vector.load %arg7[%c0_122, %c0_123] : memref<4x1xf32, #tpu.memory_space<vmem>>, vector<4x1xf32>
      %cst_124 = arith.constant dense<0.000000e+00> : vector<288x1xf32>
      %127 = tpu.matmul %125, %126, %cst_124 {dimension_numbers = #tpu.dot_dimension_numbers<[1], [0], [0], [1], [0, 0, 1, 1], [], []>} : vector<288x4xf32>, vector<4x1xf32>, vector<288x1xf32> -> vector<288x1xf32>
      %c0_125 = arith.constant 0 : index
      %c0_126 = arith.constant 0 : index
      %128 = vector.load %arg8[%c0_125, %c0_126] : memref<1x1xf32, #tpu.memory_space<vmem>>, vector<1x1xf32>
      %129 = vector.extract %128[0, 0] : f32 from vector<1x1xf32>
      %130 = vector.broadcast %129 : f32 to vector<288x1xf32>
      %131 = arith.addf %127, %130 : vector<288x1xf32>
      %cst_127 = arith.constant 0.000000e+00 : f32
      %132 = vector.broadcast %cst_127 : f32 to vector<288x1xf32>
      %133 = arith.subf %132, %131 : vector<288x1xf32>
      %134 = math.exp %133 : vector<288x1xf32>
      %cst_128 = arith.constant 1.000000e+00 : f32
      %135 = vector.broadcast %cst_128 : f32 to vector<288x1xf32>
      %136 = arith.addf %135, %134 : vector<288x1xf32>
      %137 = tpu.reciprocal %136 {approx = true} : vector<288x1xf32> -> vector<288x1xf32>
      %138 = vector.shape_cast %131 : vector<288x1xf32> to vector<16x18xf32>
      %c0_129 = arith.constant 0 : index
      %c0_130 = arith.constant 0 : index
      %c0_131 = arith.constant 0 : index
      %c0_132 = arith.constant 0 : index
      %139 = vector.load %arg9[%c0_129, %c0_130, %c0_131, %c0_132] : memref<1x1x16x18xf32, #tpu.memory_space<vmem>>, vector<1x1x16x18xf32>
      %140 = vector.shape_cast %139 : vector<1x1x16x18xf32> to vector<16x18xf32>
      %141 = vector.shape_cast %138 : vector<16x18xf32> to vector<1x1x16x18xf32>
      tpu.vector_store %arg9[%c0_129, %c0_130, %c0_131, %c0_132], %141 {strides = array<i32>} : memref<1x1x16x18xf32, #tpu.memory_space<vmem>>, vector<1x1x16x18xf32>,
      %142 = vector.shape_cast %137 : vector<288x1xf32> to vector<16x18xf32>
      %c0_133 = arith.constant 0 : index
      %c0_134 = arith.constant 0 : index
      %c0_135 = arith.constant 0 : index
      %c0_136 = arith.constant 0 : index
      %143 = vector.load %arg10[%c0_133, %c0_134, %c0_135, %c0_136] : memref<1x1x16x18xf32, #tpu.memory_space<vmem>>, vector<1x1x16x18xf32>
      %144 = vector.shape_cast %143 : vector<1x1x16x18xf32> to vector<16x18xf32>
      %145 = vector.shape_cast %142 : vector<16x18xf32> to vector<1x1x16x18xf32>
      tpu.vector_store %arg10[%c0_133, %c0_134, %c0_135, %c0_136], %145 {strides = array<i32>} : memref<1x1x16x18xf32, #tpu.memory_space<vmem>>, vector<1x1x16x18xf32>,
    } else {
    }
    return
  }
  func.func @transform_0(%arg0: i32, %arg1: i32, %arg2: i32) -> (i32, i32, i32, i32) {
    %0 = arith.addi %arg1, %arg2 : i32
    %c0_i32 = arith.constant 0 : i32
    %c0_i32_0 = arith.constant 0 : i32
    %c0_i32_1 = arith.constant 0 : i32
    return %arg0, %0, %c0_i32, %c0_i32_0 : i32, i32, i32, i32
  }
  func.func @transform_1(%arg0: i32, %arg1: i32, %arg2: i32) -> (i32, i32, i32) {
    %c0_i32 = arith.constant 0 : i32
    %c0_i32_0 = arith.constant 0 : i32
    %c0_i32_1 = arith.constant 0 : i32
    %c0_i32_2 = arith.constant 0 : i32
    return %c0_i32, %c0_i32_0, %c0_i32_1 : i32, i32, i32
  }
  func.func @transform_2(%arg0: i32, %arg1: i32, %arg2: i32) -> (i32, i32) {
    %c0_i32 = arith.constant 0 : i32
    %c0_i32_0 = arith.constant 0 : i32
    %c0_i32_1 = arith.constant 0 : i32
    return %c0_i32, %c0_i32_0 : i32, i32
  }
  func.func @transform_3(%arg0: i32, %arg1: i32, %arg2: i32) -> (i32, i32) {
    %c0_i32 = arith.constant 0 : i32
    %c0_i32_0 = arith.constant 0 : i32
    %c0_i32_1 = arith.constant 0 : i32
    return %c0_i32, %c0_i32_0 : i32, i32
  }
  func.func @transform_4(%arg0: i32, %arg1: i32, %arg2: i32) -> (i32, i32) {
    %c0_i32 = arith.constant 0 : i32
    %c0_i32_0 = arith.constant 0 : i32
    %c0_i32_1 = arith.constant 0 : i32
    return %c0_i32, %c0_i32_0 : i32, i32
  }
  func.func @transform_5(%arg0: i32, %arg1: i32, %arg2: i32) -> (i32, i32) {
    %c0_i32 = arith.constant 0 : i32
    %c0_i32_0 = arith.constant 0 : i32
    %c0_i32_1 = arith.constant 0 : i32
    return %c0_i32, %c0_i32_0 : i32, i32
  }
  func.func @transform_6(%arg0: i32, %arg1: i32, %arg2: i32) -> (i32, i32, i32, i32) {
    %c0_i32 = arith.constant 0 : i32
    %c0_i32_0 = arith.constant 0 : i32
    %c0_i32_1 = arith.constant 0 : i32
    return %arg0, %arg1, %c0_i32, %c0_i32_0 : i32, i32, i32, i32
  }
  func.func @transform_7(%arg0: i32, %arg1: i32, %arg2: i32) -> (i32, i32, i32, i32) {
    %c0_i32 = arith.constant 0 : i32
    %c0_i32_0 = arith.constant 0 : i32
    %c0_i32_1 = arith.constant 0 : i32
    return %arg0, %arg1, %c0_i32, %c0_i32_0 : i32, i32, i32, i32
  }
}

</mosaic_0001>

<bundles_post_ra>
// kernel: tile.23
= control target key start
LH: loop header
LB: loop body
LE: loop exit
PB: predicated region body
PF: predicated region fallthrough
CT: control target
= control target key end

     0   :  { %s22_s0 = inlined_call_operand.vmem [shape: f32[16], index: 0, kind: input, shape index: {}]   ;;  %s23_s1 = inlined_call_operand.vmem [shape: f32[8,16], index: 1, kind: output, shape index: {}]  }
   0x1   :  { %v4_v0 = vld [vmem:[%s22_s0] ss:$0 sm:$0xff] }
   0x2   :  { %5 = vst [vmem:[%s23_s1] sm:$0xff] %v4_v0 }

// kernel: tile.24
= control target key start
LH: loop header
LB: loop body
LE: loop exit
PB: predicated region body
PF: predicated region fallthrough
CT: control target
= control target key end

     0   :  { %s67_s10 = smov 112   ;;  %s68_s11 = smov 80   ;;  %vm3_vm0 = vcmask 130048   ;;  %vm9_vm1 = vcmask 1048448   ;;  %vm15_vm2 = vcmask 917248   ;;  %vm21_vm3 = vcmask 786048   ;;  %s111_s0 = inlined_call_operand.vmem [shape: f32[8,16], index: 0, kind: input, shape index: {}]   ;;  %s112_s1 = inlined_call_operand.vmem [shape: f32[1,128], index: 1, kind: output, shape index: {}]  }
   0x1   :  { %v53_v0 = vld [vmem:[%s111_s0 + $0x7] sm:$0x1]   ;;  %v55_v1 = vld [vmem:[%s111_s0 + $0x5] sm:$0x1]   ;;  %v57_v2 = vld [vmem:[%s111_s0 + $0x3] sm:$0x1]  }
   0x2   :  { %7 = vrot.lane.b32.xlu0 %v53_v0, %s67_s10  ;;  %19 = vrot.lane.b32.xlu1 %v55_v1, %s68_s11  ;;  %s69_s14 = smov 48   ;;  %v54_v3 = vld [vmem:[%s111_s0 + $0x6] sm:$0x1]   ;;  %v56_v4 = vld [vmem:[%s111_s0 + $0x4] sm:$0x1]   ;;  %s70_s21 = smov 96  }
   0x3   :  { %31 = vrot.lane.b32.xlu2 %v57_v2, %s69_s14  ;;  %v58_v5 = vld [vmem:[%s111_s0 + $0x2] sm:$0x1]   ;;  %s71_s22 = smov 64   ;;  %s72_s23 = smov 32   ;;  %v59_v6 = vld [vmem:[%s111_s0 + $0x1] sm:$0x1]  }
   0x4   :  { %s73_s26 = smov 16   ;;  %v2_v7 = vld [vmem:[%s111_s0] sm:$0x1]   ;;  %vm27_vm4 = vcmask 654848   ;;  %vm33_vm5 = vcmask 523648   ;;  %vm39_vm6 = vcmask 392448  }
   0x5   :  { %4 = vst.msk [vmem:[#allocation0] sm:$0x1] %vm3_vm0, %v2_v7   ;;  %vm45_vm7 = vcmask 261248  }
   0xa   :  { %13 = vrot.lane.b32.xlu0 %v54_v3, %s70_s21  ;;  %25 = vrot.lane.b32.xlu1 %v56_v4, %s71_s22 }
   0xb   :  { %37 = vrot.lane.b32.xlu2 %v58_v5, %s72_s23 }
  0x12   :  { %43 = vrot.lane.b32.xlu0 %v59_v6, %s73_s26 }
  0x5d   :  { %v32_v8 = vpop.permute.xlu2 %31  }
  0x65   :  { %v38_v9 = vpop.permute.xlu2 %37  }
  0x74   :  { %v8_v10 = vpop.permute.xlu0 %7   ;;  %v20_v11 = vpop.permute.xlu1 %19  }
  0x75   :  { %10 = vst.msk [vmem:[#allocation0] sm:$0x1] %vm9_vm1, %v8_v10  }
  0x7c   :  { %v14_v12 = vpop.permute.xlu0 %13   ;;  %v26_v13 = vpop.permute.xlu1 %25  }
  0x7d   :  { %16 = vst.msk [vmem:[#allocation0] sm:$0x1] %vm15_vm2, %v14_v12  }
  0x7e   :  { %22 = vst.msk [vmem:[#allocation0] sm:$0x1] %vm21_vm3, %v20_v11  }
  0x7f   :  { %28 = vst.msk [vmem:[#allocation0] sm:$0x1] %vm27_vm4, %v26_v13  }
  0x80   :  { %34 = vst.msk [vmem:[#allocation0] sm:$0x1] %vm33_vm5, %v32_v8  }
  0x81   :  { %40 = vst.msk [vmem:[#allocation0] sm:$0x1] %vm39_vm6, %v38_v9  }
  0x84   :  { %v44_v14 = vpop.permute.xlu0 %43  }
  0x85   :  { %46 = vst.msk [vmem:[#allocation0] sm:$0x1] %vm45_vm7, %v44_v14  }
  0x8c   :  { %v49_v15 = vld [vmem:[#allocation0] sm:$0x1] }
  0x8d   :  { %52 = vst [vmem:[%s112_s1] sm:$0x1] %v49_v15 }

// kernel: forward.4
= control target key start
LH: loop header
LB: loop body
LE: loop exit
PB: predicated region body
PF: predicated region fallthrough
CT: control target
= control target key end

     0   :  { %s534_s12 = smov 0   ;;  %s584_s0 = inlined_call_operand.vmem [shape: bf16[8,768], index: 0, kind: input, shape index: {}]   ;;  %s585_s1 = inlined_call_operand.vmem [shape: bf16[768,8], index: 1, kind: input, shape index: {}]   ;;  %s586_s2 = inlined_call_operand.vmem [shape: f32[1,8], index: 2, kind: input, shape index: {}]   ;;  %s587_s3 = inlined_call_operand.vmem [shape: f32[8,8], index: 3, kind: output, shape index: {}]  }
   0x1 LB: > { %s540_s13 = sadd.s32 4294967295, %s511_s12   ;;  %p406_p0 = scmp.ge.s32.totalorder %s511_s12, 1  ;;  %s511_s12 = sphi %s534_s12, %s13_s12  }
   0x2   : > { %p144_p1 = scmp.lt.s32.totalorder %s511_s12, 4 }
   0x4   : > { %p145_p2 = pnand %p406_p0, %p144_p1 }
   0x5   : > { %s407_s14 = sshll.u32 (!%p145_p2), %s540_s13, 1  ;;  %s409_s15 = sshll.u32 (!%p145_p2), %s540_s13, 5 }
   0x6   : > { %148 = sbr.rel (%p145_p2) target bundleno = 195 (0xc3), region = 32  ;;  %p169_p3 = scmp.lt.s32.totalorder (!%p145_p2), %s407_s14, 5 }
   0x7   : > { %p175_p4 = scmp.lt.s32.totalorder (!%p145_p2), %s409_s15, 95  ;;  %p411_p5 = scmp.ne.s32.totalorder (!%p145_p2), %s540_s13, 0 }
   0xb   : > { %s589_s14 = smov (!%p169_p3, %s407_s14), 5  ;;  %s591_s15 = smov (!%p175_p4, %s409_s15), 95 }
   0xc   : > { %s408_s16 = sshll.u32 %s589_s14, 2  ;;  %s410_s20 = sshll.u32 %s591_s15, 2 }
   0xd   : > { %s549_s19 = scalar_lea.vmem %s584_s0, %s408_s16  ;;  %s554_s23 = scalar_lea.vmem %s585_s1, %s410_s20 }
   0xe   : > { %183 = sbr.rel (%p411_p5) target bundleno = 21 (0x15), region = 36 }
  0x13   : > { %vm184_vm0 = vcmask 64512   ;;  %v513_v0 = vmov 0.0  }
  0x14   : > { %185 = vst.msk [vmem:[#allocation2] sm:$0xff] %vm184_vm0, %v513_v0 }
  0x15 PF: > { %v486_v1 = vld [vmem:[%s554_s23 + $0x38] sm:$0xff]  ;;  %v485_v3 = vld [vmem:[%s554_s23 + $0x30] sm:$0xff]  ;;  %v484_v5 = vld [vmem:[%s554_s23 + $0x28] sm:$0xff]  ;;  %vm350_vm1 = vcmask 64512   ;;  %p476_p6 = scmp.ne.s32.totalorder %s540_s13, 2 }
  0x16   : > { %v494_v2 = vld [vmem:[%s554_s23 + $0x78] sm:$0xff]  ;;  %323 = vmatpush.bf16.msra.mxu0 %v486_v1  ;;  %v493_v4 = vld [vmem:[%s554_s23 + $0x70] sm:$0xff]  ;;  %v492_v6 = vld [vmem:[%s554_s23 + $0x68] sm:$0xff] }
  0x17   : > { %336 = vmatpush.bf16.msra.mxu1 %v494_v2  ;;  %v483_v7 = vld [vmem:[%s554_s23 + $0x20] sm:$0xff]  ;;  %v482_v9 = vld [vmem:[%s554_s23 + $0x18] sm:$0xff]  ;;  %v481_v11 = vld [vmem:[%s554_s23 + $0x10] sm:$0xff] }
  0x18   : > { %v491_v8 = vld [vmem:[%s554_s23 + $0x60] sm:$0xff]  ;;  %v490_v10 = vld [vmem:[%s554_s23 + $0x58] sm:$0xff]  ;;  %v489_v12 = vld [vmem:[%s554_s23 + $0x50] sm:$0xff] }
  0x19   : > { %v480_v13 = vld [vmem:[%s554_s23 + $0x8] sm:$0xff]  ;;  %v187_v15 = vld [vmem:[%s549_s19] sm:$0xff] }
  0x1a   : > { %324 = vmatpush.bf16.msra.mxu0 %v485_v3  ;;  %v488_v14 = vld [vmem:[%s554_s23 + $0x48] sm:$0xff]  ;;  %v221_v16 = vunpack.c.l.b16 %v187_v15  ;;  %v222_v17 = vunpack.c.h.b16 %v187_v15  ;;  %v479_v18 = vld [vmem:[%s554_s23] sm:$0xff] }
  0x1b   : > { %337 = vmatpush.bf16.msra.mxu1 %v493_v4  ;;  %v487_v19 = vld [vmem:[%s554_s23 + $0x40] sm:$0xff] }
  0x1c   : > { %v223_v20 = vpack.c.b16 %v221_v16, %v221_v16  ;;  %v224_v21 = vpack.c.b16 %v222_v17, %v222_v17  ;;  %v186_v23 = vld [vmem:[#allocation2] sm:$0xff] }
  0x1e   : > { %325 = vmatpush.bf16.msra.mxu0 %v484_v5 }
  0x1f   : > { %338 = vmatpush.bf16.msra.mxu1 %v492_v6 }
  0x22   : > { %326 = vmatpush.bf16.msra.mxu0 %v483_v7 }
  0x23   : > { %339 = vmatpush.bf16.msra.mxu1 %v491_v8 }
  0x26   : > { %327 = vmatpush.bf16.msra.mxu0 %v482_v9 }
  0x27   : > { %340 = vmatpush.bf16.msra.mxu1 %v490_v10 }
  0x2a   : > { %328 = vmatpush.bf16.msra.mxu0 %v481_v11 }
  0x2b   : > { %341 = vmatpush.bf16.msra.mxu1 %v489_v12 }
  0x2e   : > { %329 = vmatpush.bf16.msra.mxu0 %v480_v13 }
  0x2f   : > { %342 = vmatpush.bf16.msra.mxu1 %v488_v14 }
  0x32   : > { %330 = vmatpush.bf16.msra.mxu0 %v479_v18 }
  0x33   : > { %343 = vmatpush.bf16.msra.mxu1 %v487_v19 }
  0x35   : > { %331 = vmatmul.bf16.vlgmr.msra.gmra.mxu0 %v223_v20 }
  0x36   : > { %344 = vmatmul.bf16.vlgmr.msra.gmra.mxu1 %v224_v21 }
  0xb2   : > { %v332_v22 = vpop.f32.mrf.mxu0 }
  0xb3   : > { %v345_v24 = vpop.f32.mrf.mxu1 }
  0xb4   : > { %v346_v25 = vadd.f32 %v345_v24, %v332_v22 }
  0xb6   : > { %v349_v26 = vadd.f32 %v346_v25, %v186_v23 }
  0xb7   : > { %355 = sbr.rel (%p476_p6) target bundleno = 195 (0xc3), region = 40 }
  0xb8   : > { %351 = vst.msk [vmem:[#allocation2] sm:$0xff] %vm350_vm1, %v349_v26 }
  0xba   : > { %v334_v27 = vpop.f32.mrf.mxu0 }
  0xbb   : > { %v347_v28 = vpop.f32.mrf.mxu1 }
  0xbc   : > { %v504_v30 = vld [vmem:[%s586_s2] ss:$0 sm:$0xff] }
  0xbf   : > { %v356_v29 = vld [vmem:[#allocation2] sm:$0xff] }
  0xc0   : > { %v361_v31 = vadd.f32 %v504_v30, %v356_v29 }
  0xc2   : > { %362 = vst.msk [vmem:[%s587_s3] sm:$0xff] %vm350_vm1, %v361_v31 }
  0xc3 PF: > { %s13_s12 = sadd.s32 1, %s511_s12  }
  0xc4   : > { %p10_p7 = scmp.ge.s32.totalorder %s13_s12, 5  }
  0xc6   :  { %12 = sbr.rel (!%p10_p7) target bundleno = 1 (0x1), region = 69 }

// kernel: forward.5
= control target key start
LH: loop header
LB: loop body
LE: loop exit
PB: predicated region body
PF: predicated region fallthrough
CT: control target
= control target key end

     0   :  { %s1376_s15 = smov 0   ;;  %s1378_s16 = smov 0   ;;  %s1564_s0 = inlined_call_operand.vmem [shape: bf16[2,6,42,9], index: 0, kind: input, shape index: {}]   ;;  %s1565_s1 = inlined_call_operand.vmem [shape: bf16[27,9,128], index: 1, kind: input, shape index: {}]   ;;  %s1566_s2 = inlined_call_operand.vmem [shape: f32[1,128], index: 2, kind: input, shape index: {}]   ;;  %s1567_s3 = inlined_call_operand.vmem [shape: f32[1,128], index: 3, kind: input, shape index: {}]   ;;  %s1568_s4 = inlined_call_operand.vmem [shape: bf16[2,4,24,128], index: 4, kind: output, shape index: {}]  }
   0x1   :  { %s1380_s17 = smov 0   ;;  %s1382_s18 = smov 0  }
   0x2   :  { %s1384_s19 = smov 0   ;;  %s1386_s20 = smov 0  }
   0x3   :  { %s1388_s21 = smov 0  }
   0x4 LB: > { %s26_s22 = sadd.s32 1, %s1335_s18  ;;  %s29_s23 = sadd.s32 1, %s1339_s19  ;;  %s1347_s21 = sphi %s1388_s21, %s14_s21   ;;  %s1343_s20 = sphi %s1386_s20, %s1574_s20   ;;  %s1339_s19 = sphi %s1384_s19, %s1573_s19   ;;  %s1335_s18 = sphi %s1382_s18, %s1572_s18   ;;  %s1331_s17 = sphi %s1380_s17, %s1571_s17   ;;  %s1327_s16 = sphi %s1378_s16, %s1570_s16   ;;  %s1323_s15 = sphi %s1376_s15, %s1569_s15  }
   0x5   : > { %p27_p0 = scmp.ge.s32.totalorder %s26_s22, 3  ;;  %p1046_p1 = scmp.ge.s32.totalorder %s1347_s21, 1 }
   0x6   : > { %p193_p2 = scmp.lt.s32.totalorder %s1347_s21, 25  ;;  %s33_s24 = sadd.s32 1, %s1343_s20 }
   0x7   : > { %s1576_s22 = smov (%p27_p0, %s26_s22), 0  ;;  %s1578_s23 = smov (!%p27_p0, %s29_s23), %s1339_s19 }
   0x8   : > { %p194_p3 = pnand %p1046_p1, %p193_p2  ;;  %p31_p4 = scmp.ge.s32.totalorder %s1578_s23, 4 }
   0x9   : > { %s228_s25 = sadd.s32 (!%p194_p3), %s1323_s15, %s1327_s16  ;;  %p229_p6 = scmp.lt.s32.totalorder (!%p194_p3), %s1331_s17, 1 }
   0xa   : > { %s1580_s23 = smov (%p31_p4, %s1578_s23), 0  ;;  %s1582_s24 = smov (!%p31_p4, %s33_s24), %s1343_s20 }
   0xb   : > { %p35_p5 = scmp.ge.s32.totalorder %s1582_s24, 2  ;;  %197 = sbr.rel (%p194_p3) target bundleno = 257 (0x101), region = 36 }
   0xc   : > { %p231_p7 = scmp.lt.s32.totalorder (!%p194_p3), %s228_s25, 5  ;;  %p241_p8 = scmp.lt.s32.totalorder (!%p194_p3), %s1327_s16, 3 }
   0xd   : > { %s1584_s24 = smov (%p35_p5, %s1582_s24), 0  ;;  %p1049_p9 = scmp.ne.s32.totalorder (!%p194_p3), %s1323_s15, 0 }
  0x10   : > { %s1586_s17 = smov (!%p229_p6, %s1331_s17), 1  ;;  %s1588_s25 = smov (!%p231_p7, %s228_s25), 5 }
  0x11   : > { %s1230_s26 = smul.u32 36, %s1586_s17  ;;  %s1590_s16 = smov (!%p241_p8, %s1327_s16), 3 }
  0x12   : > { %s1229_s27 = smul.u32 6, %s1588_s25 }
  0x13   : > { %s1232_s29 = smul.u32 12, %s1586_s17 }
  0x14   : > { %s235_s28 = sadd.s32 %s1230_s26, %s1229_s27  ;;  %s1231_s5 = smul.u32 3, %s1590_s16 }
  0x15   : > { %s1047_s30 = sshll.u32 %s235_s28, 2  ;;  %252 = sbr.rel (%p1049_p9) target bundleno = 30 (0x1e), region = 40 }
  0x16   : > { %s1424_s8 = scalar_lea.vmem %s1564_s0, %s1047_s30  ;;  %s245_s9 = sadd.s32 %s1232_s29, %s1231_s5 }
  0x17   : > { %s1048_s10 = sshll.u32 %s245_s9, 2 }
  0x18   : > { %s1429_s13 = scalar_lea.vmem %s1568_s4, %s1048_s10 }
  0x1a   : > { %v1349_v0 = vmov 0.0  }
  0x1b   : > { %253 = vst [vmem:[#allocation2 + $0x10] sm:$0xff] %v1349_v0 }
  0x1c   : > { %254 = vst [vmem:[#allocation2] sm:$0xff] %v1349_v0 }
  0x1d   : > { %255 = vst [vmem:[#allocation2 + $0x8] sm:$0xff] %v1349_v0 }
  0x1e PF: > { %s1198_s14 = smul.u32 72, %s1323_s15  ;;  %vm288_vm0 = vcmask 1043456   ;;  %vm289_vm1 = vcmask 1044480   ;;  %v1434_v1 = vld [vmem:[%s1424_s8 + $0x8] sm:$0xff]   ;;  %v1350_v2 = vmov 65535   ;;  %vm281_vm2 = vcmask 72704  }
  0x1f   : > { %v290_v3 = vsel %vm288_vm0, 4294967295, %v1350_v2  ;;  %v1084_v4 = vld [vmem:[%s1424_s8] sm:$0xe]  ;;  %v1203_v5 = vld [vmem:[%s1424_s8] sm:$0xf0]  ;;  %v273_v12 = vunpack.c.l.b16 %v1434_v1  ;;  %vm419_vm3 = vcmask 1046528  }
  0x20   : > { %s1441_s25 = scalar_lea.vmem %s1565_s1, %s1198_s14  ;;  %v1444_v6 = vsel %vm289_vm1, %v290_v3, 0  ;;  %v1088_v7 = vld [vmem:[%s1424_s8 + $0x8] sm:$0xf]  ;;  %v1204_v8 = vld [vmem:[%s1424_s8 + $0x8] sm:$0x10]  ;;  %v1085_v9 = vor.u32 %v1203_v5, %v1084_v4  ;;  %v1197_v24 = vld [vmem:[%s1424_s8] sm:$0xff] }
  0x21   : > { %v1058_v10 = vld [vmem:[%s1441_s25] sm:$0xf]  ;;  %v1199_v11 = vld [vmem:[%s1441_s25] sm:$0x10]  ;;  %v1075_v13 = vld [vmem:[%s1441_s25 + $0x8] sm:$0xf]  ;;  %v1089_v14 = vor.u32 %v1204_v8, %v1088_v7  ;;  %v275_v27 = vpack.c.b16 %v273_v12, %v273_v12 }
  0x22   : > { %v1059_v15 = vor.u32 %v1199_v11, %v1058_v10  ;;  %v1202_v16 = vld [vmem:[%s1441_s25 + $0x8] sm:$0x10]  ;;  %v1092_v17 = vld [vmem:[%s1441_s25 + $0x10] sm:$0xf]  ;;  %v1205_v18 = vld [vmem:[%s1441_s25 + $0x10] sm:$0x10] }
  0x23   : > { %v1076_v19 = vor.u32 %v1202_v16, %v1075_v13  ;;  %v1093_v20 = vor.u32 %v1205_v18, %v1092_v17  ;;  %v420_v21 = vrot.slane %v1085_v9, 1  ;;  %v1455_v22 = vrot.slane %v1089_v14, 1  ;;  %v1460_v25 = vld [vmem:[%s1424_s8] sm:$0xff]  ;;  %v1109_v26 = vld [vmem:[%s1441_s25 + $0x18] sm:$0xf]  ;;  %v1210_v48 = vld [vmem:[%s1424_s8 + $0x8] sm:$0xff] }
  0x24   : > { %v293_v23 = vand.u32 %v1059_v15, %v1444_v6  ;;  %v1208_v30 = vld [vmem:[%s1441_s25 + $0x18] sm:$0x10]  ;;  %v1101_v31 = vld [vmem:[%s1424_s8] sm:$0x8]  ;;  %v1206_v32 = vld [vmem:[%s1424_s8] sm:$0xf0] }
  0x25   : > { %v370_v28 = vand.u32 %v1076_v19, %v1444_v6  ;;  %v435_v29 = vand.u32 %v1093_v20, %v1444_v6  ;;  %v1071_v33 = vld [vmem:[%s1424_s8 + $0x8] sm:$0xf]  ;;  %v1110_v34 = vor.u32 %v1208_v30, %v1109_v26  ;;  %v1207_v36 = vld [vmem:[%s1424_s8 + $0x8] sm:$0x70]  ;;  %v1102_v37 = vor.u32 %v1206_v32, %v1101_v31  ;;  %v1156_v46 = vld [vmem:[%s1441_s25 + $0x30] sm:$0xf] }
  0x26   : > { %1228 = vmatpush.bf16.msra.mxu1 %v293_v23  ;;  %302 = vmatpush.bf16.msra.mxu0 %v293_v23  ;;  %v1105_v35 = vld [vmem:[%s1424_s8 + $0x8] sm:$0xf]  ;;  %v422_v38 = vsel %vm419_vm3, %v420_v21, %v1455_v22  ;;  %v1201_v39 = vld [vmem:[%s1424_s8 + $0x8] sm:$0x10]  ;;  %v1216_v47 = vld [vmem:[%s1441_s25 + $0x30] sm:$0x10] }
  0x27   : > { %444 = vmatpush.bf16.msra.mxu2 %v435_v29  ;;  %v1106_v40 = vor.u32 %v1207_v36, %v1105_v35  ;;  %v1139_v41 = vld [vmem:[%s1441_s25 + $0x28] sm:$0xf]  ;;  %v1213_v42 = vld [vmem:[%s1441_s25 + $0x28] sm:$0x10]  ;;  %v500_v43 = vand.u32 %v1110_v34, %v1444_v6  ;;  %v485_v44 = vrot.slane %v1102_v37, 3  ;;  %v1157_v50 = vor.u32 %v1216_v47, %v1156_v46  ;;  %p1194_p10 = scmp.ne.s32.totalorder %s1323_s15, 2 }
  0x28   : > { %v1140_v45 = vor.u32 %v1213_v42, %v1139_v41  ;;  %v1126_v51 = vld [vmem:[%s1441_s25 + $0x20] sm:$0xf]  ;;  %v1211_v52 = vld [vmem:[%s1441_s25 + $0x20] sm:$0x10]  ;;  %v1485_v53 = vor.u32 %v1201_v39, %v1071_v33  ;;  %v346_v54 = vshll.u32 %v1460_v25, 16  ;;  %v559_v2 = vshrl.u32 %v1210_v48, 16 }
  0x29   : > { %1061 = vmatmul.msk.bf16.vlgmr.msra.gmra.mxu1 %vm281_vm2, %v275_v27  ;;  %1060 = vmatmul.msk.bf16.vlgmr.msra.gmra.mxu0 %vm281_vm2, %v1197_v24  ;;  %v486_v49 = vrot.slane %v1106_v40, 3  ;;  %v1127_v56 = vor.u32 %v1211_v52, %v1126_v51  ;;  %v1118_v57 = vld [vmem:[%s1424_s8] sm:$0x8]  ;;  %v1209_v58 = vld [vmem:[%s1424_s8] sm:$0xf0]  ;;  %v702_v60 = vand.u32 %v1157_v50, %v1444_v6  ;;  %v562_v3 = vshll.u32 %v1210_v48, 16 }
  0x2a   : > { %379 = vmatpush.bf16.msrb.mxu1 %v370_v28  ;;  %1094 = vmatmul.msk.bf16.vlgmr.msra.gmra.mxu2 %vm281_vm2, %v422_v38  ;;  %v637_v55 = vand.u32 %v1140_v45, %v1444_v6  ;;  %v1119_v61 = vor.u32 %v1209_v58, %v1118_v57  ;;  %v1173_v62 = vld [vmem:[%s1441_s25 + $0x38] sm:$0xf]  ;;  %v1219_v63 = vld [vmem:[%s1441_s25 + $0x38] sm:$0x10]  ;;  %v344_v4 = vshrl.u32 %v1460_v25, 16  ;;  %v348_v9 = vrot.slane %v346_v54, 1 }
  0x2b   : > { %509 = vmatpush.bf16.msra.mxu3 %v500_v43  ;;  %v487_v59 = vsel %vm289_vm1, %v485_v44, %v486_v49  ;;  %v579_v0 = vand.u32 %v1127_v56, %v1444_v6  ;;  %711 = vmatpush.bf16.msrb.mxu2 %v702_v60  ;;  %v1174_v8 = vor.u32 %v1219_v63, %v1173_v62  ;;  %v351_v10 = vshll.u32 %v1485_v53, 16  ;;  %v1190_v20 = vld [vmem:[%s1441_s25 + $0x40] sm:$0xf]  ;;  %v1222_v21 = vld [vmem:[%s1441_s25 + $0x40] sm:$0x10] }
  0x2c   : > { %v551_v5 = vshrl.u32 %v1119_v61, 16  ;;  %v554_v7 = vshll.u32 %v1119_v61, 16  ;;  %v561_v11 = vrot.slane %v559_v2, 3  ;;  %v564_v12 = vrot.slane %v562_v3, 4  ;;  %v1165_v27 = vld [vmem:[%s1424_s8 + $0x4] sm:$0xc] }
  0x2d   : > { %588 = vmatpush.bf16.msrb.mxu0 %v579_v0  ;;  %v781_v15 = vand.u32 %v1174_v8, %v1444_v6  ;;  %v349_v16 = vor.u32 %v348_v9, %v344_v4  ;;  %v353_v17 = vrot.slane %v351_v10, 1  ;;  %vm342_vm4 = vsmask.f32 7424  ;;  %v1217_v28 = vld [vmem:[%s1424_s8 + $0x4] sm:$0xf0] }
  0x2e   : > { %646 = vmatpush.bf16.msra.mxu1 %v637_v55  ;;  %1111 = vmatmul.msk.bf16.vlgmr.msra.gmra.mxu3 %vm281_vm2, %v487_v59  ;;  %v553_v13 = vrot.slane %v551_v5, 3  ;;  %v556_v14 = vrot.slane %v554_v7, 4  ;;  %v565_v19 = vor.u32 %v564_v12, %v561_v11  ;;  %vm549_vm5 = vsmask.f32 4352  ;;  %v1169_v29 = vld [vmem:[%s1424_s8 + $0xc] sm:$0xf] }
  0x2f   : > { %790 = vmatpush.bf16.msrb.mxu3 %v781_v15  ;;  %v1191_v23 = vor.u32 %v1222_v21, %v1190_v20  ;;  %v354_v25 = vsel %vm342_vm4, %v349_v16, %v353_v17  ;;  %v1218_v30 = vld [vmem:[%s1424_s8 + $0xc] sm:$0x70]  ;;  %v1166_v31 = vor.u32 %v1217_v28, %v1165_v27  ;;  %v1148_v33 = vld [vmem:[%s1424_s8 + $0x4] sm:$0xc]  ;;  %v1214_v34 = vld [vmem:[%s1424_s8 + $0x4] sm:$0xf0]  ;;  %v622_v63 = vunpack.c.h.b16 %v1434_v1 }
  0x30   : > { %v557_v18 = vor.u32 %v556_v14, %v553_v13  ;;  %v1170_v32 = vor.u32 %v1218_v30, %v1169_v29  ;;  %v1215_v35 = vld [vmem:[%s1424_s8 + $0xc] sm:$0x30]  ;;  %v1149_v40 = vor.u32 %v1214_v34, %v1148_v33  ;;  %v355_v42 = vshrl.u32 %v1485_v53, 16  ;;  %v1182_v53 = vld [vmem:[%s1424_s8 + $0x4] sm:$0x8]  ;;  %v267_v33 = vld [vmem:[#allocation2 + $0x8] sm:$0xff] }
  0x31   : > { %v845_v24 = vand.u32 %v1191_v23, %v1444_v6  ;;  %v1152_v6 = vld [vmem:[%s1424_s8 + $0xc] sm:$0xf]  ;;  %v753_v36 = vshrl.u32 %v1166_v31, 16  ;;  %v756_v37 = vshll.u32 %v1166_v31, 16  ;;  %vm686_vm6 = vcmask 1045504   ;;  %v1212_v61 = vld [vmem:[%s1424_s8 + $0x4] sm:$0xff] }
  0x32   : > { %v566_v26 = vsel %vm549_vm5, %v557_v18, %v565_v19  ;;  %v761_v38 = vshrl.u32 %v1170_v32, 16  ;;  %v764_v39 = vshll.u32 %v1170_v32, 16  ;;  %v1153_v41 = vor.u32 %v1215_v35, %v1152_v6  ;;  %v1220_v54 = vld [vmem:[%s1424_s8 + $0x4] sm:$0xf0]  ;;  %v1186_v55 = vld [vmem:[%s1424_s8 + $0xc] sm:$0xf] }
  0x33   : > { %854 = vmatpush.bf16.msra.mxu0 %v845_v24  ;;  %v755_v43 = vrot.slane %v753_v36, 2  ;;  %v758_v44 = vrot.slane %v756_v37, 3  ;;  %v687_v46 = vrot.slane %v1149_v40, 2  ;;  %v357_v48 = vor.u32 %v355_v42, %v353_v17  ;;  %v1221_v56 = vld [vmem:[%s1424_s8 + $0xc] sm:$0x70]  ;;  %v266_v24 = vld [vmem:[#allocation2] sm:$0xff] }
  0x34   : > { %v766_v45 = vrot.slane %v764_v39, 3  ;;  %v688_v47 = vrot.slane %v1153_v41, 2  ;;  %vm751_vm7 = vsmask.f32 5376  ;;  %v1183_v57 = vor.u32 %v1220_v54, %v1182_v53  ;;  %v265_v1 = vld [vmem:[#allocation2 + $0x10] sm:$0xff] }
  0x35   : > { %v1187_v58 = vor.u32 %v1221_v56, %v1186_v55  ;;  %v624_v0 = vpack.c.b16 %v622_v63, %v622_v63 }
  0x36   : > { %v689_v51 = vsel %vm686_vm6, %v687_v46, %v688_v47  ;;  %v830_v59 = vrot.slane %v1183_v57, 3 }
  0x37   : > { %v831_v60 = vrot.slane %v1187_v58, 3 }
  0x39   : > { %1077 = vmatmul.msk.bf16.vlgmr.msrb.gmra.mxu1 %vm281_vm2, %v354_v25  ;;  %1128 = vmatmul.msk.bf16.vlgmr.msrb.gmra.mxu0 %vm281_vm2, %v566_v26  ;;  %v832_v62 = vsel %vm289_vm1, %v830_v59, %v831_v60 }
  0x3a   : > { %1095 = vmatmul.msk.bf16.gmra.mxu2 %vm281_vm2, %v1455_v22  ;;  %v763_v22 = vrot.slane %v761_v38, 2 }
  0x3c   : > { %v767_v50 = vor.u32 %v766_v45, %v763_v22 }
  0x3e   : > { %1112 = vmatmul.msk.bf16.gmra.mxu3 %vm281_vm2, %v486_v49  ;;  %v759_v49 = vor.u32 %v758_v44, %v755_v43 }
  0x40   : > { %v768_v52 = vsel %vm751_vm7, %v759_v49, %v767_v50 }
  0x49   : > { %1078 = vmatmul.msk.bf16.gmra.mxu1 %vm281_vm2, %v357_v48  ;;  %1129 = vmatmul.msk.bf16.gmra.mxu0 %vm281_vm2, %v565_v19 }
  0x4a   : > { %1158 = vmatmul.msk.bf16.vlgmr.msrb.gmra.mxu2 %vm281_vm2, %v689_v51 }
  0x4e   : > { %1175 = vmatmul.msk.bf16.vlgmr.msrb.gmra.mxu3 %vm281_vm2, %v768_v52 }
  0x59   : > { %1141 = vmatmul.msk.bf16.vlgmr.msra.gmra.mxu1 %vm281_vm2, %v1212_v61  ;;  %1192 = vmatmul.msk.bf16.vlgmr.msra.gmra.mxu0 %vm281_vm2, %v832_v62 }
  0x5a   : > { %1159 = vmatmul.msk.bf16.gmra.mxu2 %vm281_vm2, %v688_v47 }
  0x5e   : > { %1176 = vmatmul.msk.bf16.gmra.mxu3 %vm281_vm2, %v767_v50 }
  0x69   : > { %1142 = vmatmul.msk.bf16.gmra.mxu1 %vm281_vm2, %v624_v0  ;;  %1193 = vmatmul.msk.bf16.gmra.mxu0 %vm281_vm2, %v831_v60 }
  0xa6   : > { %v309_v2 = vpop.f32.mrf.mxu1  ;;  %v304_v3 = vpop.f32.mrf.mxu0 }
  0xa7   : > { %v313_v20 = vadd.f32 %v304_v3, %v265_v1  ;;  %v315_v38 = vadd.f32 %v309_v2, %v267_v33 }
  0xad   : > { %v446_v4 = vpop.f32.mrf.mxu2 }
  0xae   : > { %v311_v5 = vpop.f32.mrf.mxu1  ;;  %v306_v7 = vpop.f32.mrf.mxu0 }
  0xaf   : > { %v314_v29 = vadd.f32 %v306_v7, %v266_v24 }
  0xb1   : > { %v511_v8 = vpop.f32.mrf.mxu3 }
  0xb5   : > { %v448_v9 = vpop.f32.mrf.mxu2 }
  0xb6   : > { %v381_v10 = vpop.f32.mrf.mxu1  ;;  %v590_v11 = vpop.f32.mrf.mxu0 }
  0xb7   : > { %v390_v23 = vadd.f32 %v381_v10, %v313_v20 }
  0xb9   : > { %v513_v12 = vpop.f32.mrf.mxu3  ;;  %v455_v25 = vadd.f32 %v446_v4, %v390_v23 }
  0xbb   : > { %v520_v32 = vadd.f32 %v511_v8, %v455_v25 }
  0xbd   : > { %v451_v13 = vpop.f32.mrf.mxu2  ;;  %v599_v6 = vadd.f32 %v590_v11, %v520_v32 }
  0xbe   : > { %v383_v14 = vpop.f32.mrf.mxu1  ;;  %v592_v15 = vpop.f32.mrf.mxu0 }
  0xbf   : > { %v391_v31 = vadd.f32 %v383_v14, %v314_v29 }
  0xc1   : > { %v516_v16 = vpop.f32.mrf.mxu3  ;;  %v456_v34 = vadd.f32 %v448_v9, %v391_v31 }
  0xc3   : > { %v521_v42 = vadd.f32 %v513_v12, %v456_v34 }
  0xc5   : > { %v453_v17 = vpop.f32.mrf.mxu2  ;;  %v600_v45 = vadd.f32 %v592_v15, %v521_v42 }
  0xc6   : > { %v386_v18 = vpop.f32.mrf.mxu1  ;;  %v595_v19 = vpop.f32.mrf.mxu0 }
  0xc7   : > { %v392_v41 = vadd.f32 %v386_v18, %v315_v38 }
  0xc9   : > { %v518_v21 = vpop.f32.mrf.mxu3  ;;  %v457_v22 = vadd.f32 %v451_v13, %v392_v41 }
  0xcb   : > { %v522_v52 = vadd.f32 %v516_v16, %v457_v22 }
  0xcd   : > { %v713_v26 = vpop.f32.mrf.mxu2  ;;  %v601_v55 = vadd.f32 %v595_v19, %v522_v52 }
  0xce   : > { %v388_v27 = vpop.f32.mrf.mxu1  ;;  %v597_v28 = vpop.f32.mrf.mxu0 }
  0xd1   : > { %v792_v30 = vpop.f32.mrf.mxu3 }
  0xd5   : > { %v715_v35 = vpop.f32.mrf.mxu2 }
  0xd6   : > { %v648_v36 = vpop.f32.mrf.mxu1  ;;  %v856_v37 = vpop.f32.mrf.mxu0 }
  0xd7   : > { %v657_v39 = vadd.f32 %v648_v36, %v599_v6 }
  0xd9   : > { %v794_v40 = vpop.f32.mrf.mxu3  ;;  %v722_v43 = vadd.f32 %v713_v26, %v657_v39 }
  0xdb   : > { %v801_v44 = vadd.f32 %v792_v30, %v722_v43 }
  0xdd   : > { %v865_v46 = vadd.f32 %v856_v37, %v801_v44  ;;  %v718_v47 = vpop.f32.mrf.mxu2 }
  0xde   : > { %v650_v48 = vpop.f32.mrf.mxu1  ;;  %v858_v49 = vpop.f32.mrf.mxu0 }
  0xdf   : > { %v658_v50 = vadd.f32 %v650_v48, %v600_v45  ;;  %868 = vst [vmem:[#allocation2 + $0x10] sm:$0xff] %v865_v46 }
  0xe1   : > { %v797_v51 = vpop.f32.mrf.mxu3  ;;  %v723_v53 = vadd.f32 %v715_v35, %v658_v50 }
  0xe3   : > { %v802_v54 = vadd.f32 %v794_v40, %v723_v53 }
  0xe5   : > { %v866_v56 = vadd.f32 %v858_v49, %v802_v54  ;;  %v720_v57 = vpop.f32.mrf.mxu2 }
  0xe6   : > { %v653_v58 = vpop.f32.mrf.mxu1  ;;  %v861_v59 = vpop.f32.mrf.mxu0 }
  0xe7   : > { %v659_v60 = vadd.f32 %v653_v58, %v601_v55  ;;  %869 = vst [vmem:[#allocation2] sm:$0xff] %v866_v56 }
  0xe9   : > { %v799_v61 = vpop.f32.mrf.mxu3  ;;  %v724_v62 = vadd.f32 %v718_v47, %v659_v60 }
  0xeb   : > { %v803_v63 = vadd.f32 %v797_v51, %v724_v62  ;;  %874 = sbr.rel (%p1194_p10) target bundleno = 257 (0x101), region = 44 }
  0xed   : > { %v867_v0 = vadd.f32 %v861_v59, %v803_v63 }
  0xee   : > { %v655_v2 = vpop.f32.mrf.mxu1  ;;  %v863_v3 = vpop.f32.mrf.mxu0 }
  0xef   : > { %870 = vst [vmem:[#allocation2 + $0x8] sm:$0xff] %v867_v0 }
  0xf0   : > { %v875_v4 = vld [vmem:[#allocation2 + $0x10] sm:$0xff]  ;;  %v876_v5 = vld [vmem:[#allocation2] sm:$0xff] }
  0xf1   : > { %v1291_v7 = vld [vmem:[%s1566_s2] ss:$0 sm:$0xff] }
  0xf2   : > { %v1292_v8 = vld [vmem:[%s1567_s3] ss:$0 sm:$0xff]  ;;  %v882_v10 = vmul.f32 %v1291_v7, %v875_v4  ;;  %v883_v11 = vmul.f32 %v1291_v7, %v876_v5 }
  0xf4   : > { %v889_v13 = vadd.f32 %v1292_v8, %v882_v10  ;;  %v890_v14 = vadd.f32 %v1292_v8, %v883_v11 }
  0xf6   : > { %v877_v9 = vld [vmem:[#allocation2 + $0x8] sm:$0xff]  ;;  %vm892_vm8 = vcmp.ge.f32.partialorder %v889_v13, 0.0  ;;  %vm893_vm9 = vcmp.ge.f32.partialorder %v890_v14, 0.0  ;;  %v895_v16 = vmul.f32 0.2, %v889_v13 }
  0xf7   : > { %v884_v12 = vmul.f32 %v1291_v7, %v877_v9  ;;  %v896_v1 = vmul.f32 0.2, %v890_v14 }
  0xf8   : > { %v898_v18 = vsel %vm892_vm8, %v889_v13, %v895_v16 }
  0xf9   : > { %v891_v15 = vadd.f32 %v1292_v8, %v884_v12  ;;  %v899_v19 = vsel %vm893_vm9, %v890_v14, %v896_v1 }
  0xfa   : > { %v1226_v20 = vpack.c.bf16 %v899_v19, %v898_v18 }
  0xfb   : > { %vm894_vm10 = vcmp.ge.f32.partialorder %v891_v15, 0.0  ;;  %v897_v17 = vmul.f32 0.2, %v891_v15 }
  0xfc   : > { %1227 = vst [vmem:[%s1429_s13] sm:$0xff] %v1226_v20  }
  0xfd   : > { %v900_v21 = vsel %vm894_vm10, %v891_v15, %v897_v17 }
  0xfe   : > { %v903_v23 = vpack.c.bf16 %v900_v21, %v900_v21 }
 0x100   : > { %906 = vst [vmem:[%s1429_s13 + $0x8] sm:$0xf] %v903_v23 }
 0x101 PF: > { %s14_s21 = sadd.s32 1, %s1347_s21   ;;  %s1569_s15 = smov %s1335_s18 }
 0x102   : > { %p11_p11 = scmp.ge.s32.totalorder %s14_s21, 26   ;;  %s1570_s16 = smov %s1339_s19 }
 0x103   : > { %s1571_s17 = smov %s1343_s20  ;;  %s1572_s18 = smov %s1576_s22 }
 0x104   : > { %s1573_s19 = smov %s1580_s23  ;;  %s1574_s20 = smov %s1584_s24 }
 0x105   :  { %13 = sbr.rel (!%p11_p11) target bundleno = 4 (0x4), region = 83 }

// kernel: tile.33
= control target key start
LH: loop header
LB: loop body
LE: loop exit
PB: predicated region body
PF: predicated region fallthrough
CT: control target
= control target key end

     0   :  { %s22_s0 = inlined_call_operand.vmem [shape: f32[8], index: 0, kind: input, shape index: {}]   ;;  %s23_s1 = inlined_call_operand.vmem [shape: f32[8,8], index: 1, kind: output, shape index: {}]  }
   0x1   :  { %v4_v0 = vld [vmem:[%s22_s0] ss:$0 sm:$0xff] }
   0x2   :  { %5 = vst [vmem:[%s23_s1] sm:$0xff] %v4_v0 }

// kernel: tile.34
= control target key start
LH: loop header
LB: loop body
LE: loop exit
PB: predicated region body
PF: predicated region fallthrough
CT: control target
= control target key end

     0   :  { %s67_s10 = smov 56   ;;  %s68_s11 = smov 40   ;;  %vm3_vm0 = vcmask 64512   ;;  %vm9_vm1 = vcmask 523712   ;;  %vm15_vm2 = vcmask 458112   ;;  %vm21_vm3 = vcmask 392512   ;;  %s111_s0 = inlined_call_operand.vmem [shape: f32[8,8], index: 0, kind: input, shape index: {}]   ;;  %s112_s1 = inlined_call_operand.vmem [shape: f32[1,64], index: 1, kind: output, shape index: {}]  }
   0x1   :  { %v53_v0 = vld [vmem:[%s111_s0 + $0x7] sm:$0x1]   ;;  %v55_v1 = vld [vmem:[%s111_s0 + $0x5] sm:$0x1]   ;;  %v57_v2 = vld [vmem:[%s111_s0 + $0x3] sm:$0x1]  }
   0x2   :  { %7 = vrot.lane.b32.xlu0 %v53_v0, %s67_s10  ;;  %19 = vrot.lane.b32.xlu1 %v55_v1, %s68_s11  ;;  %s69_s14 = smov 24   ;;  %v54_v3 = vld [vmem:[%s111_s0 + $0x6] sm:$0x1]   ;;  %v56_v4 = vld [vmem:[%s111_s0 + $0x4] sm:$0x1]   ;;  %s70_s21 = smov 48  }
   0x3   :  { %31 = vrot.lane.b32.xlu2 %v57_v2, %s69_s14  ;;  %v58_v5 = vld [vmem:[%s111_s0 + $0x2] sm:$0x1]   ;;  %s71_s22 = smov 32   ;;  %s72_s23 = smov 16   ;;  %v59_v6 = vld [vmem:[%s111_s0 + $0x1] sm:$0x1]  }
   0x4   :  { %s73_s26 = smov 8   ;;  %v2_v7 = vld [vmem:[%s111_s0] sm:$0x1]   ;;  %vm27_vm4 = vcmask 326912   ;;  %vm33_vm5 = vcmask 261312   ;;  %vm39_vm6 = vcmask 195712  }
   0x5   :  { %4 = vst.msk [vmem:[#allocation0] sm:$0x1] %vm3_vm0, %v2_v7   ;;  %vm45_vm7 = vcmask 130112  }
   0xa   :  { %13 = vrot.lane.b32.xlu0 %v54_v3, %s70_s21  ;;  %25 = vrot.lane.b32.xlu1 %v56_v4, %s71_s22 }
   0xb   :  { %37 = vrot.lane.b32.xlu2 %v58_v5, %s72_s23 }
  0x12   :  { %43 = vrot.lane.b32.xlu0 %v59_v6, %s73_s26 }
  0x5d   :  { %v32_v8 = vpop.permute.xlu2 %31  }
  0x65   :  { %v38_v9 = vpop.permute.xlu2 %37  }
  0x74   :  { %v8_v10 = vpop.permute.xlu0 %7   ;;  %v20_v11 = vpop.permute.xlu1 %19  }
  0x75   :  { %10 = vst.msk [vmem:[#allocation0] sm:$0x1] %vm9_vm1, %v8_v10  }
  0x7c   :  { %v14_v12 = vpop.permute.xlu0 %13   ;;  %v26_v13 = vpop.permute.xlu1 %25  }
  0x7d   :  { %16 = vst.msk [vmem:[#allocation0] sm:$0x1] %vm15_vm2, %v14_v12  }
  0x7e   :  { %22 = vst.msk [vmem:[#allocation0] sm:$0x1] %vm21_vm3, %v20_v11  }
  0x7f   :  { %28 = vst.msk [vmem:[#allocation0] sm:$0x1] %vm27_vm4, %v26_v13  }
  0x80   :  { %34 = vst.msk [vmem:[#allocation0] sm:$0x1] %vm33_vm5, %v32_v8  }
  0x81   :  { %40 = vst.msk [vmem:[#allocation0] sm:$0x1] %vm39_vm6, %v38_v9  }
  0x84   :  { %v44_v14 = vpop.permute.xlu0 %43  }
  0x85   :  { %46 = vst.msk [vmem:[#allocation0] sm:$0x1] %vm45_vm7, %v44_v14  }
  0x8c   :  { %v49_v15 = vld [vmem:[#allocation0] sm:$0x1] }
  0x8d   :  { %52 = vst [vmem:[%s112_s1] sm:$0x1] %v49_v15 }

// kernel: forward.6
= control target key start
LH: loop header
LB: loop body
LE: loop exit
PB: predicated region body
PF: predicated region fallthrough
CT: control target
= control target key end

     0   :  { %s2372_s15 = smov 0   ;;  %s2374_s16 = smov 0   ;;  %s2750_s0 = inlined_call_operand.vmem [shape: bf16[2,10,110,16], index: 0, kind: input, shape index: {}]   ;;  %s2751_s1 = inlined_call_operand.vmem [shape: bf16[27,16,64], index: 1, kind: input, shape index: {}]   ;;  %s2752_s2 = inlined_call_operand.vmem [shape: f32[1,64], index: 2, kind: input, shape index: {}]   ;;  %s2753_s3 = inlined_call_operand.vmem [shape: f32[1,64], index: 3, kind: input, shape index: {}]   ;;  %s2754_s4 = inlined_call_operand.vmem [shape: bf16[2,8,80,64], index: 4, kind: output, shape index: {}]  }
   0x1   :  { %s2376_s17 = smov 0   ;;  %s2378_s18 = smov 0  }
   0x2   :  { %s2380_s19 = smov 0   ;;  %s2382_s20 = smov 0  }
   0x3   :  { %s2384_s21 = smov 0  }
   0x4 LB: > { %s26_s22 = sadd.s32 1, %s2332_s18  ;;  %s29_s23 = sadd.s32 1, %s2336_s19  ;;  %s2344_s21 = sphi %s2384_s21, %s14_s21   ;;  %s2340_s20 = sphi %s2382_s20, %s2760_s20   ;;  %s2336_s19 = sphi %s2380_s19, %s2759_s19   ;;  %s2332_s18 = sphi %s2378_s18, %s2758_s18   ;;  %s2328_s17 = sphi %s2376_s17, %s2757_s17   ;;  %s2324_s16 = sphi %s2374_s16, %s2756_s16   ;;  %s2320_s15 = sphi %s2372_s15, %s2755_s15  }
   0x5   : > { %p27_p0 = scmp.ge.s32.totalorder %s26_s22, 3  ;;  %p1875_p1 = scmp.ge.s32.totalorder %s2344_s21, 1 }
   0x6   : > { %p193_p2 = scmp.lt.s32.totalorder %s2344_s21, 49  ;;  %s33_s24 = sadd.s32 1, %s2340_s20 }
   0x7   : > { %s2762_s22 = smov (%p27_p0, %s26_s22), 0  ;;  %s2764_s23 = smov (!%p27_p0, %s29_s23), %s2336_s19 }
   0x8   : > { %p194_p3 = pnand %p1875_p1, %p193_p2  ;;  %p31_p4 = scmp.ge.s32.totalorder %s2764_s23, 8 }
   0x9   : > { %s228_s25 = sadd.s32 (!%p194_p3), %s2320_s15, %s2324_s16  ;;  %p229_p6 = scmp.lt.s32.totalorder (!%p194_p3), %s2328_s17, 1 }
   0xa   : > { %s2766_s23 = smov (%p31_p4, %s2764_s23), 0  ;;  %s2768_s24 = smov (!%p31_p4, %s33_s24), %s2340_s20 }
   0xb   : > { %p35_p5 = scmp.ge.s32.totalorder %s2768_s24, 2  ;;  %197 = sbr.rel (%p194_p3) target bundleno = 405 (0x195), region = 36 }
   0xc   : > { %p231_p7 = scmp.lt.s32.totalorder (!%p194_p3), %s228_s25, 9  ;;  %p241_p8 = scmp.lt.s32.totalorder (!%p194_p3), %s2324_s16, 7 }
   0xd   : > { %s2770_s24 = smov (%p35_p5, %s2768_s24), 0  ;;  %p1878_p9 = scmp.ne.s32.totalorder (!%p194_p3), %s2320_s15, 0 }
  0x10   : > { %s2772_s17 = smov (!%p229_p6, %s2328_s17), 1  ;;  %s2774_s25 = smov (!%p231_p7, %s228_s25), 9 }
  0x11   : > { %s2228_s26 = smul.u32 140, %s2772_s17  ;;  %s2776_s16 = smov (!%p241_p8, %s2324_s16), 7 }
  0x12   : > { %s2227_s27 = smul.u32 14, %s2774_s25 }
  0x13   : > { %s2230_s29 = smul.u32 80, %s2772_s17 }
  0x14   : > { %s235_s28 = sadd.s32 %s2228_s26, %s2227_s27  ;;  %s2229_s5 = smul.u32 10, %s2776_s16 }
  0x15   : > { %s1876_s30 = sshll.u32 %s235_s28, 2  ;;  %252 = sbr.rel (%p1878_p9) target bundleno = 37 (0x25), region = 40 }
  0x16   : > { %s2420_s8 = scalar_lea.vmem %s2750_s0, %s1876_s30  ;;  %s245_s9 = sadd.s32 %s2230_s29, %s2229_s5 }
  0x17   : > { %s1877_s10 = sshll.u32 %s245_s9, 2 }
  0x18   : > { %s2425_s13 = scalar_lea.vmem %s2754_s4, %s1877_s10 }
  0x1a   : > { %vm253_vm0 = vcmask 523264   ;;  %v2346_v0 = vmov 0.0  }
  0x1b   : > { %254 = vst.msk [vmem:[#allocation2] sm:$0xff] %vm253_vm0, %v2346_v0 }
  0x1c   : > { %255 = vst.msk [vmem:[#allocation2 + $0x8] sm:$0xff] %vm253_vm0, %v2346_v0 }
  0x1d   : > { %256 = vst.msk [vmem:[#allocation2 + $0x10] sm:$0xff] %vm253_vm0, %v2346_v0 }
  0x1e   : > { %257 = vst.msk [vmem:[#allocation2 + $0x18] sm:$0xff] %vm253_vm0, %v2346_v0 }
  0x1f   : > { %258 = vst.msk [vmem:[#allocation2 + $0x20] sm:$0xff] %vm253_vm0, %v2346_v0 }
  0x20   : > { %259 = vst.msk [vmem:[#allocation2 + $0x28] sm:$0xff] %vm253_vm0, %v2346_v0 }
  0x21   : > { %260 = vst.msk [vmem:[#allocation2 + $0x30] sm:$0xff] %vm253_vm0, %v2346_v0 }
  0x22   : > { %261 = vst.msk [vmem:[#allocation2 + $0x38] sm:$0xff] %vm253_vm0, %v2346_v0 }
  0x23   : > { %262 = vst.msk [vmem:[#allocation2 + $0x40] sm:$0xff] %vm253_vm0, %v2346_v0 }
  0x24   : > { %263 = vst.msk [vmem:[#allocation2 + $0x48] sm:$0xff] %vm253_vm0, %v2346_v0 }
  0x25 PF: > { %s2174_s14 = smul.u32 72, %s2320_s15  ;;  %v2170_v4 = vld [vmem:[%s2420_s8 + $0x8] sm:$0xff]  ;;  %v2171_v5 = vld [vmem:[%s2420_s8 + $0x10] sm:$0xff]  ;;  %vm321_vm1 = vcmask 130048   ;;  %v2169_v6 = vld [vmem:[%s2420_s8] sm:$0xff]  ;;  %vm622_vm3 = vcmask 1046528  }
  0x26   : > { %v2176_v7 = vld [vmem:[%s2420_s8] sm:$0xff]  ;;  %v2177_v14 = vld [vmem:[%s2420_s8 + $0x8] sm:$0xff]  ;;  %vm447_vm2 = vsmask.f32 7424  ;;  %v2172_v35 = vld [vmem:[%s2420_s8 + $0x18] sm:$0xff]  ;;  %vm1089_vm5 = vcmask 1045504  }
  0x27   : > { %s2432_s25 = scalar_lea.vmem %s2751_s1, %s2174_s14  ;;  %v2173_v9 = vld [vmem:[%s2420_s8 + $0x20] sm:$0xff]  ;;  %v451_v15 = vshll.u32 %v2176_v7, 16  ;;  %v2188_v17 = vld [vmem:[%s2420_s8 + $0x4] sm:$0xf0]  ;;  %v449_v18 = vshrl.u32 %v2176_v7, 16  ;;  %v456_v20 = vshll.u32 %v2177_v14, 16 }
  0x28   : > { %v2175_v1 = vld [vmem:[%s2432_s25] sm:$0xff]  ;;  %v2187_v2 = vld [vmem:[%s2432_s25 + $0x10] sm:$0xff]  ;;  %v2181_v3 = vld [vmem:[%s2432_s25 + $0x8] sm:$0xff]  ;;  %vm905_vm4 = vsmask.f32 6400  ;;  %v460_v49 = vshrl.u32 %v2177_v14, 16 }
  0x29   : > { %2224 = vmatpush.bf16.msra.mxu1 %v2175_v1  ;;  %2225 = vmatpush.bf16.msra.mxu2 %v2175_v1  ;;  %v2193_v8 = vld [vmem:[%s2432_s25 + $0x18] sm:$0xff]  ;;  %v2205_v10 = vld [vmem:[%s2432_s25 + $0x28] sm:$0xff]  ;;  %v2211_v11 = vld [vmem:[%s2432_s25 + $0x30] sm:$0xff]  ;;  %v453_v19 = vrot.slane %v451_v15, 1  ;;  %v458_v26 = vrot.slane %v456_v20, 1  ;;  %vm1556_vm7 = vcmask 1044480  }
  0x2a   : > { %344 = vmatpush.bf16.msra.mxu0 %v2175_v1  ;;  %2226 = vmatpush.bf16.msra.mxu3 %v2175_v1  ;;  %v2199_v12 = vld [vmem:[%s2432_s25 + $0x20] sm:$0xff]  ;;  %v2217_v13 = vld [vmem:[%s2432_s25 + $0x38] sm:$0xff]  ;;  %v2189_v21 = vld [vmem:[%s2420_s8 + $0xc] sm:$0xff]  ;;  %vm1372_vm6 = vsmask.f32 5376  ;;  %vm381_vm8 = vcmask 523264  }
  0x2b   : > { %v1979_v16 = vld [vmem:[%s2420_s8 + $0x4] sm:$0xe]  ;;  %v2194_v24 = vld [vmem:[%s2420_s8 + $0x4] sm:$0xf0]  ;;  %v454_v25 = vor.u32 %v453_v19, %v449_v18  ;;  %v2195_v27 = vld [vmem:[%s2420_s8 + $0xc] sm:$0xff]  ;;  %v765_v30 = vrot.slane %v2189_v21, 1  ;;  %v462_v54 = vor.u32 %v460_v49, %v458_v26 }
  0x2c   : > { %1906 = vmatmul.msk.bf16.vlgmr.msra.gmra.mxu1 %vm321_vm1, %v2170_v4  ;;  %1907 = vmatmul.msk.bf16.vlgmr.msra.gmra.mxu2 %vm321_vm1, %v2171_v5  ;;  %v1980_v22 = vor.u32 %v2188_v17, %v1979_v16  ;;  %v2011_v23 = vld [vmem:[%s2420_s8 + $0x4] sm:$0xe]  ;;  %v915_v33 = vshrl.u32 %v2195_v27, 16  ;;  %v918_v34 = vshll.u32 %v2195_v27, 16  ;;  %v2178_v45 = vld [vmem:[%s2420_s8 + $0x10] sm:$0xff]  ;;  %v2183_v51 = vld [vmem:[%s2420_s8 + $0x8] sm:$0xff] }
  0x2d   : > { %662 = vmatpush.bf16.msrb.mxu2 %v2187_v2  ;;  %520 = vmatpush.bf16.msrb.mxu1 %v2181_v3  ;;  %v2012_v28 = vor.u32 %v2194_v24, %v2011_v23  ;;  %v459_v36 = vsel %vm447_vm2, %v454_v25, %v458_v26  ;;  %v2223_v44 = vld [vmem:[%s2432_s25 + $0x40] sm:$0xff]  ;;  %v464_v50 = vshll.u32 %v2178_v45, 16  ;;  %v2190_v53 = vld [vmem:[%s2420_s8 + $0x14] sm:$0xff]  ;;  %v624_v57 = vrot.slane %v2183_v51, 1  ;;  %v860_v51 = vld [vmem:[%s2420_s8 + $0x2c] sm:$0x3] }
  0x2e   : > { %1905 = vmatmul.msk.bf16.vlgmr.msra.gmra.mxu0 %vm321_vm1, %v2169_v6  ;;  %803 = vmatpush.bf16.msrb.mxu3 %v2193_v8  ;;  %v764_v29 = vrot.slane %v1980_v22, 1  ;;  %v917_v39 = vrot.slane %v915_v33, 1  ;;  %v920_v40 = vrot.slane %v918_v34, 2  ;;  %v1947_v46 = vld [vmem:[%s2420_s8] sm:$0xe]  ;;  %v2196_v58 = vld [vmem:[%s2420_s8 + $0x14] sm:$0xff] }
  0x2f   : > { %1909 = vmatmul.msk.bf16.vlgmr.msra.gmra.mxu3 %vm321_vm1, %v2173_v9  ;;  %987 = vmatpush.bf16.msrb.mxu0 %v2199_v12  ;;  %v907_v31 = vshrl.u32 %v2012_v28, 16  ;;  %v910_v32 = vshll.u32 %v2012_v28, 16  ;;  %v2182_v47 = vld [vmem:[%s2420_s8] sm:$0xf0]  ;;  %v466_v55 = vrot.slane %v464_v50, 1  ;;  %v767_v59 = vrot.slane %v2190_v53, 1 }
  0x30   : > { %v766_v41 = vsel %vm622_vm3, %v764_v29, %v765_v30  ;;  %v921_v43 = vor.u32 %v920_v40, %v917_v39  ;;  %v1948_v52 = vor.u32 %v2182_v47, %v1947_v46  ;;  %v924_v60 = vshrl.u32 %v2196_v58, 16  ;;  %v2179_v4 = vld [vmem:[%s2420_s8 + $0x18] sm:$0xff]  ;;  %v2184_v8 = vld [vmem:[%s2420_s8 + $0x10] sm:$0xff]  ;;  %v2180_v23 = vld [vmem:[%s2420_s8 + $0x20] sm:$0xff]  ;;  %p2166_p10 = scmp.ne.s32.totalorder %s2320_s15, 2 }
  0x31   : > { %1129 = vmatpush.bf16.msra.mxu1 %v2205_v10  ;;  %1270 = vmatpush.bf16.msra.mxu2 %v2211_v11  ;;  %v909_v37 = vrot.slane %v907_v31, 1  ;;  %v912_v38 = vrot.slane %v910_v32, 2  ;;  %v927_v61 = vshll.u32 %v2196_v58, 16  ;;  %v467_v62 = vsel %vm447_vm2, %v462_v54, %v466_v55  ;;  %v2191_v9 = vld [vmem:[%s2420_s8 + $0x1c] sm:$0xff]  ;;  %v2192_v28 = vld [vmem:[%s2420_s8 + $0x24] sm:$0xff] }
  0x32   : > { %1454 = vmatpush.bf16.msra.mxu3 %v2217_v13  ;;  %v623_v56 = vrot.slane %v1948_v52, 1  ;;  %v926_v0 = vrot.slane %v924_v60, 1  ;;  %v768_v2 = vsel %vm622_vm3, %v765_v30, %v767_v59  ;;  %v468_v6 = vshrl.u32 %v2178_v45, 16  ;;  %v2197_v13 = vld [vmem:[%s2420_s8 + $0x1c] sm:$0xff]  ;;  %v2198_v32 = vld [vmem:[%s2420_s8 + $0x24] sm:$0xff] }
  0x33   : > { %v913_v42 = vor.u32 %v912_v38, %v909_v37  ;;  %1596 = vmatpush.bf16.msra.mxu0 %v2223_v44  ;;  %v929_v1 = vrot.slane %v927_v61, 2  ;;  %v472_v7 = vshll.u32 %v2179_v4, 16  ;;  %v626_v12 = vrot.slane %v2184_v8, 1  ;;  %v2185_v27 = vld [vmem:[%s2420_s8 + $0x18] sm:$0xff]  ;;  %v402_v33 = vld [vmem:[%s2420_s8 + $0x28] sm:$0x1] }
  0x34   : > { %v625_v63 = vsel %vm622_vm3, %v623_v56, %v624_v57  ;;  %v470_v10 = vor.u32 %v468_v6, %v466_v55  ;;  %v769_v14 = vrot.slane %v2191_v9, 1  ;;  %v933_v15 = vshrl.u32 %v2197_v13, 16  ;;  %v2186_v50 = vld [vmem:[%s2420_s8 + $0x20] sm:$0xff]  ;;  %v2107_v61 = vld [vmem:[%s2420_s8 + $0x8] sm:$0xc]  ;;  %v2213_v6 = vld [vmem:[%s2420_s8 + $0x10] sm:$0xff] }
  0x35   : > { %v922_v48 = vsel %vm905_vm4, %v913_v42, %v921_v43  ;;  %v930_v3 = vor.u32 %v929_v1, %v926_v0  ;;  %v474_v11 = vrot.slane %v472_v7, 1  ;;  %v936_v16 = vshll.u32 %v2197_v13, 16 }
  0x36   : > { %v627_v18 = vsel %vm622_vm3, %v624_v57, %v626_v12  ;;  %v935_v19 = vrot.slane %v933_v15, 1  ;;  %v770_v21 = vsel %vm622_vm3, %v767_v59, %v769_v14  ;;  %v476_v25 = vshrl.u32 %v2179_v4, 16 }
  0x37   : > { %v931_v5 = vsel %vm905_vm4, %v921_v43, %v930_v3  ;;  %v475_v17 = vsel %vm447_vm2, %v470_v10, %v474_v11  ;;  %v938_v20 = vrot.slane %v936_v16, 2  ;;  %v480_v26 = vshll.u32 %v2180_v23, 16  ;;  %v719_v43 = vld [vmem:[%s2420_s8 + $0x2c] sm:$0x1]  ;;  %v2043_v10 = vld [vmem:[%s2420_s8 + $0x4] sm:$0xc] }
  0x38   : > { %v478_v29 = vor.u32 %v476_v25, %v474_v11  ;;  %v628_v31 = vrot.slane %v2185_v27, 1  ;;  %v771_v34 = vrot.slane %v2192_v28, 1  ;;  %v440_v39 = vunpack.c.l.b16 %v402_v33  ;;  %v2200_v11 = vld [vmem:[%s2420_s8 + $0x4] sm:$0xf0] }
  0x39   : > { %v939_v22 = vor.u32 %v938_v20, %v935_v19  ;;  %v482_v30 = vrot.slane %v480_v26, 1  ;;  %v757_v47 = vunpack.c.l.b16 %v719_v43  ;;  %v898_v53 = vunpack.c.l.b16 %v860_v51  ;;  %v2139_v28 = vld [vmem:[%s2420_s8 + $0x8] sm:$0x8]  ;;  %v2202_v43 = vld [vmem:[%s2420_s8 + $0x14] sm:$0xff] }
  0x3a   : > { %v629_v38 = vsel %vm622_vm3, %v626_v12, %v628_v31  ;;  %v772_v42 = vsel %vm622_vm3, %v769_v14, %v771_v34  ;;  %v446_v45 = vpack.c.b16 %v440_v39, %v440_v39  ;;  %v630_v56 = vrot.slane %v2186_v50, 1  ;;  %v2206_v39 = vld [vmem:[%s2420_s8 + $0x8] sm:$0xf0] }
  0x3b   : > { %v940_v24 = vsel %vm905_vm4, %v930_v3, %v939_v22  ;;  %v483_v37 = vsel %vm447_vm2, %v478_v29, %v482_v30  ;;  %v763_v52 = vpack.c.b16 %v757_v47, %v757_v47  ;;  %v904_v57 = vpack.c.b16 %v898_v53, %v898_v53  ;;  %v577_v3 = vld [vmem:[%s2420_s8 + $0x28] sm:$0x1]  ;;  %v2218_v29 = vld [vmem:[%s2420_s8 + $0x8] sm:$0xf0] }
  0x3c   : > { %1908 = vmatmul.msk.bf16.gmra.mxu2 %vm321_vm1, %v2172_v35  ;;  %1937 = vmatmul.msk.bf16.vlgmr.msrb.gmra.mxu1 %vm321_vm1, %v459_v36  ;;  %v942_v35 = vshrl.u32 %v2198_v32, 16  ;;  %v945_v36 = vshll.u32 %v2198_v32, 16  ;;  %v488_v49 = vshll.u32 %v446_v45, 16  ;;  %v631_v0 = vsel %vm622_vm3, %v628_v31, %v630_v56  ;;  %v2219_v32 = vld [vmem:[%s2420_s8 + $0x10] sm:$0xff] }
  0x3d   : > { %v773_v58 = vrot.slane %v763_v52, 1  ;;  %v951_v59 = vshrl.u32 %v904_v57, 16  ;;  %v954_v60 = vshll.u32 %v904_v57, 16  ;;  %v615_v8 = vunpack.c.l.b16 %v577_v3  ;;  %v282_v3 = vld [vmem:[#allocation2 + $0x10] sm:$0xff] }
  0x3e   : > { %2033 = vmatmul.msk.bf16.vlgmr.msrb.gmra.mxu0 %vm321_vm1, %v922_v48  ;;  %v944_v40 = vrot.slane %v942_v35, 1  ;;  %v484_v48 = vshrl.u32 %v2180_v23, 16  ;;  %v490_v55 = vrot.slane %v488_v49, 1  ;;  %v1382_v14 = vshrl.u32 %v2213_v6, 16  ;;  %v2214_v35 = vld [vmem:[%s2420_s8 + $0x18] sm:$0xff] }
  0x3f   : > { %2001 = vmatmul.msk.bf16.vlgmr.msrb.gmra.mxu3 %vm321_vm1, %v766_v41  ;;  %v947_v41 = vrot.slane %v945_v36, 2  ;;  %v953_v1 = vrot.slane %v951_v59, 1  ;;  %v774_v4 = vsel %vm622_vm3, %v771_v34, %v773_v58  ;;  %v1385_v15 = vshll.u32 %v2213_v6, 16 }
  0x40   : > { %v486_v54 = vor.u32 %v484_v48, %v482_v30  ;;  %v621_v16 = vpack.c.b16 %v615_v8, %v615_v8  ;;  %v2140_v33 = vor.u32 %v2218_v29, %v2139_v28  ;;  %v1558_v36 = vrot.slane %v2219_v32, 3 }
  0x41   : > { %v948_v44 = vor.u32 %v947_v41, %v944_v40  ;;  %v1391_v41 = vshrl.u32 %v2214_v35, 16  ;;  %v1093_v48 = vrot.slane %v2202_v43, 2 }
  0x42   : > { %v632_v23 = vrot.slane %v621_v16, 1  ;;  %v284_v16 = vld [vmem:[#allocation2 + $0x20] sm:$0xff] }
  0x43   : > { %v949_v46 = vsel %vm905_vm4, %v939_v22, %v948_v44  ;;  %v1387_v22 = vrot.slane %v1385_v15, 3 }
  0x44   : > { %v633_v30 = vsel %vm622_vm3, %v630_v56, %v632_v23  ;;  %v2215_v56 = vld [vmem:[%s2420_s8 + $0x20] sm:$0xff] }
  0x45   : > { %v1400_v59 = vshrl.u32 %v2215_v56, 16 }
  0x4c   : > { %1938 = vmatmul.msk.bf16.gmra.mxu1 %vm321_vm1, %v467_v62  ;;  %1969 = vmatmul.msk.bf16.vlgmr.msrb.gmra.mxu2 %vm321_vm1, %v625_v63  ;;  %v2212_v62 = vld [vmem:[%s2420_s8 + $0x8] sm:$0xf0]  ;;  %v491_v63 = vsel %vm447_vm2, %v486_v54, %v490_v55  ;;  %v2220_v54 = vld [vmem:[%s2420_s8 + $0x18] sm:$0xff] }
  0x4d   : > { %v2108_v7 = vor.u32 %v2212_v62, %v2107_v61  ;;  %v1560_v57 = vrot.slane %v2220_v54, 3  ;;  %v2203_v61 = vld [vmem:[%s2420_s8 + $0x1c] sm:$0xff] }
  0x4e   : > { %2034 = vmatmul.msk.bf16.gmra.mxu0 %vm321_vm1, %v931_v5  ;;  %v2208_v62 = vld [vmem:[%s2420_s8 + $0x18] sm:$0xff] }
  0x4f   : > { %2002 = vmatmul.msk.bf16.gmra.mxu3 %vm321_vm1, %v768_v2  ;;  %v956_v2 = vrot.slane %v954_v60, 2  ;;  %v1374_v12 = vshrl.u32 %v2108_v7, 16  ;;  %v1377_v13 = vshll.u32 %v2108_v7, 16  ;;  %v1561_v58 = vsel %vm1556_vm7, %v1558_v36, %v1560_v57 }
  0x50   : > { %v1403_v60 = vshll.u32 %v2215_v56, 16 }
  0x51   : > { %v957_v5 = vor.u32 %v956_v2, %v953_v1  ;;  %v1376_v19 = vrot.slane %v1374_v12, 2  ;;  %v1379_v20 = vrot.slane %v1377_v13, 3  ;;  %v1095_v1 = vrot.slane %v2203_v61, 2 }
  0x52   : > { %v1234_v2 = vrot.slane %v2208_v62, 2 }
  0x53   : > { %v958_v9 = vsel %vm905_vm4, %v948_v44, %v957_v5  ;;  %v1380_v26 = vor.u32 %v1379_v20, %v1376_v19  ;;  %v2207_v44 = vld [vmem:[%s2420_s8 + $0x10] sm:$0xff]  ;;  %v280_v5 = vld [vmem:[#allocation2] sm:$0xff]  ;;  %v1096_v7 = vsel %vm1089_vm5, %v1093_v48, %v1095_v1  ;;  %v283_v19 = vld [vmem:[#allocation2 + $0x18] sm:$0xff] }
  0x54   : > { %v1232_v50 = vrot.slane %v2207_v44, 2  ;;  %v288_v20 = vld [vmem:[#allocation2 + $0x40] sm:$0xff] }
  0x56   : > { %v1235_v8 = vsel %vm1089_vm5, %v1232_v50, %v1234_v2 }
  0x5c   : > { %1939 = vmatmul.msk.bf16.gmra.mxu1 %vm321_vm1, %v475_v17  ;;  %1970 = vmatmul.msk.bf16.gmra.mxu2 %vm321_vm1, %v627_v18  ;;  %v2201_v17 = vld [vmem:[%s2420_s8 + $0xc] sm:$0xff]  ;;  %v2044_v18 = vor.u32 %v2200_v11, %v2043_v10 }
  0x5d   : > { %v1091_v25 = vrot.slane %v2201_v17, 2 }
  0x5e   : > { %2035 = vmatmul.msk.bf16.gmra.mxu0 %vm321_vm1, %v940_v24  ;;  %v1090_v24 = vrot.slane %v2044_v18, 2 }
  0x5f   : > { %2003 = vmatmul.msk.bf16.gmra.mxu3 %vm321_vm1, %v770_v21  ;;  %v1384_v21 = vrot.slane %v1382_v14, 2  ;;  %v1094_v52 = vsel %vm1089_vm5, %v1091_v25, %v1093_v48  ;;  %v2216_v14 = vld [vmem:[%s2420_s8 + $0x28] sm:$0xff] }
  0x60   : > { %v1092_v31 = vsel %vm1089_vm5, %v1090_v24, %v1091_v25  ;;  %v281_v24 = vld [vmem:[#allocation2 + $0x8] sm:$0xff] }
  0x61   : > { %v1388_v27 = vor.u32 %v1387_v22, %v1384_v21  ;;  %v1409_v21 = vshrl.u32 %v2216_v14, 16  ;;  %v1412_v22 = vshll.u32 %v2216_v14, 16  ;;  %v1511_v14 = vld [vmem:[%s2420_s8 + $0x30] sm:$0x7] }
  0x63   : > { %v1389_v34 = vsel %vm1372_vm6, %v1380_v26, %v1388_v27  ;;  %v2568_v26 = vld [vmem:[%s2420_s8 + $0x24] sm:$0xff] }
  0x6c   : > { %1940 = vmatmul.msk.bf16.gmra.mxu1 %vm321_vm1, %v483_v37  ;;  %1971 = vmatmul.msk.bf16.gmra.mxu2 %vm321_vm1, %v629_v38  ;;  %v1557_v37 = vrot.slane %v2140_v33, 3  ;;  %v2075_v38 = vld [vmem:[%s2420_s8 + $0x8] sm:$0xc]  ;;  %v1411_v33 = vrot.slane %v1409_v21, 2 }
  0x6d   : > { %v2076_v45 = vor.u32 %v2206_v39, %v2075_v38 }
  0x6e   : > { %2036 = vmatmul.msk.bf16.gmra.mxu0 %vm321_vm1, %v949_v46  ;;  %v1559_v40 = vsel %vm1556_vm7, %v1557_v37, %v1558_v36  ;;  %v1393_v46 = vrot.slane %v1391_v41, 2  ;;  %v285_v36 = vld [vmem:[#allocation2 + $0x28] sm:$0xff]  ;;  %v1097_v37 = vrot.slane %v2568_v26, 2 }
  0x6f   : > { %2004 = vmatmul.msk.bf16.gmra.mxu3 %vm321_vm1, %v772_v42  ;;  %v1394_v42 = vshll.u32 %v2214_v35, 16  ;;  %v1231_v49 = vrot.slane %v2076_v45, 2  ;;  %v1327_v35 = vld [vmem:[%s2420_s8 + $0x30] sm:$0x7]  ;;  %v289_v41 = vld [vmem:[#allocation2 + $0x48] sm:$0xff] }
  0x70   : > { %v1365_v43 = vunpack.c.l.b16 %v1327_v35 }
  0x71   : > { %v1396_v47 = vrot.slane %v1394_v42, 3  ;;  %v1233_v53 = vsel %vm1089_vm5, %v1231_v49, %v1232_v50 }
  0x72   : > { %v1371_v54 = vpack.c.b16 %v1365_v43, %v1365_v43 }
  0x73   : > { %v1397_v51 = vor.u32 %v1396_v47, %v1393_v46  ;;  %v1098_v46 = vsel %vm1089_vm5, %v1095_v1, %v1097_v37 }
  0x74   : > { %v1418_v62 = vshrl.u32 %v1371_v54, 16 }
  0x75   : > { %v1398_v55 = vsel %vm1372_vm6, %v1388_v27, %v1397_v51  ;;  %v2571_v27 = vld [vmem:[%s2420_s8 + $0x20] sm:$0xff] }
  0x76   : > { %v1236_v38 = vrot.slane %v2571_v27, 2 }
  0x78   : > { %v1237_v47 = vsel %vm1089_vm5, %v1234_v2, %v1236_v38 }
  0x7c   : > { %1941 = vmatmul.msk.bf16.gmra.mxu1 %vm321_vm1, %v491_v63  ;;  %1972 = vmatmul.msk.bf16.gmra.mxu2 %vm321_vm1, %v631_v0  ;;  %v1402_v63 = vrot.slane %v1400_v59, 2  ;;  %v1405_v0 = vrot.slane %v1403_v60, 3 }
  0x7e   : > { %2037 = vmatmul.msk.bf16.gmra.mxu0 %vm321_vm1, %v958_v9  ;;  %v2555_v9 = vld [vmem:[%s2420_s8 + $0x20] sm:$0xff] }
  0x7f   : > { %2005 = vmatmul.msk.bf16.gmra.mxu3 %vm321_vm1, %v774_v4  ;;  %v1406_v4 = vor.u32 %v1405_v0, %v1402_v63  ;;  %v1562_v15 = vrot.slane %v2555_v9, 3  ;;  %v1421_v63 = vshll.u32 %v1371_v54, 16 }
  0x81   : > { %v1407_v13 = vsel %vm1372_vm6, %v1397_v51, %v1406_v4  ;;  %v1563_v17 = vsel %vm1556_vm7, %v1560_v57, %v1562_v15  ;;  %v1044_v51 = vld [vmem:[%s2420_s8 + $0x2c] sm:$0x3]  ;;  %v286_v57 = vld [vmem:[#allocation2 + $0x30] sm:$0xff] }
  0x8c   : > { %1973 = vmatmul.msk.bf16.gmra.mxu2 %vm321_vm1, %v633_v30  ;;  %2065 = vmatmul.msk.bf16.vlgmr.msra.gmra.mxu1 %vm321_vm1, %v1092_v31 }
  0x8e   : > { %2161 = vmatmul.msk.bf16.vlgmr.msra.gmra.mxu0 %vm321_vm1, %v1559_v40 }
  0x8f   : > { %2129 = vmatmul.msk.bf16.vlgmr.msra.gmra.mxu3 %vm321_vm1, %v1389_v34  ;;  %v1414_v34 = vrot.slane %v1412_v22, 3 }
  0x91   : > { %v1415_v42 = vor.u32 %v1414_v34, %v1411_v33 }
  0x9c   : > { %2066 = vmatmul.msk.bf16.gmra.mxu1 %vm321_vm1, %v1094_v52  ;;  %2097 = vmatmul.msk.bf16.vlgmr.msra.gmra.mxu2 %vm321_vm1, %v1233_v53  ;;  %v2222_v52 = vld [vmem:[%s2420_s8 + $0x28] sm:$0xff]  ;;  %v1416_v53 = vsel %vm1372_vm6, %v1406_v4, %v1415_v42 }
  0x9d   : > { %v1564_v56 = vrot.slane %v2222_v52, 3 }
  0x9e   : > { %2162 = vmatmul.msk.bf16.gmra.mxu0 %vm321_vm1, %v1561_v58  ;;  %v1082_v58 = vunpack.c.l.b16 %v1044_v51 }
  0x9f   : > { %2130 = vmatmul.msk.bf16.gmra.mxu3 %vm321_vm1, %v1398_v55  ;;  %v1565_v59 = vsel %vm1556_vm7, %v1562_v15, %v1564_v56 }
  0xa0   : > { %v1088_v2 = vpack.c.b16 %v1082_v58, %v1082_v58 }
  0xa2   : > { %v1099_v9 = vrot.slane %v1088_v2, 2 }
  0xa9   : > { %v351_v6 = vpop.f32.mrf.mxu1 }
  0xaa   : > { %v373_v10 = vadd.f32 %v351_v6, %v282_v3  ;;  %v2210_v3 = vld [vmem:[%s2420_s8 + $0x28] sm:$0xff]  ;;  %v1420_v6 = vrot.slane %v1418_v62, 2 }
  0xab   : > { %v346_v11 = vpop.f32.mrf.mxu0 }
  0xac   : > { %v371_v12 = vadd.f32 %v346_v11, %v280_v5  ;;  %384 = vst.msk [vmem:[#allocation2 + $0x10] sm:$0xff] %vm381_vm8, %v373_v10  ;;  %2067 = vmatmul.msk.bf16.gmra.mxu1 %vm321_vm1, %v1096_v7  ;;  %2098 = vmatmul.msk.bf16.gmra.mxu2 %vm321_vm1, %v1235_v8  ;;  %v1423_v7 = vrot.slane %v1421_v63, 3  ;;  %v287_v8 = vld [vmem:[#allocation2 + $0x38] sm:$0xff]  ;;  %v1238_v10 = vrot.slane %v2210_v3, 2 }
  0xae   : > { %382 = vst.msk [vmem:[#allocation2] sm:$0xff] %vm381_vm8, %v371_v12  ;;  %2163 = vmatmul.msk.bf16.gmra.mxu0 %vm321_vm1, %v1563_v17 }
  0xaf   : > { %2131 = vmatmul.msk.bf16.gmra.mxu3 %vm321_vm1, %v1407_v13  ;;  %v356_v18 = vpop.f32.mrf.mxu2  ;;  %v1424_v13 = vor.u32 %v1423_v7, %v1420_v6 }
  0xb0   : > { %v375_v23 = vadd.f32 %v356_v18, %v284_v16  ;;  %v1549_v16 = vunpack.c.l.b16 %v1511_v14 }
  0xb1   : > { %v353_v25 = vpop.f32.mrf.mxu1 }
  0xb2   : > { %v366_v28 = vpop.f32.mrf.mxu3  ;;  %386 = vst.msk [vmem:[#allocation2 + $0x20] sm:$0xff] %vm381_vm8, %v375_v23  ;;  %v374_v29 = vadd.f32 %v353_v25, %v283_v19  ;;  %v1100_v19 = vsel %vm1089_vm5, %v1097_v37, %v1099_v9  ;;  %v1186_v23 = vld [vmem:[%s2420_s8 + $0x30] sm:$0x3]  ;;  %v1425_v25 = vsel %vm1372_vm6, %v1415_v42, %v1424_v13 }
  0xb3   : > { %v348_v30 = vpop.f32.mrf.mxu0  ;;  %v379_v31 = vadd.f32 %v366_v28, %v288_v20  ;;  %v411_v17 = vld [vmem:[#allocation2 + $0x10] sm:$0xff]  ;;  %v1239_v20 = vsel %vm1089_vm5, %v1236_v38, %v1238_v10  ;;  %v1224_v28 = vunpack.c.l.b16 %v1186_v23 }
  0xb4   : > { %v372_v32 = vadd.f32 %v348_v30, %v281_v24  ;;  %385 = vst.msk [vmem:[#allocation2 + $0x18] sm:$0xff] %vm381_vm8, %v374_v29  ;;  %v1555_v24 = vpack.c.b16 %v1549_v16, %v1549_v16 }
  0xb5   : > { %390 = vst.msk [vmem:[#allocation2 + $0x40] sm:$0xff] %vm381_vm8, %v379_v31  ;;  %v409_v40 = vld [vmem:[#allocation2] sm:$0xff]  ;;  %v1230_v35 = vpack.c.b16 %v1224_v28, %v1224_v28 }
  0xb6   : > { %383 = vst.msk [vmem:[#allocation2 + $0x8] sm:$0xff] %vm381_vm8, %v372_v32  ;;  %v1566_v26 = vrot.slane %v1555_v24, 3 }
  0xb7   : > { %v358_v39 = vpop.f32.mrf.mxu2  ;;  %v1240_v38 = vrot.slane %v1230_v35, 2 }
  0xb8   : > { %v376_v44 = vadd.f32 %v358_v39, %v285_v36  ;;  %v1567_v29 = vsel %vm1556_vm7, %v1564_v56, %v1566_v26 }
  0xb9   : > { %v522_v45 = vpop.f32.mrf.mxu1  ;;  %v413_v43 = vld [vmem:[#allocation2 + $0x20] sm:$0xff] }
  0xba   : > { %v368_v48 = vpop.f32.mrf.mxu3  ;;  %387 = vst.msk [vmem:[#allocation2 + $0x28] sm:$0xff] %vm381_vm8, %v376_v44  ;;  %v547_v49 = vadd.f32 %v522_v45, %v409_v40  ;;  %v1241_v45 = vsel %vm1089_vm5, %v1238_v10, %v1240_v38 }
  0xbb   : > { %v380_v50 = vadd.f32 %v368_v48, %v289_v41  ;;  %v2589_v55 = vpop.f32.mrf.mxu0  ;;  %v412_v33 = vld [vmem:[#allocation2 + $0x18] sm:$0xff] }
  0xbc   : > { %557 = vst.msk [vmem:[#allocation2] sm:$0xff] %vm381_vm8, %v547_v49  ;;  %2068 = vmatmul.msk.bf16.gmra.mxu1 %vm321_vm1, %v1098_v46  ;;  %2099 = vmatmul.msk.bf16.gmra.mxu2 %vm321_vm1, %v1237_v47  ;;  %v417_v26 = vld [vmem:[#allocation2 + $0x40] sm:$0xff] }
  0xbd   : > { %391 = vst.msk [vmem:[#allocation2 + $0x48] sm:$0xff] %vm381_vm8, %v380_v50  ;;  %v410_v61 = vld [vmem:[#allocation2 + $0x8] sm:$0xff] }
  0xbe   : > { %2164 = vmatmul.msk.bf16.gmra.mxu0 %vm321_vm1, %v1565_v59 }
  0xbf   : > { %2132 = vmatmul.msk.bf16.gmra.mxu3 %vm321_vm1, %v1416_v53  ;;  %v361_v60 = vpop.f32.mrf.mxu2 }
  0xc0   : > { %v377_v0 = vadd.f32 %v361_v60, %v286_v57 }
  0xc1   : > { %v524_v1 = vpop.f32.mrf.mxu1  ;;  %v414_v54 = vld [vmem:[#allocation2 + $0x28] sm:$0xff] }
  0xc2   : > { %v805_v4 = vpop.f32.mrf.mxu3  ;;  %388 = vst.msk [vmem:[#allocation2 + $0x30] sm:$0xff] %vm381_vm8, %v377_v0  ;;  %v548_v5 = vadd.f32 %v524_v1, %v410_v61 }
  0xc3   : > { %v2598_v11 = vpop.f32.mrf.mxu0  ;;  %v584_v27 = vld [vmem:[#allocation2] sm:$0xff] }
  0xc4   : > { %558 = vst.msk [vmem:[#allocation2 + $0x8] sm:$0xff] %vm381_vm8, %v548_v5 }
  0xc7   : > { %v363_v12 = vpop.f32.mrf.mxu2 }
  0xc8   : > { %v378_v15 = vadd.f32 %v363_v12, %v287_v8 }
  0xc9   : > { %v527_v18 = vpop.f32.mrf.mxu1  ;;  %v415_v3 = vld [vmem:[#allocation2 + $0x30] sm:$0xff] }
  0xca   : > { %v807_v21 = vpop.f32.mrf.mxu3  ;;  %389 = vst.msk [vmem:[#allocation2 + $0x38] sm:$0xff] %vm381_vm8, %v378_v15  ;;  %v549_v22 = vadd.f32 %v527_v18, %v411_v17 }
  0xcb   : > { %v2612_v32 = vpop.f32.mrf.mxu0  ;;  %v585_v39 = vld [vmem:[#allocation2 + $0x8] sm:$0xff] }
  0xcc   : > { %559 = vst.msk [vmem:[#allocation2 + $0x10] sm:$0xff] %vm381_vm8, %v549_v22  ;;  %2069 = vmatmul.msk.bf16.gmra.mxu1 %vm321_vm1, %v1100_v19  ;;  %2100 = vmatmul.msk.bf16.gmra.mxu2 %vm321_vm1, %v1239_v20 }
  0xce   : > { %2165 = vmatmul.msk.bf16.gmra.mxu0 %vm321_vm1, %v1567_v29 }
  0xcf   : > { %2133 = vmatmul.msk.bf16.gmra.mxu3 %vm321_vm1, %v1425_v25  ;;  %v664_v30 = vpop.f32.mrf.mxu2 }
  0xd0   : > { %v689_v31 = vadd.f32 %v664_v30, %v584_v27 }
  0xd1   : > { %v529_v34 = vpop.f32.mrf.mxu1  ;;  %v416_v15 = vld [vmem:[#allocation2 + $0x38] sm:$0xff] }
  0xd2   : > { %v810_v36 = vpop.f32.mrf.mxu3  ;;  %699 = vst.msk [vmem:[#allocation2] sm:$0xff] %vm381_vm8, %v689_v31  ;;  %v550_v37 = vadd.f32 %v529_v34, %v412_v33 }
  0xd3   : > { %v2618_v49 = vpop.f32.mrf.mxu0  ;;  %v586_v50 = vld [vmem:[#allocation2 + $0x10] sm:$0xff] }
  0xd4   : > { %560 = vst.msk [vmem:[#allocation2 + $0x18] sm:$0xff] %vm381_vm8, %v550_v37  ;;  %v418_v37 = vld [vmem:[#allocation2 + $0x48] sm:$0xff] }
  0xd7   : > { %v666_v40 = vpop.f32.mrf.mxu2 }
  0xd8   : > { %v690_v41 = vadd.f32 %v666_v40, %v585_v39 }
  0xd9   : > { %v726_v42 = vld [vmem:[#allocation2] sm:$0xff]  ;;  %v532_v44 = vpop.f32.mrf.mxu1 }
  0xda   : > { %v812_v46 = vpop.f32.mrf.mxu3  ;;  %v830_v47 = vadd.f32 %v805_v4, %v726_v42  ;;  %700 = vst.msk [vmem:[#allocation2 + $0x8] sm:$0xff] %vm381_vm8, %v690_v41  ;;  %v551_v48 = vadd.f32 %v532_v44, %v413_v43 }
  0xdb   : > { %v2626_v62 = vpop.f32.mrf.mxu0  ;;  %v587_v63 = vld [vmem:[#allocation2 + $0x18] sm:$0xff] }
  0xdc   : > { %840 = vst.msk [vmem:[#allocation2] sm:$0xff] %vm381_vm8, %v830_v47  ;;  %2101 = vmatmul.msk.bf16.gmra.mxu2 %vm321_vm1, %v1241_v45 }
  0xdd   : > { %561 = vst.msk [vmem:[#allocation2 + $0x20] sm:$0xff] %vm381_vm8, %v551_v48 }
  0xdf   : > { %v669_v51 = vpop.f32.mrf.mxu2 }
  0xe0   : > { %v691_v52 = vadd.f32 %v669_v51, %v586_v50 }
  0xe1   : > { %v727_v53 = vld [vmem:[#allocation2 + $0x8] sm:$0xff]  ;;  %v534_v56 = vpop.f32.mrf.mxu1 }
  0xe2   : > { %v815_v57 = vpop.f32.mrf.mxu3  ;;  %v831_v58 = vadd.f32 %v807_v21, %v727_v53  ;;  %701 = vst.msk [vmem:[#allocation2 + $0x10] sm:$0xff] %vm381_vm8, %v691_v52  ;;  %v552_v59 = vadd.f32 %v534_v56, %v414_v54 }
  0xe3   : > { %v867_v60 = vld [vmem:[#allocation2] sm:$0xff]  ;;  %v1001_v9 = vpop.f32.mrf.mxu0 }
  0xe4   : > { %841 = vst.msk [vmem:[#allocation2 + $0x8] sm:$0xff] %vm381_vm8, %v831_v58  ;;  %v1014_v61 = vadd.f32 %v2589_v55, %v867_v60  ;;  %v588_v10 = vld [vmem:[#allocation2 + $0x20] sm:$0xff] }
  0xe5   : > { %562 = vst.msk [vmem:[#allocation2 + $0x28] sm:$0xff] %vm381_vm8, %v552_v59 }
  0xe6   : > { %1024 = vst.msk [vmem:[#allocation2] sm:$0xff] %vm381_vm8, %v1014_v61 }
  0xe7   : > { %v671_v0 = vpop.f32.mrf.mxu2 }
  0xe8   : > { %v692_v1 = vadd.f32 %v671_v0, %v587_v63 }
  0xe9   : > { %v728_v2 = vld [vmem:[#allocation2 + $0x10] sm:$0xff]  ;;  %v537_v4 = vpop.f32.mrf.mxu1 }
  0xea   : > { %v817_v5 = vpop.f32.mrf.mxu3  ;;  %v832_v6 = vadd.f32 %v810_v36, %v728_v2  ;;  %702 = vst.msk [vmem:[#allocation2 + $0x18] sm:$0xff] %vm381_vm8, %v692_v1  ;;  %v553_v7 = vadd.f32 %v537_v4, %v415_v3 }
  0xeb   : > { %v868_v8 = vld [vmem:[#allocation2 + $0x8] sm:$0xff]  ;;  %v1004_v24 = vpop.f32.mrf.mxu0 }
  0xec   : > { %842 = vst.msk [vmem:[#allocation2 + $0x10] sm:$0xff] %vm381_vm8, %v832_v6  ;;  %v1015_v55 = vadd.f32 %v2598_v11, %v868_v8  ;;  %v589_v21 = vld [vmem:[#allocation2 + $0x28] sm:$0xff] }
  0xed   : > { %563 = vst.msk [vmem:[#allocation2 + $0x30] sm:$0xff] %vm381_vm8, %v553_v7 }
  0xee   : > { %1025 = vst.msk [vmem:[#allocation2 + $0x8] sm:$0xff] %vm381_vm8, %v1015_v55 }
  0xef   : > { %v674_v12 = vpop.f32.mrf.mxu2 }
  0xf0   : > { %v693_v13 = vadd.f32 %v674_v12, %v588_v10 }
  0xf1   : > { %v729_v14 = vld [vmem:[#allocation2 + $0x18] sm:$0xff]  ;;  %v539_v16 = vpop.f32.mrf.mxu1 }
  0xf2   : > { %v820_v17 = vpop.f32.mrf.mxu3  ;;  %v833_v18 = vadd.f32 %v812_v46, %v729_v14  ;;  %703 = vst.msk [vmem:[#allocation2 + $0x20] sm:$0xff] %vm381_vm8, %v693_v13  ;;  %v554_v19 = vadd.f32 %v539_v16, %v416_v15 }
  0xf3   : > { %v869_v20 = vld [vmem:[#allocation2 + $0x10] sm:$0xff]  ;;  %v1006_v41 = vpop.f32.mrf.mxu0 }
  0xf4   : > { %843 = vst.msk [vmem:[#allocation2 + $0x18] sm:$0xff] %vm381_vm8, %v833_v18  ;;  %v1016_v11 = vadd.f32 %v2612_v32, %v869_v20  ;;  %v590_v33 = vld [vmem:[#allocation2 + $0x30] sm:$0xff] }
  0xf5   : > { %564 = vst.msk [vmem:[#allocation2 + $0x38] sm:$0xff] %vm381_vm8, %v554_v19 }
  0xf6   : > { %1026 = vst.msk [vmem:[#allocation2 + $0x10] sm:$0xff] %vm381_vm8, %v1016_v11 }
  0xf7   : > { %v676_v22 = vpop.f32.mrf.mxu2 }
  0xf8   : > { %v694_v23 = vadd.f32 %v676_v22, %v589_v21 }
  0xf9   : > { %v730_v25 = vld [vmem:[#allocation2 + $0x20] sm:$0xff]  ;;  %v542_v27 = vpop.f32.mrf.mxu1 }
  0xfa   : > { %v822_v28 = vpop.f32.mrf.mxu3  ;;  %v834_v29 = vadd.f32 %v815_v57, %v730_v25  ;;  %704 = vst.msk [vmem:[#allocation2 + $0x28] sm:$0xff] %vm381_vm8, %v694_v23  ;;  %v555_v30 = vadd.f32 %v542_v27, %v417_v26 }
  0xfb   : > { %v870_v31 = vld [vmem:[#allocation2 + $0x18] sm:$0xff]  ;;  %v1009_v56 = vpop.f32.mrf.mxu0 }
  0xfc   : > { %844 = vst.msk [vmem:[#allocation2 + $0x20] sm:$0xff] %vm381_vm8, %v834_v29  ;;  %v1017_v32 = vadd.f32 %v2618_v49, %v870_v31  ;;  %v591_v45 = vld [vmem:[#allocation2 + $0x38] sm:$0xff]  ;;  %v1051_v49 = vld [vmem:[#allocation2] sm:$0xff] }
  0xfd   : > { %565 = vst.msk [vmem:[#allocation2 + $0x40] sm:$0xff] %vm381_vm8, %v555_v30 }
  0xfe   : > { %1027 = vst.msk [vmem:[#allocation2 + $0x18] sm:$0xff] %vm381_vm8, %v1017_v32 }
  0xff   : > { %v679_v34 = vpop.f32.mrf.mxu2 }
 0x100   : > { %v695_v35 = vadd.f32 %v679_v34, %v590_v33 }
 0x101   : > { %v731_v36 = vld [vmem:[#allocation2 + $0x28] sm:$0xff]  ;;  %v544_v38 = vpop.f32.mrf.mxu1 }
 0x102   : > { %v835_v39 = vadd.f32 %v817_v5, %v731_v36  ;;  %705 = vst.msk [vmem:[#allocation2 + $0x30] sm:$0xff] %vm381_vm8, %v695_v35  ;;  %v556_v40 = vadd.f32 %v544_v38, %v418_v37  ;;  %v825_v43 = vpop.f32.mrf.mxu3 }
 0x103   : > { %v871_v42 = vld [vmem:[#allocation2 + $0x20] sm:$0xff]  ;;  %v1011_v4 = vpop.f32.mrf.mxu0 }
 0x104   : > { %845 = vst.msk [vmem:[#allocation2 + $0x28] sm:$0xff] %vm381_vm8, %v835_v39  ;;  %v1018_v44 = vadd.f32 %v2626_v62, %v871_v42  ;;  %v592_v58 = vld [vmem:[#allocation2 + $0x40] sm:$0xff]  ;;  %v1052_v62 = vld [vmem:[#allocation2 + $0x8] sm:$0xff] }
 0x105   : > { %566 = vst.msk [vmem:[#allocation2 + $0x48] sm:$0xff] %vm381_vm8, %v556_v40  ;;  %v1054_v11 = vld [vmem:[#allocation2 + $0x18] sm:$0xff] }
 0x106   : > { %1028 = vst.msk [vmem:[#allocation2 + $0x20] sm:$0xff] %vm381_vm8, %v1018_v44 }
 0x107   : > { %v681_v46 = vpop.f32.mrf.mxu2 }
 0x108   : > { %v696_v47 = vadd.f32 %v681_v46, %v591_v45 }
 0x109   : > { %v732_v48 = vld [vmem:[#allocation2 + $0x30] sm:$0xff]  ;;  %v1131_v50 = vpop.f32.mrf.mxu1 }
 0x10a   : > { %v836_v51 = vadd.f32 %v820_v17, %v732_v48  ;;  %706 = vst.msk [vmem:[#allocation2 + $0x38] sm:$0xff] %vm381_vm8, %v696_v47  ;;  %v1156_v52 = vadd.f32 %v1131_v50, %v1051_v49  ;;  %v827_v57 = vpop.f32.mrf.mxu3 }
 0x10b   : > { %v872_v53 = vld [vmem:[#allocation2 + $0x28] sm:$0xff]  ;;  %v1598_v19 = vpop.f32.mrf.mxu0 }
 0x10c   : > { %846 = vst.msk [vmem:[#allocation2 + $0x30] sm:$0xff] %vm381_vm8, %v836_v51  ;;  %v1019_v54 = vadd.f32 %v1001_v9, %v872_v53  ;;  %v593_v5 = vld [vmem:[#allocation2 + $0x48] sm:$0xff]  ;;  %v1053_v9 = vld [vmem:[#allocation2 + $0x10] sm:$0xff] }
 0x10d   : > { %1166 = vst.msk [vmem:[#allocation2] sm:$0xff] %vm381_vm8, %v1156_v52  ;;  %v1055_v31 = vld [vmem:[#allocation2 + $0x20] sm:$0xff] }
 0x10e   : > { %1029 = vst.msk [vmem:[#allocation2 + $0x28] sm:$0xff] %vm381_vm8, %v1019_v54 }
 0x10f   : > { %v684_v59 = vpop.f32.mrf.mxu2 }
 0x110   : > { %v697_v60 = vadd.f32 %v684_v59, %v592_v58 }
 0x111   : > { %v733_v61 = vld [vmem:[#allocation2 + $0x38] sm:$0xff]  ;;  %v1133_v63 = vpop.f32.mrf.mxu1 }
 0x112   : > { %v837_v0 = vadd.f32 %v822_v28, %v733_v61  ;;  %707 = vst.msk [vmem:[#allocation2 + $0x40] sm:$0xff] %vm381_vm8, %v697_v60  ;;  %v1157_v1 = vadd.f32 %v1133_v63, %v1052_v62  ;;  %v1456_v7 = vpop.f32.mrf.mxu3 }
 0x113   : > { %v873_v2 = vld [vmem:[#allocation2 + $0x30] sm:$0xff]  ;;  %v1600_v35 = vpop.f32.mrf.mxu0 }
 0x114   : > { %847 = vst.msk [vmem:[#allocation2 + $0x38] sm:$0xff] %vm381_vm8, %v837_v0  ;;  %v1020_v3 = vadd.f32 %v1004_v24, %v873_v2  ;;  %v1193_v16 = vld [vmem:[#allocation2] sm:$0xff] }
 0x115   : > { %1167 = vst.msk [vmem:[#allocation2 + $0x8] sm:$0xff] %vm381_vm8, %v1157_v1 }
 0x116   : > { %1030 = vst.msk [vmem:[#allocation2 + $0x30] sm:$0xff] %vm381_vm8, %v1020_v3 }
 0x117   : > { %v686_v6 = vpop.f32.mrf.mxu2 }
 0x118   : > { %v698_v8 = vadd.f32 %v686_v6, %v593_v5 }
 0x119   : > { %v734_v55 = vld [vmem:[#allocation2 + $0x40] sm:$0xff]  ;;  %v1136_v10 = vpop.f32.mrf.mxu1 }
 0x11a   : > { %v838_v12 = vadd.f32 %v825_v43, %v734_v55  ;;  %708 = vst.msk [vmem:[#allocation2 + $0x48] sm:$0xff] %vm381_vm8, %v698_v8  ;;  %v1158_v13 = vadd.f32 %v1136_v10, %v1053_v9  ;;  %v1458_v22 = vpop.f32.mrf.mxu3  ;;  %v1056_v43 = vld [vmem:[#allocation2 + $0x28] sm:$0xff] }
 0x11b   : > { %v874_v14 = vld [vmem:[#allocation2 + $0x38] sm:$0xff]  ;;  %v1603_v49 = vpop.f32.mrf.mxu0 }
 0x11c   : > { %848 = vst.msk [vmem:[#allocation2 + $0x40] sm:$0xff] %vm381_vm8, %v838_v12  ;;  %v1021_v15 = vadd.f32 %v1006_v41, %v874_v14  ;;  %v1194_v27 = vld [vmem:[#allocation2 + $0x8] sm:$0xff] }
 0x11d   : > { %1168 = vst.msk [vmem:[#allocation2 + $0x10] sm:$0xff] %vm381_vm8, %v1158_v13 }
 0x11e   : > { %1031 = vst.msk [vmem:[#allocation2 + $0x38] sm:$0xff] %vm381_vm8, %v1021_v15 }
 0x11f   : > { %v1272_v17 = vpop.f32.mrf.mxu2 }
 0x120   : > { %v1297_v18 = vadd.f32 %v1272_v17, %v1193_v16 }
 0x121   : > { %v735_v20 = vld [vmem:[#allocation2 + $0x48] sm:$0xff]  ;;  %v1138_v21 = vpop.f32.mrf.mxu1 }
 0x122   : > { %v839_v23 = vadd.f32 %v827_v57, %v735_v20  ;;  %1307 = vst.msk [vmem:[#allocation2] sm:$0xff] %vm381_vm8, %v1297_v18  ;;  %v1159_v24 = vadd.f32 %v1138_v21, %v1054_v11  ;;  %v1461_v37 = vpop.f32.mrf.mxu3 }
 0x123   : > { %v875_v25 = vld [vmem:[#allocation2 + $0x40] sm:$0xff]  ;;  %v1605_v62 = vpop.f32.mrf.mxu0 }
 0x124   : > { %849 = vst.msk [vmem:[#allocation2 + $0x48] sm:$0xff] %vm381_vm8, %v839_v23  ;;  %v1022_v26 = vadd.f32 %v1009_v56, %v875_v25  ;;  %v1195_v39 = vld [vmem:[#allocation2 + $0x10] sm:$0xff] }
 0x125   : > { %1169 = vst.msk [vmem:[#allocation2 + $0x18] sm:$0xff] %vm381_vm8, %v1159_v24  ;;  %v1057_v56 = vld [vmem:[#allocation2 + $0x30] sm:$0xff] }
 0x126   : > { %1032 = vst.msk [vmem:[#allocation2 + $0x40] sm:$0xff] %vm381_vm8, %v1022_v26 }
 0x127   : > { %v1274_v28 = vpop.f32.mrf.mxu2 }
 0x128   : > { %v1298_v29 = vadd.f32 %v1274_v28, %v1194_v27 }
 0x129   : > { %v1334_v30 = vld [vmem:[#allocation2] sm:$0xff]  ;;  %v1141_v32 = vpop.f32.mrf.mxu1 }
 0x12a   : > { %v1481_v33 = vadd.f32 %v1456_v7, %v1334_v30  ;;  %1308 = vst.msk [vmem:[#allocation2 + $0x8] sm:$0xff] %vm381_vm8, %v1298_v29  ;;  %v1160_v34 = vadd.f32 %v1141_v32, %v1055_v31  ;;  %v1463_v50 = vpop.f32.mrf.mxu3 }
 0x12b   : > { %v876_v36 = vld [vmem:[#allocation2 + $0x48] sm:$0xff]  ;;  %v1608_v13 = vpop.f32.mrf.mxu0 }
 0x12c   : > { %1491 = vst.msk [vmem:[#allocation2] sm:$0xff] %vm381_vm8, %v1481_v33  ;;  %v1023_v38 = vadd.f32 %v1011_v4, %v876_v36  ;;  %v1196_v51 = vld [vmem:[#allocation2 + $0x18] sm:$0xff] }
 0x12d   : > { %1170 = vst.msk [vmem:[#allocation2 + $0x20] sm:$0xff] %vm381_vm8, %v1160_v34  ;;  %v1058_v4 = vld [vmem:[#allocation2 + $0x38] sm:$0xff]  ;;  %v1059_v15 = vld [vmem:[#allocation2 + $0x40] sm:$0xff] }
 0x12e   : > { %1033 = vst.msk [vmem:[#allocation2 + $0x48] sm:$0xff] %vm381_vm8, %v1023_v38 }
 0x12f   : > { %v1277_v40 = vpop.f32.mrf.mxu2 }
 0x130   : > { %v1299_v41 = vadd.f32 %v1277_v40, %v1195_v39 }
 0x131   : > { %v1335_v42 = vld [vmem:[#allocation2 + $0x8] sm:$0xff]  ;;  %v1143_v44 = vpop.f32.mrf.mxu1 }
 0x132   : > { %v1482_v45 = vadd.f32 %v1458_v22, %v1335_v42  ;;  %1309 = vst.msk [vmem:[#allocation2 + $0x10] sm:$0xff] %vm381_vm8, %v1299_v41  ;;  %v1161_v46 = vadd.f32 %v1143_v44, %v1056_v43  ;;  %v1466_v1 = vpop.f32.mrf.mxu3 }
 0x133   : > { %v1518_v47 = vld [vmem:[#allocation2] sm:$0xff]  ;;  %v1610_v29 = vpop.f32.mrf.mxu0 }
 0x134   : > { %1492 = vst.msk [vmem:[#allocation2 + $0x8] sm:$0xff] %vm381_vm8, %v1482_v45  ;;  %v1623_v48 = vadd.f32 %v1598_v19, %v1518_v47  ;;  %v1197_v63 = vld [vmem:[#allocation2 + $0x20] sm:$0xff] }
 0x135   : > { %1171 = vst.msk [vmem:[#allocation2 + $0x28] sm:$0xff] %vm381_vm8, %v1161_v46  ;;  %v1060_v25 = vld [vmem:[#allocation2 + $0x48] sm:$0xff] }
 0x136   : > { %1633 = vst.msk [vmem:[#allocation2] sm:$0xff] %vm381_vm8, %v1623_v48 }
 0x137   : > { %v1279_v52 = vpop.f32.mrf.mxu2 }
 0x138   : > { %v1300_v53 = vadd.f32 %v1279_v52, %v1196_v51 }
 0x139   : > { %v1336_v54 = vld [vmem:[#allocation2 + $0x10] sm:$0xff]  ;;  %v1146_v57 = vpop.f32.mrf.mxu1 }
 0x13a   : > { %v1483_v58 = vadd.f32 %v1461_v37, %v1336_v54  ;;  %1310 = vst.msk [vmem:[#allocation2 + $0x18] sm:$0xff] %vm381_vm8, %v1300_v53  ;;  %v1162_v59 = vadd.f32 %v1146_v57, %v1057_v56  ;;  %v1468_v17 = vpop.f32.mrf.mxu3 }
 0x13b   : > { %v1519_v60 = vld [vmem:[#allocation2 + $0x8] sm:$0xff]  ;;  %v1613_v40 = vpop.f32.mrf.mxu0 }
 0x13c   : > { %1493 = vst.msk [vmem:[#allocation2 + $0x10] sm:$0xff] %vm381_vm8, %v1483_v58  ;;  %v1624_v61 = vadd.f32 %v1600_v35, %v1519_v60  ;;  %v1198_v9 = vld [vmem:[#allocation2 + $0x28] sm:$0xff] }
 0x13d   : > { %1172 = vst.msk [vmem:[#allocation2 + $0x30] sm:$0xff] %vm381_vm8, %v1162_v59 }
 0x13e   : > { %1634 = vst.msk [vmem:[#allocation2 + $0x8] sm:$0xff] %vm381_vm8, %v1624_v61 }
 0x13f   : > { %v1282_v0 = vpop.f32.mrf.mxu2 }
 0x140   : > { %v1301_v2 = vadd.f32 %v1282_v0, %v1197_v63 }
 0x141   : > { %v1337_v3 = vld [vmem:[#allocation2 + $0x18] sm:$0xff]  ;;  %v1148_v5 = vpop.f32.mrf.mxu1 }
 0x142   : > { %v1484_v6 = vadd.f32 %v1463_v50, %v1337_v3  ;;  %1311 = vst.msk [vmem:[#allocation2 + $0x20] sm:$0xff] %vm381_vm8, %v1301_v2  ;;  %v1163_v7 = vadd.f32 %v1148_v5, %v1058_v4  ;;  %v1471_v31 = vpop.f32.mrf.mxu3 }
 0x143   : > { %v1520_v8 = vld [vmem:[#allocation2 + $0x10] sm:$0xff] }
 0x144   : > { %1494 = vst.msk [vmem:[#allocation2 + $0x18] sm:$0xff] %vm381_vm8, %v1484_v6  ;;  %v1625_v55 = vadd.f32 %v1603_v49, %v1520_v8  ;;  %v1199_v21 = vld [vmem:[#allocation2 + $0x30] sm:$0xff]  ;;  %v1615_v49 = vpop.f32.mrf.mxu0 }
 0x145   : > { %1173 = vst.msk [vmem:[#allocation2 + $0x38] sm:$0xff] %vm381_vm8, %v1163_v7 }
 0x146   : > { %1635 = vst.msk [vmem:[#allocation2 + $0x10] sm:$0xff] %vm381_vm8, %v1625_v55 }
 0x147   : > { %v1284_v10 = vpop.f32.mrf.mxu2 }
 0x148   : > { %v1302_v12 = vadd.f32 %v1284_v10, %v1198_v9 }
 0x149   : > { %v1338_v14 = vld [vmem:[#allocation2 + $0x20] sm:$0xff]  ;;  %v1151_v16 = vpop.f32.mrf.mxu1 }
 0x14a   : > { %v1485_v18 = vadd.f32 %v1466_v1, %v1338_v14  ;;  %1312 = vst.msk [vmem:[#allocation2 + $0x28] sm:$0xff] %vm381_vm8, %v1302_v12  ;;  %v1164_v19 = vadd.f32 %v1151_v16, %v1059_v15  ;;  %v1473_v41 = vpop.f32.mrf.mxu3 }
 0x14b   : > { %v1521_v20 = vld [vmem:[#allocation2 + $0x18] sm:$0xff] }
 0x14c   : > { %1495 = vst.msk [vmem:[#allocation2 + $0x20] sm:$0xff] %vm381_vm8, %v1485_v18  ;;  %v1626_v11 = vadd.f32 %v1605_v62, %v1521_v20  ;;  %v1200_v33 = vld [vmem:[#allocation2 + $0x38] sm:$0xff]  ;;  %v1618_v61 = vpop.f32.mrf.mxu0 }
 0x14d   : > { %1174 = vst.msk [vmem:[#allocation2 + $0x40] sm:$0xff] %vm381_vm8, %v1164_v19 }
 0x14e   : > { %1636 = vst.msk [vmem:[#allocation2 + $0x18] sm:$0xff] %vm381_vm8, %v1626_v11 }
 0x14f   : > { %v1287_v22 = vpop.f32.mrf.mxu2 }
 0x150   : > { %v1303_v23 = vadd.f32 %v1287_v22, %v1199_v21 }
 0x151   : > { %v1339_v24 = vld [vmem:[#allocation2 + $0x28] sm:$0xff]  ;;  %v1153_v26 = vpop.f32.mrf.mxu1 }
 0x152   : > { %v1486_v27 = vadd.f32 %v1468_v17, %v1339_v24  ;;  %1313 = vst.msk [vmem:[#allocation2 + $0x30] sm:$0xff] %vm381_vm8, %v1303_v23  ;;  %v1165_v28 = vadd.f32 %v1153_v26, %v1060_v25  ;;  %v1476_v50 = vpop.f32.mrf.mxu3 }
 0x153   : > { %v1522_v30 = vld [vmem:[#allocation2 + $0x20] sm:$0xff] }
 0x154   : > { %1496 = vst.msk [vmem:[#allocation2 + $0x28] sm:$0xff] %vm381_vm8, %v1486_v27  ;;  %v1627_v32 = vadd.f32 %v1608_v13, %v1522_v30  ;;  %v1201_v42 = vld [vmem:[#allocation2 + $0x40] sm:$0xff]  ;;  %v1620_v2 = vpop.f32.mrf.mxu0 }
 0x155   : > { %1175 = vst.msk [vmem:[#allocation2 + $0x48] sm:$0xff] %vm381_vm8, %v1165_v28 }
 0x156   : > { %1637 = vst.msk [vmem:[#allocation2 + $0x20] sm:$0xff] %vm381_vm8, %v1627_v32 }
 0x157   : > { %v1289_v34 = vpop.f32.mrf.mxu2 }
 0x158   : > { %v1304_v35 = vadd.f32 %v1289_v34, %v1200_v33 }
 0x159   : > { %v1340_v36 = vld [vmem:[#allocation2 + $0x30] sm:$0xff] }
 0x15a   : > { %v1487_v37 = vadd.f32 %v1471_v31, %v1340_v36  ;;  %1314 = vst.msk [vmem:[#allocation2 + $0x38] sm:$0xff] %vm381_vm8, %v1304_v35  ;;  %v1478_v60 = vpop.f32.mrf.mxu3 }
 0x15b   : > { %v1523_v38 = vld [vmem:[#allocation2 + $0x28] sm:$0xff] }
 0x15c   : > { %1497 = vst.msk [vmem:[#allocation2 + $0x30] sm:$0xff] %vm381_vm8, %v1487_v37  ;;  %v1628_v39 = vadd.f32 %v1610_v29, %v1523_v38  ;;  %v1202_v51 = vld [vmem:[#allocation2 + $0x48] sm:$0xff] }
 0x15e   : > { %1638 = vst.msk [vmem:[#allocation2 + $0x28] sm:$0xff] %vm381_vm8, %v1628_v39 }
 0x15f   : > { %v1292_v43 = vpop.f32.mrf.mxu2 }
 0x160   : > { %v1305_v44 = vadd.f32 %v1292_v43, %v1201_v42 }
 0x161   : > { %v1341_v45 = vld [vmem:[#allocation2 + $0x38] sm:$0xff] }
 0x162   : > { %v1488_v46 = vadd.f32 %v1473_v41, %v1341_v45  ;;  %1315 = vst.msk [vmem:[#allocation2 + $0x40] sm:$0xff] %vm381_vm8, %v1305_v44 }
 0x163   : > { %v1524_v47 = vld [vmem:[#allocation2 + $0x30] sm:$0xff] }
 0x164   : > { %1498 = vst.msk [vmem:[#allocation2 + $0x38] sm:$0xff] %vm381_vm8, %v1488_v46  ;;  %v1629_v48 = vadd.f32 %v1613_v40, %v1524_v47 }
 0x166   : > { %1639 = vst.msk [vmem:[#allocation2 + $0x30] sm:$0xff] %vm381_vm8, %v1629_v48 }
 0x167   : > { %v1294_v52 = vpop.f32.mrf.mxu2 }
 0x168   : > { %v1306_v53 = vadd.f32 %v1294_v52, %v1202_v51 }
 0x169   : > { %v1342_v54 = vld [vmem:[#allocation2 + $0x40] sm:$0xff] }
 0x16a   : > { %v1489_v56 = vadd.f32 %v1476_v50, %v1342_v54  ;;  %1316 = vst.msk [vmem:[#allocation2 + $0x48] sm:$0xff] %vm381_vm8, %v1306_v53 }
 0x16b   : > { %v1525_v57 = vld [vmem:[#allocation2 + $0x38] sm:$0xff] }
 0x16c   : > { %1499 = vst.msk [vmem:[#allocation2 + $0x40] sm:$0xff] %vm381_vm8, %v1489_v56  ;;  %v1630_v58 = vadd.f32 %v1615_v49, %v1525_v57 }
 0x16e   : > { %1640 = vst.msk [vmem:[#allocation2 + $0x38] sm:$0xff] %vm381_vm8, %v1630_v58 }
 0x171   : > { %v1343_v59 = vld [vmem:[#allocation2 + $0x48] sm:$0xff] }
 0x172   : > { %v1490_v62 = vadd.f32 %v1478_v60, %v1343_v59 }
 0x173   : > { %v1526_v63 = vld [vmem:[#allocation2 + $0x40] sm:$0xff] }
 0x174   : > { %1500 = vst.msk [vmem:[#allocation2 + $0x48] sm:$0xff] %vm381_vm8, %v1490_v62  ;;  %v1631_v0 = vadd.f32 %v1618_v61, %v1526_v63 }
 0x176   : > { %1641 = vst.msk [vmem:[#allocation2 + $0x40] sm:$0xff] %vm381_vm8, %v1631_v0 }
 0x17a   : > { %1646 = sbr.rel (%p2166_p10) target bundleno = 405 (0x195), region = 44 }
 0x17b   : > { %v1527_v1 = vld [vmem:[#allocation2 + $0x48] sm:$0xff] }
 0x17c   : > { %v1632_v3 = vadd.f32 %v1620_v2, %v1527_v1 }
 0x17e   : > { %1642 = vst.msk [vmem:[#allocation2 + $0x48] sm:$0xff] %vm381_vm8, %v1632_v3 }
 0x17f   : > { %v1647_v4 = vld [vmem:[#allocation2] sm:$0xff]  ;;  %v1648_v7 = vld [vmem:[#allocation2 + $0x8] sm:$0xff]  ;;  %v1649_v9 = vld [vmem:[#allocation2 + $0x10] sm:$0xff]  ;;  %vm1725_vm9 = vcmask 519168  }
 0x180   : > { %v2288_v5 = vld [vmem:[%s2752_s2] ss:$0 sm:$0xff]  ;;  %v1650_v10 = vld [vmem:[#allocation2 + $0x18] sm:$0xff]  ;;  %v1652_v16 = vld [vmem:[#allocation2 + $0x28] sm:$0xff] }
 0x181   : > { %v2289_v6 = vld [vmem:[%s2753_s3] ss:$0 sm:$0xff]  ;;  %v1661_v8 = vmul.f32 %v2288_v5, %v1647_v4  ;;  %v1662_v55 = vmul.f32 %v2288_v5, %v1648_v7  ;;  %v1663_v13 = vmul.f32 %v2288_v5, %v1649_v9  ;;  %v1664_v14 = vmul.f32 %v2288_v5, %v1650_v10  ;;  %v1653_v17 = vld [vmem:[#allocation2 + $0x30] sm:$0xff]  ;;  %v1654_v18 = vld [vmem:[#allocation2 + $0x38] sm:$0xff] }
 0x182   : > { %v1651_v12 = vld [vmem:[#allocation2 + $0x20] sm:$0xff]  ;;  %v1666_v11 = vmul.f32 %v2288_v5, %v1652_v16  ;;  %v1667_v21 = vmul.f32 %v2288_v5, %v1653_v17  ;;  %v1668_v25 = vmul.f32 %v2288_v5, %v1654_v18 }
 0x183   : > { %v1665_v15 = vmul.f32 %v2288_v5, %v1651_v12  ;;  %v1675_v19 = vadd.f32 %v2289_v6, %v1661_v8  ;;  %v1676_v20 = vadd.f32 %v2289_v6, %v1662_v55  ;;  %v1677_v22 = vadd.f32 %v2289_v6, %v1663_v13  ;;  %v1655_v33 = vld [vmem:[#allocation2 + $0x40] sm:$0xff] }
 0x184   : > { %v1678_v23 = vadd.f32 %v2289_v6, %v1664_v14  ;;  %v1680_v42 = vadd.f32 %v2289_v6, %v1666_v11  ;;  %v1681_v44 = vadd.f32 %v2289_v6, %v1667_v21  ;;  %v1682_v45 = vadd.f32 %v2289_v6, %v1668_v25 }
 0x185   : > { %v1679_v24 = vadd.f32 %v2289_v6, %v1665_v15  ;;  %vm1685_vm10 = vcmp.ge.f32.partialorder %v1675_v19, 0.0  ;;  %v1695_v26 = vmul.f32 0.2, %v1675_v19  ;;  %vm1686_vm11 = vcmp.ge.f32.partialorder %v1676_v20, 0.0  ;;  %v1656_v38 = vld [vmem:[#allocation2 + $0x48] sm:$0xff] }
 0x186   : > { %v1696_v27 = vmul.f32 0.2, %v1676_v20  ;;  %vm1687_vm12 = vcmp.ge.f32.partialorder %v1677_v22, 0.0  ;;  %v1697_v28 = vmul.f32 0.2, %v1677_v22  ;;  %vm1688_vm13 = vcmp.ge.f32.partialorder %v1678_v23, 0.0 }
 0x187   : > { %v1698_v29 = vmul.f32 0.2, %v1678_v23  ;;  %v1705_v30 = vsel %vm1685_vm10, %v1675_v19, %v1695_v26  ;;  %vm1689_vm14 = vcmp.ge.f32.partialorder %v1679_v24, 0.0  ;;  %v1699_v32 = vmul.f32 0.2, %v1679_v24 }
 0x188   : > { %v1706_v31 = vsel %vm1686_vm11, %v1676_v20, %v1696_v27  ;;  %v1715_v34 = vpack.c.bf16 %v1705_v30, %v1705_v30  ;;  %v1707_v36 = vsel %vm1687_vm12, %v1677_v22, %v1697_v28  ;;  %v1669_v46 = vmul.f32 %v2288_v5, %v1655_v33 }
 0x189   : > { %v1716_v35 = vpack.c.bf16 %v1706_v31, %v1706_v31  ;;  %v1708_v37 = vsel %vm1688_vm13, %v1678_v23, %v1698_v29  ;;  %v1717_v39 = vpack.c.bf16 %v1707_v36, %v1707_v36  ;;  %v1709_v41 = vsel %vm1689_vm14, %v1679_v24, %v1699_v32 }
 0x18a   : > { %v1718_v40 = vpack.c.bf16 %v1708_v37, %v1708_v37  ;;  %1726 = vst.msk [vmem:[%s2425_s13] sm:$0xf] %vm1725_vm9, %v1715_v34  ;;  %v1719_v43 = vpack.c.bf16 %v1709_v41, %v1709_v41  ;;  %vm1690_vm15 = vcmp.ge.f32.partialorder %v1680_v42, 0.0  ;;  %v1700_v47 = vmul.f32 0.2, %v1680_v42 }
 0x18b   : > { %1727 = vst.msk [vmem:[%s2425_s13 + $0x4] sm:$0xf] %vm1725_vm9, %v1716_v35  ;;  %v1670_v48 = vmul.f32 %v2288_v5, %v1656_v38  ;;  %vm1691_vm0 = vcmp.ge.f32.partialorder %v1681_v44, 0.0  ;;  %v1701_v49 = vmul.f32 0.2, %v1681_v44  ;;  %vm1692_vm1 = vcmp.ge.f32.partialorder %v1682_v45, 0.0 }
 0x18c   : > { %1728 = vst.msk [vmem:[%s2425_s13 + $0x8] sm:$0xf] %vm1725_vm9, %v1717_v39  ;;  %v1683_v50 = vadd.f32 %v2289_v6, %v1669_v46  ;;  %v1710_v51 = vsel %vm1690_vm15, %v1680_v42, %v1700_v47  ;;  %v1702_v52 = vmul.f32 0.2, %v1682_v45 }
 0x18d   : > { %1729 = vst.msk [vmem:[%s2425_s13 + $0xc] sm:$0xf] %vm1725_vm9, %v1718_v40  ;;  %v1684_v53 = vadd.f32 %v2289_v6, %v1670_v48  ;;  %v1720_v54 = vpack.c.bf16 %v1710_v51, %v1710_v51  ;;  %v1711_v56 = vsel %vm1691_vm0, %v1681_v44, %v1701_v49 }
 0x18e   : > { %1730 = vst.msk [vmem:[%s2425_s13 + $0x10] sm:$0xf] %vm1725_vm9, %v1719_v43  ;;  %vm1693_vm2 = vcmp.ge.f32.partialorder %v1683_v50, 0.0  ;;  %v1703_v57 = vmul.f32 0.2, %v1683_v50  ;;  %v1721_v58 = vpack.c.bf16 %v1711_v56, %v1711_v56  ;;  %v1712_v59 = vsel %vm1692_vm1, %v1682_v45, %v1702_v52 }
 0x18f   : > { %vm1694_vm3 = vcmp.ge.f32.partialorder %v1684_v53, 0.0  ;;  %v1704_v60 = vmul.f32 0.2, %v1684_v53  ;;  %1731 = vst.msk [vmem:[%s2425_s13 + $0x14] sm:$0xf] %vm1725_vm9, %v1720_v54  ;;  %v1722_v61 = vpack.c.bf16 %v1712_v59, %v1712_v59 }
 0x190   : > { %v1713_v62 = vsel %vm1693_vm2, %v1683_v50, %v1703_v57  ;;  %1732 = vst.msk [vmem:[%s2425_s13 + $0x18] sm:$0xf] %vm1725_vm9, %v1721_v58 }
 0x191   : > { %v1723_v63 = vpack.c.bf16 %v1713_v62, %v1713_v62  ;;  %v1714_v0 = vsel %vm1694_vm3, %v1684_v53, %v1704_v60  ;;  %1733 = vst.msk [vmem:[%s2425_s13 + $0x1c] sm:$0xf] %vm1725_vm9, %v1722_v61 }
 0x192   : > { %v1724_v1 = vpack.c.bf16 %v1714_v0, %v1714_v0 }
 0x193   : > { %1734 = vst.msk [vmem:[%s2425_s13 + $0x20] sm:$0xf] %vm1725_vm9, %v1723_v63 }
 0x194   : > { %1735 = vst.msk [vmem:[%s2425_s13 + $0x24] sm:$0xf] %vm1725_vm9, %v1724_v1 }
 0x195 PF: > { %s14_s21 = sadd.s32 1, %s2344_s21   ;;  %s2755_s15 = smov %s2332_s18 }
 0x196   : > { %p11_p11 = scmp.ge.s32.totalorder %s14_s21, 50   ;;  %s2756_s16 = smov %s2336_s19 }
 0x197   : > { %s2757_s17 = smov %s2340_s20  ;;  %s2758_s18 = smov %s2762_s22 }
 0x198   : > { %s2759_s19 = smov %s2766_s23  ;;  %s2760_s20 = smov %s2770_s24 }
 0x199   :  { %13 = sbr.rel (!%p11_p11) target bundleno = 4 (0x4), region = 83 }

// kernel: forward.7
= control target key start
LH: loop header
LB: loop body
LE: loop exit
PB: predicated region body
PF: predicated region fallthrough
CT: control target
= control target key end

     0   :  { %s8037_s26 = smov 0   ;;  %s8039_s27 = smov 0   ;;  %s10778_s0 = inlined_call_operand.vmem [shape: bf16[2,18,342,8], index: 0, kind: input, shape index: {}]   ;;  %s10779_s1 = inlined_call_operand.vmem [shape: bf16[27,8,4], index: 1, kind: input, shape index: {}]   ;;  %s10780_s2 = inlined_call_operand.vmem [shape: f32[1,4], index: 2, kind: input, shape index: {}]   ;;  %s10781_s3 = inlined_call_operand.vmem [shape: f32[1,4], index: 3, kind: input, shape index: {}]   ;;  %s10782_s4 = inlined_call_operand.vmem [shape: f32[4,1], index: 4, kind: input, shape index: {}]   ;;  %s10783_s5 = inlined_call_operand.<no memory space> [shape: f32[1,1], index: 5, kind: input, shape index: {}]   ;;  %s10784_s6 = inlined_call_operand.vmem [shape: f32[2,16,16,18], index: 6, kind: output, shape index: {0}]   ;;  %s10785_s7 = inlined_call_operand.vmem [shape: f32[2,16,16,18], index: 7, kind: output, shape index: {1}]  }
   0x1   :  { %v13_v0 = vstv %s10783_s5  ;;  %s8041_s28 = smov 0   ;;  %s8043_s29 = smov 0  }
   0x2   :  { %14 = vst [vmem:[#allocation3] sm:$0x1] %v13_v0  ;;  %s8045_s30 = smov 0   ;;  %s8047_s8 = smov 0  }
   0x3   :  { %s8049_s9 = smov 0  }
   0x4 LB: > { %s32_s5 = sadd.s32 1, %s7978_s29  ;;  %s35_s10 = sadd.s32 1, %s7982_s30  ;;  %s7990_s9 = sphi %s8049_s9, %s20_s9   ;;  %s7986_s8 = sphi %s8047_s8, %s10813_s8   ;;  %s7982_s30 = sphi %s8045_s30, %s10812_s30   ;;  %s7978_s29 = sphi %s8043_s29, %s10811_s29   ;;  %s7974_s28 = sphi %s8041_s28, %s10810_s28   ;;  %s7970_s27 = sphi %s8039_s27, %s10809_s27   ;;  %s7966_s26 = sphi %s8037_s26, %s10808_s26  }
   0x5   : > { %p33_p0 = scmp.ge.s32.totalorder %s32_s5, 3  ;;  %p6680_p1 = scmp.ge.s32.totalorder %s7990_s9, 1 }
   0x6   : > { %p275_p2 = scmp.lt.s32.totalorder %s7990_s9, 97  ;;  %s39_s11 = sadd.s32 1, %s7986_s8 }
   0x7   : > { %s10815_s5 = smov (%p33_p0, %s32_s5), 0  ;;  %s10817_s10 = smov (!%p33_p0, %s35_s10), %s7982_s30 }
   0x8   : > { %10790 = sst [smem:[#allocation4_spill]] %s10815_s5  ;;  %p276_p3 = pnand %p6680_p1, %p275_p2 }
   0x9   : > { %p37_p4 = scmp.ge.s32.totalorder %s10817_s10, 16  ;;  %s325_s12 = sadd.s32 (!%p276_p3), %s7966_s26, %s7970_s27 }
   0xa   : > { %p326_p6 = scmp.lt.s32.totalorder (!%p276_p3), %s7974_s28, 1  ;;  %p328_p7 = scmp.lt.s32.totalorder (!%p276_p3), %s325_s12, 17 }
   0xb   : > { %s10819_s10 = smov (%p37_p4, %s10817_s10), 0  ;;  %s10821_s11 = smov (!%p37_p4, %s39_s11), %s7986_s8 }
   0xc   : > { %10791 = sst [smem:[#allocation5_spill]] %s10819_s10  ;;  %p41_p5 = scmp.ge.s32.totalorder %s10821_s11, 2 }
   0xd   : > { %279 = sbr.rel (%p276_p3) target bundleno = 1631 (0x65f), region = 44  ;;  %p338_p8 = scmp.lt.s32.totalorder (!%p276_p3), %s7970_s27, 15 }
   0xe   : > { %s10823_s11 = smov (%p41_p5, %s10821_s11), 0  ;;  %p6688_p9 = scmp.ne.s32.totalorder (!%p276_p3), %s7966_s26, 0 }
   0xf   : > { %10792 = sst [smem:[#allocation6_spill]] %s10823_s11 }
  0x12   : > { %s10825_s28 = smov (!%p326_p6, %s7974_s28), 1  ;;  %s10827_s12 = smov (!%p328_p7, %s325_s12), 17 }
  0x13   : > { %s7726_s13 = smul.u32 774, %s10825_s28  ;;  %s6683_s15 = sshll.u32 %s10825_s28, 5 }
  0x14   : > { %s7725_s14 = smul.u32 43, %s10827_s12  ;;  %s10829_s27 = smov (!%p338_p8, %s7970_s27), 15 }
  0x15   : > { %s6682_s18 = sshll.u32 %s10829_s27, 1  ;;  %358 = sbr.rel (%p6688_p9) target bundleno = 63 (0x3f), region = 48 }
  0x16   : > { %s332_s16 = sadd.s32 %s7726_s13, %s7725_s14  ;;  %s342_s22 = sadd.s32 %s6683_s15, %s6682_s18 }
  0x17   : > { %s6681_s17 = sshll.u32 %s332_s16, 2  ;;  %s6684_s23 = sshll.u32 %s342_s22, 3 }
  0x18   : > { %s8090_s21 = scalar_lea.vmem %s10778_s0, %s6681_s17  ;;  %s8095_s11 = scalar_lea.vmem %s10784_s6, %s6684_s23 }
  0x19   : > { %s8100_s28 = scalar_lea.vmem %s10785_s7, %s6684_s23 }
  0x1a   : > { %vm359_vm0 = vcmask 31744   ;;  %v7992_v1 = vmov 0.0  }
  0x1b   : > { %360 = vst.msk [vmem:[#allocation2] sm:$0xff] %vm359_vm0, %v7992_v1 }
  0x1c   : > { %361 = vst.msk [vmem:[#allocation2 + $0x8] sm:$0xff] %vm359_vm0, %v7992_v1 }
  0x1d   : > { %362 = vst.msk [vmem:[#allocation2 + $0x10] sm:$0xff] %vm359_vm0, %v7992_v1 }
  0x1e   : > { %363 = vst.msk [vmem:[#allocation2 + $0x18] sm:$0xff] %vm359_vm0, %v7992_v1 }
  0x1f   : > { %364 = vst.msk [vmem:[#allocation2 + $0x20] sm:$0xff] %vm359_vm0, %v7992_v1 }
  0x20   : > { %365 = vst.msk [vmem:[#allocation2 + $0x28] sm:$0xff] %vm359_vm0, %v7992_v1 }
  0x21   : > { %366 = vst.msk [vmem:[#allocation2 + $0x30] sm:$0xff] %vm359_vm0, %v7992_v1 }
  0x22   : > { %367 = vst.msk [vmem:[#allocation2 + $0x38] sm:$0xff] %vm359_vm0, %v7992_v1 }
  0x23   : > { %368 = vst.msk [vmem:[#allocation2 + $0x40] sm:$0xff] %vm359_vm0, %v7992_v1 }
  0x24   : > { %369 = vst.msk [vmem:[#allocation2 + $0x48] sm:$0xff] %vm359_vm0, %v7992_v1 }
  0x25   : > { %370 = vst.msk [vmem:[#allocation2 + $0x50] sm:$0xff] %vm359_vm0, %v7992_v1 }
  0x26   : > { %371 = vst.msk [vmem:[#allocation2 + $0x58] sm:$0xff] %vm359_vm0, %v7992_v1 }
  0x27   : > { %372 = vst.msk [vmem:[#allocation2 + $0x60] sm:$0xff] %vm359_vm0, %v7992_v1 }
  0x28   : > { %373 = vst.msk [vmem:[#allocation2 + $0x68] sm:$0xff] %vm359_vm0, %v7992_v1 }
  0x29   : > { %374 = vst.msk [vmem:[#allocation2 + $0x70] sm:$0xff] %vm359_vm0, %v7992_v1 }
  0x2a   : > { %375 = vst.msk [vmem:[#allocation2 + $0x78] sm:$0xff] %vm359_vm0, %v7992_v1 }
  0x2b   : > { %376 = vst.msk [vmem:[#allocation2 + $0x80] sm:$0xff] %vm359_vm0, %v7992_v1 }
  0x2c   : > { %377 = vst.msk [vmem:[#allocation2 + $0x88] sm:$0xff] %vm359_vm0, %v7992_v1 }
  0x2d   : > { %378 = vst.msk [vmem:[#allocation2 + $0x90] sm:$0xff] %vm359_vm0, %v7992_v1 }
  0x2e   : > { %379 = vst.msk [vmem:[#allocation2 + $0x98] sm:$0xff] %vm359_vm0, %v7992_v1 }
  0x2f   : > { %380 = vst.msk [vmem:[#allocation2 + $0xa0] sm:$0xff] %vm359_vm0, %v7992_v1 }
  0x30   : > { %381 = vst.msk [vmem:[#allocation2 + $0xa8] sm:$0xff] %vm359_vm0, %v7992_v1 }
  0x31   : > { %382 = vst.msk [vmem:[#allocation2 + $0xb0] sm:$0xff] %vm359_vm0, %v7992_v1 }
  0x32   : > { %383 = vst.msk [vmem:[#allocation2 + $0xb8] sm:$0xff] %vm359_vm0, %v7992_v1 }
  0x33   : > { %384 = vst.msk [vmem:[#allocation2 + $0xc0] sm:$0xff] %vm359_vm0, %v7992_v1 }
  0x34   : > { %385 = vst.msk [vmem:[#allocation2 + $0xc8] sm:$0xff] %vm359_vm0, %v7992_v1 }
  0x35   : > { %386 = vst.msk [vmem:[#allocation2 + $0xd0] sm:$0xff] %vm359_vm0, %v7992_v1 }
  0x36   : > { %387 = vst.msk [vmem:[#allocation2 + $0xd8] sm:$0xff] %vm359_vm0, %v7992_v1 }
  0x37   : > { %388 = vst.msk [vmem:[#allocation2 + $0xe0] sm:$0xff] %vm359_vm0, %v7992_v1 }
  0x38   : > { %389 = vst.msk [vmem:[#allocation2 + $0xe8] sm:$0xff] %vm359_vm0, %v7992_v1 }
  0x39   : > { %390 = vst.msk [vmem:[#allocation2 + $0xf0] sm:$0xff] %vm359_vm0, %v7992_v1 }
  0x3a   : > { %391 = vst.msk [vmem:[#allocation2 + $0xf8] sm:$0xff] %vm359_vm0, %v7992_v1 }
  0x3b   : > { %392 = vst.msk [vmem:[#allocation2 + $0x100] sm:$0xff] %vm359_vm0, %v7992_v1 }
  0x3c   : > { %393 = vst.msk [vmem:[#allocation2 + $0x108] sm:$0xff] %vm359_vm0, %v7992_v1 }
  0x3d   : > { %394 = vst.msk [vmem:[#allocation2 + $0x110] sm:$0xff] %vm359_vm0, %v7992_v1 }
  0x3e   : > { %395 = vst.msk [vmem:[#allocation2 + $0x118] sm:$0xff] %vm359_vm0, %v7992_v1 }
  0x3f PF: > { %s7574_s27 = smul.u32 36, %s7966_s26  ;;  %vm617_vm1 = vcmask 1043456   ;;  %v7561_v2 = vld [vmem:[%s8090_s21 + $0x28] sm:$0xff]  ;;  %v7566_v7 = vld [vmem:[%s8090_s21 + $0x50] sm:$0xff]  ;;  %vm562_vm2 = vcmask 64512   ;;  %v7556_v11 = vld [vmem:[%s8090_s21] sm:$0xff] }
  0x40   : > { %v7571_v13 = vld [vmem:[%s8090_s21 + $0x78] sm:$0xff]  ;;  %v7562_v16 = vld [vmem:[%s8090_s21 + $0x30] sm:$0xff]  ;;  %v7557_v18 = vld [vmem:[%s8090_s21 + $0x8] sm:$0xff]  ;;  %vm1510_vm3 = vcmask 1046528   ;;  %vm963_vm4 = vsmask.f32 7424 }
  0x41   : > { %s8143_s12 = scalar_lea.vmem %s10779_s1, %s7574_s27  ;;  %v7567_v17 = vld [vmem:[%s8090_s21 + $0x58] sm:$0xff]  ;;  %v7572_v19 = vld [vmem:[%s8090_s21 + $0x80] sm:$0xff]  ;;  %v7558_v22 = vld [vmem:[%s8090_s21 + $0x10] sm:$0xff]  ;;  %vm2381_vm5 = vsmask.f32 6400  ;;  %vm756_vm6 = vcmask 31744  }
  0x42   : > { %v435_v3 = vld [vmem:[%s8143_s12] sm:$0xf]  ;;  %v6781_v4 = vld [vmem:[%s8143_s12 + $0x4] sm:$0xf]  ;;  %v6873_v5 = vld [vmem:[%s8143_s12 + $0x8] sm:$0xf] }
  0x43   : > { %v619_v6 = vsel %vm617_vm1, %v435_v3, 0  ;;  %v1167_v8 = vsel %vm617_vm1, %v6781_v4, 0  ;;  %v1603_v9 = vsel %vm617_vm1, %v6873_v5, 0  ;;  %v7057_v10 = vld [vmem:[%s8143_s12 + $0x10] sm:$0xf]  ;;  %v7563_v20 = vld [vmem:[%s8090_s21 + $0x38] sm:$0xff] }
  0x44   : > { %7719 = vmatpush.bf16.msra.mxu1 %v619_v6  ;;  %7720 = vmatpush.bf16.msra.mxu2 %v619_v6  ;;  %v2607_v12 = vsel %vm617_vm1, %v7057_v10, 0  ;;  %v6965_v14 = vld [vmem:[%s8143_s12 + $0xc] sm:$0xf]  ;;  %v7568_v21 = vld [vmem:[%s8090_s21 + $0x60] sm:$0xff]  ;;  %v7559_v26 = vld [vmem:[%s8090_s21 + $0x18] sm:$0xff]  ;;  %vm2950_vm8 = vcmask 1045504  }
  0x45   : > { %628 = vmatpush.bf16.msra.mxu0 %v619_v6  ;;  %7721 = vmatpush.bf16.msra.mxu3 %v619_v6  ;;  %v2038_v15 = vsel %vm617_vm1, %v6965_v14, 0  ;;  %v7573_v23 = vld [vmem:[%s8090_s21 + $0x88] sm:$0xff]  ;;  %v7564_v24 = vld [vmem:[%s8090_s21 + $0x40] sm:$0xff]  ;;  %v7149_v27 = vld [vmem:[%s8143_s12 + $0x14] sm:$0xf]  ;;  %vm4390_vm9 = vcmask 1044480  }
  0x46   : > { %v7569_v25 = vld [vmem:[%s8090_s21 + $0x68] sm:$0xff]  ;;  %v7241_v28 = vld [vmem:[%s8143_s12 + $0x18] sm:$0xf]  ;;  %v3043_v29 = vsel %vm617_vm1, %v7149_v27, 0  ;;  %v7612_v33 = vld [vmem:[%s8090_s21 + $0x10] sm:$0xff]  ;;  %p7516_p10 = scmp.ne.s32.totalorder %s7966_s26, 2 }
  0x47   : > { %6767 = vmatmul.msk.bf16.vlgmr.msra.gmra.mxu1 %vm562_vm2, %v7561_v2  ;;  %6772 = vmatmul.msk.bf16.vlgmr.msra.gmra.mxu2 %vm562_vm2, %v7566_v7  ;;  %v3478_v30 = vsel %vm617_vm1, %v7241_v28, 0  ;;  %v6968_v31 = vld [vmem:[%s8090_s21 + $0x8] sm:$0xe]  ;;  %v7611_v32 = vld [vmem:[%s8090_s21 + $0x8] sm:$0xf0]  ;;  %v1947_v38 = vrot.slane %v7612_v33, 1 }
  0x48   : > { %1176 = vmatpush.bf16.msrb.mxu1 %v1167_v8  ;;  %1612 = vmatpush.bf16.msrb.mxu2 %v1603_v9  ;;  %v6969_v34 = vor.u32 %v7611_v32, %v6968_v31  ;;  %v7333_v35 = vld [vmem:[%s8143_s12 + $0x1c] sm:$0xf]  ;;  %v7565_v40 = vld [vmem:[%s8090_s21 + $0x48] sm:$0xff]  ;;  %v7570_v41 = vld [vmem:[%s8090_s21 + $0x70] sm:$0xff]  ;;  %vm3821_vm7 = vsmask.f32 5376 }
  0x49   : > { %2616 = vmatpush.bf16.msrb.mxu0 %v2607_v12  ;;  %6777 = vmatmul.msk.bf16.vlgmr.msra.gmra.mxu3 %vm562_vm2, %v7571_v13  ;;  %v4047_v36 = vsel %vm617_vm1, %v7333_v35, 0  ;;  %v7060_v42 = vld [vmem:[%s8090_s21 + $0x8] sm:$0xe]  ;;  %v7629_v43 = vld [vmem:[%s8090_s21 + $0x8] sm:$0xf0]  ;;  %v7575_v44 = vld [vmem:[%s8090_s21] sm:$0xff] }
  0x4a   : > { %6762 = vmatmul.msk.bf16.vlgmr.msra.gmra.mxu0 %vm562_vm2, %v7556_v11  ;;  %2047 = vmatpush.bf16.msrb.mxu3 %v2038_v15  ;;  %v1946_v37 = vrot.slane %v6969_v34, 1  ;;  %v7560_v45 = vld [vmem:[%s8090_s21 + $0x20] sm:$0xff]  ;;  %v7630_v46 = vld [vmem:[%s8090_s21 + $0x10] sm:$0xff]  ;;  %v7061_v47 = vor.u32 %v7629_v43, %v7060_v42  ;;  %v7613_v48 = vld [vmem:[%s8090_s21 + $0x18] sm:$0xff]  ;;  %v967_v51 = vshll.u32 %v7575_v44, 16  ;;  %v965_v61 = vshrl.u32 %v7575_v44, 16 }
  0x4b   : > { %v7425_v49 = vld [vmem:[%s8143_s12 + $0x20] sm:$0xf]  ;;  %v7576_v50 = vld [vmem:[%s8090_s21 + $0x8] sm:$0xff]  ;;  %v7593_v54 = vld [vmem:[%s8090_s21] sm:$0xf0]  ;;  %v1949_v55 = vrot.slane %v7613_v48, 1 }
  0x4c   : > { %3052 = vmatpush.bf16.msra.mxu1 %v3043_v29  ;;  %3487 = vmatpush.bf16.msra.mxu2 %v3478_v30  ;;  %v1948_v39 = vsel %vm1510_vm3, %v1946_v37, %v1947_v38  ;;  %v4483_v52 = vsel %vm617_vm1, %v7425_v49, 0  ;;  %v6876_v53 = vld [vmem:[%s8090_s21] sm:$0xe]  ;;  %v2383_v56 = vshrl.u32 %v7061_v47, 16  ;;  %v2386_v57 = vshll.u32 %v7061_v47, 16  ;;  %v7594_v0 = vld [vmem:[%s8090_s21 + $0x8] sm:$0xff] }
  0x4d   : > { %v2391_v58 = vshrl.u32 %v7630_v46, 16  ;;  %v2394_v59 = vshll.u32 %v7630_v46, 16  ;;  %4492 = vmatpush.bf16.msra.mxu0 %v4483_v52  ;;  %v1950_v60 = vsel %vm1510_vm3, %v1947_v38, %v1949_v55  ;;  %v969_v62 = vrot.slane %v967_v51, 1  ;;  %v7631_v15 = vld [vmem:[%s8090_s21 + $0x18] sm:$0xff]  ;;  %v7632_v34 = vld [vmem:[%s8090_s21 + $0x20] sm:$0xff] }
  0x4e   : > { %4056 = vmatpush.bf16.msra.mxu3 %v4047_v36  ;;  %v972_v63 = vshll.u32 %v7576_v50, 16  ;;  %v6877_v1 = vor.u32 %v7593_v54, %v6876_v53  ;;  %v2385_v2 = vrot.slane %v2383_v56, 1  ;;  %v2388_v3 = vrot.slane %v2386_v57, 2  ;;  %v7578_v35 = vld [vmem:[%s8090_s21 + $0x18] sm:$0xff]  ;;  %v7615_v36 = vld [vmem:[%s8090_s21 + $0x28] sm:$0xff]  ;;  %v7579_v54 = vld [vmem:[%s8090_s21 + $0x20] sm:$0xff] }
  0x4f   : > { %v2393_v4 = vrot.slane %v2391_v58, 1  ;;  %v2396_v5 = vrot.slane %v2394_v59, 2  ;;  %v970_v6 = vor.u32 %v969_v62, %v965_v61  ;;  %v1512_v9 = vrot.slane %v7594_v0, 1  ;;  %v7596_v42 = vld [vmem:[%s8090_s21 + $0x18] sm:$0xff]  ;;  %v7633_v53 = vld [vmem:[%s8090_s21 + $0x28] sm:$0xff]  ;;  %v8249_v61 = vld [vmem:[%s8090_s21 + $0x20] sm:$0xff] }
  0x50   : > { %v974_v7 = vrot.slane %v972_v63, 1  ;;  %v1511_v8 = vrot.slane %v6877_v1, 1  ;;  %v2389_v10 = vor.u32 %v2388_v3, %v2385_v2  ;;  %v1953_v37 = vrot.slane %v7615_v36, 1 }
  0x51   : > { %v2397_v11 = vor.u32 %v2396_v5, %v2393_v4  ;;  %v2409_v38 = vshrl.u32 %v7632_v34, 16  ;;  %v1516_v48 = vrot.slane %v7596_v42, 1  ;;  %v2418_v57 = vshrl.u32 %v7633_v53, 16  ;;  %v446_v4 = vld [vmem:[#allocation2 + $0x50] sm:$0xff] }
  0x52   : > { %v975_v12 = vsel %vm963_vm4, %v970_v6, %v974_v7  ;;  %v1513_v13 = vsel %vm1510_vm3, %v1511_v8, %v1512_v9  ;;  %v2421_v58 = vshll.u32 %v7633_v53, 16  ;;  %v992_v59 = vshrl.u32 %v7578_v35, 16  ;;  %v7635_v53 = vld [vmem:[%s8090_s21 + $0x38] sm:$0xff] }
  0x53   : > { %v2398_v14 = vsel %vm2381_vm5, %v2389_v10, %v2397_v11  ;;  %v2411_v44 = vrot.slane %v2409_v38, 1  ;;  %v2420_v63 = vrot.slane %v2418_v57, 1  ;;  %v1518_v3 = vrot.slane %v8249_v61, 1  ;;  %v458_v57 = vld [vmem:[#allocation2 + $0xb0] sm:$0xff] }
  0x54   : > { %v2423_v0 = vrot.slane %v2421_v58, 2  ;;  %v8297_v58 = vld [vmem:[%s8090_s21 + $0x30] sm:$0xff] }
  0x55   : > { %v1519_v8 = vsel %vm1510_vm3, %v1516_v48, %v1518_v3 }
  0x56   : > { %v2424_v5 = vor.u32 %v2423_v0, %v2420_v63  ;;  %v2436_v0 = vshrl.u32 %v7635_v53, 16 }
  0x57   : > { %6768 = vmatmul.msk.bf16.gmra.mxu1 %vm562_vm2, %v7562_v16  ;;  %6773 = vmatmul.msk.bf16.gmra.mxu2 %vm562_vm2, %v7567_v17  ;;  %v7614_v16 = vld [vmem:[%s8090_s21 + $0x20] sm:$0xff]  ;;  %v7577_v17 = vld [vmem:[%s8090_s21 + $0x10] sm:$0xff] }
  0x59   : > { %6778 = vmatmul.msk.bf16.gmra.mxu3 %vm562_vm2, %v7572_v19  ;;  %v2400_v19 = vshrl.u32 %v7631_v15, 16 }
  0x5a   : > { %6763 = vmatmul.msk.bf16.gmra.mxu0 %vm562_vm2, %v7557_v18  ;;  %v1951_v18 = vrot.slane %v7614_v16, 1  ;;  %v8262_v16 = vld [vmem:[%s8090_s21 + $0x28] sm:$0xff] }
  0x5c   : > { %v1954_v43 = vsel %vm1510_vm3, %v1951_v18, %v1953_v37 }
  0x67   : > { %6769 = vmatmul.msk.bf16.gmra.mxu1 %vm562_vm2, %v7563_v20  ;;  %6774 = vmatmul.msk.bf16.gmra.mxu2 %vm562_vm2, %v7568_v21  ;;  %v2403_v20 = vshll.u32 %v7631_v15, 16  ;;  %v1952_v21 = vsel %vm1510_vm3, %v1949_v55, %v1951_v18  ;;  %v7616_v55 = vld [vmem:[%s8090_s21 + $0x30] sm:$0xff]  ;;  %v456_v15 = vld [vmem:[#allocation2 + $0xa0] sm:$0xff] }
  0x68   : > { %v1955_v56 = vrot.slane %v7616_v55, 1  ;;  %v467_v55 = vld [vmem:[#allocation2 + $0xf8] sm:$0xff] }
  0x69   : > { %6779 = vmatmul.msk.bf16.gmra.mxu3 %vm562_vm2, %v7573_v23  ;;  %v980_v23 = vshll.u32 %v7577_v17, 16 }
  0x6a   : > { %6764 = vmatmul.msk.bf16.gmra.mxu0 %vm562_vm2, %v7558_v22  ;;  %v976_v22 = vshrl.u32 %v7576_v50, 16  ;;  %v1956_v62 = vsel %vm1510_vm3, %v1953_v37, %v1955_v56  ;;  %v457_v37 = vld [vmem:[#allocation2 + $0xa8] sm:$0xff] }
  0x6b   : > { %v982_v28 = vrot.slane %v980_v23, 1 }
  0x6c   : > { %v978_v27 = vor.u32 %v976_v22, %v974_v7 }
  0x6e   : > { %v983_v31 = vsel %vm963_vm4, %v978_v27, %v982_v28  ;;  %v8272_v27 = vld [vmem:[%s8090_s21 + $0x28] sm:$0xff] }
  0x77   : > { %6770 = vmatmul.msk.bf16.gmra.mxu1 %vm562_vm2, %v7564_v24  ;;  %6775 = vmatmul.msk.bf16.gmra.mxu2 %vm562_vm2, %v7569_v25  ;;  %v7595_v24 = vld [vmem:[%s8090_s21 + $0x10] sm:$0xff]  ;;  %v2402_v25 = vrot.slane %v2400_v19, 1  ;;  %v447_v19 = vld [vmem:[#allocation2 + $0x58] sm:$0xff] }
  0x78   : > { %v1514_v29 = vrot.slane %v7595_v24, 1 }
  0x79   : > { %7038 = vmatmul.msk.bf16.vlgmr.msrb.gmra.mxu3 %vm562_vm2, %v1948_v39  ;;  %v2412_v39 = vshll.u32 %v7632_v34, 16 }
  0x7a   : > { %6765 = vmatmul.msk.bf16.gmra.mxu0 %vm562_vm2, %v7559_v26  ;;  %v2405_v26 = vrot.slane %v2403_v20, 2  ;;  %v1515_v32 = vsel %vm1510_vm3, %v1512_v9, %v1514_v29  ;;  %v1517_v51 = vsel %vm1510_vm3, %v1514_v29, %v1516_v48  ;;  %v436_v9 = vld [vmem:[#allocation2] sm:$0xff] }
  0x7c   : > { %v2406_v30 = vor.u32 %v2405_v26, %v2402_v25  ;;  %v1000_v25 = vshrl.u32 %v7579_v54, 16  ;;  %v1004_v26 = vshll.u32 %v8262_v16, 16 }
  0x7e   : > { %v2407_v33 = vsel %vm2381_vm5, %v2397_v11, %v2406_v30 }
  0x87   : > { %6771 = vmatmul.msk.bf16.gmra.mxu1 %vm562_vm2, %v7565_v40  ;;  %6776 = vmatmul.msk.bf16.gmra.mxu2 %vm562_vm2, %v7570_v41  ;;  %v984_v40 = vshrl.u32 %v7577_v17, 16  ;;  %v988_v41 = vshll.u32 %v7578_v35, 16  ;;  %v8265_v17 = vld [vmem:[%s8090_s21 + $0x38] sm:$0xff] }
  0x88   : > { %v1957_v20 = vrot.slane %v8265_v17, 1  ;;  %v466_v35 = vld [vmem:[#allocation2 + $0xf0] sm:$0xff] }
  0x89   : > { %7039 = vmatmul.msk.bf16.gmra.mxu3 %vm562_vm2, %v1950_v60  ;;  %v986_v46 = vor.u32 %v984_v40, %v982_v28  ;;  %v990_v47 = vrot.slane %v988_v41, 1  ;;  %v996_v60 = vshll.u32 %v7579_v54, 16  ;;  %v437_v28 = vld [vmem:[#allocation2 + $0x8] sm:$0xff]  ;;  %v1520_v40 = vrot.slane %v8272_v27, 1 }
  0x8a   : > { %6766 = vmatmul.msk.bf16.gmra.mxu0 %vm562_vm2, %v7560_v45  ;;  %v2414_v45 = vrot.slane %v2412_v39, 2  ;;  %v1958_v29 = vsel %vm1510_vm3, %v1955_v56, %v1957_v20  ;;  %v1006_v39 = vrot.slane %v1004_v26, 1 }
  0x8b   : > { %v991_v50 = vsel %vm963_vm4, %v986_v46, %v990_v47  ;;  %v994_v1 = vor.u32 %v992_v59, %v990_v47  ;;  %v998_v2 = vrot.slane %v996_v60, 1  ;;  %v1521_v48 = vsel %vm1510_vm3, %v1518_v3, %v1520_v40  ;;  %v8300_v60 = vld [vmem:[%s8090_s21 + $0x40] sm:$0xff] }
  0x8c   : > { %v2415_v49 = vor.u32 %v2414_v45, %v2411_v44  ;;  %v1959_v63 = vrot.slane %v8300_v60, 1 }
  0x8d   : > { %v999_v7 = vsel %vm963_vm4, %v994_v1, %v998_v2  ;;  %v1002_v38 = vor.u32 %v1000_v25, %v998_v2  ;;  %v2439_v1 = vshll.u32 %v7635_v53, 16 }
  0x8e   : > { %v2416_v52 = vsel %vm2381_vm5, %v2406_v30, %v2415_v49 }
  0x8f   : > { %v1007_v47 = vsel %vm963_vm4, %v1002_v38, %v1006_v39 }
  0x97   : > { %6854 = vmatmul.msk.bf16.vlgmr.msrb.gmra.mxu1 %vm562_vm2, %v975_v12  ;;  %6946 = vmatmul.msk.bf16.vlgmr.msrb.gmra.mxu2 %vm562_vm2, %v1513_v13  ;;  %v2425_v12 = vsel %vm2381_vm5, %v2415_v49, %v2424_v5  ;;  %v7634_v13 = vld [vmem:[%s8090_s21 + $0x30] sm:$0xff]  ;;  %v438_v49 = vld [vmem:[#allocation2 + $0x10] sm:$0xff] }
  0x98   : > { %v2430_v22 = vshll.u32 %v7634_v13, 16 }
  0x99   : > { %7040 = vmatmul.msk.bf16.gmra.mxu3 %vm562_vm2, %v1952_v21  ;;  %v2427_v21 = vshrl.u32 %v7634_v13, 16 }
  0x9a   : > { %7130 = vmatmul.msk.bf16.vlgmr.msrb.gmra.mxu0 %vm562_vm2, %v2398_v14 }
  0xa7   : > { %6855 = vmatmul.msk.bf16.gmra.mxu1 %vm562_vm2, %v983_v31  ;;  %6947 = vmatmul.msk.bf16.gmra.mxu2 %vm562_vm2, %v1515_v32  ;;  %v2429_v32 = vrot.slane %v2427_v21, 1 }
  0xa9   : > { %7041 = vmatmul.msk.bf16.gmra.mxu3 %vm562_vm2, %v1954_v43  ;;  %v448_v43 = vld [vmem:[#allocation2 + $0x60] sm:$0xff] }
  0xaa   : > { %7131 = vmatmul.msk.bf16.gmra.mxu0 %vm562_vm2, %v2407_v33  ;;  %v2432_v33 = vrot.slane %v2430_v22, 2  ;;  %v450_v22 = vld [vmem:[#allocation2 + $0x70] sm:$0xff] }
  0xac   : > { %v8282_v44 = vor.u32 %v2432_v33, %v2429_v32  ;;  %v7636_v33 = vld [vmem:[%s8090_s21 + $0x40] sm:$0xff] }
  0xb7   : > { %6856 = vmatmul.msk.bf16.gmra.mxu1 %vm562_vm2, %v991_v50  ;;  %6948 = vmatmul.msk.bf16.gmra.mxu2 %vm562_vm2, %v1517_v51 }
  0xb9   : > { %7042 = vmatmul.msk.bf16.gmra.mxu3 %vm562_vm2, %v1956_v62  ;;  %v449_v62 = vld [vmem:[#allocation2 + $0x68] sm:$0xff] }
  0xba   : > { %7132 = vmatmul.msk.bf16.gmra.mxu0 %vm562_vm2, %v2416_v52  ;;  %v2434_v52 = vsel %vm2381_vm5, %v2424_v5, %v8282_v44  ;;  %v1012_v5 = vshll.u32 %v8297_v58, 16 }
  0xc4   : > { %v655_v6 = vpop.f32.mrf.mxu1 }
  0xc5   : > { %v730_v10 = vadd.f32 %v655_v6, %v446_v4  ;;  %v1008_v4 = vshrl.u32 %v8262_v16, 16  ;;  %v8309_v6 = vld [vmem:[%s8090_s21 + $0x30] sm:$0xff]  ;;  %v459_v16 = vld [vmem:[#allocation2 + $0xb8] sm:$0xff] }
  0xc6   : > { %v1522_v17 = vrot.slane %v8309_v6, 1 }
  0xc7   : > { %v630_v11 = vpop.f32.mrf.mxu0  ;;  %767 = vst.msk [vmem:[#allocation2 + $0x50] sm:$0xff] %vm756_vm6, %v730_v10  ;;  %6857 = vmatmul.msk.bf16.gmra.mxu1 %vm562_vm2, %v999_v7  ;;  %6949 = vmatmul.msk.bf16.gmra.mxu2 %vm562_vm2, %v1519_v8  ;;  %v439_v7 = vld [vmem:[#allocation2 + $0x18] sm:$0xff]  ;;  %v1960_v8 = vsel %vm1510_vm3, %v1957_v20, %v1959_v63 }
  0xc8   : > { %v720_v14 = vadd.f32 %v630_v11, %v436_v9  ;;  %v2438_v11 = vrot.slane %v2436_v0, 1 }
  0xc9   : > { %7043 = vmatmul.msk.bf16.gmra.mxu3 %vm562_vm2, %v1958_v29  ;;  %v440_v29 = vld [vmem:[#allocation2 + $0x20] sm:$0xff] }
  0xca   : > { %757 = vst.msk [vmem:[#allocation2] sm:$0xff] %vm756_vm6, %v720_v14  ;;  %7133 = vmatmul.msk.bf16.gmra.mxu0 %vm562_vm2, %v2425_v12  ;;  %v680_v18 = vpop.f32.mrf.mxu2  ;;  %v2441_v12 = vrot.slane %v2439_v1, 2  ;;  %v468_v14 = vld [vmem:[#allocation2 + $0x100] sm:$0xff] }
  0xcb   : > { %v740_v23 = vadd.f32 %v680_v18, %v456_v15  ;;  %v1010_v18 = vor.u32 %v1008_v4, %v1006_v39  ;;  %v8342_v39 = vld [vmem:[%s8090_s21 + $0x48] sm:$0xff] }
  0xcc   : > { %v657_v24 = vpop.f32.mrf.mxu1  ;;  %v705_v36 = vpop.f32.mrf.mxu3  ;;  %v452_v1 = vld [vmem:[#allocation2 + $0x80] sm:$0xff] }
  0xcd   : > { %777 = vst.msk [vmem:[#allocation2 + $0xa0] sm:$0xff] %vm756_vm6, %v740_v23  ;;  %v731_v30 = vadd.f32 %v657_v24, %v447_v19  ;;  %v750_v41 = vadd.f32 %v705_v36, %v466_v35  ;;  %v1014_v19 = vrot.slane %v1012_v5, 1  ;;  %v8321_v23 = vor.u32 %v2441_v12, %v2438_v11  ;;  %v460_v36 = vld [vmem:[#allocation2 + $0xc0] sm:$0xff] }
  0xce   : > { %v7637_v12 = vld [vmem:[%s8090_s21 + $0x48] sm:$0xff] }
  0xcf   : > { %v632_v31 = vpop.f32.mrf.mxu0  ;;  %768 = vst.msk [vmem:[#allocation2 + $0x58] sm:$0xff] %vm756_vm6, %v731_v30  ;;  %v1015_v26 = vsel %vm963_vm4, %v1010_v18, %v1014_v19  ;;  %v2443_v32 = vsel %vm2381_vm5, %v8282_v44, %v8321_v23  ;;  %v2448_v44 = vshll.u32 %v7636_v33, 16 }
  0xd0   : > { %v721_v34 = vadd.f32 %v632_v31, %v437_v28  ;;  %787 = vst.msk [vmem:[#allocation2 + $0xf0] sm:$0xff] %vm756_vm6, %v750_v41  ;;  %v1523_v28 = vsel %vm1510_vm3, %v1520_v40, %v1522_v17  ;;  %v451_v41 = vld [vmem:[#allocation2 + $0x78] sm:$0xff] }
  0xd2   : > { %758 = vst.msk [vmem:[#allocation2 + $0x8] sm:$0xff] %vm756_vm6, %v721_v34  ;;  %v682_v42 = vpop.f32.mrf.mxu2  ;;  %v469_v34 = vld [vmem:[#allocation2 + $0x108] sm:$0xff] }
  0xd3   : > { %v741_v45 = vadd.f32 %v682_v42, %v457_v37  ;;  %v8339_v37 = vld [vmem:[%s8090_s21 + $0x38] sm:$0xff]  ;;  %v1961_v42 = vrot.slane %v8342_v39, 1 }
  0xd4   : > { %v660_v46 = vpop.f32.mrf.mxu1  ;;  %v707_v56 = vpop.f32.mrf.mxu3 }
  0xd5   : > { %778 = vst.msk [vmem:[#allocation2 + $0xa8] sm:$0xff] %vm756_vm6, %v741_v45  ;;  %v732_v50 = vadd.f32 %v660_v46, %v448_v43  ;;  %v751_v59 = vadd.f32 %v707_v56, %v467_v55  ;;  %v2445_v43 = vshrl.u32 %v7636_v33, 16  ;;  %v2450_v55 = vrot.slane %v2448_v44, 2 }
  0xd7   : > { %v635_v51 = vpop.f32.mrf.mxu0  ;;  %769 = vst.msk [vmem:[#allocation2 + $0x60] sm:$0xff] %vm756_vm6, %v732_v50  ;;  %6858 = vmatmul.msk.bf16.gmra.mxu1 %vm562_vm2, %v1007_v47  ;;  %6950 = vmatmul.msk.bf16.gmra.mxu2 %vm562_vm2, %v1521_v48  ;;  %v1016_v47 = vshrl.u32 %v8297_v58, 16  ;;  %v1020_v48 = vshll.u32 %v8339_v37, 16  ;;  %v441_v50 = vld [vmem:[#allocation2 + $0x28] sm:$0xff] }
  0xd8   : > { %v722_v54 = vadd.f32 %v635_v51, %v438_v49  ;;  %788 = vst.msk [vmem:[#allocation2 + $0xf8] sm:$0xff] %vm756_vm6, %v751_v59  ;;  %v8351_v49 = vld [vmem:[%s8090_s21 + $0x38] sm:$0xff]  ;;  %v1962_v51 = vsel %vm1510_vm3, %v1959_v63, %v1961_v42  ;;  %v461_v59 = vld [vmem:[#allocation2 + $0xc8] sm:$0xff] }
  0xd9   : > { %7044 = vmatmul.msk.bf16.gmra.mxu3 %vm562_vm2, %v1960_v8  ;;  %v1524_v60 = vrot.slane %v8351_v49, 1  ;;  %v442_v8 = vld [vmem:[#allocation2 + $0x30] sm:$0xff]  ;;  %v464_v49 = vld [vmem:[#allocation2 + $0xe0] sm:$0xff] }
  0xda   : > { %759 = vst.msk [vmem:[#allocation2 + $0x10] sm:$0xff] %vm756_vm6, %v722_v54  ;;  %7134 = vmatmul.msk.bf16.gmra.mxu0 %vm562_vm2, %v2434_v52  ;;  %v685_v61 = vpop.f32.mrf.mxu2  ;;  %v2447_v54 = vrot.slane %v2445_v43, 1 }
  0xdb   : > { %v742_v2 = vadd.f32 %v685_v61, %v458_v57  ;;  %v470_v57 = vld [vmem:[#allocation2 + $0x110] sm:$0xff]  ;;  %v1018_v61 = vor.u32 %v1016_v47, %v1014_v19  ;;  %v8384_v19 = vld [vmem:[%s8090_s21 + $0x50] sm:$0xff] }
  0xdc   : > { %v662_v3 = vpop.f32.mrf.mxu1  ;;  %v710_v15 = vpop.f32.mrf.mxu3 }
  0xdd   : > { %779 = vst.msk [vmem:[#allocation2 + $0xb0] sm:$0xff] %vm756_vm6, %v742_v2  ;;  %v733_v9 = vadd.f32 %v662_v3, %v449_v62  ;;  %v752_v20 = vadd.f32 %v710_v15, %v468_v14  ;;  %v1022_v62 = vrot.slane %v1020_v48, 1  ;;  %v8363_v2 = vor.u32 %v2450_v55, %v2447_v54  ;;  %v462_v15 = vld [vmem:[#allocation2 + $0xd0] sm:$0xff]  ;;  %v444_v48 = vld [vmem:[#allocation2 + $0x40] sm:$0xff] }
  0xde   : > { %v8417_v55 = vld [vmem:[%s8090_s21 + $0x48] sm:$0xff] }
  0xdf   : > { %v637_v10 = vpop.f32.mrf.mxu0  ;;  %770 = vst.msk [vmem:[#allocation2 + $0x68] sm:$0xff] %vm756_vm6, %v733_v9  ;;  %v1023_v5 = vsel %vm963_vm4, %v1018_v61, %v1022_v62  ;;  %v2452_v11 = vsel %vm2381_vm5, %v8321_v23, %v8363_v2  ;;  %v2457_v23 = vshll.u32 %v7637_v12, 16 }
  0xe0   : > { %v723_v13 = vadd.f32 %v637_v10, %v439_v7  ;;  %789 = vst.msk [vmem:[#allocation2 + $0x100] sm:$0xff] %vm756_vm6, %v752_v20  ;;  %v1525_v7 = vsel %vm1510_vm3, %v1522_v17, %v1524_v60  ;;  %v453_v20 = vld [vmem:[#allocation2 + $0x88] sm:$0xff] }
  0xe2   : > { %760 = vst.msk [vmem:[#allocation2 + $0x18] sm:$0xff] %vm756_vm6, %v723_v13  ;;  %v687_v21 = vpop.f32.mrf.mxu2  ;;  %v471_v13 = vld [vmem:[#allocation2 + $0x118] sm:$0xff] }
  0xe3   : > { %v743_v24 = vadd.f32 %v687_v21, %v459_v16  ;;  %v8381_v16 = vld [vmem:[%s8090_s21 + $0x40] sm:$0xff]  ;;  %v1963_v21 = vrot.slane %v8384_v19, 1 }
  0xe4   : > { %v665_v25 = vpop.f32.mrf.mxu1  ;;  %v712_v35 = vpop.f32.mrf.mxu3 }
  0xe5   : > { %780 = vst.msk [vmem:[#allocation2 + $0xb8] sm:$0xff] %vm756_vm6, %v743_v24  ;;  %v734_v30 = vadd.f32 %v665_v25, %v450_v22  ;;  %v753_v38 = vadd.f32 %v712_v35, %v469_v34  ;;  %v2454_v22 = vshrl.u32 %v7637_v12, 16  ;;  %v2459_v34 = vrot.slane %v2457_v23, 2  ;;  %v465_v12 = vld [vmem:[#allocation2 + $0xe8] sm:$0xff] }
  0xe7   : > { %v640_v31 = vpop.f32.mrf.mxu0  ;;  %771 = vst.msk [vmem:[#allocation2 + $0x70] sm:$0xff] %vm756_vm6, %v734_v30  ;;  %6859 = vmatmul.msk.bf16.gmra.mxu1 %vm562_vm2, %v1015_v26  ;;  %6951 = vmatmul.msk.bf16.gmra.mxu2 %vm562_vm2, %v1523_v28  ;;  %v1024_v26 = vshrl.u32 %v8339_v37, 16  ;;  %v1028_v28 = vshll.u32 %v8381_v16, 16  ;;  %v443_v30 = vld [vmem:[#allocation2 + $0x38] sm:$0xff] }
  0xe8   : > { %v724_v27 = vadd.f32 %v640_v31, %v440_v29  ;;  %790 = vst.msk [vmem:[#allocation2 + $0x108] sm:$0xff] %vm756_vm6, %v753_v38  ;;  %v8393_v29 = vld [vmem:[%s8090_s21 + $0x40] sm:$0xff]  ;;  %v1964_v31 = vsel %vm1510_vm3, %v1961_v42, %v1963_v21  ;;  %v454_v42 = vld [vmem:[#allocation2 + $0x90] sm:$0xff] }
  0xe9   : > { %7045 = vmatmul.msk.bf16.gmra.mxu3 %vm562_vm2, %v1962_v51  ;;  %v1026_v37 = vor.u32 %v1024_v26, %v1022_v62  ;;  %v1030_v38 = vrot.slane %v1028_v28, 1  ;;  %v7639_v26 = vld [vmem:[%s8090_s21 + $0x58] sm:$0xff]  ;;  %v8448_v28 = vld [vmem:[%s8090_s21 + $0x50] sm:$0xff] }
  0xea   : > { %761 = vst.msk [vmem:[#allocation2 + $0x20] sm:$0xff] %vm756_vm6, %v724_v27  ;;  %7135 = vmatmul.msk.bf16.gmra.mxu0 %vm562_vm2, %v2443_v32  ;;  %v690_v40 = vpop.f32.mrf.mxu2  ;;  %v2456_v27 = vrot.slane %v2454_v22, 1 }
  0xeb   : > { %v744_v45 = vadd.f32 %v690_v40, %v460_v36  ;;  %v463_v36 = vld [vmem:[#allocation2 + $0xd8] sm:$0xff]  ;;  %v1526_v40 = vrot.slane %v8393_v29, 1 }
  0xec   : > { %v667_v46 = vpop.f32.mrf.mxu1  ;;  %v715_v58 = vpop.f32.mrf.mxu3  ;;  %v2460_v43 = vor.u32 %v2459_v34, %v2456_v27  ;;  %v7622_v29 = vld [vmem:[%s8090_s21 + $0x60] sm:$0xff]  ;;  %v2475_v27 = vshll.u32 %v7639_v26, 16  ;;  %v835_v34 = vld [vmem:[#allocation2 + $0x8] sm:$0xff] }
  0xed   : > { %781 = vst.msk [vmem:[#allocation2 + $0xc0] sm:$0xff] %vm756_vm6, %v744_v45  ;;  %v735_v52 = vadd.f32 %v667_v46, %v451_v41  ;;  %v754_v63 = vadd.f32 %v715_v58, %v470_v57  ;;  %v1031_v46 = vsel %vm963_vm4, %v1026_v37, %v1030_v38  ;;  %v1527_v47 = vsel %vm1510_vm3, %v1524_v60, %v1526_v40 }
  0xee   : > { %v1044_v37 = vshll.u32 %v8448_v28, 16 }
  0xef   : > { %v642_v53 = vpop.f32.mrf.mxu0  ;;  %772 = vst.msk [vmem:[#allocation2 + $0x78] sm:$0xff] %vm756_vm6, %v735_v52  ;;  %v2461_v52 = vsel %vm2381_vm5, %v8363_v2, %v2460_v43  ;;  %v1036_v2 = vshll.u32 %v8417_v55, 16 }
  0xf0   : > { %v725_v56 = vadd.f32 %v642_v53, %v441_v50  ;;  %791 = vst.msk [vmem:[#allocation2 + $0x110] sm:$0xff] %vm756_vm6, %v754_v63  ;;  %v7638_v53 = vld [vmem:[%s8090_s21 + $0x50] sm:$0xff] }
  0xf1   : > { %v2463_v62 = vshrl.u32 %v7638_v53, 16  ;;  %v2466_v60 = vshll.u32 %v7638_v53, 16 }
  0xf2   : > { %762 = vst.msk [vmem:[#allocation2 + $0x28] sm:$0xff] %vm756_vm6, %v725_v56  ;;  %v692_v0 = vpop.f32.mrf.mxu2  ;;  %v7621_v56 = vld [vmem:[%s8090_s21 + $0x58] sm:$0xff] }
  0xf3   : > { %v745_v3 = vadd.f32 %v692_v0, %v461_v59  ;;  %v455_v59 = vld [vmem:[#allocation2 + $0x98] sm:$0xff]  ;;  %v1965_v61 = vrot.slane %v7621_v56, 1 }
  0xf4   : > { %v670_v4 = vpop.f32.mrf.mxu1  ;;  %v717_v14 = vpop.f32.mrf.mxu3 }
  0xf5   : > { %782 = vst.msk [vmem:[#allocation2 + $0xc8] sm:$0xff] %vm756_vm6, %v745_v3  ;;  %v736_v9 = vadd.f32 %v670_v4, %v452_v1  ;;  %v755_v18 = vadd.f32 %v717_v14, %v471_v13  ;;  %v1032_v1 = vshrl.u32 %v8381_v16, 16  ;;  %v8427_v3 = vld [vmem:[%s8090_s21 + $0x48] sm:$0xff]  ;;  %v445_v4 = vld [vmem:[#allocation2 + $0x48] sm:$0xff]  ;;  %v1038_v13 = vrot.slane %v1036_v2, 1 }
  0xf6   : > { %v1528_v14 = vrot.slane %v8427_v3, 1  ;;  %v8481_v2 = vld [vmem:[%s8090_s21 + $0x68] sm:$0xff] }
  0xf7   : > { %v645_v10 = vpop.f32.mrf.mxu0  ;;  %773 = vst.msk [vmem:[#allocation2 + $0x80] sm:$0xff] %vm756_vm6, %v736_v9  ;;  %6860 = vmatmul.msk.bf16.gmra.mxu1 %vm562_vm2, %v1023_v5  ;;  %6952 = vmatmul.msk.bf16.gmra.mxu2 %vm562_vm2, %v1525_v7  ;;  %v1966_v5 = vsel %vm1510_vm3, %v1963_v21, %v1965_v61  ;;  %v2465_v9 = vrot.slane %v2463_v62, 1 }
  0xf8   : > { %v726_v6 = vadd.f32 %v645_v10, %v442_v8  ;;  %792 = vst.msk [vmem:[#allocation2 + $0x118] sm:$0xff] %vm756_vm6, %v755_v18  ;;  %v2468_v10 = vrot.slane %v2466_v60, 2  ;;  %v1529_v22 = vsel %vm1510_vm3, %v1526_v40, %v1528_v14  ;;  %v7640_v60 = vld [vmem:[%s8090_s21 + $0x60] sm:$0xff] }
  0xf9   : > { %7046 = vmatmul.msk.bf16.gmra.mxu3 %vm562_vm2, %v1964_v31 }
  0xfa   : > { %763 = vst.msk [vmem:[#allocation2 + $0x30] sm:$0xff] %vm756_vm6, %v726_v6  ;;  %7136 = vmatmul.msk.bf16.gmra.mxu0 %vm562_vm2, %v2452_v11  ;;  %v695_v17 = vpop.f32.mrf.mxu2  ;;  %v1034_v6 = vor.u32 %v1032_v1, %v1030_v38  ;;  %v2469_v18 = vor.u32 %v2468_v10, %v2465_v9  ;;  %v8457_v38 = vld [vmem:[%s8090_s21 + $0x50] sm:$0xff]  ;;  %v8478_v1 = vld [vmem:[%s8090_s21 + $0x58] sm:$0xff]  ;;  %v2484_v9 = vshll.u32 %v7640_v60, 16  ;;  %v837_v10 = vld [vmem:[#allocation2 + $0x18] sm:$0xff] }
  0xfb   : > { %v746_v24 = vadd.f32 %v695_v17, %v462_v15  ;;  %v834_v17 = vld [vmem:[#allocation2] sm:$0xff] }
  0xfc   : > { %v672_v25 = vpop.f32.mrf.mxu1  ;;  %v8403_v39 = vpop.f32.mrf.mxu3  ;;  %v1039_v21 = vsel %vm963_vm4, %v1034_v6, %v1038_v13  ;;  %v1052_v6 = vshll.u32 %v8478_v1, 16 }
  0xfd   : > { %783 = vst.msk [vmem:[#allocation2 + $0xd0] sm:$0xff] %vm756_vm6, %v746_v24  ;;  %v737_v32 = vadd.f32 %v672_v25, %v453_v20  ;;  %v2470_v25 = vsel %vm2381_vm5, %v2460_v43, %v2469_v18 }
  0xff   : > { %v647_v33 = vpop.f32.mrf.mxu0  ;;  %774 = vst.msk [vmem:[#allocation2 + $0x88] sm:$0xff] %vm756_vm6, %v737_v32  ;;  %v1967_v32 = vrot.slane %v7622_v29, 1 }
 0x100   : > { %v727_v35 = vadd.f32 %v647_v33, %v443_v30  ;;  %v2472_v33 = vshrl.u32 %v7639_v26, 16 }
 0x101   : > { %v1968_v40 = vsel %vm1510_vm3, %v1965_v61, %v1967_v32 }
 0x102   : > { %764 = vst.msk [vmem:[#allocation2 + $0x38] sm:$0xff] %vm756_vm6, %v727_v35  ;;  %v697_v41 = vpop.f32.mrf.mxu2 }
 0x103   : > { %v747_v44 = vadd.f32 %v697_v41, %v463_v36  ;;  %v1040_v36 = vshrl.u32 %v8417_v55, 16 }
 0x104   : > { %v675_v45 = vpop.f32.mrf.mxu1  ;;  %v8422_v57 = vpop.f32.mrf.mxu3 }
 0x105   : > { %784 = vst.msk [vmem:[#allocation2 + $0xd8] sm:$0xff] %vm756_vm6, %v747_v44  ;;  %v738_v50 = vadd.f32 %v675_v45, %v454_v42  ;;  %v2474_v44 = vrot.slane %v2472_v33, 1  ;;  %v2477_v45 = vrot.slane %v2475_v27, 2  ;;  %v838_v27 = vld [vmem:[#allocation2 + $0x20] sm:$0xff] }
 0x107   : > { %v650_v51 = vpop.f32.mrf.mxu0  ;;  %775 = vst.msk [vmem:[#allocation2 + $0x90] sm:$0xff] %vm756_vm6, %v738_v50  ;;  %6861 = vmatmul.msk.bf16.gmra.mxu1 %vm562_vm2, %v1031_v46  ;;  %6953 = vmatmul.msk.bf16.gmra.mxu2 %vm562_vm2, %v1527_v47  ;;  %v1042_v47 = vor.u32 %v1040_v36, %v1038_v13  ;;  %v1530_v50 = vrot.slane %v8457_v38, 1  ;;  %v2478_v53 = vor.u32 %v2477_v45, %v2474_v44  ;;  %v8525_v44 = vld [vmem:[%s8090_s21 + $0x60] sm:$0xff]  ;;  %v8528_v45 = vld [vmem:[%s8090_s21 + $0x70] sm:$0xff] }
 0x108   : > { %v728_v54 = vadd.f32 %v650_v51, %v444_v48  ;;  %v1046_v48 = vrot.slane %v1044_v37, 1 }
 0x109   : > { %7047 = vmatmul.msk.bf16.gmra.mxu3 %vm562_vm2, %v1966_v5  ;;  %v1531_v56 = vsel %vm1510_vm3, %v1528_v14, %v1530_v50  ;;  %v2479_v62 = vsel %vm2381_vm5, %v2469_v18, %v2478_v53 }
 0x10a   : > { %765 = vst.msk [vmem:[#allocation2 + $0x40] sm:$0xff] %vm756_vm6, %v728_v54  ;;  %7137 = vmatmul.msk.bf16.gmra.mxu0 %vm562_vm2, %v2461_v52  ;;  %v700_v58 = vpop.f32.mrf.mxu2  ;;  %v836_v54 = vld [vmem:[#allocation2 + $0x10] sm:$0xff]  ;;  %v1047_v55 = vsel %vm963_vm4, %v1042_v47, %v1046_v48 }
 0x10b   : > { %v748_v63 = vadd.f32 %v700_v58, %v464_v49 }
 0x10c   : > { %v677_v0 = vpop.f32.mrf.mxu1  ;;  %v8435_v15 = vpop.f32.mrf.mxu3 }
 0x10d   : > { %785 = vst.msk [vmem:[#allocation2 + $0xe0] sm:$0xff] %vm756_vm6, %v748_v63  ;;  %v739_v7 = vadd.f32 %v677_v0, %v455_v59 }
 0x10f   : > { %v652_v8 = vpop.f32.mrf.mxu0  ;;  %776 = vst.msk [vmem:[#allocation2 + $0x98] sm:$0xff] %vm756_vm6, %v739_v7  ;;  %v1969_v7 = vrot.slane %v8481_v2, 1 }
 0x110   : > { %v729_v11 = vadd.f32 %v652_v8, %v445_v4  ;;  %v2481_v8 = vshrl.u32 %v7640_v60, 16 }
 0x111   : > { %v1970_v13 = vsel %vm1510_vm3, %v1967_v32, %v1969_v7 }
 0x112   : > { %766 = vst.msk [vmem:[#allocation2 + $0x48] sm:$0xff] %vm756_vm6, %v729_v11  ;;  %v702_v16 = vpop.f32.mrf.mxu2 }
 0x113   : > { %v749_v19 = vadd.f32 %v702_v16, %v465_v12  ;;  %v1048_v12 = vshrl.u32 %v8448_v28, 16 }
 0x114   : > { %v1178_v20 = vpop.f32.mrf.mxu1  ;;  %v8452_v30 = vpop.f32.mrf.mxu3 }
 0x115   : > { %786 = vst.msk [vmem:[#allocation2 + $0xe8] sm:$0xff] %vm756_vm6, %v749_v19  ;;  %v1268_v23 = vadd.f32 %v1178_v20, %v834_v17  ;;  %v2483_v19 = vrot.slane %v2481_v8, 1  ;;  %v2486_v17 = vrot.slane %v2484_v9, 2 }
 0x117   : > { %v8440_v24 = vpop.f32.mrf.mxu0  ;;  %1304 = vst.msk [vmem:[#allocation2] sm:$0xff] %vm756_vm6, %v1268_v23  ;;  %6862 = vmatmul.msk.bf16.gmra.mxu1 %vm562_vm2, %v1039_v21  ;;  %6954 = vmatmul.msk.bf16.gmra.mxu2 %vm562_vm2, %v1529_v22  ;;  %v1050_v22 = vor.u32 %v1048_v12, %v1046_v48  ;;  %v1054_v23 = vrot.slane %v1052_v6, 1  ;;  %v8507_v32 = vor.u32 %v2486_v17, %v2483_v19 }
 0x119   : > { %7048 = vmatmul.msk.bf16.gmra.mxu3 %vm562_vm2, %v1968_v40  ;;  %v2488_v40 = vsel %vm2381_vm5, %v2478_v53, %v8507_v32 }
 0x11a   : > { %7138 = vmatmul.msk.bf16.gmra.mxu0 %vm562_vm2, %v2470_v25  ;;  %v1614_v31 = vpop.f32.mrf.mxu2 }
 0x11c   : > { %v1180_v35 = vpop.f32.mrf.mxu1  ;;  %v8466_v51 = vpop.f32.mrf.mxu3 }
 0x11d   : > { %v1269_v41 = vadd.f32 %v1180_v35, %v835_v34  ;;  %v1055_v35 = vsel %vm963_vm4, %v1050_v22, %v1054_v23  ;;  %v7642_v22 = vld [vmem:[%s8090_s21 + $0x70] sm:$0xff] }
 0x11e   : > { %v1381_v42 = vld [vmem:[#allocation2] sm:$0xff] }
 0x11f   : > { %v8460_v43 = vpop.f32.mrf.mxu0  ;;  %v1704_v46 = vadd.f32 %v1614_v31, %v1381_v42  ;;  %1305 = vst.msk [vmem:[#allocation2 + $0x8] sm:$0xff] %vm756_vm6, %v1269_v41 }
 0x121   : > { %1740 = vst.msk [vmem:[#allocation2] sm:$0xff] %vm756_vm6, %v1704_v46 }
 0x122   : > { %v1616_v52 = vpop.f32.mrf.mxu2 }
 0x124   : > { %v1183_v49 = vpop.f32.mrf.mxu1  ;;  %v8486_v4 = vpop.f32.mrf.mxu3 }
 0x125   : > { %v1270_v58 = vadd.f32 %v1183_v49, %v836_v54 }
 0x126   : > { %v1382_v59 = vld [vmem:[#allocation2 + $0x8] sm:$0xff] }
 0x127   : > { %v8470_v61 = vpop.f32.mrf.mxu0  ;;  %v1705_v63 = vadd.f32 %v1616_v52, %v1382_v59  ;;  %1306 = vst.msk [vmem:[#allocation2 + $0x10] sm:$0xff] %vm756_vm6, %v1270_v58  ;;  %6863 = vmatmul.msk.bf16.gmra.mxu1 %vm562_vm2, %v1047_v55  ;;  %6955 = vmatmul.msk.bf16.gmra.mxu2 %vm562_vm2, %v1531_v56  ;;  %v1971_v52 = vrot.slane %v8528_v45, 1  ;;  %v839_v55 = vld [vmem:[#allocation2 + $0x28] sm:$0xff]  ;;  %v1060_v58 = vshll.u32 %v8525_v44, 16  ;;  %v8541_v59 = vld [vmem:[%s8090_s21 + $0x60] sm:$0xff] }
 0x128   : > { %v1817_v0 = vld [vmem:[#allocation2] sm:$0xff]  ;;  %v1534_v2 = vrot.slane %v8541_v59, 1 }
 0x129   : > { %v2139_v3 = vadd.f32 %v8403_v39, %v1817_v0  ;;  %1741 = vst.msk [vmem:[#allocation2 + $0x8] sm:$0xff] %vm756_vm6, %v1705_v63  ;;  %v8493_v39 = vld [vmem:[%s8090_s21 + $0x58] sm:$0xff]  ;;  %7049 = vmatmul.msk.bf16.gmra.mxu3 %vm562_vm2, %v1970_v13  ;;  %v1062_v9 = vrot.slane %v1060_v58, 1 }
 0x12a   : > { %7139 = vmatmul.msk.bf16.gmra.mxu0 %vm562_vm2, %v2479_v62  ;;  %v1619_v5 = vpop.f32.mrf.mxu2  ;;  %v1532_v25 = vrot.slane %v8493_v39, 1  ;;  %v1972_v62 = vsel %vm1510_vm3, %v1969_v7, %v1971_v52 }
 0x12b   : > { %2175 = vst.msk [vmem:[#allocation2] sm:$0xff] %vm756_vm6, %v2139_v3 }
 0x12c   : > { %v1185_v11 = vpop.f32.mrf.mxu1  ;;  %v8505_v28 = vpop.f32.mrf.mxu3 }
 0x12d   : > { %v1271_v14 = vadd.f32 %v1185_v11, %v837_v10 }
 0x12e   : > { %v1383_v16 = vld [vmem:[#allocation2 + $0x10] sm:$0xff] }
 0x12f   : > { %v8498_v18 = vpop.f32.mrf.mxu0  ;;  %v1706_v20 = vadd.f32 %v1619_v5, %v1383_v16  ;;  %1307 = vst.msk [vmem:[#allocation2 + $0x18] sm:$0xff] %vm756_vm6, %v1271_v14  ;;  %v840_v14 = vld [vmem:[#allocation2 + $0x30] sm:$0xff] }
 0x130   : > { %v1818_v21 = vld [vmem:[#allocation2 + $0x8] sm:$0xff] }
 0x131   : > { %v2140_v26 = vadd.f32 %v8422_v57, %v1818_v21  ;;  %1742 = vst.msk [vmem:[#allocation2 + $0x10] sm:$0xff] %vm756_vm6, %v1706_v20  ;;  %v1533_v57 = vsel %vm1510_vm3, %v1530_v50, %v1532_v25 }
 0x132   : > { %v2252_v29 = vld [vmem:[#allocation2] sm:$0xff]  ;;  %v1621_v31 = vpop.f32.mrf.mxu2 }
 0x133   : > { %2176 = vst.msk [vmem:[#allocation2 + $0x8] sm:$0xff] %vm756_vm6, %v2140_v26  ;;  %v2708_v33 = vadd.f32 %v8440_v24, %v2252_v29  ;;  %v7641_v24 = vld [vmem:[%s8090_s21 + $0x68] sm:$0xff]  ;;  %v8582_v26 = vld [vmem:[%s8090_s21 + $0x78] sm:$0xff] }
 0x134   : > { %v1188_v34 = vpop.f32.mrf.mxu1  ;;  %v8533_v47 = vpop.f32.mrf.mxu3  ;;  %v2490_v53 = vshrl.u32 %v7641_v24, 16  ;;  %v2493_v54 = vshll.u32 %v7641_v24, 16  ;;  %v8595_v24 = vld [vmem:[%s8090_s21 + $0x68] sm:$0xff] }
 0x135   : > { %2744 = vst.msk [vmem:[#allocation2] sm:$0xff] %vm756_vm6, %v2708_v33  ;;  %v1272_v36 = vadd.f32 %v1188_v34, %v838_v27  ;;  %v1973_v27 = vrot.slane %v8582_v26, 1  ;;  %v2499_v34 = vshrl.u32 %v7642_v22, 16  ;;  %v1536_v45 = vrot.slane %v8595_v24, 1 }
 0x136   : > { %v1384_v37 = vld [vmem:[#allocation2 + $0x18] sm:$0xff] }
 0x137   : > { %v8516_v38 = vpop.f32.mrf.mxu0  ;;  %v1707_v41 = vadd.f32 %v1621_v31, %v1384_v37  ;;  %1308 = vst.msk [vmem:[#allocation2 + $0x20] sm:$0xff] %vm756_vm6, %v1272_v36  ;;  %6864 = vmatmul.msk.bf16.gmra.mxu1 %vm562_vm2, %v1055_v35  ;;  %6956 = vmatmul.msk.bf16.gmra.mxu2 %vm562_vm2, %v1533_v57  ;;  %v2502_v35 = vshll.u32 %v7642_v22, 16  ;;  %v841_v36 = vld [vmem:[#allocation2 + $0x38] sm:$0xff]  ;;  %v8649_v22 = vld [vmem:[%s8090_s21 + $0x70] sm:$0xff] }
 0x138   : > { %v1819_v42 = vld [vmem:[#allocation2 + $0x10] sm:$0xff]  ;;  %v1538_v26 = vrot.slane %v8649_v22, 1 }
 0x139   : > { %v2141_v46 = vadd.f32 %v8435_v15, %v1819_v42  ;;  %1743 = vst.msk [vmem:[#allocation2 + $0x18] sm:$0xff] %vm756_vm6, %v1707_v41  ;;  %v1056_v15 = vshrl.u32 %v8478_v1, 16  ;;  %7050 = vmatmul.msk.bf16.gmra.mxu3 %vm562_vm2, %v1972_v62  ;;  %v2495_v1 = vrot.slane %v2493_v54, 2  ;;  %v1974_v41 = vsel %vm1510_vm3, %v1971_v52, %v1973_v27 }
 0x13a   : > { %7140 = vmatmul.msk.bf16.gmra.mxu0 %vm562_vm2, %v2488_v40  ;;  %v2253_v48 = vld [vmem:[#allocation2 + $0x8] sm:$0xff]  ;;  %v1624_v50 = vpop.f32.mrf.mxu2 }
 0x13b   : > { %2177 = vst.msk [vmem:[#allocation2 + $0x10] sm:$0xff] %vm756_vm6, %v2141_v46  ;;  %v2709_v49 = vadd.f32 %v8460_v43, %v2253_v48  ;;  %v2492_v43 = vrot.slane %v2490_v53, 1  ;;  %v1058_v8 = vor.u32 %v1056_v15, %v1054_v23 }
 0x13c   : > { %v1190_v56 = vpop.f32.mrf.mxu1  ;;  %v8556_v10 = vpop.f32.mrf.mxu3 }
 0x13d   : > { %2745 = vst.msk [vmem:[#allocation2 + $0x8] sm:$0xff] %vm756_vm6, %v2709_v49  ;;  %v1273_v60 = vadd.f32 %v1190_v56, %v839_v55  ;;  %v8558_v6 = vor.u32 %v2495_v1, %v2492_v43  ;;  %v1063_v19 = vsel %vm963_vm4, %v1058_v8, %v1062_v9  ;;  %v7643_v8 = vld [vmem:[%s8090_s21 + $0x78] sm:$0xff] }
 0x13e   : > { %v1385_v63 = vld [vmem:[#allocation2 + $0x20] sm:$0xff] }
 0x13f   : > { %v8549_v0 = vpop.f32.mrf.mxu0  ;;  %v1708_v3 = vadd.f32 %v1624_v50, %v1385_v63  ;;  %1309 = vst.msk [vmem:[#allocation2 + $0x28] sm:$0xff] %vm756_vm6, %v1273_v60  ;;  %v842_v60 = vld [vmem:[#allocation2 + $0x40] sm:$0xff] }
 0x140   : > { %v1820_v5 = vld [vmem:[#allocation2 + $0x18] sm:$0xff] }
 0x141   : > { %v2142_v7 = vadd.f32 %v8452_v30, %v1820_v5  ;;  %1744 = vst.msk [vmem:[#allocation2 + $0x20] sm:$0xff] %vm756_vm6, %v1708_v3  ;;  %v1535_v30 = vsel %vm1510_vm3, %v1532_v25, %v1534_v2  ;;  %v8579_v25 = vld [vmem:[%s8090_s21 + $0x68] sm:$0xff] }
 0x142   : > { %v2254_v11 = vld [vmem:[#allocation2 + $0x10] sm:$0xff]  ;;  %v1626_v12 = vpop.f32.mrf.mxu2  ;;  %v1068_v40 = vshll.u32 %v8579_v25, 16 }
 0x143   : > { %2178 = vst.msk [vmem:[#allocation2 + $0x18] sm:$0xff] %vm756_vm6, %v2142_v7  ;;  %v2710_v13 = vadd.f32 %v8470_v61, %v2254_v11  ;;  %v2497_v61 = vsel %vm2381_vm5, %v8507_v32, %v8558_v6  ;;  %v8636_v7 = vld [vmem:[%s8090_s21 + $0x80] sm:$0xff] }
 0x144   : > { %v1193_v16 = vpop.f32.mrf.mxu1  ;;  %v8587_v31 = vpop.f32.mrf.mxu3  ;;  %v1070_v49 = vrot.slane %v1068_v40, 1 }
 0x145   : > { %2746 = vst.msk [vmem:[#allocation2 + $0x10] sm:$0xff] %vm756_vm6, %v2710_v13  ;;  %v1274_v17 = vadd.f32 %v1193_v16, %v840_v14  ;;  %v1975_v14 = vrot.slane %v8636_v7, 1  ;;  %v2508_v16 = vshrl.u32 %v7643_v8, 16 }
 0x146   : > { %v1386_v20 = vld [vmem:[#allocation2 + $0x28] sm:$0xff] }
 0x147   : > { %v8569_v21 = vpop.f32.mrf.mxu0  ;;  %v1709_v23 = vadd.f32 %v1626_v12, %v1386_v20  ;;  %1310 = vst.msk [vmem:[#allocation2 + $0x30] sm:$0xff] %vm756_vm6, %v1274_v17  ;;  %6865 = vmatmul.msk.bf16.gmra.mxu1 %vm562_vm2, %v1063_v19  ;;  %6957 = vmatmul.msk.bf16.gmra.mxu2 %vm562_vm2, %v1535_v30  ;;  %v2511_v19 = vshll.u32 %v7643_v8, 16  ;;  %v843_v17 = vld [vmem:[#allocation2 + $0x48] sm:$0xff]  ;;  %v8703_v8 = vld [vmem:[%s8090_s21 + $0x78] sm:$0xff] }
 0x148   : > { %v1821_v39 = vld [vmem:[#allocation2 + $0x20] sm:$0xff]  ;;  %v1540_v7 = vrot.slane %v8703_v8, 1 }
 0x149   : > { %v2143_v29 = vadd.f32 %v8466_v51, %v1821_v39  ;;  %1745 = vst.msk [vmem:[#allocation2 + $0x28] sm:$0xff] %vm756_vm6, %v1709_v23  ;;  %v1064_v51 = vshrl.u32 %v8525_v44, 16  ;;  %7051 = vmatmul.msk.bf16.gmra.mxu3 %vm562_vm2, %v1974_v41  ;;  %v2504_v44 = vrot.slane %v2502_v35, 2  ;;  %v1976_v23 = vsel %vm1510_vm3, %v1973_v27, %v1975_v14 }
 0x14a   : > { %7141 = vmatmul.msk.bf16.gmra.mxu0 %vm562_vm2, %v2497_v61  ;;  %v2255_v32 = vld [vmem:[#allocation2 + $0x18] sm:$0xff]  ;;  %v1629_v33 = vpop.f32.mrf.mxu2 }
 0x14b   : > { %2179 = vst.msk [vmem:[#allocation2 + $0x20] sm:$0xff] %vm756_vm6, %v2143_v29  ;;  %v2711_v57 = vadd.f32 %v8498_v18, %v2255_v32  ;;  %v2501_v18 = vrot.slane %v2499_v34, 1  ;;  %v1066_v54 = vor.u32 %v1064_v51, %v1062_v9 }
 0x14c   : > { %v1195_v37 = vpop.f32.mrf.mxu1  ;;  %v8610_v55 = vpop.f32.mrf.mxu3 }
 0x14d   : > { %2747 = vst.msk [vmem:[#allocation2 + $0x18] sm:$0xff] %vm756_vm6, %v2711_v57  ;;  %v1275_v42 = vadd.f32 %v1195_v37, %v841_v36  ;;  %v8612_v58 = vor.u32 %v2504_v44, %v2501_v18  ;;  %v1071_v43 = vsel %vm963_vm4, %v1066_v54, %v1070_v49  ;;  %v7644_v54 = vld [vmem:[%s8090_s21 + $0x80] sm:$0xff] }
 0x14e   : > { %v1387_v46 = vld [vmem:[#allocation2 + $0x30] sm:$0xff] }
 0x14f   : > { %v8603_v48 = vpop.f32.mrf.mxu0  ;;  %v1710_v50 = vadd.f32 %v1629_v33, %v1387_v46  ;;  %1311 = vst.msk [vmem:[#allocation2 + $0x38] sm:$0xff] %vm756_vm6, %v1275_v42  ;;  %v844_v42 = vld [vmem:[#allocation2 + $0x50] sm:$0xff] }
 0x150   : > { %v1822_v53 = vld [vmem:[#allocation2 + $0x28] sm:$0xff] }
 0x151   : > { %v2144_v52 = vadd.f32 %v8486_v4, %v1822_v53  ;;  %1746 = vst.msk [vmem:[#allocation2 + $0x30] sm:$0xff] %vm756_vm6, %v1710_v50  ;;  %v1537_v4 = vsel %vm1510_vm3, %v1534_v2, %v1536_v45  ;;  %v8633_v2 = vld [vmem:[%s8090_s21 + $0x70] sm:$0xff] }
 0x152   : > { %v2256_v56 = vld [vmem:[#allocation2 + $0x20] sm:$0xff]  ;;  %v1631_v15 = vpop.f32.mrf.mxu2  ;;  %v1076_v61 = vshll.u32 %v8633_v2, 16 }
 0x153   : > { %2180 = vst.msk [vmem:[#allocation2 + $0x28] sm:$0xff] %vm756_vm6, %v2144_v52  ;;  %v2712_v62 = vadd.f32 %v8516_v38, %v2256_v56  ;;  %v2506_v38 = vsel %vm2381_vm5, %v8558_v6, %v8612_v58  ;;  %v8690_v52 = vld [vmem:[%s8090_s21 + $0x88] sm:$0xff] }
 0x154   : > { %v1198_v63 = vpop.f32.mrf.mxu1  ;;  %v8641_v12 = vpop.f32.mrf.mxu3  ;;  %v1078_v57 = vrot.slane %v1076_v61, 1 }
 0x155   : > { %2748 = vst.msk [vmem:[#allocation2 + $0x20] sm:$0xff] %vm756_vm6, %v2712_v62  ;;  %v1276_v1 = vadd.f32 %v1198_v63, %v842_v60  ;;  %v1977_v60 = vrot.slane %v8690_v52, 1  ;;  %v2517_v63 = vshrl.u32 %v7644_v54, 16 }
 0x156   : > { %v1388_v3 = vld [vmem:[#allocation2 + $0x38] sm:$0xff] }
 0x157   : > { %v8623_v5 = vpop.f32.mrf.mxu0  ;;  %v1711_v9 = vadd.f32 %v1631_v15, %v1388_v3  ;;  %1312 = vst.msk [vmem:[#allocation2 + $0x40] sm:$0xff] %vm756_vm6, %v1276_v1  ;;  %6866 = vmatmul.msk.bf16.gmra.mxu1 %vm562_vm2, %v1071_v43  ;;  %6958 = vmatmul.msk.bf16.gmra.mxu2 %vm562_vm2, %v1537_v4  ;;  %v2520_v43 = vshll.u32 %v7644_v54, 16  ;;  %v845_v1 = vld [vmem:[#allocation2 + $0x58] sm:$0xff] }
 0x158   : > { %v1823_v59 = vld [vmem:[#allocation2 + $0x30] sm:$0xff]  ;;  %v8757_v54 = vld [vmem:[%s8090_s21 + $0x80] sm:$0xff] }
 0x159   : > { %v2145_v11 = vadd.f32 %v8505_v28, %v1823_v59  ;;  %1747 = vst.msk [vmem:[#allocation2 + $0x38] sm:$0xff] %vm756_vm6, %v1711_v9  ;;  %v1072_v28 = vshrl.u32 %v8579_v25, 16  ;;  %7052 = vmatmul.msk.bf16.gmra.mxu3 %vm562_vm2, %v1976_v23  ;;  %v2513_v25 = vrot.slane %v2511_v19, 2  ;;  %v1978_v9 = vsel %vm1510_vm3, %v1975_v14, %v1977_v60 }
 0x15a   : > { %7142 = vmatmul.msk.bf16.gmra.mxu0 %vm562_vm2, %v2506_v38  ;;  %v2257_v6 = vld [vmem:[#allocation2 + $0x28] sm:$0xff]  ;;  %v1634_v13 = vpop.f32.mrf.mxu2  ;;  %v1542_v52 = vrot.slane %v8757_v54, 1 }
 0x15b   : > { %2181 = vst.msk [vmem:[#allocation2 + $0x30] sm:$0xff] %vm756_vm6, %v2145_v11  ;;  %v2713_v30 = vadd.f32 %v8549_v0, %v2257_v6  ;;  %v2510_v0 = vrot.slane %v2508_v16, 1  ;;  %v1074_v35 = vor.u32 %v1072_v28, %v1070_v49 }
 0x15c   : > { %v1200_v20 = vpop.f32.mrf.mxu1  ;;  %v8664_v36 = vpop.f32.mrf.mxu3 }
 0x15d   : > { %2749 = vst.msk [vmem:[#allocation2 + $0x28] sm:$0xff] %vm756_vm6, %v2713_v30  ;;  %v1277_v39 = vadd.f32 %v1200_v20, %v843_v17  ;;  %v8666_v40 = vor.u32 %v2513_v25, %v2510_v0  ;;  %v1079_v18 = vsel %vm963_vm4, %v1074_v35, %v1078_v57  ;;  %v7645_v35 = vld [vmem:[%s8090_s21 + $0x88] sm:$0xff] }
 0x15e   : > { %v1389_v29 = vld [vmem:[#allocation2 + $0x40] sm:$0xff] }
 0x15f   : > { %v8657_v32 = vpop.f32.mrf.mxu0  ;;  %v1712_v33 = vadd.f32 %v1634_v13, %v1389_v29  ;;  %1313 = vst.msk [vmem:[#allocation2 + $0x48] sm:$0xff] %vm756_vm6, %v1277_v39  ;;  %v846_v39 = vld [vmem:[#allocation2 + $0x60] sm:$0xff] }
 0x160   : > { %v1824_v34 = vld [vmem:[#allocation2 + $0x38] sm:$0xff] }
 0x161   : > { %v2146_v27 = vadd.f32 %v8533_v47, %v1824_v34  ;;  %1748 = vst.msk [vmem:[#allocation2 + $0x40] sm:$0xff] %vm756_vm6, %v1712_v33  ;;  %v1539_v47 = vsel %vm1510_vm3, %v1536_v45, %v1538_v26  ;;  %v8687_v45 = vld [vmem:[%s8090_s21 + $0x78] sm:$0xff] }
 0x162   : > { %v2258_v37 = vld [vmem:[#allocation2 + $0x30] sm:$0xff]  ;;  %v1636_v51 = vpop.f32.mrf.mxu2  ;;  %v1084_v38 = vshll.u32 %v8687_v45, 16 }
 0x163   : > { %2182 = vst.msk [vmem:[#allocation2 + $0x38] sm:$0xff] %vm756_vm6, %v2146_v27  ;;  %v2714_v41 = vadd.f32 %v8569_v21, %v2258_v37  ;;  %v2515_v21 = vsel %vm2381_vm5, %v8612_v58, %v8666_v40  ;;  %v8744_v27 = vld [vmem:[%s8090_s21 + $0x90] sm:$0xff] }
 0x164   : > { %v1203_v46 = vpop.f32.mrf.mxu1  ;;  %v8695_v15 = vpop.f32.mrf.mxu3  ;;  %v1086_v30 = vrot.slane %v1084_v38, 1 }
 0x165   : > { %2750 = vst.msk [vmem:[#allocation2 + $0x30] sm:$0xff] %vm756_vm6, %v2714_v41  ;;  %v1278_v44 = vadd.f32 %v1203_v46, %v844_v42  ;;  %v1979_v42 = vrot.slane %v8744_v27, 1  ;;  %v2526_v46 = vshrl.u32 %v7645_v35, 16 }
 0x166   : > { %v1390_v50 = vld [vmem:[#allocation2 + $0x48] sm:$0xff] }
 0x167   : > { %v8677_v53 = vpop.f32.mrf.mxu0  ;;  %v1713_v49 = vadd.f32 %v1636_v51, %v1390_v50  ;;  %1314 = vst.msk [vmem:[#allocation2 + $0x50] sm:$0xff] %vm756_vm6, %v1278_v44  ;;  %6867 = vmatmul.msk.bf16.gmra.mxu1 %vm562_vm2, %v1079_v18  ;;  %6959 = vmatmul.msk.bf16.gmra.mxu2 %vm562_vm2, %v1539_v47  ;;  %v2529_v18 = vshll.u32 %v7645_v35, 16  ;;  %v847_v44 = vld [vmem:[#allocation2 + $0x68] sm:$0xff] }
 0x168   : > { %v1825_v24 = vld [vmem:[#allocation2 + $0x40] sm:$0xff] }
 0x169   : > { %v2147_v56 = vadd.f32 %v8556_v10, %v1825_v24  ;;  %1749 = vst.msk [vmem:[#allocation2 + $0x48] sm:$0xff] %vm756_vm6, %v1713_v49  ;;  %v1080_v10 = vshrl.u32 %v8633_v2, 16  ;;  %7053 = vmatmul.msk.bf16.gmra.mxu3 %vm562_vm2, %v1978_v9  ;;  %v2522_v2 = vrot.slane %v2520_v43, 2  ;;  %v1980_v49 = vsel %vm1510_vm3, %v1977_v60, %v1979_v42 }
 0x16a   : > { %7143 = vmatmul.msk.bf16.gmra.mxu0 %vm562_vm2, %v2515_v21  ;;  %v2259_v58 = vld [vmem:[#allocation2 + $0x38] sm:$0xff]  ;;  %v1639_v62 = vpop.f32.mrf.mxu2 }
 0x16b   : > { %2183 = vst.msk [vmem:[#allocation2 + $0x40] sm:$0xff] %vm756_vm6, %v2147_v56  ;;  %v2715_v4 = vadd.f32 %v8603_v48, %v2259_v58  ;;  %v2519_v48 = vrot.slane %v2517_v63, 1  ;;  %v1082_v19 = vor.u32 %v1080_v10, %v1078_v57 }
 0x16c   : > { %v1205_v3 = vpop.f32.mrf.mxu1  ;;  %v8718_v17 = vpop.f32.mrf.mxu3 }
 0x16d   : > { %2751 = vst.msk [vmem:[#allocation2 + $0x38] sm:$0xff] %vm756_vm6, %v2715_v4  ;;  %v1279_v59 = vadd.f32 %v1205_v3, %v845_v1  ;;  %v8720_v61 = vor.u32 %v2522_v2, %v2519_v48  ;;  %v1087_v0 = vsel %vm963_vm4, %v1082_v19, %v1086_v30 }
 0x16e   : > { %v1391_v11 = vld [vmem:[#allocation2 + $0x50] sm:$0xff] }
 0x16f   : > { %v8711_v6 = vpop.f32.mrf.mxu0  ;;  %v1714_v13 = vadd.f32 %v1639_v62, %v1391_v11  ;;  %1315 = vst.msk [vmem:[#allocation2 + $0x58] sm:$0xff] %vm756_vm6, %v1279_v59  ;;  %v848_v59 = vld [vmem:[#allocation2 + $0x70] sm:$0xff] }
 0x170   : > { %v1826_v16 = vld [vmem:[#allocation2 + $0x48] sm:$0xff] }
 0x171   : > { %v2148_v14 = vadd.f32 %v8587_v31, %v1826_v16  ;;  %1750 = vst.msk [vmem:[#allocation2 + $0x50] sm:$0xff] %vm756_vm6, %v1714_v13  ;;  %v1541_v31 = vsel %vm1510_vm3, %v1538_v26, %v1540_v7  ;;  %v8741_v26 = vld [vmem:[%s8090_s21 + $0x80] sm:$0xff]  ;;  %v1812_v13 = vld [vmem:[%s8090_s21 + $0x98] sm:$0x1] }
 0x172   : > { %v2260_v20 = vld [vmem:[#allocation2 + $0x40] sm:$0xff]  ;;  %v1641_v28 = vpop.f32.mrf.mxu2  ;;  %v1092_v21 = vshll.u32 %v8741_v26, 16 }
 0x173   : > { %2184 = vst.msk [vmem:[#allocation2 + $0x48] sm:$0xff] %vm756_vm6, %v2148_v14  ;;  %v2716_v23 = vadd.f32 %v8623_v5, %v2260_v20  ;;  %v2524_v5 = vsel %vm2381_vm5, %v8666_v40, %v8720_v61  ;;  %v7646_v14 = vld [vmem:[%s8090_s21 + $0x90] sm:$0xff] }
 0x174   : > { %v1208_v29 = vpop.f32.mrf.mxu1  ;;  %v8749_v51 = vpop.f32.mrf.mxu3  ;;  %v1094_v4 = vrot.slane %v1092_v21, 1 }
 0x175   : > { %2752 = vst.msk [vmem:[#allocation2 + $0x40] sm:$0xff] %vm756_vm6, %v2716_v23  ;;  %v1280_v25 = vadd.f32 %v1208_v29, %v846_v39 }
 0x176   : > { %v1392_v33 = vld [vmem:[#allocation2 + $0x58] sm:$0xff] }
 0x177   : > { %v8731_v34 = vpop.f32.mrf.mxu0  ;;  %v1715_v57 = vadd.f32 %v1641_v28, %v1392_v33  ;;  %1316 = vst.msk [vmem:[#allocation2 + $0x60] sm:$0xff] %vm756_vm6, %v1280_v25  ;;  %6868 = vmatmul.msk.bf16.gmra.mxu1 %vm562_vm2, %v1087_v0  ;;  %6960 = vmatmul.msk.bf16.gmra.mxu2 %vm562_vm2, %v1541_v31  ;;  %v2535_v31 = vshrl.u32 %v7646_v14, 16  ;;  %v2538_v25 = vshll.u32 %v7646_v14, 16 }
 0x178   : > { %v1827_v22 = vld [vmem:[#allocation2 + $0x50] sm:$0xff] }
 0x179   : > { %v2149_v37 = vadd.f32 %v8610_v55, %v1827_v22  ;;  %1751 = vst.msk [vmem:[#allocation2 + $0x58] sm:$0xff] %vm756_vm6, %v1715_v57  ;;  %v1088_v55 = vshrl.u32 %v8687_v45, 16  ;;  %7054 = vmatmul.msk.bf16.gmra.mxu3 %vm562_vm2, %v1980_v49  ;;  %v2531_v45 = vrot.slane %v2529_v18, 2  ;;  %v1096_v57 = vshrl.u32 %v8741_v26, 16  ;;  %v8808_v22 = vld [vmem:[%s8090_s21 + $0x88] sm:$0xff] }
 0x17a   : > { %7144 = vmatmul.msk.bf16.gmra.mxu0 %vm562_vm2, %v2524_v5  ;;  %v2261_v40 = vld [vmem:[#allocation2 + $0x48] sm:$0xff]  ;;  %v1644_v41 = vpop.f32.mrf.mxu2  ;;  %v849_v5 = vld [vmem:[#allocation2 + $0x78] sm:$0xff]  ;;  %v2540_v18 = vrot.slane %v2538_v25, 2 }
 0x17b   : > { %2185 = vst.msk [vmem:[#allocation2 + $0x50] sm:$0xff] %vm756_vm6, %v2149_v37  ;;  %v2717_v47 = vadd.f32 %v8657_v32, %v2261_v40  ;;  %v2528_v32 = vrot.slane %v2526_v46, 1  ;;  %v1090_v43 = vor.u32 %v1088_v55, %v1086_v30  ;;  %v1926_v30 = vunpack.c.l.b16 %v1812_v13  ;;  %v829_v55 = vld [vmem:[%s8090_s21 + $0x90] sm:$0x1] }
 0x17c   : > { %v1210_v50 = vpop.f32.mrf.mxu1  ;;  %v8772_v1 = vpop.f32.mrf.mxu3 }
 0x17d   : > { %2753 = vst.msk [vmem:[#allocation2 + $0x48] sm:$0xff] %vm756_vm6, %v2717_v47  ;;  %v1281_v24 = vadd.f32 %v1210_v50, %v847_v44  ;;  %v8774_v38 = vor.u32 %v2531_v45, %v2528_v32  ;;  %v1095_v48 = vsel %vm963_vm4, %v1090_v43, %v1094_v4  ;;  %v1945_v28 = vpack.c.b16 %v1926_v30, %v1926_v30  ;;  %v2247_v45 = vld [vmem:[%s8090_s21 + $0x98] sm:$0x3] }
 0x17e   : > { %v1393_v56 = vld [vmem:[#allocation2 + $0x60] sm:$0xff]  ;;  %v1098_v44 = vor.u32 %v1096_v57, %v1094_v4  ;;  %v943_v4 = vunpack.c.l.b16 %v829_v55  ;;  %v851_v57 = vld [vmem:[#allocation2 + $0x88] sm:$0xff] }
 0x17f   : > { %v8765_v58 = vpop.f32.mrf.mxu0  ;;  %v1716_v62 = vadd.f32 %v1644_v41, %v1393_v56  ;;  %1317 = vst.msk [vmem:[#allocation2 + $0x68] sm:$0xff] %vm756_vm6, %v1281_v24  ;;  %v1981_v0 = vrot.slane %v1945_v28, 1 }
 0x180   : > { %v1828_v63 = vld [vmem:[#allocation2 + $0x58] sm:$0xff]  ;;  %v962_v14 = vpack.c.b16 %v943_v4, %v943_v4 }
 0x181   : > { %v2150_v60 = vadd.f32 %v8641_v12, %v1828_v63  ;;  %1752 = vst.msk [vmem:[#allocation2 + $0x60] sm:$0xff] %vm756_vm6, %v1716_v62  ;;  %v1543_v12 = vsel %vm1510_vm3, %v1540_v7, %v1542_v52  ;;  %v8796_v7 = vld [vmem:[%s8090_s21 + $0x88] sm:$0xff]  ;;  %v1982_v37 = vsel %vm1510_vm3, %v1979_v42, %v1981_v0  ;;  %v1544_v42 = vrot.slane %v8808_v22, 1 }
 0x182   : > { %v2262_v3 = vld [vmem:[#allocation2 + $0x50] sm:$0xff]  ;;  %v1646_v10 = vpop.f32.mrf.mxu2  ;;  %v850_v62 = vld [vmem:[#allocation2 + $0x80] sm:$0xff] }
 0x183   : > { %2186 = vst.msk [vmem:[#allocation2 + $0x58] sm:$0xff] %vm756_vm6, %v2150_v60  ;;  %v2718_v9 = vadd.f32 %v8677_v53, %v2262_v3  ;;  %v2533_v53 = vsel %vm2381_vm5, %v8720_v61, %v8774_v38  ;;  %v1545_v43 = vsel %vm1510_vm3, %v1542_v52, %v1544_v42  ;;  %v2361_v60 = vunpack.c.l.b16 %v2247_v45  ;;  %v7336_v3 = vld [vmem:[%s8090_s21 + $0x10] sm:$0xc]  ;;  %v7152_v22 = vld [vmem:[%s8090_s21 + $0x8] sm:$0xc] }
 0x184   : > { %v1213_v11 = vpop.f32.mrf.mxu1  ;;  %v8801_v61 = vpop.f32.mrf.mxu3 }
 0x185   : > { %2754 = vst.msk [vmem:[#allocation2 + $0x50] sm:$0xff] %vm756_vm6, %v2718_v9  ;;  %v1282_v2 = vadd.f32 %v1213_v11, %v848_v59  ;;  %v7684_v59 = vld [vmem:[%s8090_s21 + $0x18] sm:$0xff]  ;;  %v2380_v54 = vpack.c.b16 %v2361_v60, %v2361_v60 }
 0x186   : > { %v1394_v16 = vld [vmem:[#allocation2 + $0x68] sm:$0xff]  ;;  %v852_v60 = vld [vmem:[#allocation2 + $0x90] sm:$0xff] }
 0x187   : > { %v8786_v19 = vpop.f32.mrf.mxu0  ;;  %v1717_v20 = vadd.f32 %v1646_v10, %v1394_v16  ;;  %1318 = vst.msk [vmem:[#allocation2 + $0x70] sm:$0xff] %vm756_vm6, %v1282_v2  ;;  %6869 = vmatmul.msk.bf16.gmra.mxu1 %vm562_vm2, %v1095_v48  ;;  %6961 = vmatmul.msk.bf16.gmra.mxu2 %vm562_vm2, %v1543_v12  ;;  %v7683_v10 = vld [vmem:[%s8090_s21 + $0x10] sm:$0xf0]  ;;  %v2544_v25 = vshrl.u32 %v2380_v54, 16 }
 0x188   : > { %v1829_v8 = vld [vmem:[#allocation2 + $0x60] sm:$0xff]  ;;  %v7337_v11 = vor.u32 %v7683_v10, %v7336_v3  ;;  %v7685_v10 = vld [vmem:[%s8090_s21 + $0x20] sm:$0xff] }
 0x189   : > { %v2151_v23 = vadd.f32 %v8664_v36, %v1829_v8  ;;  %1753 = vst.msk [vmem:[#allocation2 + $0x68] sm:$0xff] %vm756_vm6, %v1717_v20  ;;  %v1100_v36 = vshll.u32 %v8796_v7, 16  ;;  %7055 = vmatmul.msk.bf16.gmra.mxu3 %vm562_vm2, %v1982_v37  ;;  %v3834_v8 = vshll.u32 %v7684_v59, 16  ;;  %v1104_v37 = vshrl.u32 %v8796_v7, 16 }
 0x18a   : > { %7145 = vmatmul.msk.bf16.gmra.mxu0 %vm562_vm2, %v2533_v53  ;;  %v2263_v39 = vld [vmem:[#allocation2 + $0x58] sm:$0xff]  ;;  %v1649_v29 = vpop.f32.mrf.mxu2  ;;  %v3823_v52 = vshrl.u32 %v7337_v11, 16  ;;  %v3826_v16 = vshll.u32 %v7337_v11, 16  ;;  %v3831_v53 = vshrl.u32 %v7684_v59, 16  ;;  %v3840_v11 = vshrl.u32 %v7685_v10, 16 }
 0x18b   : > { %2187 = vst.msk [vmem:[#allocation2 + $0x60] sm:$0xff] %vm756_vm6, %v2151_v23  ;;  %v2719_v33 = vadd.f32 %v8711_v6, %v2263_v39  ;;  %v2537_v6 = vrot.slane %v2535_v31, 1  ;;  %v8818_v27 = vrot.slane %v1100_v36, 1 }
 0x18c   : > { %v1215_v35 = vpop.f32.mrf.mxu1  ;;  %v8824_v21 = vpop.f32.mrf.mxu3  ;;  %v3825_v23 = vrot.slane %v3823_v52, 2  ;;  %v3828_v39 = vrot.slane %v3826_v16, 3 }
 0x18d   : > { %2755 = vst.msk [vmem:[#allocation2 + $0x58] sm:$0xff] %vm756_vm6, %v2719_v33  ;;  %v1283_v40 = vadd.f32 %v1215_v35, %v849_v5  ;;  %v8826_v56 = vor.u32 %v2540_v18, %v2537_v6  ;;  %v1103_v63 = vsel %vm963_vm4, %v1098_v44, %v8818_v27  ;;  %v2547_v33 = vshll.u32 %v2380_v54, 16  ;;  %v7647_v54 = vld [vmem:[%s8090_s21 + $0x8] sm:$0xf0] }
 0x18e   : > { %v1395_v41 = vld [vmem:[#allocation2 + $0x70] sm:$0xff]  ;;  %v3836_v5 = vrot.slane %v3834_v8, 3  ;;  %v2546_v44 = vrot.slane %v2544_v25, 1 }
 0x18f   : > { %v8814_v46 = vpop.f32.mrf.mxu0  ;;  %v1718_v26 = vadd.f32 %v1649_v29, %v1395_v41  ;;  %1319 = vst.msk [vmem:[#allocation2 + $0x78] sm:$0xff] %vm756_vm6, %v1283_v40  ;;  %v2542_v2 = vsel %vm2381_vm5, %v8774_v38, %v8826_v56  ;;  %v3833_v29 = vrot.slane %v3831_v53, 2  ;;  %v1108_v40 = vshll.u32 %v962_v14, 16  ;;  %v7665_v53 = vld [vmem:[%s8090_s21 + $0x10] sm:$0xf0]  ;;  %v8907_v25 = vld [vmem:[%s8090_s21 + $0x18] sm:$0xff] }
 0x190   : > { %v1830_v47 = vld [vmem:[#allocation2 + $0x68] sm:$0xff] }
 0x191   : > { %v2152_v50 = vadd.f32 %v8695_v15, %v1830_v47  ;;  %1754 = vst.msk [vmem:[#allocation2 + $0x70] sm:$0xff] %vm756_vm6, %v1718_v26  ;;  %v8859_v6 = vor.u32 %v3836_v5, %v3833_v29 }
 0x192   : > { %v2264_v49 = vld [vmem:[#allocation2 + $0x60] sm:$0xff]  ;;  %v1651_v24 = vpop.f32.mrf.mxu2 }
 0x193   : > { %2188 = vst.msk [vmem:[#allocation2 + $0x68] sm:$0xff] %vm756_vm6, %v2152_v50  ;;  %v2720_v32 = vadd.f32 %v8731_v34, %v2264_v49  ;;  %v1376_v34 = vld [vmem:[%s8090_s21 + $0x90] sm:$0x1]  ;;  %v2549_v50 = vrot.slane %v2547_v33, 2  ;;  %v1106_v49 = vor.u32 %v1104_v37, %v8818_v27 }
 0x194   : > { %v1218_v15 = vpop.f32.mrf.mxu1  ;;  %v1490_v20 = vunpack.c.l.b16 %v1376_v34  ;;  %v8854_v38 = vpop.f32.mrf.mxu3 }
 0x195   : > { %2756 = vst.msk [vmem:[#allocation2 + $0x60] sm:$0xff] %vm756_vm6, %v2720_v32  ;;  %v1284_v9 = vadd.f32 %v1218_v15, %v850_v62 }
 0x196   : > { %v1396_v48 = vld [vmem:[#allocation2 + $0x78] sm:$0xff]  ;;  %v1509_v41 = vpack.c.b16 %v1490_v20, %v1490_v20 }
 0x197   : > { %v8843_v12 = vpop.f32.mrf.mxu0  ;;  %v1719_v13 = vadd.f32 %v1651_v24, %v1396_v48  ;;  %1320 = vst.msk [vmem:[#allocation2 + $0x80] sm:$0xff] %vm756_vm6, %v1284_v9  ;;  %6870 = vmatmul.msk.bf16.gmra.mxu1 %vm562_vm2, %v1103_v63  ;;  %6962 = vmatmul.msk.bf16.gmra.mxu2 %vm562_vm2, %v1545_v43  ;;  %v1110_v24 = vrot.slane %v1108_v40, 1  ;;  %v2550_v43 = vor.u32 %v2549_v50, %v2546_v44  ;;  %v3843_v48 = vshll.u32 %v7685_v10, 16 }
 0x198   : > { %v1831_v30 = vld [vmem:[#allocation2 + $0x70] sm:$0xff]  ;;  %v1546_v32 = vrot.slane %v1509_v41, 1 }
 0x199   : > { %v2153_v28 = vadd.f32 %v8718_v17, %v1831_v30  ;;  %1755 = vst.msk [vmem:[#allocation2 + $0x78] sm:$0xff] %vm756_vm6, %v1719_v13  ;;  %v3829_v17 = vor.u32 %v3828_v39, %v3825_v23  ;;  %v1111_v27 = vsel %vm963_vm4, %v1106_v49, %v1110_v24  ;;  %v3842_v13 = vrot.slane %v3840_v11, 2  ;;  %v7428_v23 = vld [vmem:[%s8090_s21 + $0x10] sm:$0x8]  ;;  %v853_v39 = vld [vmem:[#allocation2 + $0x98] sm:$0xff] }
 0x19a   : > { %7146 = vmatmul.msk.bf16.gmra.mxu0 %vm562_vm2, %v2542_v2  ;;  %v2265_v0 = vld [vmem:[#allocation2 + $0x68] sm:$0xff]  ;;  %v1654_v31 = vpop.f32.mrf.mxu2  ;;  %v3845_v52 = vrot.slane %v3843_v48, 3 }
 0x19b   : > { %2189 = vst.msk [vmem:[#allocation2 + $0x70] sm:$0xff] %vm756_vm6, %v2153_v28  ;;  %v2721_v35 = vadd.f32 %v8765_v58, %v2265_v0  ;;  %v3838_v58 = vsel %vm3821_vm7, %v3829_v17, %v8859_v6  ;;  %v8904_v0 = vld [vmem:[%s8090_s21 + $0x10] sm:$0xff] }
 0x19c   : > { %v1220_v36 = vpop.f32.mrf.mxu1  ;;  %7406 = vmatmul.msk.bf16.vlgmr.msra.gmra.mxu3 %vm562_vm2, %v3838_v58  ;;  %v8871_v62 = vpop.f32.mrf.mxu3  ;;  %v8897_v8 = vor.u32 %v3845_v52, %v3842_v13  ;;  %v8953_v52 = vld [vmem:[%s8090_s21 + $0x18] sm:$0xff] }
 0x19d   : > { %2757 = vst.msk [vmem:[#allocation2 + $0x68] sm:$0xff] %vm756_vm6, %v2721_v35  ;;  %v1285_v18 = vadd.f32 %v1220_v36, %v851_v57 }
 0x19e   : > { %v1397_v26 = vld [vmem:[#allocation2 + $0x80] sm:$0xff]  ;;  %v3847_v5 = vsel %vm3821_vm7, %v8859_v6, %v8897_v8  ;;  %v3387_v6 = vrot.slane %v8907_v25, 2 }
 0x19f   : > { %v8862_v47 = vpop.f32.mrf.mxu0  ;;  %v1720_v55 = vadd.f32 %v1654_v31, %v1397_v26  ;;  %1321 = vst.msk [vmem:[#allocation2 + $0x88] sm:$0xff] %vm756_vm6, %v1285_v18  ;;  %v7153_v31 = vor.u32 %v7647_v54, %v7152_v22  ;;  %v2952_v18 = vrot.slane %v8904_v0, 2  ;;  %v855_v54 = vld [vmem:[#allocation2 + $0xa8] sm:$0xff] }
 0x1a0   : > { %v1832_v7 = vld [vmem:[#allocation2 + $0x78] sm:$0xff] }
 0x1a1   : > { %v2154_v45 = vadd.f32 %v8749_v51, %v1832_v7  ;;  %1756 = vst.msk [vmem:[#allocation2 + $0x80] sm:$0xff] %vm756_vm6, %v1720_v55  ;;  %v1547_v51 = vsel %vm1510_vm3, %v1544_v42, %v1546_v32  ;;  %v2951_v41 = vrot.slane %v7153_v31, 2  ;;  %v854_v32 = vld [vmem:[#allocation2 + $0xa0] sm:$0xff] }
 0x1a2   : > { %v2266_v15 = vld [vmem:[#allocation2 + $0x70] sm:$0xff]  ;;  %v1656_v63 = vpop.f32.mrf.mxu2 }
 0x1a3   : > { %2190 = vst.msk [vmem:[#allocation2 + $0x78] sm:$0xff] %vm756_vm6, %v2154_v45  ;;  %v2722_v4 = vadd.f32 %v8786_v19, %v2266_v15  ;;  %v2551_v19 = vsel %vm2381_vm5, %v8826_v56, %v2550_v43  ;;  %v7244_v56 = vld [vmem:[%s8090_s21 + $0x10] sm:$0xc] }
 0x1a4   : > { %v1223_v3 = vpop.f32.mrf.mxu1  ;;  %v8895_v30 = vpop.f32.mrf.mxu3  ;;  %v7245_v33 = vor.u32 %v7665_v53, %v7244_v56 }
 0x1a5   : > { %2758 = vst.msk [vmem:[#allocation2 + $0x70] sm:$0xff] %vm756_vm6, %v2722_v4  ;;  %v1286_v9 = vadd.f32 %v1223_v3, %v852_v60 }
 0x1a6   : > { %v1398_v34 = vld [vmem:[#allocation2 + $0x88] sm:$0xff]  ;;  %v3386_v26 = vrot.slane %v7245_v33, 2 }
 0x1a7   : > { %v8881_v59 = vpop.f32.mrf.mxu0  ;;  %v1721_v2 = vadd.f32 %v1656_v63, %v1398_v34  ;;  %1322 = vst.msk [vmem:[#allocation2 + $0x90] sm:$0xff] %vm756_vm6, %v1286_v9  ;;  %6871 = vmatmul.msk.bf16.gmra.mxu1 %vm562_vm2, %v1111_v27  ;;  %6963 = vmatmul.msk.bf16.gmra.mxu2 %vm562_vm2, %v1547_v51  ;;  %v7686_v63 = vld [vmem:[%s8090_s21 + $0x28] sm:$0xff] }
 0x1a8   : > { %v1833_v42 = vld [vmem:[#allocation2 + $0x80] sm:$0xff]  ;;  %v3388_v15 = vsel %vm2950_vm8, %v3386_v26, %v3387_v6  ;;  %v3849_v3 = vshrl.u32 %v7686_v63, 16  ;;  %v3852_v27 = vshll.u32 %v7686_v63, 16 }
 0x1a9   : > { %v2155_v16 = vadd.f32 %v8772_v1, %v1833_v42  ;;  %1757 = vst.msk [vmem:[#allocation2 + $0x88] sm:$0xff] %vm756_vm6, %v1721_v2  ;;  %v7701_v1 = vld [vmem:[%s8090_s21 + $0x10] sm:$0xf0]  ;;  %v9010_v63 = vld [vmem:[%s8090_s21 + $0x28] sm:$0xff] }
 0x1aa   : > { %7147 = vmatmul.msk.bf16.gmra.mxu0 %vm562_vm2, %v2551_v19  ;;  %v2267_v14 = vld [vmem:[#allocation2 + $0x78] sm:$0xff]  ;;  %v1659_v20 = vpop.f32.mrf.mxu2  ;;  %v7429_v36 = vor.u32 %v7701_v1, %v7428_v23  ;;  %v3851_v9 = vrot.slane %v3849_v3, 2  ;;  %v3854_v34 = vrot.slane %v3852_v27, 3  ;;  %v2954_v23 = vrot.slane %v8953_v52, 2  ;;  %v9017_v3 = vld [vmem:[%s8090_s21 + $0x28] sm:$0xff] }
 0x1ab   : > { %2191 = vst.msk [vmem:[#allocation2 + $0x80] sm:$0xff] %vm756_vm6, %v2155_v16  ;;  %v2723_v28 = vadd.f32 %v8814_v46, %v2267_v14  ;;  %v8916_v46 = vld [vmem:[%s8090_s21 + $0x18] sm:$0xff]  ;;  %v8956_v16 = vld [vmem:[%s8090_s21 + $0x20] sm:$0xff] }
 0x1ac   : > { %v1225_v29 = vpop.f32.mrf.mxu1  ;;  %7407 = vmatmul.msk.bf16.gmra.mxu3 %vm562_vm2, %v3847_v5  ;;  %v8924_v50 = vpop.f32.mrf.mxu3  ;;  %v4391_v7 = vrot.slane %v7429_v36, 3  ;;  %v4392_v49 = vrot.slane %v8916_v46, 3  ;;  %v3855_v22 = vor.u32 %v3854_v34, %v3851_v9  ;;  %v3389_v1 = vrot.slane %v8956_v16, 2 }
 0x1ad   : > { %2759 = vst.msk [vmem:[#allocation2 + $0x78] sm:$0xff] %vm756_vm6, %v2723_v28  ;;  %v1287_v35 = vadd.f32 %v1225_v29, %v853_v39 }
 0x1ae   : > { %v1399_v17 = vld [vmem:[#allocation2 + $0x90] sm:$0xff]  ;;  %v3390_v36 = vsel %vm2950_vm8, %v3387_v6, %v3389_v1 }
 0x1af   : > { %v8913_v57 = vpop.f32.mrf.mxu0  ;;  %v1722_v37 = vadd.f32 %v1659_v20, %v1399_v17  ;;  %1323 = vst.msk [vmem:[#allocation2 + $0x98] sm:$0xff] %vm756_vm6, %v1287_v35  ;;  %v8964_v20 = vld [vmem:[%s8090_s21 + $0x20] sm:$0xff]  ;;  %v856_v35 = vld [vmem:[#allocation2 + $0xb0] sm:$0xff] }
 0x1b0   : > { %v1834_v40 = vld [vmem:[#allocation2 + $0x88] sm:$0xff]  ;;  %v4394_v33 = vrot.slane %v8964_v20, 3 }
 0x1b1   : > { %v2156_v44 = vadd.f32 %v8801_v61, %v1834_v40  ;;  %1758 = vst.msk [vmem:[#allocation2 + $0x90] sm:$0xff] %vm756_vm6, %v1722_v37  ;;  %v2953_v61 = vsel %vm2950_vm8, %v2951_v41, %v2952_v18  ;;  %v7687_v37 = vld [vmem:[%s8090_s21 + $0x30] sm:$0xff] }
 0x1b2   : > { %v2268_v58 = vld [vmem:[#allocation2 + $0x80] sm:$0xff]  ;;  %v1661_v55 = vpop.f32.mrf.mxu2  ;;  %v4395_v0 = vsel %vm4390_vm9, %v4392_v49, %v4394_v33  ;;  %v3861_v26 = vshll.u32 %v7687_v37, 16 }
 0x1b3   : > { %2192 = vst.msk [vmem:[#allocation2 + $0x88] sm:$0xff] %vm756_vm6, %v2156_v44  ;;  %v2724_v24 = vadd.f32 %v8843_v12, %v2268_v58  ;;  %v4393_v12 = vsel %vm4390_vm9, %v4391_v7, %v4392_v49 }
 0x1b4   : > { %v1228_v45 = vpop.f32.mrf.mxu1  ;;  %v8948_v11 = vpop.f32.mrf.mxu3  ;;  %v3863_v58 = vrot.slane %v3861_v26, 3 }
 0x1b5   : > { %2760 = vst.msk [vmem:[#allocation2 + $0x80] sm:$0xff] %vm756_vm6, %v2724_v24  ;;  %v1288_v43 = vadd.f32 %v1228_v45, %v854_v32  ;;  %v857_v45 = vld [vmem:[#allocation2 + $0xb8] sm:$0xff] }
 0x1b6   : > { %v1400_v4 = vld [vmem:[#allocation2 + $0x98] sm:$0xff] }
 0x1b7   : > { %v8937_v60 = vpop.f32.mrf.mxu0  ;;  %v1723_v51 = vadd.f32 %v1661_v55, %v1400_v4  ;;  %1324 = vst.msk [vmem:[#allocation2 + $0xa0] sm:$0xff] %vm756_vm6, %v1288_v43  ;;  %7222 = vmatmul.msk.bf16.vlgmr.msra.gmra.mxu1 %vm562_vm2, %v2953_v61  ;;  %7314 = vmatmul.msk.bf16.vlgmr.msra.gmra.mxu2 %vm562_vm2, %v3388_v15  ;;  %v9007_v15 = vld [vmem:[%s8090_s21 + $0x20] sm:$0xff] }
 0x1b8   : > { %v1835_v10 = vld [vmem:[#allocation2 + $0x90] sm:$0xff] }
 0x1b9   : > { %v2157_v19 = vadd.f32 %v8824_v21, %v1835_v10  ;;  %1759 = vst.msk [vmem:[#allocation2 + $0x98] sm:$0xff] %vm756_vm6, %v1723_v51  ;;  %v3856_v21 = vsel %vm3821_vm7, %v8897_v8, %v3855_v22  ;;  %v2956_v51 = vrot.slane %v9007_v15, 2  ;;  %v3391_v10 = vrot.slane %v9010_v63, 2 }
 0x1ba   : > { %7498 = vmatmul.msk.bf16.vlgmr.msra.gmra.mxu0 %vm562_vm2, %v4393_v12  ;;  %v2269_v48 = vld [vmem:[#allocation2 + $0x88] sm:$0xff]  ;;  %v1664_v2 = vpop.f32.mrf.mxu2 }
 0x1bb   : > { %2193 = vst.msk [vmem:[#allocation2 + $0x90] sm:$0xff] %vm756_vm6, %v2157_v19  ;;  %v2725_v42 = vadd.f32 %v8862_v47, %v2269_v48 }
 0x1bc   : > { %v1230_v13 = vpop.f32.mrf.mxu1  ;;  %7408 = vmatmul.msk.bf16.gmra.mxu3 %vm562_vm2, %v3856_v21  ;;  %v8972_v39 = vpop.f32.mrf.mxu3  ;;  %v7688_v21 = vld [vmem:[%s8090_s21 + $0x38] sm:$0xff] }
 0x1bd   : > { %2761 = vst.msk [vmem:[#allocation2 + $0x88] sm:$0xff] %vm756_vm6, %v2725_v42  ;;  %v1289_v56 = vadd.f32 %v1230_v13, %v855_v54  ;;  %v858_v42 = vld [vmem:[#allocation2 + $0xc0] sm:$0xff]  ;;  %v3392_v13 = vsel %vm2950_vm8, %v3389_v1, %v3391_v10 }
 0x1be   : > { %v1401_v53 = vld [vmem:[#allocation2 + $0xa0] sm:$0xff] }
 0x1bf   : > { %v8961_v14 = vpop.f32.mrf.mxu0  ;;  %v1724_v28 = vadd.f32 %v1664_v2, %v1401_v53  ;;  %1325 = vst.msk [vmem:[#allocation2 + $0xa8] sm:$0xff] %vm756_vm6, %v1289_v56  ;;  %v4396_v2 = vrot.slane %v9017_v3, 3 }
 0x1c0   : > { %v1836_v47 = vld [vmem:[#allocation2 + $0x98] sm:$0xff] }
 0x1c1   : > { %v2158_v8 = vadd.f32 %v8854_v38, %v1836_v47  ;;  %1760 = vst.msk [vmem:[#allocation2 + $0xa0] sm:$0xff] %vm756_vm6, %v1724_v28  ;;  %v2955_v38 = vsel %vm2950_vm8, %v2952_v18, %v2954_v23  ;;  %v3858_v18 = vshrl.u32 %v7687_v37, 16  ;;  %v4397_v52 = vsel %vm4390_vm9, %v4394_v33, %v4396_v2  ;;  %v9063_v37 = vld [vmem:[%s8090_s21 + $0x30] sm:$0xff] }
 0x1c2   : > { %v2270_v29 = vld [vmem:[#allocation2 + $0x90] sm:$0xff]  ;;  %v1666_v31 = vpop.f32.mrf.mxu2  ;;  %v3867_v28 = vshrl.u32 %v7688_v21, 16  ;;  %v3870_v47 = vshll.u32 %v7688_v21, 16 }
 0x1c3   : > { %2194 = vst.msk [vmem:[#allocation2 + $0x98] sm:$0xff] %vm756_vm6, %v2158_v8  ;;  %v2726_v5 = vadd.f32 %v8881_v59, %v2270_v29  ;;  %v3860_v6 = vrot.slane %v3858_v18, 2  ;;  %v9070_v18 = vld [vmem:[%s8090_s21 + $0x30] sm:$0xff]  ;;  %v9116_v21 = vld [vmem:[%s8090_s21 + $0x38] sm:$0xff] }
 0x1c4   : > { %v1233_v17 = vpop.f32.mrf.mxu1  ;;  %v9002_v46 = vpop.f32.mrf.mxu3  ;;  %v3869_v1 = vrot.slane %v3867_v28, 2  ;;  %v3872_v8 = vrot.slane %v3870_v47, 3  ;;  %v9123_v28 = vld [vmem:[%s8090_s21 + $0x38] sm:$0xff] }
 0x1c5   : > { %2762 = vst.msk [vmem:[#allocation2 + $0x90] sm:$0xff] %vm756_vm6, %v2726_v5  ;;  %v1290_v40 = vadd.f32 %v1233_v17, %v856_v35  ;;  %v3864_v24 = vor.u32 %v3863_v58, %v3860_v6  ;;  %v859_v17 = vld [vmem:[#allocation2 + $0xc8] sm:$0xff] }
 0x1c6   : > { %v1402_v41 = vld [vmem:[#allocation2 + $0xa8] sm:$0xff]  ;;  %v3873_v5 = vor.u32 %v3872_v8, %v3869_v1 }
 0x1c7   : > { %v8989_v59 = vpop.f32.mrf.mxu0  ;;  %v1725_v44 = vadd.f32 %v1666_v31, %v1402_v41  ;;  %1326 = vst.msk [vmem:[#allocation2 + $0xb0] sm:$0xff] %vm756_vm6, %v1290_v40  ;;  %7223 = vmatmul.msk.bf16.gmra.mxu1 %vm562_vm2, %v2955_v38  ;;  %7315 = vmatmul.msk.bf16.gmra.mxu2 %vm562_vm2, %v3390_v36  ;;  %v9060_v36 = vld [vmem:[%s8090_s21 + $0x28] sm:$0xff] }
 0x1c8   : > { %v1837_v25 = vld [vmem:[#allocation2 + $0xa0] sm:$0xff] }
 0x1c9   : > { %v2159_v55 = vadd.f32 %v8871_v62, %v1837_v25  ;;  %1761 = vst.msk [vmem:[#allocation2 + $0xa8] sm:$0xff] %vm756_vm6, %v1725_v44  ;;  %v3865_v62 = vsel %vm3821_vm7, %v3855_v22, %v3864_v24  ;;  %v2958_v44 = vrot.slane %v9060_v36, 2  ;;  %v3393_v25 = vrot.slane %v9063_v37, 2 }
 0x1ca   : > { %7499 = vmatmul.msk.bf16.gmra.mxu0 %vm562_vm2, %v4395_v0  ;;  %v2271_v7 = vld [vmem:[#allocation2 + $0x98] sm:$0xff]  ;;  %v1669_v49 = vpop.f32.mrf.mxu2 }
 0x1cb   : > { %2195 = vst.msk [vmem:[#allocation2 + $0xa0] sm:$0xff] %vm756_vm6, %v2159_v55  ;;  %v2727_v32 = vadd.f32 %v8913_v57, %v2271_v7 }
 0x1cc   : > { %v1235_v61 = vpop.f32.mrf.mxu1  ;;  %7409 = vmatmul.msk.bf16.gmra.mxu3 %vm562_vm2, %v3865_v62  ;;  %v9025_v34 = vpop.f32.mrf.mxu3  ;;  %v7689_v62 = vld [vmem:[%s8090_s21 + $0x40] sm:$0xff] }
 0x1cd   : > { %2763 = vst.msk [vmem:[#allocation2 + $0x98] sm:$0xff] %vm756_vm6, %v2727_v32  ;;  %v1291_v43 = vadd.f32 %v1235_v61, %v857_v45  ;;  %v860_v32 = vld [vmem:[#allocation2 + $0xd0] sm:$0xff]  ;;  %v3394_v61 = vsel %vm2950_vm8, %v3391_v10, %v3393_v25 }
 0x1ce   : > { %v1403_v4 = vld [vmem:[#allocation2 + $0xb0] sm:$0xff] }
 0x1cf   : > { %v9014_v12 = vpop.f32.mrf.mxu0  ;;  %v1726_v27 = vadd.f32 %v1669_v49, %v1403_v4  ;;  %1327 = vst.msk [vmem:[#allocation2 + $0xb8] sm:$0xff] %vm756_vm6, %v1291_v43  ;;  %v4398_v49 = vrot.slane %v9070_v18, 3 }
 0x1d0   : > { %v1838_v57 = vld [vmem:[#allocation2 + $0xa8] sm:$0xff] }
 0x1d1   : > { %v2160_v9 = vadd.f32 %v8895_v30, %v1838_v57  ;;  %1762 = vst.msk [vmem:[#allocation2 + $0xb0] sm:$0xff] %vm756_vm6, %v1726_v27  ;;  %v2957_v30 = vsel %vm2950_vm8, %v2954_v23, %v2956_v51  ;;  %v4399_v15 = vsel %vm4390_vm9, %v4396_v2, %v4398_v49  ;;  %v3876_v27 = vshrl.u32 %v7689_v62, 16 }
 0x1d2   : > { %v2272_v19 = vld [vmem:[#allocation2 + $0xa0] sm:$0xff]  ;;  %v1671_v48 = vpop.f32.mrf.mxu2  ;;  %v3879_v57 = vshll.u32 %v7689_v62, 16  ;;  %v9169_v62 = vld [vmem:[%s8090_s21 + $0x40] sm:$0xff] }
 0x1d3   : > { %2196 = vst.msk [vmem:[#allocation2 + $0xa8] sm:$0xff] %vm756_vm6, %v2160_v9  ;;  %v2728_v22 = vadd.f32 %v8937_v60, %v2272_v19  ;;  %v3878_v10 = vrot.slane %v3876_v27, 2  ;;  %v9176_v27 = vld [vmem:[%s8090_s21 + $0x40] sm:$0xff] }
 0x1d4   : > { %v1238_v54 = vpop.f32.mrf.mxu1  ;;  %v9055_v20 = vpop.f32.mrf.mxu3  ;;  %v3881_v9 = vrot.slane %v3879_v57, 3 }
 0x1d5   : > { %2764 = vst.msk [vmem:[#allocation2 + $0xa0] sm:$0xff] %vm756_vm6, %v2728_v22  ;;  %v1292_v56 = vadd.f32 %v1238_v54, %v858_v42  ;;  %v861_v54 = vld [vmem:[#allocation2 + $0xd8] sm:$0xff] }
 0x1d6   : > { %v1404_v53 = vld [vmem:[#allocation2 + $0xb8] sm:$0xff]  ;;  %v3882_v22 = vor.u32 %v3881_v9, %v3878_v10 }
 0x1d7   : > { %v9042_v60 = vpop.f32.mrf.mxu0  ;;  %v1727_v23 = vadd.f32 %v1671_v48, %v1404_v53  ;;  %1328 = vst.msk [vmem:[#allocation2 + $0xc0] sm:$0xff] %vm756_vm6, %v1292_v56  ;;  %7224 = vmatmul.msk.bf16.gmra.mxu1 %vm562_vm2, %v2957_v30  ;;  %7316 = vmatmul.msk.bf16.gmra.mxu2 %vm562_vm2, %v3392_v13  ;;  %v9113_v13 = vld [vmem:[%s8090_s21 + $0x30] sm:$0xff] }
 0x1d8   : > { %v1839_v16 = vld [vmem:[#allocation2 + $0xb0] sm:$0xff] }
 0x1d9   : > { %v2161_v29 = vadd.f32 %v8924_v50, %v1839_v16  ;;  %1763 = vst.msk [vmem:[#allocation2 + $0xb8] sm:$0xff] %vm756_vm6, %v1727_v23  ;;  %v3874_v50 = vsel %vm3821_vm7, %v3864_v24, %v3873_v5  ;;  %v2960_v23 = vrot.slane %v9113_v13, 2  ;;  %v3395_v16 = vrot.slane %v9116_v21, 2 }
 0x1da   : > { %7500 = vmatmul.msk.bf16.gmra.mxu0 %vm562_vm2, %v4397_v52  ;;  %v2273_v31 = vld [vmem:[#allocation2 + $0xa8] sm:$0xff]  ;;  %v1674_v33 = vpop.f32.mrf.mxu2 }
 0x1db   : > { %2197 = vst.msk [vmem:[#allocation2 + $0xb0] sm:$0xff] %vm756_vm6, %v2161_v29  ;;  %v2729_v35 = vadd.f32 %v8961_v14, %v2273_v31 }
 0x1dc   : > { %v1240_v38 = vpop.f32.mrf.mxu1  ;;  %7410 = vmatmul.msk.bf16.gmra.mxu3 %vm562_vm2, %v3874_v50  ;;  %v9078_v58 = vpop.f32.mrf.mxu3  ;;  %v7690_v50 = vld [vmem:[%s8090_s21 + $0x48] sm:$0xff] }
 0x1dd   : > { %2765 = vst.msk [vmem:[#allocation2 + $0xa8] sm:$0xff] %vm756_vm6, %v2729_v35  ;;  %v1293_v40 = vadd.f32 %v1240_v38, %v859_v17  ;;  %v862_v35 = vld [vmem:[#allocation2 + $0xe0] sm:$0xff]  ;;  %v3396_v38 = vsel %vm2950_vm8, %v3393_v25, %v3395_v16 }
 0x1de   : > { %v1405_v41 = vld [vmem:[#allocation2 + $0xc0] sm:$0xff] }
 0x1df   : > { %v9067_v0 = vpop.f32.mrf.mxu0  ;;  %v1728_v26 = vadd.f32 %v1674_v33, %v1405_v41  ;;  %1329 = vst.msk [vmem:[#allocation2 + $0xc8] sm:$0xff] %vm756_vm6, %v1293_v40  ;;  %v4400_v33 = vrot.slane %v9123_v28, 3 }
 0x1e0   : > { %v1840_v14 = vld [vmem:[#allocation2 + $0xb8] sm:$0xff] }
 0x1e1   : > { %v2162_v6 = vadd.f32 %v8948_v11, %v1840_v14  ;;  %1764 = vst.msk [vmem:[#allocation2 + $0xc0] sm:$0xff] %vm756_vm6, %v1728_v26  ;;  %v2959_v11 = vsel %vm2950_vm8, %v2956_v51, %v2958_v44  ;;  %v4401_v36 = vsel %vm4390_vm9, %v4398_v49, %v4400_v33  ;;  %v3885_v26 = vshrl.u32 %v7690_v50, 16 }
 0x1e2   : > { %v2274_v55 = vld [vmem:[#allocation2 + $0xb0] sm:$0xff]  ;;  %v1676_v7 = vpop.f32.mrf.mxu2  ;;  %v3888_v14 = vshll.u32 %v7690_v50, 16  ;;  %v9222_v50 = vld [vmem:[%s8090_s21 + $0x48] sm:$0xff] }
 0x1e3   : > { %2198 = vst.msk [vmem:[#allocation2 + $0xb8] sm:$0xff] %vm756_vm6, %v2162_v6  ;;  %v2730_v24 = vadd.f32 %v8989_v59, %v2274_v55  ;;  %v3887_v25 = vrot.slane %v3885_v26, 2  ;;  %v9229_v26 = vld [vmem:[%s8090_s21 + $0x48] sm:$0xff] }
 0x1e4   : > { %v1243_v45 = vpop.f32.mrf.mxu1  ;;  %v9108_v3 = vpop.f32.mrf.mxu3  ;;  %v3890_v6 = vrot.slane %v3888_v14, 3 }
 0x1e5   : > { %2766 = vst.msk [vmem:[#allocation2 + $0xb0] sm:$0xff] %vm756_vm6, %v2730_v24  ;;  %v1294_v43 = vadd.f32 %v1243_v45, %v860_v32  ;;  %v863_v45 = vld [vmem:[#allocation2 + $0xe8] sm:$0xff] }
 0x1e6   : > { %v1406_v4 = vld [vmem:[#allocation2 + $0xc8] sm:$0xff]  ;;  %v3891_v24 = vor.u32 %v3890_v6, %v3887_v25 }
 0x1e7   : > { %v9095_v59 = vpop.f32.mrf.mxu0  ;;  %v1729_v51 = vadd.f32 %v1676_v7, %v1406_v4  ;;  %1330 = vst.msk [vmem:[#allocation2 + $0xd0] sm:$0xff] %vm756_vm6, %v1294_v43  ;;  %7225 = vmatmul.msk.bf16.gmra.mxu1 %vm562_vm2, %v2959_v11  ;;  %7317 = vmatmul.msk.bf16.gmra.mxu2 %vm562_vm2, %v3394_v61  ;;  %v9166_v61 = vld [vmem:[%s8090_s21 + $0x38] sm:$0xff] }
 0x1e8   : > { %v1841_v63 = vld [vmem:[#allocation2 + $0xc0] sm:$0xff] }
 0x1e9   : > { %v2163_v19 = vadd.f32 %v8972_v39, %v1841_v63  ;;  %1765 = vst.msk [vmem:[#allocation2 + $0xc8] sm:$0xff] %vm756_vm6, %v1729_v51  ;;  %v3883_v39 = vsel %vm3821_vm7, %v3873_v5, %v3882_v22  ;;  %v2962_v51 = vrot.slane %v9166_v61, 2  ;;  %v3397_v63 = vrot.slane %v9169_v62, 2 }
 0x1ea   : > { %7501 = vmatmul.msk.bf16.gmra.mxu0 %vm562_vm2, %v4399_v15  ;;  %v2275_v48 = vld [vmem:[#allocation2 + $0xb8] sm:$0xff]  ;;  %v1679_v2 = vpop.f32.mrf.mxu2 }
 0x1eb   : > { %2199 = vst.msk [vmem:[#allocation2 + $0xc0] sm:$0xff] %vm756_vm6, %v2163_v19  ;;  %v2731_v42 = vadd.f32 %v9014_v12, %v2275_v48 }
 0x1ec   : > { %v1245_v30 = vpop.f32.mrf.mxu1  ;;  %7411 = vmatmul.msk.bf16.gmra.mxu3 %vm562_vm2, %v3883_v39  ;;  %v9131_v8 = vpop.f32.mrf.mxu3  ;;  %v7691_v39 = vld [vmem:[%s8090_s21 + $0x50] sm:$0xff] }
 0x1ed   : > { %2767 = vst.msk [vmem:[#allocation2 + $0xb8] sm:$0xff] %vm756_vm6, %v2731_v42  ;;  %v1295_v56 = vadd.f32 %v1245_v30, %v861_v54  ;;  %v864_v42 = vld [vmem:[#allocation2 + $0xf0] sm:$0xff]  ;;  %v3398_v30 = vsel %vm2950_vm8, %v3395_v16, %v3397_v63 }
 0x1ee   : > { %v1407_v53 = vld [vmem:[#allocation2 + $0xd0] sm:$0xff] }
 0x1ef   : > { %v9120_v52 = vpop.f32.mrf.mxu0  ;;  %v1730_v47 = vadd.f32 %v1679_v2, %v1407_v53  ;;  %1331 = vst.msk [vmem:[#allocation2 + $0xd8] sm:$0xff] %vm756_vm6, %v1295_v56  ;;  %v4402_v2 = vrot.slane %v9176_v27, 3 }
 0x1f0   : > { %v1842_v12 = vld [vmem:[#allocation2 + $0xc8] sm:$0xff] }
 0x1f1   : > { %v2164_v1 = vadd.f32 %v9002_v46, %v1842_v12  ;;  %1766 = vst.msk [vmem:[#allocation2 + $0xd0] sm:$0xff] %vm756_vm6, %v1730_v47  ;;  %v2961_v46 = vsel %vm2950_vm8, %v2958_v44, %v2960_v23  ;;  %v4403_v13 = vsel %vm4390_vm9, %v4400_v33, %v4402_v2  ;;  %v3894_v47 = vshrl.u32 %v7691_v39, 16 }
 0x1f2   : > { %v2276_v29 = vld [vmem:[#allocation2 + $0xc0] sm:$0xff]  ;;  %v1681_v31 = vpop.f32.mrf.mxu2  ;;  %v3897_v12 = vshll.u32 %v7691_v39, 16  ;;  %v9275_v39 = vld [vmem:[%s8090_s21 + $0x50] sm:$0xff] }
 0x1f3   : > { %2200 = vst.msk [vmem:[#allocation2 + $0xc8] sm:$0xff] %vm756_vm6, %v2164_v1  ;;  %v2732_v5 = vadd.f32 %v9042_v60, %v2276_v29  ;;  %v3896_v16 = vrot.slane %v3894_v47, 2  ;;  %v9282_v47 = vld [vmem:[%s8090_s21 + $0x50] sm:$0xff] }
 0x1f4   : > { %v1248_v17 = vpop.f32.mrf.mxu1  ;;  %v9161_v18 = vpop.f32.mrf.mxu3  ;;  %v3899_v1 = vrot.slane %v3897_v12, 3 }
 0x1f5   : > { %2768 = vst.msk [vmem:[#allocation2 + $0xc0] sm:$0xff] %vm756_vm6, %v2732_v5  ;;  %v1296_v40 = vadd.f32 %v1248_v17, %v862_v35  ;;  %v865_v17 = vld [vmem:[#allocation2 + $0xf8] sm:$0xff] }
 0x1f6   : > { %v1408_v41 = vld [vmem:[#allocation2 + $0xd8] sm:$0xff]  ;;  %v3900_v5 = vor.u32 %v3899_v1, %v3896_v16 }
 0x1f7   : > { %v9148_v60 = vpop.f32.mrf.mxu0  ;;  %v1731_v44 = vadd.f32 %v1681_v31, %v1408_v41  ;;  %1332 = vst.msk [vmem:[#allocation2 + $0xe0] sm:$0xff] %vm756_vm6, %v1296_v40  ;;  %7226 = vmatmul.msk.bf16.gmra.mxu1 %vm562_vm2, %v2961_v46  ;;  %7318 = vmatmul.msk.bf16.gmra.mxu2 %vm562_vm2, %v3396_v38  ;;  %v9219_v38 = vld [vmem:[%s8090_s21 + $0x40] sm:$0xff] }
 0x1f8   : > { %v1843_v37 = vld [vmem:[#allocation2 + $0xd0] sm:$0xff] }
 0x1f9   : > { %v2165_v55 = vadd.f32 %v9025_v34, %v1843_v37  ;;  %1767 = vst.msk [vmem:[#allocation2 + $0xd8] sm:$0xff] %vm756_vm6, %v1731_v44  ;;  %v3892_v34 = vsel %vm3821_vm7, %v3882_v22, %v3891_v24  ;;  %v2964_v44 = vrot.slane %v9219_v38, 2  ;;  %v3399_v37 = vrot.slane %v9222_v50, 2 }
 0x1fa   : > { %7502 = vmatmul.msk.bf16.gmra.mxu0 %vm562_vm2, %v4401_v36  ;;  %v2277_v7 = vld [vmem:[#allocation2 + $0xc8] sm:$0xff]  ;;  %v1684_v49 = vpop.f32.mrf.mxu2 }
 0x1fb   : > { %2201 = vst.msk [vmem:[#allocation2 + $0xd0] sm:$0xff] %vm756_vm6, %v2165_v55  ;;  %v2733_v32 = vadd.f32 %v9067_v0, %v2277_v7 }
 0x1fc   : > { %v1250_v11 = vpop.f32.mrf.mxu1  ;;  %7412 = vmatmul.msk.bf16.gmra.mxu3 %vm562_vm2, %v3892_v34  ;;  %v9184_v9 = vpop.f32.mrf.mxu3  ;;  %v7692_v34 = vld [vmem:[%s8090_s21 + $0x58] sm:$0xff] }
 0x1fd   : > { %2769 = vst.msk [vmem:[#allocation2 + $0xc8] sm:$0xff] %vm756_vm6, %v2733_v32  ;;  %v1297_v43 = vadd.f32 %v1250_v11, %v863_v45  ;;  %v866_v32 = vld [vmem:[#allocation2 + $0x100] sm:$0xff]  ;;  %v3400_v11 = vsel %vm2950_vm8, %v3397_v63, %v3399_v37 }
 0x1fe   : > { %v1409_v4 = vld [vmem:[#allocation2 + $0xe0] sm:$0xff] }
 0x1ff   : > { %v9173_v15 = vpop.f32.mrf.mxu0  ;;  %v1732_v57 = vadd.f32 %v1684_v49, %v1409_v4  ;;  %1333 = vst.msk [vmem:[#allocation2 + $0xe8] sm:$0xff] %vm756_vm6, %v1297_v43  ;;  %v4404_v49 = vrot.slane %v9229_v26, 3 }
 0x200   : > { %v1844_v0 = vld [vmem:[#allocation2 + $0xd8] sm:$0xff] }
 0x201   : > { %v2166_v10 = vadd.f32 %v9055_v20, %v1844_v0  ;;  %1768 = vst.msk [vmem:[#allocation2 + $0xe0] sm:$0xff] %vm756_vm6, %v1732_v57  ;;  %v2963_v20 = vsel %vm2950_vm8, %v2960_v23, %v2962_v51  ;;  %v4405_v61 = vsel %vm4390_vm9, %v4402_v2, %v4404_v49  ;;  %v3903_v57 = vshrl.u32 %v7692_v34, 16 }
 0x202   : > { %v2278_v19 = vld [vmem:[#allocation2 + $0xd0] sm:$0xff]  ;;  %v1686_v48 = vpop.f32.mrf.mxu2  ;;  %v3906_v0 = vshll.u32 %v7692_v34, 16 }
 0x203   : > { %2202 = vst.msk [vmem:[#allocation2 + $0xd8] sm:$0xff] %vm756_vm6, %v2166_v10  ;;  %v2734_v22 = vadd.f32 %v9095_v59, %v2278_v19  ;;  %v3905_v63 = vrot.slane %v3903_v57, 2  ;;  %v9328_v34 = vld [vmem:[%s8090_s21 + $0x58] sm:$0xff] }
 0x204   : > { %v1253_v54 = vpop.f32.mrf.mxu1  ;;  %v9214_v28 = vpop.f32.mrf.mxu3  ;;  %v3908_v10 = vrot.slane %v3906_v0, 3  ;;  %v9335_v57 = vld [vmem:[%s8090_s21 + $0x58] sm:$0xff] }
 0x205   : > { %2770 = vst.msk [vmem:[#allocation2 + $0xd0] sm:$0xff] %vm756_vm6, %v2734_v22  ;;  %v1298_v56 = vadd.f32 %v1253_v54, %v864_v42  ;;  %v867_v54 = vld [vmem:[#allocation2 + $0x108] sm:$0xff] }
 0x206   : > { %v1410_v53 = vld [vmem:[#allocation2 + $0xe8] sm:$0xff]  ;;  %v3909_v22 = vor.u32 %v3908_v10, %v3905_v63 }
 0x207   : > { %v9201_v59 = vpop.f32.mrf.mxu0  ;;  %v1733_v23 = vadd.f32 %v1686_v48, %v1410_v53  ;;  %1334 = vst.msk [vmem:[#allocation2 + $0xf0] sm:$0xff] %vm756_vm6, %v1298_v56  ;;  %7227 = vmatmul.msk.bf16.gmra.mxu1 %vm562_vm2, %v2963_v20  ;;  %7319 = vmatmul.msk.bf16.gmra.mxu2 %vm562_vm2, %v3398_v30  ;;  %v9272_v30 = vld [vmem:[%s8090_s21 + $0x48] sm:$0xff] }
 0x208   : > { %v1845_v21 = vld [vmem:[#allocation2 + $0xe0] sm:$0xff] }
 0x209   : > { %v2167_v29 = vadd.f32 %v9078_v58, %v1845_v21  ;;  %1769 = vst.msk [vmem:[#allocation2 + $0xe8] sm:$0xff] %vm756_vm6, %v1733_v23  ;;  %v3901_v58 = vsel %vm3821_vm7, %v3891_v24, %v3900_v5  ;;  %v2966_v23 = vrot.slane %v9272_v30, 2  ;;  %v3401_v21 = vrot.slane %v9275_v39, 2 }
 0x20a   : > { %7503 = vmatmul.msk.bf16.gmra.mxu0 %vm562_vm2, %v4403_v13  ;;  %v2279_v31 = vld [vmem:[#allocation2 + $0xd8] sm:$0xff]  ;;  %v1689_v33 = vpop.f32.mrf.mxu2 }
 0x20b   : > { %2203 = vst.msk [vmem:[#allocation2 + $0xe0] sm:$0xff] %vm756_vm6, %v2167_v29  ;;  %v2735_v35 = vadd.f32 %v9120_v52, %v2279_v31  ;;  %v4406_v31 = vrot.slane %v9282_v47, 3 }
 0x20c   : > { %v1255_v46 = vpop.f32.mrf.mxu1  ;;  %7413 = vmatmul.msk.bf16.gmra.mxu3 %vm562_vm2, %v3901_v58  ;;  %v9237_v6 = vpop.f32.mrf.mxu3  ;;  %v7693_v58 = vld [vmem:[%s8090_s21 + $0x60] sm:$0xff] }
 0x20d   : > { %2771 = vst.msk [vmem:[#allocation2 + $0xd8] sm:$0xff] %vm756_vm6, %v2735_v35  ;;  %v1299_v40 = vadd.f32 %v1255_v46, %v865_v17  ;;  %v868_v35 = vld [vmem:[#allocation2 + $0x110] sm:$0xff]  ;;  %v3402_v46 = vsel %vm2950_vm8, %v3399_v37, %v3401_v21  ;;  %v4407_v38 = vsel %vm4390_vm9, %v4404_v49, %v4406_v31 }
 0x20e   : > { %v1411_v41 = vld [vmem:[#allocation2 + $0xf0] sm:$0xff] }
 0x20f   : > { %v9226_v36 = vpop.f32.mrf.mxu0  ;;  %v1734_v14 = vadd.f32 %v1689_v33, %v1411_v41  ;;  %1335 = vst.msk [vmem:[#allocation2 + $0xf8] sm:$0xff] %vm756_vm6, %v1299_v40 }
 0x210   : > { %v1846_v52 = vld [vmem:[#allocation2 + $0xe8] sm:$0xff] }
 0x211   : > { %v2168_v25 = vadd.f32 %v9108_v3, %v1846_v52  ;;  %1770 = vst.msk [vmem:[#allocation2 + $0xf0] sm:$0xff] %vm756_vm6, %v1734_v14  ;;  %v2965_v3 = vsel %vm2950_vm8, %v2962_v51, %v2964_v44  ;;  %v3912_v14 = vshrl.u32 %v7693_v58, 16  ;;  %v3915_v52 = vshll.u32 %v7693_v58, 16  ;;  %v9381_v58 = vld [vmem:[%s8090_s21 + $0x60] sm:$0xff] }
 0x212   : > { %v2280_v55 = vld [vmem:[#allocation2 + $0xe0] sm:$0xff]  ;;  %v1691_v7 = vpop.f32.mrf.mxu2 }
 0x213   : > { %2204 = vst.msk [vmem:[#allocation2 + $0xe8] sm:$0xff] %vm756_vm6, %v2168_v25  ;;  %v2736_v24 = vadd.f32 %v9148_v60, %v2280_v55  ;;  %v3914_v37 = vrot.slane %v3912_v14, 2  ;;  %v3917_v25 = vrot.slane %v3915_v52, 3  ;;  %v9388_v14 = vld [vmem:[%s8090_s21 + $0x60] sm:$0xff] }
 0x214   : > { %v1258_v45 = vpop.f32.mrf.mxu1  ;;  %v9267_v27 = vpop.f32.mrf.mxu3 }
 0x215   : > { %2772 = vst.msk [vmem:[#allocation2 + $0xe0] sm:$0xff] %vm756_vm6, %v2736_v24  ;;  %v1300_v43 = vadd.f32 %v1258_v45, %v866_v32  ;;  %v3918_v24 = vor.u32 %v3917_v25, %v3914_v37  ;;  %v869_v45 = vld [vmem:[#allocation2 + $0x118] sm:$0xff] }
 0x216   : > { %v1412_v4 = vld [vmem:[#allocation2 + $0xf8] sm:$0xff] }
 0x217   : > { %v9254_v60 = vpop.f32.mrf.mxu0  ;;  %v1735_v51 = vadd.f32 %v1691_v7, %v1412_v4  ;;  %1336 = vst.msk [vmem:[#allocation2 + $0x100] sm:$0xff] %vm756_vm6, %v1300_v43  ;;  %7228 = vmatmul.msk.bf16.gmra.mxu1 %vm562_vm2, %v2965_v3  ;;  %7320 = vmatmul.msk.bf16.gmra.mxu2 %vm562_vm2, %v3400_v11  ;;  %v9325_v11 = vld [vmem:[%s8090_s21 + $0x50] sm:$0xff] }
 0x218   : > { %v1847_v62 = vld [vmem:[#allocation2 + $0xf0] sm:$0xff] }
 0x219   : > { %v2169_v19 = vadd.f32 %v9131_v8, %v1847_v62  ;;  %1771 = vst.msk [vmem:[#allocation2 + $0xf8] sm:$0xff] %vm756_vm6, %v1735_v51  ;;  %v3910_v8 = vsel %vm3821_vm7, %v3900_v5, %v3909_v22  ;;  %v2968_v51 = vrot.slane %v9325_v11, 2  ;;  %v3403_v62 = vrot.slane %v9328_v34, 2 }
 0x21a   : > { %7504 = vmatmul.msk.bf16.gmra.mxu0 %vm562_vm2, %v4405_v61  ;;  %v2281_v48 = vld [vmem:[#allocation2 + $0xe8] sm:$0xff]  ;;  %v1694_v2 = vpop.f32.mrf.mxu2 }
 0x21b   : > { %2205 = vst.msk [vmem:[#allocation2 + $0xf0] sm:$0xff] %vm756_vm6, %v2169_v19  ;;  %v2737_v42 = vadd.f32 %v9173_v15, %v2281_v48  ;;  %v4408_v48 = vrot.slane %v9335_v57, 3 }
 0x21c   : > { %v1260_v20 = vpop.f32.mrf.mxu1  ;;  %7414 = vmatmul.msk.bf16.gmra.mxu3 %vm562_vm2, %v3910_v8  ;;  %v7694_v8 = vld [vmem:[%s8090_s21 + $0x68] sm:$0xff] }
 0x21d   : > { %2773 = vst.msk [vmem:[#allocation2 + $0xe8] sm:$0xff] %vm756_vm6, %v2737_v42  ;;  %v1301_v56 = vadd.f32 %v1260_v20, %v867_v54  ;;  %v2821_v42 = vld [vmem:[#allocation2] sm:$0xff]  ;;  %v3404_v20 = vsel %vm2950_vm8, %v3401_v21, %v3403_v62  ;;  %v4409_v30 = vsel %vm4390_vm9, %v4406_v31, %v4408_v48 }
 0x21e   : > { %v1413_v53 = vld [vmem:[#allocation2 + $0x100] sm:$0xff] }
 0x21f   : > { %v9279_v13 = vpop.f32.mrf.mxu0  ;;  %v1736_v12 = vadd.f32 %v1694_v2, %v1413_v53  ;;  %1337 = vst.msk [vmem:[#allocation2 + $0x108] sm:$0xff] %vm756_vm6, %v1301_v56  ;;  %v9291_v33 = vpop.f32.mrf.mxu3 }
 0x220   : > { %v1848_v15 = vld [vmem:[#allocation2 + $0xf8] sm:$0xff] }
 0x221   : > { %v2170_v16 = vadd.f32 %v9161_v18, %v1848_v15  ;;  %1772 = vst.msk [vmem:[#allocation2 + $0x100] sm:$0xff] %vm756_vm6, %v1736_v12  ;;  %v2967_v18 = vsel %vm2950_vm8, %v2964_v44, %v2966_v23  ;;  %v3921_v12 = vshrl.u32 %v7694_v8, 16  ;;  %v3924_v15 = vshll.u32 %v7694_v8, 16  ;;  %v9434_v8 = vld [vmem:[%s8090_s21 + $0x68] sm:$0xff] }
 0x222   : > { %v2282_v1 = vld [vmem:[#allocation2 + $0xf0] sm:$0xff]  ;;  %v1696_v29 = vpop.f32.mrf.mxu2 }
 0x223   : > { %2206 = vst.msk [vmem:[#allocation2 + $0xf8] sm:$0xff] %vm756_vm6, %v2170_v16  ;;  %v2738_v5 = vadd.f32 %v9201_v59, %v2282_v1  ;;  %v3923_v21 = vrot.slane %v3921_v12, 2  ;;  %v3926_v16 = vrot.slane %v3924_v15, 3  ;;  %v9441_v12 = vld [vmem:[%s8090_s21 + $0x68] sm:$0xff] }
 0x224   : > { %v1263_v17 = vpop.f32.mrf.mxu1 }
 0x225   : > { %2774 = vst.msk [vmem:[#allocation2 + $0xf0] sm:$0xff] %vm756_vm6, %v2738_v5  ;;  %v1302_v40 = vadd.f32 %v1263_v17, %v868_v35  ;;  %v3927_v5 = vor.u32 %v3926_v16, %v3923_v21  ;;  %v2822_v17 = vld [vmem:[#allocation2 + $0x8] sm:$0xff] }
 0x226   : > { %v1414_v41 = vld [vmem:[#allocation2 + $0x108] sm:$0xff] }
 0x227   : > { %v9307_v59 = vpop.f32.mrf.mxu0  ;;  %v1737_v44 = vadd.f32 %v1696_v29, %v1414_v41  ;;  %1338 = vst.msk [vmem:[#allocation2 + $0x110] sm:$0xff] %vm756_vm6, %v1302_v40  ;;  %7229 = vmatmul.msk.bf16.gmra.mxu1 %vm562_vm2, %v2967_v18  ;;  %7321 = vmatmul.msk.bf16.gmra.mxu2 %vm562_vm2, %v3402_v46  ;;  %v9320_v49 = vpop.f32.mrf.mxu3  ;;  %v9378_v46 = vld [vmem:[%s8090_s21 + $0x58] sm:$0xff] }
 0x228   : > { %v1849_v50 = vld [vmem:[#allocation2 + $0x100] sm:$0xff] }
 0x229   : > { %v2171_v55 = vadd.f32 %v9184_v9, %v1849_v50  ;;  %1773 = vst.msk [vmem:[#allocation2 + $0x108] sm:$0xff] %vm756_vm6, %v1737_v44  ;;  %v3919_v9 = vsel %vm3821_vm7, %v3909_v22, %v3918_v24  ;;  %v2970_v44 = vrot.slane %v9378_v46, 2  ;;  %v3405_v50 = vrot.slane %v9381_v58, 2 }
 0x22a   : > { %7505 = vmatmul.msk.bf16.gmra.mxu0 %vm562_vm2, %v4407_v38  ;;  %v2283_v26 = vld [vmem:[#allocation2 + $0xf8] sm:$0xff]  ;;  %v1699_v7 = vpop.f32.mrf.mxu2 }
 0x22b   : > { %2207 = vst.msk [vmem:[#allocation2 + $0x100] sm:$0xff] %vm756_vm6, %v2171_v55  ;;  %v2739_v32 = vadd.f32 %v9226_v36, %v2283_v26  ;;  %v4410_v26 = vrot.slane %v9388_v14, 3 }
 0x22c   : > { %v1265_v3 = vpop.f32.mrf.mxu1  ;;  %7415 = vmatmul.msk.bf16.gmra.mxu3 %vm562_vm2, %v3919_v9  ;;  %v7695_v9 = vld [vmem:[%s8090_s21 + $0x70] sm:$0xff] }
 0x22d   : > { %2775 = vst.msk [vmem:[#allocation2 + $0xf8] sm:$0xff] %vm756_vm6, %v2739_v32  ;;  %v1303_v43 = vadd.f32 %v1265_v3, %v869_v45  ;;  %v2823_v32 = vld [vmem:[#allocation2 + $0x10] sm:$0xff]  ;;  %v3406_v3 = vsel %vm2950_vm8, %v3403_v62, %v3405_v50  ;;  %v4411_v11 = vsel %vm4390_vm9, %v4408_v48, %v4410_v26 }
 0x22e   : > { %v1415_v4 = vld [vmem:[#allocation2 + $0x110] sm:$0xff] }
 0x22f   : > { %v9332_v61 = vpop.f32.mrf.mxu0  ;;  %v1738_v0 = vadd.f32 %v1699_v7, %v1415_v4  ;;  %1339 = vst.msk [vmem:[#allocation2 + $0x118] sm:$0xff] %vm756_vm6, %v1303_v43  ;;  %v9344_v2 = vpop.f32.mrf.mxu3 }
 0x230   : > { %v1850_v36 = vld [vmem:[#allocation2 + $0x108] sm:$0xff] }
 0x231   : > { %v2172_v63 = vadd.f32 %v9214_v28, %v1850_v36  ;;  %1774 = vst.msk [vmem:[#allocation2 + $0x110] sm:$0xff] %vm756_vm6, %v1738_v0  ;;  %v2969_v28 = vsel %vm2950_vm8, %v2966_v23, %v2968_v51  ;;  %v3930_v0 = vshrl.u32 %v7695_v9, 16  ;;  %v3933_v36 = vshll.u32 %v7695_v9, 16  ;;  %v9487_v9 = vld [vmem:[%s8090_s21 + $0x70] sm:$0xff] }
 0x232   : > { %v2284_v10 = vld [vmem:[#allocation2 + $0x100] sm:$0xff]  ;;  %v1701_v19 = vpop.f32.mrf.mxu2 }
 0x233   : > { %2208 = vst.msk [vmem:[#allocation2 + $0x108] sm:$0xff] %vm756_vm6, %v2172_v63  ;;  %v2740_v22 = vadd.f32 %v9254_v60, %v2284_v10  ;;  %v3932_v62 = vrot.slane %v3930_v0, 2  ;;  %v3935_v63 = vrot.slane %v3933_v36, 3  ;;  %v9494_v0 = vld [vmem:[%s8090_s21 + $0x70] sm:$0xff] }
 0x234   : > { %v3054_v54 = vpop.f32.mrf.mxu1 }
 0x235   : > { %2776 = vst.msk [vmem:[#allocation2 + $0x100] sm:$0xff] %vm756_vm6, %v2740_v22  ;;  %v3144_v56 = vadd.f32 %v3054_v54, %v2821_v42  ;;  %v3936_v22 = vor.u32 %v3935_v63, %v3932_v62  ;;  %v2824_v54 = vld [vmem:[#allocation2 + $0x18] sm:$0xff] }
 0x236   : > { %v1416_v53 = vld [vmem:[#allocation2 + $0x118] sm:$0xff] }
 0x237   : > { %v9360_v60 = vpop.f32.mrf.mxu0  ;;  %v1739_v23 = vadd.f32 %v1701_v19, %v1416_v53  ;;  %3180 = vst.msk [vmem:[#allocation2] sm:$0xff] %vm756_vm6, %v3144_v56  ;;  %7230 = vmatmul.msk.bf16.gmra.mxu1 %vm562_vm2, %v2969_v28  ;;  %7322 = vmatmul.msk.bf16.gmra.mxu2 %vm562_vm2, %v3404_v20  ;;  %v9373_v31 = vpop.f32.mrf.mxu3  ;;  %v9431_v20 = vld [vmem:[%s8090_s21 + $0x60] sm:$0xff] }
 0x238   : > { %v1851_v39 = vld [vmem:[#allocation2 + $0x110] sm:$0xff] }
 0x239   : > { %v2173_v1 = vadd.f32 %v9237_v6, %v1851_v39  ;;  %1775 = vst.msk [vmem:[#allocation2 + $0x118] sm:$0xff] %vm756_vm6, %v1739_v23  ;;  %v3928_v6 = vsel %vm3821_vm7, %v3918_v24, %v3927_v5  ;;  %v2972_v23 = vrot.slane %v9431_v20, 2  ;;  %v3407_v39 = vrot.slane %v9434_v8, 2 }
 0x23a   : > { %7506 = vmatmul.msk.bf16.gmra.mxu0 %vm562_vm2, %v4409_v30  ;;  %v2285_v47 = vld [vmem:[#allocation2 + $0x108] sm:$0xff]  ;;  %v3489_v29 = vpop.f32.mrf.mxu2 }
 0x23b   : > { %2209 = vst.msk [vmem:[#allocation2 + $0x110] sm:$0xff] %vm756_vm6, %v2173_v1  ;;  %v2741_v35 = vadd.f32 %v9279_v13, %v2285_v47  ;;  %v4412_v47 = vrot.slane %v9441_v12, 3 }
 0x23c   : > { %v3056_v18 = vpop.f32.mrf.mxu1  ;;  %7416 = vmatmul.msk.bf16.gmra.mxu3 %vm562_vm2, %v3928_v6  ;;  %v7696_v6 = vld [vmem:[%s8090_s21 + $0x78] sm:$0xff] }
 0x23d   : > { %2777 = vst.msk [vmem:[#allocation2 + $0x108] sm:$0xff] %vm756_vm6, %v2741_v35  ;;  %v3145_v40 = vadd.f32 %v3056_v18, %v2822_v17  ;;  %v2825_v35 = vld [vmem:[#allocation2 + $0x20] sm:$0xff]  ;;  %v3408_v18 = vsel %vm2950_vm8, %v3405_v50, %v3407_v39  ;;  %v4413_v46 = vsel %vm4390_vm9, %v4410_v26, %v4412_v47 }
 0x23e   : > { %v3257_v41 = vld [vmem:[#allocation2] sm:$0xff] }
 0x23f   : > { %v9385_v38 = vpop.f32.mrf.mxu0  ;;  %v3579_v52 = vadd.f32 %v3489_v29, %v3257_v41  ;;  %3181 = vst.msk [vmem:[#allocation2 + $0x8] sm:$0xff] %vm756_vm6, %v3145_v40  ;;  %v9397_v7 = vpop.f32.mrf.mxu3 }
 0x240   : > { %v1852_v13 = vld [vmem:[#allocation2 + $0x118] sm:$0xff] }
 0x241   : > { %v2174_v37 = vadd.f32 %v9267_v27, %v1852_v13  ;;  %3615 = vst.msk [vmem:[#allocation2] sm:$0xff] %vm756_vm6, %v3579_v52  ;;  %v2971_v27 = vsel %vm2950_vm8, %v2968_v51, %v2970_v44  ;;  %v3939_v52 = vshrl.u32 %v7696_v6, 16  ;;  %v3942_v13 = vshll.u32 %v7696_v6, 16 }
 0x242   : > { %v2286_v25 = vld [vmem:[#allocation2 + $0x110] sm:$0xff]  ;;  %v3491_v55 = vpop.f32.mrf.mxu2 }
 0x243   : > { %2210 = vst.msk [vmem:[#allocation2 + $0x118] sm:$0xff] %vm756_vm6, %v2174_v37  ;;  %v2742_v24 = vadd.f32 %v9307_v59, %v2286_v25  ;;  %v3941_v50 = vrot.slane %v3939_v52, 2  ;;  %v3944_v37 = vrot.slane %v3942_v13, 3  ;;  %v9547_v52 = vld [vmem:[%s8090_s21 + $0x78] sm:$0xff] }
 0x244   : > { %v3059_v45 = vpop.f32.mrf.mxu1 }
 0x245   : > { %2778 = vst.msk [vmem:[#allocation2 + $0x110] sm:$0xff] %vm756_vm6, %v2742_v24  ;;  %v3146_v43 = vadd.f32 %v3059_v45, %v2823_v32  ;;  %v3945_v24 = vor.u32 %v3944_v37, %v3941_v50  ;;  %v2826_v45 = vld [vmem:[#allocation2 + $0x28] sm:$0xff] }
 0x246   : > { %v3258_v4 = vld [vmem:[#allocation2 + $0x8] sm:$0xff] }
 0x247   : > { %v9413_v59 = vpop.f32.mrf.mxu0  ;;  %v3580_v51 = vadd.f32 %v3491_v55, %v3258_v4  ;;  %3182 = vst.msk [vmem:[#allocation2 + $0x10] sm:$0xff] %vm756_vm6, %v3146_v43  ;;  %7231 = vmatmul.msk.bf16.gmra.mxu1 %vm562_vm2, %v2971_v27  ;;  %7323 = vmatmul.msk.bf16.gmra.mxu2 %vm562_vm2, %v3406_v3  ;;  %v9426_v48 = vpop.f32.mrf.mxu3  ;;  %v9484_v3 = vld [vmem:[%s8090_s21 + $0x68] sm:$0xff] }
 0x248   : > { %v3692_v34 = vld [vmem:[#allocation2] sm:$0xff] }
 0x249   : > { %v4148_v10 = vadd.f32 %v9291_v33, %v3692_v34  ;;  %3616 = vst.msk [vmem:[#allocation2 + $0x8] sm:$0xff] %vm756_vm6, %v3580_v51  ;;  %v3937_v33 = vsel %vm3821_vm7, %v3927_v5, %v3936_v22  ;;  %v2974_v51 = vrot.slane %v9484_v3, 2  ;;  %v3409_v34 = vrot.slane %v9487_v9, 2 }
 0x24a   : > { %7507 = vmatmul.msk.bf16.gmra.mxu0 %vm562_vm2, %v4411_v11  ;;  %v2287_v57 = vld [vmem:[#allocation2 + $0x118] sm:$0xff]  ;;  %v3494_v19 = vpop.f32.mrf.mxu2 }
 0x24b   : > { %4184 = vst.msk [vmem:[#allocation2] sm:$0xff] %vm756_vm6, %v4148_v10  ;;  %v2743_v42 = vadd.f32 %v9332_v61, %v2287_v57  ;;  %v4414_v57 = vrot.slane %v9494_v0, 3 }
 0x24c   : > { %v3061_v28 = vpop.f32.mrf.mxu1  ;;  %7417 = vmatmul.msk.bf16.gmra.mxu3 %vm562_vm2, %v3937_v33 }
 0x24d   : > { %2779 = vst.msk [vmem:[#allocation2 + $0x118] sm:$0xff] %vm756_vm6, %v2743_v42  ;;  %v3147_v56 = vadd.f32 %v3061_v28, %v2824_v54  ;;  %v2827_v42 = vld [vmem:[#allocation2 + $0x30] sm:$0xff]  ;;  %v3410_v28 = vsel %vm2950_vm8, %v3407_v39, %v3409_v34  ;;  %v4415_v20 = vsel %vm4390_vm9, %v4412_v47, %v4414_v57 }
 0x24e   : > { %v3259_v53 = vld [vmem:[#allocation2 + $0x10] sm:$0xff] }
 0x24f   : > { %v9438_v30 = vpop.f32.mrf.mxu0  ;;  %v3581_v15 = vadd.f32 %v3494_v19, %v3259_v53  ;;  %3183 = vst.msk [vmem:[#allocation2 + $0x18] sm:$0xff] %vm756_vm6, %v3147_v56  ;;  %v9450_v29 = vpop.f32.mrf.mxu3  ;;  %v7697_v56 = vld [vmem:[%s8090_s21 + $0x80] sm:$0xff] }
 0x250   : > { %v3693_v61 = vld [vmem:[#allocation2 + $0x8] sm:$0xff]  ;;  %v3948_v8 = vshrl.u32 %v7697_v56, 16 }
 0x251   : > { %v4149_v21 = vadd.f32 %v9320_v49, %v3693_v61  ;;  %3617 = vst.msk [vmem:[#allocation2 + $0x10] sm:$0xff] %vm756_vm6, %v3581_v15  ;;  %v2973_v49 = vsel %vm2950_vm8, %v2970_v44, %v2972_v23  ;;  %v3951_v61 = vshll.u32 %v7697_v56, 16 }
 0x252   : > { %v4261_v16 = vld [vmem:[#allocation2] sm:$0xff]  ;;  %v3496_v1 = vpop.f32.mrf.mxu2  ;;  %v3950_v12 = vrot.slane %v3948_v8, 2 }
 0x253   : > { %4185 = vst.msk [vmem:[#allocation2 + $0x8] sm:$0xff] %vm756_vm6, %v4149_v21  ;;  %v4584_v5 = vadd.f32 %v9360_v60, %v4261_v16  ;;  %v3953_v21 = vrot.slane %v3951_v61, 3 }
 0x254   : > { %v3064_v17 = vpop.f32.mrf.mxu1 }
 0x255   : > { %4620 = vst.msk [vmem:[#allocation2] sm:$0xff] %vm756_vm6, %v4584_v5  ;;  %v3148_v40 = vadd.f32 %v3064_v17, %v2825_v35  ;;  %v3954_v35 = vor.u32 %v3953_v21, %v3950_v12  ;;  %v2828_v17 = vld [vmem:[#allocation2 + $0x38] sm:$0xff] }
 0x256   : > { %v3260_v41 = vld [vmem:[#allocation2 + $0x18] sm:$0xff] }
 0x257   : > { %v9466_v60 = vpop.f32.mrf.mxu0  ;;  %v3582_v44 = vadd.f32 %v3496_v1, %v3260_v41  ;;  %3184 = vst.msk [vmem:[#allocation2 + $0x20] sm:$0xff] %vm756_vm6, %v3148_v40  ;;  %7232 = vmatmul.msk.bf16.gmra.mxu1 %vm562_vm2, %v2973_v49  ;;  %7324 = vmatmul.msk.bf16.gmra.mxu2 %vm562_vm2, %v3408_v18  ;;  %v9479_v26 = vpop.f32.mrf.mxu3  ;;  %v9537_v18 = vld [vmem:[%s8090_s21 + $0x70] sm:$0xff]  ;;  %v3955_v40 = vsel %vm3821_vm7, %v3945_v24, %v3954_v35 }
 0x258   : > { %v3694_v58 = vld [vmem:[#allocation2 + $0x10] sm:$0xff] }
 0x259   : > { %v4150_v25 = vadd.f32 %v9344_v2, %v3694_v58  ;;  %3618 = vst.msk [vmem:[#allocation2 + $0x18] sm:$0xff] %vm756_vm6, %v3582_v44  ;;  %v3946_v2 = vsel %vm3821_vm7, %v3936_v22, %v3945_v24  ;;  %v2976_v44 = vrot.slane %v9537_v18, 2 }
 0x25a   : > { %7508 = vmatmul.msk.bf16.gmra.mxu0 %vm562_vm2, %v4413_v46  ;;  %v4262_v14 = vld [vmem:[#allocation2 + $0x8] sm:$0xff]  ;;  %v3499_v55 = vpop.f32.mrf.mxu2 }
 0x25b   : > { %4186 = vst.msk [vmem:[#allocation2 + $0x10] sm:$0xff] %vm756_vm6, %v4150_v25  ;;  %v4585_v32 = vadd.f32 %v9385_v38, %v4262_v14  ;;  %v4416_v14 = vrot.slane %v9547_v52, 3 }
 0x25c   : > { %v3066_v27 = vpop.f32.mrf.mxu1  ;;  %7418 = vmatmul.msk.bf16.gmra.mxu3 %vm562_vm2, %v3946_v2 }
 0x25d   : > { %4621 = vst.msk [vmem:[#allocation2 + $0x8] sm:$0xff] %vm756_vm6, %v4585_v32  ;;  %v3149_v43 = vadd.f32 %v3066_v27, %v2826_v45  ;;  %v2829_v32 = vld [vmem:[#allocation2 + $0x40] sm:$0xff]  ;;  %v4417_v3 = vsel %vm4390_vm9, %v4414_v57, %v4416_v14 }
 0x25e   : > { %v3261_v4 = vld [vmem:[#allocation2 + $0x20] sm:$0xff] }
 0x25f   : > { %v9491_v11 = vpop.f32.mrf.mxu0  ;;  %v3583_v36 = vadd.f32 %v3499_v55, %v3261_v4  ;;  %3185 = vst.msk [vmem:[#allocation2 + $0x28] sm:$0xff] %vm756_vm6, %v3149_v43  ;;  %v9503_v19 = vpop.f32.mrf.mxu3  ;;  %v7698_v43 = vld [vmem:[%s8090_s21 + $0x88] sm:$0xff] }
 0x260   : > { %v3695_v38 = vld [vmem:[#allocation2 + $0x18] sm:$0xff] }
 0x261   : > { %v4151_v62 = vadd.f32 %v9373_v31, %v3695_v38  ;;  %3619 = vst.msk [vmem:[#allocation2 + $0x20] sm:$0xff] %vm756_vm6, %v3583_v36  ;;  %v2975_v31 = vsel %vm2950_vm8, %v2972_v23, %v2974_v51  ;;  %v3957_v38 = vshrl.u32 %v7698_v43, 16 }
 0x262   : > { %v4263_v63 = vld [vmem:[#allocation2 + $0x10] sm:$0xff]  ;;  %v3501_v10 = vpop.f32.mrf.mxu2 }
 0x263   : > { %4187 = vst.msk [vmem:[#allocation2 + $0x18] sm:$0xff] %vm756_vm6, %v4151_v62  ;;  %v4586_v22 = vadd.f32 %v9413_v59, %v4263_v63 }
 0x264   : > { %v3069_v54 = vpop.f32.mrf.mxu1 }
 0x265   : > { %4622 = vst.msk [vmem:[#allocation2 + $0x10] sm:$0xff] %vm756_vm6, %v4586_v22  ;;  %v3150_v33 = vadd.f32 %v3069_v54, %v2827_v42  ;;  %v2830_v42 = vld [vmem:[#allocation2 + $0x48] sm:$0xff] }
 0x266   : > { %v3262_v53 = vld [vmem:[#allocation2 + $0x28] sm:$0xff] }
 0x267   : > { %v9519_v59 = vpop.f32.mrf.mxu0  ;;  %v3584_v15 = vadd.f32 %v3501_v10, %v3262_v53  ;;  %3186 = vst.msk [vmem:[#allocation2 + $0x30] sm:$0xff] %vm756_vm6, %v3150_v33  ;;  %7233 = vmatmul.msk.bf16.gmra.mxu1 %vm562_vm2, %v2975_v31  ;;  %7325 = vmatmul.msk.bf16.gmra.mxu2 %vm562_vm2, %v3410_v28  ;;  %v9532_v47 = vpop.f32.mrf.mxu3  ;;  %v3959_v10 = vrot.slane %v3957_v38, 2  ;;  %v9590_v31 = vld [vmem:[%s8090_s21 + $0x78] sm:$0xff] }
 0x268   : > { %v3696_v23 = vld [vmem:[#allocation2 + $0x20] sm:$0xff]  ;;  %v2978_v61 = vrot.slane %v9590_v31, 2 }
 0x269   : > { %v4152_v39 = vadd.f32 %v9397_v7, %v3696_v23  ;;  %3620 = vst.msk [vmem:[#allocation2 + $0x28] sm:$0xff] %vm756_vm6, %v3584_v15  ;;  %v9540_v7 = vld [vmem:[%s8090_s21 + $0x78] sm:$0xff]  ;;  %v9600_v15 = vld [vmem:[%s8090_s21 + $0x80] sm:$0xff] }
 0x26a   : > { %7509 = vmatmul.msk.bf16.gmra.mxu0 %vm562_vm2, %v4415_v20  ;;  %v4264_v16 = vld [vmem:[#allocation2 + $0x18] sm:$0xff]  ;;  %v3504_v1 = vpop.f32.mrf.mxu2  ;;  %v3411_v58 = vrot.slane %v9540_v7, 2 }
 0x26b   : > { %4188 = vst.msk [vmem:[#allocation2 + $0x20] sm:$0xff] %vm756_vm6, %v4152_v39  ;;  %v4587_v5 = vadd.f32 %v9438_v30, %v4264_v16  ;;  %v4418_v16 = vrot.slane %v9600_v15, 3 }
 0x26c   : > { %v3071_v49 = vpop.f32.mrf.mxu1  ;;  %7419 = vmatmul.msk.bf16.gmra.mxu3 %vm562_vm2, %v3955_v40  ;;  %v3412_v27 = vsel %vm2950_vm8, %v3409_v34, %v3411_v58  ;;  %v7699_v40 = vld [vmem:[%s8090_s21 + $0x90] sm:$0xff] }
 0x26d   : > { %4623 = vst.msk [vmem:[#allocation2 + $0x18] sm:$0xff] %vm756_vm6, %v4587_v5  ;;  %v3151_v6 = vadd.f32 %v3071_v49, %v2828_v17  ;;  %v4419_v18 = vsel %vm4390_vm9, %v4416_v14, %v4418_v16 }
 0x26e   : > { %v3263_v41 = vld [vmem:[#allocation2 + $0x30] sm:$0xff] }
 0x26f   : > { %v9544_v46 = vpop.f32.mrf.mxu0  ;;  %v3585_v13 = vadd.f32 %v3504_v1, %v3263_v41  ;;  %3187 = vst.msk [vmem:[#allocation2 + $0x38] sm:$0xff] %vm756_vm6, %v3151_v6  ;;  %v9556_v55 = vpop.f32.mrf.mxu3 }
 0x270   : > { %v3697_v30 = vld [vmem:[#allocation2 + $0x28] sm:$0xff] }
 0x271   : > { %v4153_v50 = vadd.f32 %v9426_v48, %v3697_v30  ;;  %3621 = vst.msk [vmem:[#allocation2 + $0x30] sm:$0xff] %vm756_vm6, %v3585_v13  ;;  %v2977_v48 = vsel %vm2950_vm8, %v2974_v51, %v2976_v44  ;;  %v3960_v51 = vshll.u32 %v7698_v43, 16  ;;  %v3966_v30 = vshrl.u32 %v7699_v40, 16 }
 0x272   : > { %v4265_v37 = vld [vmem:[#allocation2 + $0x20] sm:$0xff]  ;;  %v3506_v25 = vpop.f32.mrf.mxu2 }
 0x273   : > { %4189 = vst.msk [vmem:[#allocation2 + $0x28] sm:$0xff] %vm756_vm6, %v4153_v50  ;;  %v4588_v24 = vadd.f32 %v9466_v60, %v4265_v37  ;;  %v3962_v57 = vrot.slane %v3960_v51, 3 }
 0x274   : > { %v3074_v45 = vpop.f32.mrf.mxu1 }
 0x275   : > { %4624 = vst.msk [vmem:[#allocation2 + $0x20] sm:$0xff] %vm756_vm6, %v4588_v24  ;;  %v3152_v2 = vadd.f32 %v3074_v45, %v2829_v32  ;;  %v3963_v28 = vor.u32 %v3962_v57, %v3959_v10  ;;  %v2832_v32 = vld [vmem:[#allocation2 + $0x58] sm:$0xff] }
 0x276   : > { %v3264_v4 = vld [vmem:[#allocation2 + $0x38] sm:$0xff] }
 0x277   : > { %v9572_v60 = vpop.f32.mrf.mxu0  ;;  %v3586_v36 = vadd.f32 %v3506_v25, %v3264_v4  ;;  %3188 = vst.msk [vmem:[#allocation2 + $0x40] sm:$0xff] %vm756_vm6, %v3152_v2  ;;  %7234 = vmatmul.msk.bf16.gmra.mxu1 %vm562_vm2, %v2977_v48  ;;  %7326 = vmatmul.msk.bf16.gmra.mxu2 %vm562_vm2, %v3412_v27  ;;  %v9585_v63 = vpop.f32.mrf.mxu3  ;;  %v3964_v20 = vsel %vm3821_vm7, %v3954_v35, %v3963_v28  ;;  %v2831_v35 = vld [vmem:[#allocation2 + $0x50] sm:$0xff]  ;;  %v3968_v25 = vrot.slane %v3966_v30, 2  ;;  %v9643_v48 = vld [vmem:[%s8090_s21 + $0x80] sm:$0xff] }
 0x278   : > { %v3698_v9 = vld [vmem:[#allocation2 + $0x30] sm:$0xff]  ;;  %v2980_v38 = vrot.slane %v9643_v48, 2 }
 0x279   : > { %v4154_v34 = vadd.f32 %v9450_v29, %v3698_v9  ;;  %3622 = vst.msk [vmem:[#allocation2 + $0x38] sm:$0xff] %vm756_vm6, %v3586_v36  ;;  %v9593_v29 = vld [vmem:[%s8090_s21 + $0x80] sm:$0xff]  ;;  %v9653_v36 = vld [vmem:[%s8090_s21 + $0x88] sm:$0xff] }
 0x27a   : > { %7510 = vmatmul.msk.bf16.gmra.mxu0 %vm562_vm2, %v4417_v3  ;;  %v4266_v0 = vld [vmem:[#allocation2 + $0x28] sm:$0xff]  ;;  %v3509_v62 = vpop.f32.mrf.mxu2  ;;  %v3413_v23 = vrot.slane %v9593_v29, 2  ;;  %v4420_v10 = vrot.slane %v9653_v36, 3 }
 0x27b   : > { %4190 = vst.msk [vmem:[#allocation2 + $0x30] sm:$0xff] %vm756_vm6, %v4154_v34  ;;  %v4589_v22 = vadd.f32 %v9491_v11, %v4266_v0 }
 0x27c   : > { %v3076_v54 = vpop.f32.mrf.mxu1  ;;  %7420 = vmatmul.msk.bf16.gmra.mxu3 %vm562_vm2, %v3964_v20  ;;  %v3414_v49 = vsel %vm2950_vm8, %v3411_v58, %v3413_v23  ;;  %v4421_v31 = vsel %vm4390_vm9, %v4418_v16, %v4420_v10 }
 0x27d   : > { %4625 = vst.msk [vmem:[#allocation2 + $0x28] sm:$0xff] %vm756_vm6, %v4589_v22  ;;  %v3153_v33 = vadd.f32 %v3076_v54, %v2830_v42  ;;  %v2833_v42 = vld [vmem:[#allocation2 + $0x60] sm:$0xff] }
 0x27e   : > { %v3265_v56 = vld [vmem:[#allocation2 + $0x40] sm:$0xff] }
 0x27f   : > { %v9596_v53 = vpop.f32.mrf.mxu0  ;;  %v3587_v8 = vadd.f32 %v3509_v62, %v3265_v56  ;;  %3189 = vst.msk [vmem:[#allocation2 + $0x48] sm:$0xff] %vm756_vm6, %v3153_v33  ;;  %v9609_v1 = vpop.f32.mrf.mxu3  ;;  %v7700_v56 = vld [vmem:[%s8090_s21 + $0x98] sm:$0xff] }
 0x280   : > { %v3699_v11 = vld [vmem:[#allocation2 + $0x38] sm:$0xff] }
 0x281   : > { %v4155_v39 = vadd.f32 %v9479_v26, %v3699_v11  ;;  %3623 = vst.msk [vmem:[#allocation2 + $0x40] sm:$0xff] %vm756_vm6, %v3587_v8  ;;  %v2979_v26 = vsel %vm2950_vm8, %v2976_v44, %v2978_v61  ;;  %v3969_v44 = vshll.u32 %v7699_v40, 16  ;;  %v3975_v11 = vshrl.u32 %v7700_v56, 16 }
 0x282   : > { %v4267_v12 = vld [vmem:[#allocation2 + $0x30] sm:$0xff]  ;;  %v3511_v21 = vpop.f32.mrf.mxu2 }
 0x283   : > { %4191 = vst.msk [vmem:[#allocation2 + $0x38] sm:$0xff] %vm756_vm6, %v4155_v39  ;;  %v4590_v5 = vadd.f32 %v9519_v59, %v4267_v12  ;;  %v3971_v14 = vrot.slane %v3969_v44, 3 }
 0x284   : > { %v3079_v17 = vpop.f32.mrf.mxu1 }
 0x285   : > { %4626 = vst.msk [vmem:[#allocation2 + $0x30] sm:$0xff] %vm756_vm6, %v4590_v5  ;;  %v3154_v6 = vadd.f32 %v3079_v17, %v2831_v35  ;;  %v3972_v27 = vor.u32 %v3971_v14, %v3968_v25  ;;  %v2834_v35 = vld [vmem:[#allocation2 + $0x68] sm:$0xff] }
 0x286   : > { %v3266_v41 = vld [vmem:[#allocation2 + $0x48] sm:$0xff] }
 0x287   : > { %v9625_v59 = vpop.f32.mrf.mxu0  ;;  %v3588_v13 = vadd.f32 %v3511_v21, %v3266_v41  ;;  %3190 = vst.msk [vmem:[#allocation2 + $0x50] sm:$0xff] %vm756_vm6, %v3154_v6  ;;  %7235 = vmatmul.msk.bf16.gmra.mxu1 %vm562_vm2, %v2979_v26  ;;  %7327 = vmatmul.msk.bf16.gmra.mxu2 %vm562_vm2, %v3414_v49  ;;  %v9638_v37 = vpop.f32.mrf.mxu3  ;;  %v3973_v3 = vsel %vm3821_vm7, %v3963_v28, %v3972_v27  ;;  %v3977_v21 = vrot.slane %v3975_v11, 2  ;;  %v9696_v26 = vld [vmem:[%s8090_s21 + $0x88] sm:$0xff]  ;;  %v9759_v11 = vld [vmem:[%s8090_s21 + $0x98] sm:$0xff] }
 0x288   : > { %v3700_v7 = vld [vmem:[#allocation2 + $0x40] sm:$0xff]  ;;  %v2982_v30 = vrot.slane %v9696_v26, 2 }
 0x289   : > { %v4156_v58 = vadd.f32 %v9503_v19, %v3700_v7  ;;  %3624 = vst.msk [vmem:[#allocation2 + $0x48] sm:$0xff] %vm756_vm6, %v3588_v13  ;;  %v9646_v19 = vld [vmem:[%s8090_s21 + $0x88] sm:$0xff]  ;;  %v9706_v13 = vld [vmem:[%s8090_s21 + $0x90] sm:$0xff] }
 0x28a   : > { %7511 = vmatmul.msk.bf16.gmra.mxu0 %vm562_vm2, %v4419_v18  ;;  %v4268_v52 = vld [vmem:[#allocation2 + $0x38] sm:$0xff]  ;;  %v3514_v50 = vpop.f32.mrf.mxu2  ;;  %v3415_v51 = vrot.slane %v9646_v19, 2  ;;  %v4422_v25 = vrot.slane %v9706_v13, 3 }
 0x28b   : > { %4192 = vst.msk [vmem:[#allocation2 + $0x40] sm:$0xff] %vm756_vm6, %v4156_v58  ;;  %v4591_v24 = vadd.f32 %v9544_v46, %v4268_v52 }
 0x28c   : > { %v3081_v45 = vpop.f32.mrf.mxu1  ;;  %7421 = vmatmul.msk.bf16.gmra.mxu3 %vm562_vm2, %v3973_v3  ;;  %v3416_v28 = vsel %vm2950_vm8, %v3413_v23, %v3415_v51  ;;  %v4423_v48 = vsel %vm4390_vm9, %v4420_v10, %v4422_v25 }
 0x28d   : > { %4627 = vst.msk [vmem:[#allocation2 + $0x38] sm:$0xff] %vm756_vm6, %v4591_v24  ;;  %v3155_v2 = vadd.f32 %v3081_v45, %v2832_v32  ;;  %v3687_v24 = vld [vmem:[%s8090_s21 + $0xa0] sm:$0x7] }
 0x28e   : > { %v3267_v43 = vld [vmem:[#allocation2 + $0x50] sm:$0xff]  ;;  %v3801_v45 = vunpack.c.l.b16 %v3687_v24 }
 0x28f   : > { %v9649_v4 = vpop.f32.mrf.mxu0  ;;  %v3589_v9 = vadd.f32 %v3514_v50, %v3267_v43  ;;  %3191 = vst.msk [vmem:[#allocation2 + $0x58] sm:$0xff] %vm756_vm6, %v3155_v2  ;;  %v9662_v57 = vpop.f32.mrf.mxu3 }
 0x290   : > { %v3701_v46 = vld [vmem:[#allocation2 + $0x48] sm:$0xff] }
 0x291   : > { %v4157_v34 = vadd.f32 %v9532_v47, %v3701_v46  ;;  %3625 = vst.msk [vmem:[#allocation2 + $0x50] sm:$0xff] %vm756_vm6, %v3589_v9  ;;  %v2981_v47 = vsel %vm2950_vm8, %v2978_v61, %v2980_v38  ;;  %v3978_v61 = vshll.u32 %v7700_v56, 16  ;;  %v3820_v9 = vpack.c.b16 %v3801_v45, %v3801_v45 }
 0x292   : > { %v4269_v0 = vld [vmem:[#allocation2 + $0x40] sm:$0xff]  ;;  %v3516_v62 = vpop.f32.mrf.mxu2 }
 0x293   : > { %4193 = vst.msk [vmem:[#allocation2 + $0x48] sm:$0xff] %vm756_vm6, %v4157_v34  ;;  %v4592_v22 = vadd.f32 %v9572_v60, %v4269_v0  ;;  %v3980_v16 = vrot.slane %v3978_v61, 3  ;;  %v3987_v34 = vshll.u32 %v3820_v9, 16 }
 0x294   : > { %v3084_v54 = vpop.f32.mrf.mxu1 }
 0x295   : > { %4628 = vst.msk [vmem:[#allocation2 + $0x40] sm:$0xff] %vm756_vm6, %v4592_v22  ;;  %v3156_v33 = vadd.f32 %v3084_v54, %v2833_v42  ;;  %v3981_v49 = vor.u32 %v3980_v16, %v3977_v21  ;;  %v3989_v22 = vrot.slane %v3987_v34, 3 }
 0x296   : > { %v3268_v20 = vld [vmem:[#allocation2 + $0x58] sm:$0xff] }
 0x297   : > { %v9678_v60 = vpop.f32.mrf.mxu0  ;;  %v3590_v8 = vadd.f32 %v3516_v62, %v3268_v20  ;;  %3192 = vst.msk [vmem:[#allocation2 + $0x60] sm:$0xff] %vm756_vm6, %v3156_v33  ;;  %7236 = vmatmul.msk.bf16.gmra.mxu1 %vm562_vm2, %v2981_v47  ;;  %7328 = vmatmul.msk.bf16.gmra.mxu2 %vm562_vm2, %v3416_v28  ;;  %v9691_v12 = vpop.f32.mrf.mxu3  ;;  %v3982_v18 = vsel %vm3821_vm7, %v3972_v27, %v3981_v49  ;;  %v2835_v27 = vld [vmem:[#allocation2 + $0x70] sm:$0xff]  ;;  %v2836_v47 = vld [vmem:[#allocation2 + $0x78] sm:$0xff]  ;;  %v9749_v33 = vld [vmem:[%s8090_s21 + $0x90] sm:$0xff] }
 0x298   : > { %v3702_v29 = vld [vmem:[#allocation2 + $0x50] sm:$0xff] }
 0x299   : > { %v4158_v23 = vadd.f32 %v9556_v55, %v3702_v29  ;;  %3626 = vst.msk [vmem:[#allocation2 + $0x58] sm:$0xff] %vm756_vm6, %v3590_v8  ;;  %v9699_v55 = vld [vmem:[%s8090_s21 + $0x90] sm:$0xff] }
 0x29a   : > { %7512 = vmatmul.msk.bf16.gmra.mxu0 %vm562_vm2, %v4421_v31  ;;  %v4270_v15 = vld [vmem:[#allocation2 + $0x48] sm:$0xff]  ;;  %v3519_v39 = vpop.f32.mrf.mxu2  ;;  %v3417_v44 = vrot.slane %v9699_v55, 2  ;;  %v4256_v55 = vld [vmem:[%s8090_s21 + $0xa0] sm:$0x7] }
 0x29b   : > { %4194 = vst.msk [vmem:[#allocation2 + $0x50] sm:$0xff] %vm756_vm6, %v4158_v23  ;;  %v4593_v5 = vadd.f32 %v9596_v53, %v4270_v15  ;;  %v2984_v23 = vrot.slane %v9749_v33, 2 }
 0x29c   : > { %v3086_v17 = vpop.f32.mrf.mxu1  ;;  %7422 = vmatmul.msk.bf16.gmra.mxu3 %vm562_vm2, %v3982_v18  ;;  %v3418_v43 = vsel %vm2950_vm8, %v3415_v51, %v3417_v44  ;;  %v3984_v51 = vshrl.u32 %v3820_v9, 16  ;;  %v2816_v18 = vld [vmem:[%s8090_s21 + $0x98] sm:$0x3] }
 0x29d   : > { %4629 = vst.msk [vmem:[#allocation2 + $0x48] sm:$0xff] %vm756_vm6, %v4593_v5  ;;  %v3157_v6 = vadd.f32 %v3086_v17, %v2834_v35  ;;  %v4424_v5 = vrot.slane %v9759_v11, 3  ;;  %v2837_v17 = vld [vmem:[#allocation2 + $0x80] sm:$0xff] }
 0x29e   : > { %v3269_v40 = vld [vmem:[#allocation2 + $0x60] sm:$0xff]  ;;  %v3986_v10 = vrot.slane %v3984_v51, 2 }
 0x29f   : > { %v9702_v41 = vpop.f32.mrf.mxu0  ;;  %v3591_v7 = vadd.f32 %v3519_v39, %v3269_v40  ;;  %3193 = vst.msk [vmem:[#allocation2 + $0x68] sm:$0xff] %vm756_vm6, %v3157_v6  ;;  %v9715_v14 = vpop.f32.mrf.mxu3  ;;  %v2985_v6 = vsel %vm2950_vm8, %v2982_v30, %v2984_v23  ;;  %v4425_v26 = vsel %vm4390_vm9, %v4422_v25, %v4424_v5  ;;  %v4370_v25 = vunpack.c.l.b16 %v4256_v55 }
 0x2a0   : > { %v3703_v53 = vld [vmem:[#allocation2 + $0x58] sm:$0xff]  ;;  %v3990_v56 = vor.u32 %v3989_v22, %v3986_v10  ;;  %v2839_v22 = vld [vmem:[#allocation2 + $0x90] sm:$0xff] }
 0x2a1   : > { %v4159_v58 = vadd.f32 %v9585_v63, %v3703_v53  ;;  %3627 = vst.msk [vmem:[#allocation2 + $0x60] sm:$0xff] %vm756_vm6, %v3591_v7  ;;  %v2983_v63 = vsel %vm2950_vm8, %v2980_v38, %v2982_v30  ;;  %v3252_v7 = vld [vmem:[%s8090_s21 + $0xa0] sm:$0x3] }
 0x2a2   : > { %v4271_v52 = vld [vmem:[#allocation2 + $0x50] sm:$0xff]  ;;  %v3521_v50 = vpop.f32.mrf.mxu2  ;;  %v3991_v29 = vsel %vm3821_vm7, %v3981_v49, %v3990_v56 }
 0x2a3   : > { %4195 = vst.msk [vmem:[#allocation2 + $0x58] sm:$0xff] %vm756_vm6, %v4159_v58  ;;  %v4594_v32 = vadd.f32 %v9625_v59, %v4271_v52 }
 0x2a4   : > { %v3089_v2 = vpop.f32.mrf.mxu1 }
 0x2a5   : > { %4630 = vst.msk [vmem:[#allocation2 + $0x50] sm:$0xff] %vm756_vm6, %v4594_v32  ;;  %v3158_v3 = vadd.f32 %v3089_v2, %v2835_v27  ;;  %v2838_v27 = vld [vmem:[#allocation2 + $0x88] sm:$0xff] }
 0x2a6   : > { %v3270_v59 = vld [vmem:[#allocation2 + $0x68] sm:$0xff] }
 0x2a7   : > { %v9731_v46 = vpop.f32.mrf.mxu0  ;;  %v3592_v38 = vadd.f32 %v3521_v50, %v3270_v59  ;;  %3194 = vst.msk [vmem:[#allocation2 + $0x70] sm:$0xff] %vm756_vm6, %v3158_v3  ;;  %7237 = vmatmul.msk.bf16.gmra.mxu1 %vm562_vm2, %v2983_v63  ;;  %7329 = vmatmul.msk.bf16.gmra.mxu2 %vm562_vm2, %v3418_v43  ;;  %v9746_v54 = vpop.f32.mrf.mxu3  ;;  %v3366_v50 = vunpack.c.l.b16 %v3252_v7  ;;  %v4389_v59 = vpack.c.b16 %v4370_v25, %v4370_v25 }
 0x2a8   : > { %v3704_v19 = vld [vmem:[#allocation2 + $0x60] sm:$0xff] }
 0x2a9   : > { %v4160_v0 = vadd.f32 %v9609_v1, %v3704_v19  ;;  %3628 = vst.msk [vmem:[#allocation2 + $0x68] sm:$0xff] %vm756_vm6, %v3592_v38  ;;  %v9752_v1 = vld [vmem:[%s8090_s21 + $0x98] sm:$0xff]  ;;  %v3385_v43 = vpack.c.b16 %v3366_v50, %v3366_v50 }
 0x2aa   : > { %7513 = vmatmul.msk.bf16.gmra.mxu0 %vm562_vm2, %v4423_v48  ;;  %v4272_v36 = vld [vmem:[#allocation2 + $0x58] sm:$0xff]  ;;  %v3524_v62 = vpop.f32.mrf.mxu2  ;;  %v3419_v15 = vrot.slane %v9752_v1, 2 }
 0x2ab   : > { %4196 = vst.msk [vmem:[#allocation2 + $0x60] sm:$0xff] %vm756_vm6, %v4160_v0  ;;  %v4595_v42 = vadd.f32 %v9649_v4, %v4272_v36  ;;  %v3421_v34 = vrot.slane %v3385_v43, 2 }
 0x2ac   : > { %v3091_v28 = vpop.f32.mrf.mxu1  ;;  %7423 = vmatmul.msk.bf16.gmra.mxu3 %vm562_vm2, %v3991_v29 }
 0x2ad   : > { %4631 = vst.msk [vmem:[#allocation2 + $0x58] sm:$0xff] %vm756_vm6, %v4595_v42  ;;  %v3159_v20 = vadd.f32 %v3091_v28, %v2836_v47  ;;  %v3422_v28 = vsel %vm2950_vm8, %v3419_v15, %v3421_v34 }
 0x2ae   : > { %v3271_v31 = vld [vmem:[#allocation2 + $0x70] sm:$0xff] }
 0x2af   : > { %v9755_v8 = vpop.f32.mrf.mxu0  ;;  %v3593_v4 = vadd.f32 %v3524_v62, %v3271_v31  ;;  %3195 = vst.msk [vmem:[#allocation2 + $0x78] sm:$0xff] %vm756_vm6, %v3159_v20  ;;  %v9779_v53 = vpop.f32.mrf.mxu3  ;;  %v4426_v62 = vrot.slane %v4389_v59, 3 }
 0x2b0   : > { %v3705_v61 = vld [vmem:[#allocation2 + $0x68] sm:$0xff] }
 0x2b1   : > { %v4161_v39 = vadd.f32 %v9638_v37, %v3705_v61  ;;  %3629 = vst.msk [vmem:[#allocation2 + $0x70] sm:$0xff] %vm756_vm6, %v3593_v4  ;;  %v3420_v37 = vsel %vm2950_vm8, %v3417_v44, %v3419_v15  ;;  %v2930_v44 = vunpack.c.l.b16 %v2816_v18  ;;  %v4427_v56 = vsel %vm4390_vm9, %v4424_v5, %v4426_v62  ;;  %v2844_v62 = vld [vmem:[#allocation2 + $0xb8] sm:$0xff] }
 0x2b2   : > { %v4273_v21 = vld [vmem:[#allocation2 + $0x60] sm:$0xff]  ;;  %v3526_v16 = vpop.f32.mrf.mxu2 }
 0x2b3   : > { %4197 = vst.msk [vmem:[#allocation2 + $0x68] sm:$0xff] %vm756_vm6, %v4161_v39  ;;  %v4596_v35 = vadd.f32 %v9678_v60, %v4273_v21  ;;  %v2949_v63 = vpack.c.b16 %v2930_v44, %v2930_v44  ;;  %v2842_v44 = vld [vmem:[#allocation2 + $0xa8] sm:$0xff] }
 0x2b4   : > { %v3094_v49 = vpop.f32.mrf.mxu1 }
 0x2b5   : > { %4632 = vst.msk [vmem:[#allocation2 + $0x60] sm:$0xff] %vm756_vm6, %v4596_v35  ;;  %v3160_v40 = vadd.f32 %v3094_v49, %v2837_v17  ;;  %v2986_v51 = vrot.slane %v2949_v63, 2 }
 0x2b6   : > { %v3272_v58 = vld [vmem:[#allocation2 + $0x78] sm:$0xff] }
 0x2b7   : > { %v9781_v60 = vpop.f32.mrf.mxu0  ;;  %v3594_v52 = vadd.f32 %v3526_v16, %v3272_v58  ;;  %3196 = vst.msk [vmem:[#allocation2 + $0x80] sm:$0xff] %vm756_vm6, %v3160_v40  ;;  %7238 = vmatmul.msk.bf16.gmra.mxu1 %vm562_vm2, %v2985_v6  ;;  %7330 = vmatmul.msk.bf16.gmra.mxu2 %vm562_vm2, %v3420_v37  ;;  %v9799_v38 = vpop.f32.mrf.mxu3  ;;  %v2987_v47 = vsel %vm2950_vm8, %v2984_v23, %v2986_v51  ;;  %v2840_v23 = vld [vmem:[#allocation2 + $0x98] sm:$0xff]  ;;  %v2841_v37 = vld [vmem:[#allocation2 + $0xa0] sm:$0xff] }
 0x2b8   : > { %v3706_v30 = vld [vmem:[#allocation2 + $0x70] sm:$0xff] }
 0x2b9   : > { %v4162_v24 = vadd.f32 %v9662_v57, %v3706_v30  ;;  %3630 = vst.msk [vmem:[#allocation2 + $0x78] sm:$0xff] %vm756_vm6, %v3594_v52 }
 0x2ba   : > { %7514 = vmatmul.msk.bf16.gmra.mxu0 %vm562_vm2, %v4425_v26  ;;  %v4274_v13 = vld [vmem:[#allocation2 + $0x68] sm:$0xff]  ;;  %v3529_v32 = vpop.f32.mrf.mxu2 }
 0x2bb   : > { %4198 = vst.msk [vmem:[#allocation2 + $0x70] sm:$0xff] %vm756_vm6, %v4162_v24  ;;  %v4597_v45 = vadd.f32 %v9702_v41, %v4274_v13 }
 0x2bc   : > { %v3096_v2 = vpop.f32.mrf.mxu1 }
 0x2bd   : > { %4633 = vst.msk [vmem:[#allocation2 + $0x68] sm:$0xff] %vm756_vm6, %v4597_v45  ;;  %v3161_v3 = vadd.f32 %v3096_v2, %v2838_v27 }
 0x2be   : > { %v3273_v9 = vld [vmem:[#allocation2 + $0x80] sm:$0xff] }
 0x2bf   : > { %v9796_v57 = vpop.f32.mrf.mxu0  ;;  %v3595_v48 = vadd.f32 %v3529_v32, %v3273_v9  ;;  %3197 = vst.msk [vmem:[#allocation2 + $0x88] sm:$0xff] %vm756_vm6, %v3161_v3  ;;  %v4108_v29 = vpop.f32.mrf.mxu3  ;;  %v2843_v3 = vld [vmem:[#allocation2 + $0xb0] sm:$0xff] }
 0x2c0   : > { %v3707_v19 = vld [vmem:[#allocation2 + $0x78] sm:$0xff] }
 0x2c1   : > { %v4163_v41 = vadd.f32 %v9691_v12, %v3707_v19  ;;  %3631 = vst.msk [vmem:[#allocation2 + $0x80] sm:$0xff] %vm756_vm6, %v3595_v48 }
 0x2c2   : > { %v4275_v0 = vld [vmem:[#allocation2 + $0x70] sm:$0xff]  ;;  %v3531_v36 = vpop.f32.mrf.mxu2 }
 0x2c3   : > { %4199 = vst.msk [vmem:[#allocation2 + $0x78] sm:$0xff] %vm756_vm6, %v4163_v41  ;;  %v4598_v10 = vadd.f32 %v9731_v46, %v4275_v0 }
 0x2c4   : > { %v3099_v42 = vpop.f32.mrf.mxu1 }
 0x2c5   : > { %4634 = vst.msk [vmem:[#allocation2 + $0x70] sm:$0xff] %vm756_vm6, %v4598_v10  ;;  %v3162_v33 = vadd.f32 %v3099_v42, %v2839_v22 }
 0x2c6   : > { %v3274_v1 = vld [vmem:[#allocation2 + $0x88] sm:$0xff] }
 0x2c7   : > { %v4539_v12 = vpop.f32.mrf.mxu0  ;;  %v3596_v20 = vadd.f32 %v3531_v36, %v3274_v1  ;;  %3198 = vst.msk [vmem:[#allocation2 + $0x90] sm:$0xff] %vm756_vm6, %v3162_v33  ;;  %7239 = vmatmul.msk.bf16.gmra.mxu1 %vm562_vm2, %v2987_v47  ;;  %7331 = vmatmul.msk.bf16.gmra.mxu2 %vm562_vm2, %v3422_v28  ;;  %v4110_v6 = vpop.f32.mrf.mxu3 }
 0x2c8   : > { %v3708_v46 = vld [vmem:[#allocation2 + $0x80] sm:$0xff] }
 0x2c9   : > { %v4164_v31 = vadd.f32 %v9715_v14, %v3708_v46  ;;  %3632 = vst.msk [vmem:[#allocation2 + $0x88] sm:$0xff] %vm756_vm6, %v3596_v20 }
 0x2ca   : > { %7515 = vmatmul.msk.bf16.gmra.mxu0 %vm562_vm2, %v4427_v56  ;;  %v4276_v11 = vld [vmem:[#allocation2 + $0x78] sm:$0xff]  ;;  %v3534_v4 = vpop.f32.mrf.mxu2 }
 0x2cb   : > { %4200 = vst.msk [vmem:[#allocation2 + $0x80] sm:$0xff] %vm756_vm6, %v4164_v31  ;;  %v4599_v61 = vadd.f32 %v9755_v8, %v4276_v11  ;;  %v2845_v31 = vld [vmem:[#allocation2 + $0xc0] sm:$0xff] }
 0x2cc   : > { %v3101_v15 = vpop.f32.mrf.mxu1 }
 0x2cd   : > { %4635 = vst.msk [vmem:[#allocation2 + $0x78] sm:$0xff] %vm756_vm6, %v4599_v61  ;;  %v3163_v39 = vadd.f32 %v3101_v15, %v2840_v23 }
 0x2ce   : > { %v3275_v21 = vld [vmem:[#allocation2 + $0x90] sm:$0xff] }
 0x2cf   : > { %v4541_v16 = vpop.f32.mrf.mxu0  ;;  %v3597_v5 = vadd.f32 %v3534_v4, %v3275_v21  ;;  %3199 = vst.msk [vmem:[#allocation2 + $0x98] sm:$0xff] %vm756_vm6, %v3163_v39  ;;  %v4113_v13 = vpop.f32.mrf.mxu3 }
 0x2d0   : > { %v3709_v14 = vld [vmem:[#allocation2 + $0x88] sm:$0xff] }
 0x2d1   : > { %v4165_v35 = vadd.f32 %v9746_v54, %v3709_v14  ;;  %3633 = vst.msk [vmem:[#allocation2 + $0x90] sm:$0xff] %vm756_vm6, %v3597_v5 }
 0x2d2   : > { %v4277_v17 = vld [vmem:[#allocation2 + $0x80] sm:$0xff]  ;;  %v3536_v49 = vpop.f32.mrf.mxu2 }
 0x2d3   : > { %4201 = vst.msk [vmem:[#allocation2 + $0x88] sm:$0xff] %vm756_vm6, %v4165_v35  ;;  %v4600_v8 = vadd.f32 %v9781_v60, %v4277_v17  ;;  %v2846_v35 = vld [vmem:[#allocation2 + $0xc8] sm:$0xff] }
 0x2d4   : > { %v3104_v40 = vpop.f32.mrf.mxu1 }
 0x2d5   : > { %4636 = vst.msk [vmem:[#allocation2 + $0x80] sm:$0xff] %vm756_vm6, %v4600_v8  ;;  %v3164_v18 = vadd.f32 %v3104_v40, %v2841_v37 }
 0x2d6   : > { %v3276_v7 = vld [vmem:[#allocation2 + $0x98] sm:$0xff] }
 0x2d7   : > { %v4544_v58 = vpop.f32.mrf.mxu0  ;;  %v3598_v26 = vadd.f32 %v3536_v49, %v3276_v7  ;;  %3200 = vst.msk [vmem:[#allocation2 + $0xa0] sm:$0xff] %vm756_vm6, %v3164_v18  ;;  %v4115_v19 = vpop.f32.mrf.mxu3 }
 0x2d8   : > { %v3710_v54 = vld [vmem:[#allocation2 + $0x90] sm:$0xff] }
 0x2d9   : > { %v4166_v52 = vadd.f32 %v9779_v53, %v3710_v54  ;;  %3634 = vst.msk [vmem:[#allocation2 + $0x98] sm:$0xff] %vm756_vm6, %v3598_v26  ;;  %v2847_v26 = vld [vmem:[#allocation2 + $0xd0] sm:$0xff] }
 0x2da   : > { %v4278_v55 = vld [vmem:[#allocation2 + $0x88] sm:$0xff]  ;;  %v3539_v30 = vpop.f32.mrf.mxu2 }
 0x2db   : > { %4202 = vst.msk [vmem:[#allocation2 + $0x90] sm:$0xff] %vm756_vm6, %v4166_v52  ;;  %v4601_v60 = vadd.f32 %v9796_v57, %v4278_v55 }
 0x2dc   : > { %v3106_v50 = vpop.f32.mrf.mxu1 }
 0x2dd   : > { %4637 = vst.msk [vmem:[#allocation2 + $0x88] sm:$0xff] %vm756_vm6, %v4601_v60  ;;  %v3165_v24 = vadd.f32 %v3106_v50, %v2842_v44 }
 0x2de   : > { %v3277_v32 = vld [vmem:[#allocation2 + $0xa0] sm:$0xff] }
 0x2df   : > { %v4546_v25 = vpop.f32.mrf.mxu0  ;;  %v3599_v45 = vadd.f32 %v3539_v30, %v3277_v32  ;;  %3201 = vst.msk [vmem:[#allocation2 + $0xa8] sm:$0xff] %vm756_vm6, %v3165_v24  ;;  %v4118_v1 = vpop.f32.mrf.mxu3 }
 0x2e0   : > { %v3711_v53 = vld [vmem:[#allocation2 + $0x98] sm:$0xff] }
 0x2e1   : > { %v4167_v27 = vadd.f32 %v9799_v38, %v3711_v53  ;;  %3635 = vst.msk [vmem:[#allocation2 + $0xa0] sm:$0xff] %vm756_vm6, %v3599_v45  ;;  %v2848_v45 = vld [vmem:[#allocation2 + $0xd8] sm:$0xff] }
 0x2e2   : > { %v4279_v2 = vld [vmem:[#allocation2 + $0x90] sm:$0xff]  ;;  %v3541_v63 = vpop.f32.mrf.mxu2 }
 0x2e3   : > { %4203 = vst.msk [vmem:[#allocation2 + $0x98] sm:$0xff] %vm756_vm6, %v4167_v27  ;;  %v4602_v43 = vadd.f32 %v4539_v12, %v4279_v2 }
 0x2e4   : > { %v3109_v9 = vpop.f32.mrf.mxu1 }
 0x2e5   : > { %4638 = vst.msk [vmem:[#allocation2 + $0x90] sm:$0xff] %vm756_vm6, %v4602_v43  ;;  %v3166_v57 = vadd.f32 %v3109_v9, %v2843_v3 }
 0x2e6   : > { %v3278_v59 = vld [vmem:[#allocation2 + $0xa8] sm:$0xff] }
 0x2e7   : > { %v3600_v48 = vadd.f32 %v3541_v63, %v3278_v59  ;;  %3202 = vst.msk [vmem:[#allocation2 + $0xb0] sm:$0xff] %vm756_vm6, %v3166_v57  ;;  %v4549_v51 = vpop.f32.mrf.mxu0  ;;  %v4120_v5 = vpop.f32.mrf.mxu3 }
 0x2e8   : > { %v3712_v34 = vld [vmem:[#allocation2 + $0xa0] sm:$0xff] }
 0x2e9   : > { %v4168_v38 = vadd.f32 %v4108_v29, %v3712_v34  ;;  %3636 = vst.msk [vmem:[#allocation2 + $0xa8] sm:$0xff] %vm756_vm6, %v3600_v48 }
 0x2ea   : > { %v4280_v41 = vld [vmem:[#allocation2 + $0x98] sm:$0xff]  ;;  %v3544_v0 = vpop.f32.mrf.mxu2 }
 0x2eb   : > { %4204 = vst.msk [vmem:[#allocation2 + $0xa0] sm:$0xff] %vm756_vm6, %v4168_v38  ;;  %v4603_v36 = vadd.f32 %v4541_v16, %v4280_v41 }
 0x2ec   : > { %v3111_v10 = vpop.f32.mrf.mxu1 }
 0x2ed   : > { %4639 = vst.msk [vmem:[#allocation2 + $0x98] sm:$0xff] %vm756_vm6, %v4603_v36  ;;  %v3167_v22 = vadd.f32 %v3111_v10, %v2844_v62 }
 0x2ee   : > { %v3279_v42 = vld [vmem:[#allocation2 + $0xb0] sm:$0xff] }
 0x2ef   : > { %v3601_v47 = vadd.f32 %v3544_v0, %v3279_v42  ;;  %3203 = vst.msk [vmem:[#allocation2 + $0xb8] sm:$0xff] %vm756_vm6, %v3167_v22  ;;  %v4551_v12 = vpop.f32.mrf.mxu0  ;;  %v4123_v55 = vpop.f32.mrf.mxu3 }
 0x2f0   : > { %v3713_v28 = vld [vmem:[#allocation2 + $0xa8] sm:$0xff] }
 0x2f1   : > { %v4169_v33 = vadd.f32 %v4110_v6, %v3713_v28  ;;  %3637 = vst.msk [vmem:[#allocation2 + $0xb0] sm:$0xff] %vm756_vm6, %v3601_v47 }
 0x2f2   : > { %v4281_v56 = vld [vmem:[#allocation2 + $0xa0] sm:$0xff]  ;;  %v3546_v20 = vpop.f32.mrf.mxu2 }
 0x2f3   : > { %4205 = vst.msk [vmem:[#allocation2 + $0xa8] sm:$0xff] %vm756_vm6, %v4169_v33  ;;  %v4604_v46 = vadd.f32 %v4544_v58, %v4281_v56  ;;  %v2850_v33 = vld [vmem:[#allocation2 + $0xe8] sm:$0xff] }
 0x2f4   : > { %v3114_v29 = vpop.f32.mrf.mxu1 }
 0x2f5   : > { %4640 = vst.msk [vmem:[#allocation2 + $0xa0] sm:$0xff] %vm756_vm6, %v4604_v46  ;;  %v3168_v11 = vadd.f32 %v3114_v29, %v2845_v31 }
 0x2f6   : > { %v3280_v4 = vld [vmem:[#allocation2 + $0xb8] sm:$0xff] }
 0x2f7   : > { %v3602_v61 = vadd.f32 %v3546_v20, %v3280_v4  ;;  %3204 = vst.msk [vmem:[#allocation2 + $0xc0] sm:$0xff] %vm756_vm6, %v3168_v11  ;;  %v4554_v14 = vpop.f32.mrf.mxu0  ;;  %v4125_v43 = vpop.f32.mrf.mxu3 }
 0x2f8   : > { %v3714_v23 = vld [vmem:[#allocation2 + $0xb0] sm:$0xff] }
 0x2f9   : > { %v4170_v15 = vadd.f32 %v4113_v13, %v3714_v23  ;;  %3638 = vst.msk [vmem:[#allocation2 + $0xb8] sm:$0xff] %vm756_vm6, %v3602_v61 }
 0x2fa   : > { %v4282_v39 = vld [vmem:[#allocation2 + $0xa8] sm:$0xff]  ;;  %v3549_v21 = vpop.f32.mrf.mxu2 }
 0x2fb   : > { %4206 = vst.msk [vmem:[#allocation2 + $0xb0] sm:$0xff] %vm756_vm6, %v4170_v15  ;;  %v4605_v16 = vadd.f32 %v4546_v25, %v4282_v39  ;;  %v2851_v15 = vld [vmem:[#allocation2 + $0xf0] sm:$0xff] }
 0x2fc   : > { %v3116_v17 = vpop.f32.mrf.mxu1 }
 0x2fd   : > { %4641 = vst.msk [vmem:[#allocation2 + $0xa8] sm:$0xff] %vm756_vm6, %v4605_v16  ;;  %v3169_v49 = vadd.f32 %v3116_v17, %v2846_v35 }
 0x2fe   : > { %v3281_v8 = vld [vmem:[#allocation2 + $0xc0] sm:$0xff] }
 0x2ff   : > { %v3603_v6 = vadd.f32 %v3549_v21, %v3281_v8  ;;  %3205 = vst.msk [vmem:[#allocation2 + $0xc8] sm:$0xff] %vm756_vm6, %v3169_v49  ;;  %v4556_v30 = vpop.f32.mrf.mxu0  ;;  %v4128_v10 = vpop.f32.mrf.mxu3 }
 0x300   : > { %v3715_v37 = vld [vmem:[#allocation2 + $0xb8] sm:$0xff] }
 0x301   : > { %v4171_v40 = vadd.f32 %v4115_v19, %v3715_v37  ;;  %3639 = vst.msk [vmem:[#allocation2 + $0xc0] sm:$0xff] %vm756_vm6, %v3603_v6  ;;  %v2852_v6 = vld [vmem:[#allocation2 + $0xf8] sm:$0xff] }
 0x302   : > { %v4283_v18 = vld [vmem:[#allocation2 + $0xb0] sm:$0xff]  ;;  %v3551_v7 = vpop.f32.mrf.mxu2 }
 0x303   : > { %4207 = vst.msk [vmem:[#allocation2 + $0xb8] sm:$0xff] %vm756_vm6, %v4171_v40  ;;  %v4606_v58 = vadd.f32 %v4549_v51, %v4283_v18  ;;  %v2849_v51 = vld [vmem:[#allocation2 + $0xe0] sm:$0xff] }
 0x304   : > { %v3119_v54 = vpop.f32.mrf.mxu1 }
 0x305   : > { %4642 = vst.msk [vmem:[#allocation2 + $0xb0] sm:$0xff] %vm756_vm6, %v4606_v58  ;;  %v3170_v52 = vadd.f32 %v3119_v54, %v2847_v26 }
 0x306   : > { %v3282_v60 = vld [vmem:[#allocation2 + $0xc8] sm:$0xff] }
 0x307   : > { %v3604_v44 = vadd.f32 %v3551_v7, %v3282_v60  ;;  %3206 = vst.msk [vmem:[#allocation2 + $0xd0] sm:$0xff] %vm756_vm6, %v3170_v52  ;;  %v4559_v3 = vpop.f32.mrf.mxu0  ;;  %v4130_v61 = vpop.f32.mrf.mxu3 }
 0x308   : > { %v3716_v50 = vld [vmem:[#allocation2 + $0xc0] sm:$0xff] }
 0x309   : > { %v4172_v24 = vadd.f32 %v4118_v1, %v3716_v50  ;;  %3640 = vst.msk [vmem:[#allocation2 + $0xc8] sm:$0xff] %vm756_vm6, %v3604_v44  ;;  %v2853_v44 = vld [vmem:[#allocation2 + $0x100] sm:$0xff] }
 0x30a   : > { %v4284_v13 = vld [vmem:[#allocation2 + $0xb8] sm:$0xff]  ;;  %v3554_v32 = vpop.f32.mrf.mxu2 }
 0x30b   : > { %4208 = vst.msk [vmem:[#allocation2 + $0xc0] sm:$0xff] %vm756_vm6, %v4172_v24  ;;  %v4607_v25 = vadd.f32 %v4551_v12, %v4284_v13 }
 0x30c   : > { %v3121_v53 = vpop.f32.mrf.mxu1 }
 0x30d   : > { %4643 = vst.msk [vmem:[#allocation2 + $0xb8] sm:$0xff] %vm756_vm6, %v4607_v25  ;;  %v3171_v27 = vadd.f32 %v3121_v53, %v2848_v45 }
 0x30e   : > { %v3283_v2 = vld [vmem:[#allocation2 + $0xd0] sm:$0xff] }
 0x30f   : > { %v3605_v63 = vadd.f32 %v3554_v32, %v3283_v2  ;;  %3207 = vst.msk [vmem:[#allocation2 + $0xd8] sm:$0xff] %vm756_vm6, %v3171_v27  ;;  %v4561_v22 = vpop.f32.mrf.mxu0  ;;  %v4133_v18 = vpop.f32.mrf.mxu3 }
 0x310   : > { %v3717_v9 = vld [vmem:[#allocation2 + $0xc8] sm:$0xff] }
 0x311   : > { %v4173_v57 = vadd.f32 %v4120_v5, %v3717_v9  ;;  %3641 = vst.msk [vmem:[#allocation2 + $0xd0] sm:$0xff] %vm756_vm6, %v3605_v63 }
 0x312   : > { %v4285_v59 = vld [vmem:[#allocation2 + $0xc0] sm:$0xff]  ;;  %v3556_v48 = vpop.f32.mrf.mxu2 }
 0x313   : > { %4209 = vst.msk [vmem:[#allocation2 + $0xc8] sm:$0xff] %vm756_vm6, %v4173_v57  ;;  %v4608_v19 = vadd.f32 %v4554_v14, %v4285_v59 }
 0x314   : > { %v3124_v34 = vpop.f32.mrf.mxu1 }
 0x315   : > { %4644 = vst.msk [vmem:[#allocation2 + $0xc0] sm:$0xff] %vm756_vm6, %v4608_v19  ;;  %v3172_v38 = vadd.f32 %v3124_v34, %v2849_v51 }
 0x316   : > { %v3284_v41 = vld [vmem:[#allocation2 + $0xd8] sm:$0xff] }
 0x317   : > { %v3606_v0 = vadd.f32 %v3556_v48, %v3284_v41  ;;  %3208 = vst.msk [vmem:[#allocation2 + $0xe0] sm:$0xff] %vm756_vm6, %v3172_v38  ;;  %v4564_v23 = vpop.f32.mrf.mxu0  ;;  %v4135_v25 = vpop.f32.mrf.mxu3 }
 0x318   : > { %v3718_v36 = vld [vmem:[#allocation2 + $0xd0] sm:$0xff] }
 0x319   : > { %v4174_v62 = vadd.f32 %v4123_v55, %v3718_v36  ;;  %3642 = vst.msk [vmem:[#allocation2 + $0xd8] sm:$0xff] %vm756_vm6, %v3606_v0 }
 0x31a   : > { %v4286_v42 = vld [vmem:[#allocation2 + $0xc8] sm:$0xff]  ;;  %v3559_v47 = vpop.f32.mrf.mxu2 }
 0x31b   : > { %4210 = vst.msk [vmem:[#allocation2 + $0xd0] sm:$0xff] %vm756_vm6, %v4174_v62  ;;  %v4609_v28 = vadd.f32 %v4556_v30, %v4286_v42  ;;  %v2855_v62 = vld [vmem:[#allocation2 + $0x110] sm:$0xff] }
 0x31c   : > { %v3126_v1 = vpop.f32.mrf.mxu1 }
 0x31d   : > { %4645 = vst.msk [vmem:[#allocation2 + $0xc8] sm:$0xff] %vm756_vm6, %v4609_v28  ;;  %v3173_v12 = vadd.f32 %v3126_v1, %v2850_v33 }
 0x31e   : > { %v3285_v56 = vld [vmem:[#allocation2 + $0xe0] sm:$0xff] }
 0x31f   : > { %v3607_v20 = vadd.f32 %v3559_v47, %v3285_v56  ;;  %3209 = vst.msk [vmem:[#allocation2 + $0xe8] sm:$0xff] %vm756_vm6, %v3173_v12  ;;  %v4566_v7 = vpop.f32.mrf.mxu0  ;;  %v4138_v34 = vpop.f32.mrf.mxu3 }
 0x320   : > { %v3719_v46 = vld [vmem:[#allocation2 + $0xd8] sm:$0xff] }
 0x321   : > { %v4175_v31 = vadd.f32 %v4125_v43, %v3719_v46  ;;  %3643 = vst.msk [vmem:[#allocation2 + $0xe0] sm:$0xff] %vm756_vm6, %v3607_v20 }
 0x322   : > { %v4287_v29 = vld [vmem:[#allocation2 + $0xd0] sm:$0xff]  ;;  %v3561_v11 = vpop.f32.mrf.mxu2 }
 0x323   : > { %4211 = vst.msk [vmem:[#allocation2 + $0xd8] sm:$0xff] %vm756_vm6, %v4175_v31  ;;  %v4610_v4 = vadd.f32 %v4559_v3, %v4287_v29  ;;  %v2854_v3 = vld [vmem:[#allocation2 + $0x108] sm:$0xff]  ;;  %v2856_v31 = vld [vmem:[#allocation2 + $0x118] sm:$0xff] }
 0x324   : > { %v3129_v39 = vpop.f32.mrf.mxu1 }
 0x325   : > { %4646 = vst.msk [vmem:[#allocation2 + $0xd0] sm:$0xff] %vm756_vm6, %v4610_v4  ;;  %v3174_v21 = vadd.f32 %v3129_v39, %v2851_v15 }
 0x326   : > { %v3286_v16 = vld [vmem:[#allocation2 + $0xe8] sm:$0xff] }
 0x327   : > { %v3608_v5 = vadd.f32 %v3561_v11, %v3286_v16  ;;  %3210 = vst.msk [vmem:[#allocation2 + $0xf0] sm:$0xff] %vm756_vm6, %v3174_v21  ;;  %v4569_v45 = vpop.f32.mrf.mxu0  ;;  %v4140_v56 = vpop.f32.mrf.mxu3 }
 0x328   : > { %v3720_v14 = vld [vmem:[#allocation2 + $0xe0] sm:$0xff] }
 0x329   : > { %v4176_v35 = vadd.f32 %v4128_v10, %v3720_v14  ;;  %3644 = vst.msk [vmem:[#allocation2 + $0xe8] sm:$0xff] %vm756_vm6, %v3608_v5 }
 0x32a   : > { %v4288_v17 = vld [vmem:[#allocation2 + $0xd8] sm:$0xff]  ;;  %v3564_v49 = vpop.f32.mrf.mxu2 }
 0x32b   : > { %4212 = vst.msk [vmem:[#allocation2 + $0xe0] sm:$0xff] %vm756_vm6, %v4176_v35  ;;  %v4611_v8 = vadd.f32 %v4561_v22, %v4288_v17 }
 0x32c   : > { %v3131_v37 = vpop.f32.mrf.mxu1 }
 0x32d   : > { %4647 = vst.msk [vmem:[#allocation2 + $0xd8] sm:$0xff] %vm756_vm6, %v4611_v8  ;;  %v3175_v40 = vadd.f32 %v3131_v37, %v2852_v6 }
 0x32e   : > { %v3287_v58 = vld [vmem:[#allocation2 + $0xf0] sm:$0xff] }
 0x32f   : > { %v3609_v26 = vadd.f32 %v3564_v49, %v3287_v58  ;;  %3211 = vst.msk [vmem:[#allocation2 + $0xf8] sm:$0xff] %vm756_vm6, %v3175_v40  ;;  %v4571_v38 = vpop.f32.mrf.mxu0  ;;  %v4143_v16 = vpop.f32.mrf.mxu3 }
 0x330   : > { %v3721_v54 = vld [vmem:[#allocation2 + $0xe8] sm:$0xff] }
 0x331   : > { %v4177_v52 = vadd.f32 %v4130_v61, %v3721_v54  ;;  %3645 = vst.msk [vmem:[#allocation2 + $0xf0] sm:$0xff] %vm756_vm6, %v3609_v26 }
 0x332   : > { %v4289_v55 = vld [vmem:[#allocation2 + $0xe0] sm:$0xff]  ;;  %v3566_v30 = vpop.f32.mrf.mxu2 }
 0x333   : > { %4213 = vst.msk [vmem:[#allocation2 + $0xe8] sm:$0xff] %vm756_vm6, %v4177_v52  ;;  %v4612_v60 = vadd.f32 %v4564_v23, %v4289_v55 }
 0x334   : > { %v3134_v50 = vpop.f32.mrf.mxu1 }
 0x335   : > { %4648 = vst.msk [vmem:[#allocation2 + $0xe0] sm:$0xff] %vm756_vm6, %v4612_v60  ;;  %v3176_v24 = vadd.f32 %v3134_v50, %v2853_v44 }
 0x336   : > { %v3288_v13 = vld [vmem:[#allocation2 + $0xf8] sm:$0xff] }
 0x337   : > { %v3610_v32 = vadd.f32 %v3566_v30, %v3288_v13  ;;  %3212 = vst.msk [vmem:[#allocation2 + $0x100] sm:$0xff] %vm756_vm6, %v3176_v24  ;;  %v4574_v20 = vpop.f32.mrf.mxu0 }
 0x338   : > { %v3722_v53 = vld [vmem:[#allocation2 + $0xf0] sm:$0xff] }
 0x339   : > { %v4178_v27 = vadd.f32 %v4133_v18, %v3722_v53  ;;  %3646 = vst.msk [vmem:[#allocation2 + $0xf8] sm:$0xff] %vm756_vm6, %v3610_v32  ;;  %v4145_v18 = vpop.f32.mrf.mxu3 }
 0x33a   : > { %v4290_v2 = vld [vmem:[#allocation2 + $0xe8] sm:$0xff]  ;;  %v3569_v63 = vpop.f32.mrf.mxu2 }
 0x33b   : > { %4214 = vst.msk [vmem:[#allocation2 + $0xf0] sm:$0xff] %vm756_vm6, %v4178_v27  ;;  %v4613_v43 = vadd.f32 %v4566_v7, %v4290_v2 }
 0x33c   : > { %v3136_v9 = vpop.f32.mrf.mxu1 }
 0x33d   : > { %4649 = vst.msk [vmem:[#allocation2 + $0xe8] sm:$0xff] %vm756_vm6, %v4613_v43  ;;  %v3177_v57 = vadd.f32 %v3136_v9, %v2854_v3 }
 0x33e   : > { %v3289_v59 = vld [vmem:[#allocation2 + $0x100] sm:$0xff] }
 0x33f   : > { %v3611_v48 = vadd.f32 %v3569_v63, %v3289_v59  ;;  %3213 = vst.msk [vmem:[#allocation2 + $0x108] sm:$0xff] %vm756_vm6, %v3177_v57  ;;  %v4576_v35 = vpop.f32.mrf.mxu0 }
 0x340   : > { %v3723_v19 = vld [vmem:[#allocation2 + $0xf8] sm:$0xff] }
 0x341   : > { %v4179_v51 = vadd.f32 %v4135_v25, %v3723_v19  ;;  %3647 = vst.msk [vmem:[#allocation2 + $0x100] sm:$0xff] %vm756_vm6, %v3611_v48 }
 0x342   : > { %v4291_v41 = vld [vmem:[#allocation2 + $0xf0] sm:$0xff]  ;;  %v3571_v0 = vpop.f32.mrf.mxu2 }
 0x343   : > { %4215 = vst.msk [vmem:[#allocation2 + $0xf8] sm:$0xff] %vm756_vm6, %v4179_v51  ;;  %v4614_v36 = vadd.f32 %v4569_v45, %v4291_v41 }
 0x344   : > { %v3139_v10 = vpop.f32.mrf.mxu1 }
 0x345   : > { %4650 = vst.msk [vmem:[#allocation2 + $0xf0] sm:$0xff] %vm756_vm6, %v4614_v36  ;;  %v3178_v22 = vadd.f32 %v3139_v10, %v2855_v62 }
 0x346   : > { %v3290_v42 = vld [vmem:[#allocation2 + $0x108] sm:$0xff] }
 0x347   : > { %v3612_v47 = vadd.f32 %v3571_v0, %v3290_v42  ;;  %3214 = vst.msk [vmem:[#allocation2 + $0x110] sm:$0xff] %vm756_vm6, %v3178_v22  ;;  %v4579_v7 = vpop.f32.mrf.mxu0 }
 0x348   : > { %v3724_v28 = vld [vmem:[#allocation2 + $0x100] sm:$0xff] }
 0x349   : > { %v4180_v33 = vadd.f32 %v4138_v34, %v3724_v28  ;;  %3648 = vst.msk [vmem:[#allocation2 + $0x108] sm:$0xff] %vm756_vm6, %v3612_v47 }
 0x34a   : > { %v4292_v1 = vld [vmem:[#allocation2 + $0xf8] sm:$0xff]  ;;  %v3574_v46 = vpop.f32.mrf.mxu2 }
 0x34b   : > { %4216 = vst.msk [vmem:[#allocation2 + $0x100] sm:$0xff] %vm756_vm6, %v4180_v33  ;;  %v4615_v12 = vadd.f32 %v4571_v38, %v4292_v1 }
 0x34c   : > { %v3141_v29 = vpop.f32.mrf.mxu1 }
 0x34d   : > { %4651 = vst.msk [vmem:[#allocation2 + $0xf8] sm:$0xff] %vm756_vm6, %v4615_v12  ;;  %v3179_v11 = vadd.f32 %v3141_v29, %v2856_v31 }
 0x34e   : > { %v3291_v4 = vld [vmem:[#allocation2 + $0x110] sm:$0xff] }
 0x34f   : > { %v3613_v61 = vadd.f32 %v3574_v46, %v3291_v4  ;;  %3215 = vst.msk [vmem:[#allocation2 + $0x118] sm:$0xff] %vm756_vm6, %v3179_v11  ;;  %v4581_v55 = vpop.f32.mrf.mxu0 }
 0x350   : > { %v3725_v23 = vld [vmem:[#allocation2 + $0x108] sm:$0xff] }
 0x351   : > { %v4181_v15 = vadd.f32 %v4140_v56, %v3725_v23  ;;  %3649 = vst.msk [vmem:[#allocation2 + $0x110] sm:$0xff] %vm756_vm6, %v3613_v61 }
 0x352   : > { %v4293_v39 = vld [vmem:[#allocation2 + $0x100] sm:$0xff]  ;;  %v3576_v14 = vpop.f32.mrf.mxu2 }
 0x353   : > { %4217 = vst.msk [vmem:[#allocation2 + $0x108] sm:$0xff] %vm756_vm6, %v4181_v15  ;;  %v4616_v21 = vadd.f32 %v4574_v20, %v4293_v39 }
 0x355   : > { %4652 = vst.msk [vmem:[#allocation2 + $0x100] sm:$0xff] %vm756_vm6, %v4616_v21 }
 0x356   : > { %v3292_v5 = vld [vmem:[#allocation2 + $0x118] sm:$0xff] }
 0x357   : > { %v3614_v17 = vadd.f32 %v3576_v14, %v3292_v5 }
 0x358   : > { %v3726_v49 = vld [vmem:[#allocation2 + $0x110] sm:$0xff] }
 0x359   : > { %v4182_v8 = vadd.f32 %v4143_v16, %v3726_v49  ;;  %3650 = vst.msk [vmem:[#allocation2 + $0x118] sm:$0xff] %vm756_vm6, %v3614_v17 }
 0x35a   : > { %v4294_v6 = vld [vmem:[#allocation2 + $0x108] sm:$0xff] }
 0x35b   : > { %4218 = vst.msk [vmem:[#allocation2 + $0x110] sm:$0xff] %vm756_vm6, %v4182_v8  ;;  %v4617_v37 = vadd.f32 %v4576_v35, %v4294_v6 }
 0x35d   : > { %4653 = vst.msk [vmem:[#allocation2 + $0x108] sm:$0xff] %vm756_vm6, %v4617_v37 }
 0x360   : > { %v3727_v40 = vld [vmem:[#allocation2 + $0x118] sm:$0xff] }
 0x361   : > { %v4183_v58 = vadd.f32 %v4145_v18, %v3727_v40 }
 0x362   : > { %v4295_v26 = vld [vmem:[#allocation2 + $0x110] sm:$0xff] }
 0x363   : > { %4219 = vst.msk [vmem:[#allocation2 + $0x118] sm:$0xff] %vm756_vm6, %v4183_v58  ;;  %v4618_v54 = vadd.f32 %v4579_v7, %v4295_v26 }
 0x365   : > { %4654 = vst.msk [vmem:[#allocation2 + $0x110] sm:$0xff] %vm756_vm6, %v4618_v54 }
 0x369   : > { %4659 = sbr.rel (%p7516_p10) target bundleno = 1631 (0x65f), region = 52 }
 0x36a   : > { %v4296_v52 = vld [vmem:[#allocation2 + $0x118] sm:$0xff] }
 0x36b   : > { %v4619_v30 = vadd.f32 %v4581_v55, %v4296_v52 }
 0x36d   : > { %4655 = vst.msk [vmem:[#allocation2 + $0x118] sm:$0xff] %vm756_vm6, %v4619_v30 }
 0x36e   : > { %v4884_v60 = vld [vmem:[%s10782_s4] sm:$0xf]  ;;  %v4660_v44 = vld [vmem:[#allocation2] sm:$0xff]  ;;  %v4669_v13 = vld [vmem:[#allocation2 + $0x48] sm:$0xff] }
 0x36f   : > { %7517 = vmatpush.msk.msra.mxu0 %vm617_vm1, %v4884_v60  ;;  %7722 = vmatpush.msk.msra.mxu1 %vm617_vm1, %v4884_v60  ;;  %v9906_v50 = vld [vmem:[%s10780_s2] ss:$0 sm:$0xff]  ;;  %v4678_v32 = vld [vmem:[#allocation2 + $0x90] sm:$0xff]  ;;  %v4661_v63 = vld [vmem:[#allocation2 + $0x8] sm:$0xff] }
 0x370   : > { %v9911_v24 = vld [vmem:[%s10781_s3] ss:$0 sm:$0xff]  ;;  %7723 = vmatpush.msk.msra.mxu2 %vm617_vm1, %v4884_v60  ;;  %7724 = vmatpush.msk.msra.mxu3 %vm617_vm1, %v4884_v60  ;;  %v4700_v45 = vmul.f32 %v9906_v50, %v4660_v44  ;;  %v4709_v53 = vmul.f32 %v9906_v50, %v4669_v13  ;;  %v4718_v27 = vmul.f32 %v9906_v50, %v4678_v32  ;;  %v4670_v43 = vld [vmem:[#allocation2 + $0x50] sm:$0xff]  ;;  %v4688_v48 = vld [vmem:[#allocation2 + $0xe0] sm:$0xff] }
 0x371   : > { %v4687_v25 = vld [vmem:[#allocation2 + $0xd8] sm:$0xff]  ;;  %v4701_v9 = vmul.f32 %v9906_v50, %v4661_v63  ;;  %v4710_v57 = vmul.f32 %v9906_v50, %v4670_v43  ;;  %v4728_v62 = vmul.f32 %v9906_v50, %v4688_v48  ;;  %v4662_v1 = vld [vmem:[#allocation2 + $0x10] sm:$0xff]  ;;  %v4680_v56 = vld [vmem:[#allocation2 + $0xa0] sm:$0xff] }
 0x372   : > { %v4727_v2 = vmul.f32 %v9906_v50, %v4687_v25  ;;  %v4679_v3 = vld [vmem:[#allocation2 + $0x98] sm:$0xff]  ;;  %v4740_v19 = vadd.f32 %v9911_v24, %v4700_v45  ;;  %v4749_v51 = vadd.f32 %v9911_v24, %v4709_v53  ;;  %v4758_v34 = vadd.f32 %v9911_v24, %v4718_v27  ;;  %v4689_v31 = vld [vmem:[#allocation2 + $0xe8] sm:$0xff]  ;;  %v4672_v8 = vld [vmem:[#allocation2 + $0x60] sm:$0xff] }
 0x373   : > { %v4719_v59 = vmul.f32 %v9906_v50, %v4679_v3  ;;  %v4741_v41 = vadd.f32 %v9911_v24, %v4701_v9  ;;  %v4750_v0 = vadd.f32 %v9911_v24, %v4710_v57  ;;  %v4671_v12 = vld [vmem:[#allocation2 + $0x58] sm:$0xff]  ;;  %v4768_v4 = vadd.f32 %v9911_v24, %v4728_v62  ;;  %v4681_v7 = vld [vmem:[#allocation2 + $0xa8] sm:$0xff]  ;;  %v4690_v58 = vld [vmem:[#allocation2 + $0xf0] sm:$0xff] }
 0x374   : > { %v4767_v38 = vadd.f32 %v9911_v24, %v4727_v2  ;;  %vm4776_vm10 = vcmp.ge.f32.partialorder %v4740_v19, 0.0  ;;  %v4812_v10 = vmul.f32 0.2, %v4740_v19  ;;  %vm4785_vm11 = vcmp.ge.f32.partialorder %v4749_v51, 0.0  ;;  %v4663_v49 = vld [vmem:[#allocation2 + $0x18] sm:$0xff]  ;;  %v4664_v27 = vld [vmem:[#allocation2 + $0x20] sm:$0xff] }
 0x375   : > { %v4759_v36 = vadd.f32 %v9911_v24, %v4719_v59  ;;  %v4821_v22 = vmul.f32 0.2, %v4749_v51  ;;  %vm4794_vm12 = vcmp.ge.f32.partialorder %v4758_v34, 0.0  ;;  %v4830_v42 = vmul.f32 0.2, %v4758_v34  ;;  %v4673_v9 = vld [vmem:[#allocation2 + $0x68] sm:$0xff] }
 0x376   : > { %vm4803_vm13 = vcmp.ge.f32.partialorder %v4767_v38, 0.0  ;;  %v4839_v47 = vmul.f32 0.2, %v4767_v38  ;;  %v4848_v28 = vsel %vm4776_vm10, %v4740_v19, %v4812_v10  ;;  %vm4777_vm14 = vcmp.ge.f32.partialorder %v4741_v41, 0.0  ;;  %v4682_v57 = vld [vmem:[#allocation2 + $0xb0] sm:$0xff]  ;;  %v4691_v59 = vld [vmem:[#allocation2 + $0xf8] sm:$0xff] }
 0x377   : > { %v4857_v33 = vsel %vm4785_vm11, %v4749_v51, %v4821_v22  ;;  %7518 = vmatmul.msk.f32.vlgmr.msra.gmra.mxu0 %vm756_vm6, %v4848_v28  ;;  %v4866_v20 = vsel %vm4794_vm12, %v4758_v34, %v4830_v42  ;;  %v4813_v29 = vmul.f32 0.2, %v4741_v41  ;;  %vm4786_vm15 = vcmp.ge.f32.partialorder %v4750_v0, 0.0 }
 0x378   : > { %7527 = vmatmul.msk.f32.vlgmr.msra.gmra.mxu1 %vm756_vm6, %v4857_v33  ;;  %v4875_v46 = vsel %vm4803_vm13, %v4767_v38, %v4839_v47  ;;  %7536 = vmatmul.msk.f32.vlgmr.msra.gmra.mxu2 %vm756_vm6, %v4866_v20  ;;  %v4822_v11 = vmul.f32 0.2, %v4750_v0  ;;  %v4831_v61 = vmul.f32 0.2, %v4759_v36  ;;  %v4702_v23 = vmul.f32 %v9906_v50, %v4662_v1  ;;  %v4665_v47 = vld [vmem:[#allocation2 + $0x28] sm:$0xff]  ;;  %v4683_v20 = vld [vmem:[#allocation2 + $0xb8] sm:$0xff] }
 0x379   : > { %7545 = vmatmul.msk.f32.vlgmr.msra.gmra.mxu3 %vm756_vm6, %v4875_v46  ;;  %v4711_v15 = vmul.f32 %v9906_v50, %v4671_v12  ;;  %v4720_v39 = vmul.f32 %v9906_v50, %v4680_v56  ;;  %vm4795_vm0 = vcmp.ge.f32.partialorder %v4759_v36, 0.0  ;;  %vm4804_vm1 = vcmp.ge.f32.partialorder %v4768_v4, 0.0  ;;  %v4674_v56 = vld [vmem:[#allocation2 + $0x70] sm:$0xff]  ;;  %v4692_v46 = vld [vmem:[#allocation2 + $0x100] sm:$0xff] }
 0x37a   : > { %v4840_v21 = vmul.f32 0.2, %v4768_v4  ;;  %v4729_v16 = vmul.f32 %v9906_v50, %v4689_v31  ;;  %v4849_v5 = vsel %vm4777_vm14, %v4741_v41, %v4813_v29  ;;  %v4858_v14 = vsel %vm4786_vm15, %v4750_v0, %v4822_v11 }
 0x37b   : > { %v4742_v35 = vadd.f32 %v9911_v24, %v4702_v23  ;;  %v4751_v17 = vadd.f32 %v9911_v24, %v4711_v15  ;;  %v4867_v6 = vsel %vm4795_vm0, %v4759_v36, %v4831_v61  ;;  %v4760_v40 = vadd.f32 %v9911_v24, %v4720_v39 }
 0x37c   : > { %v4876_v37 = vsel %vm4804_vm1, %v4768_v4, %v4840_v21  ;;  %v4769_v18 = vadd.f32 %v9911_v24, %v4729_v16  ;;  %v4703_v26 = vmul.f32 %v9906_v50, %v4663_v49  ;;  %v4712_v54 = vmul.f32 %v9906_v50, %v4672_v8  ;;  %v4668_v21 = vld [vmem:[#allocation2 + $0x40] sm:$0xff]  ;;  %v4675_v49 = vld [vmem:[#allocation2 + $0x78] sm:$0xff] }
 0x37d   : > { %vm4778_vm2 = vcmp.ge.f32.partialorder %v4742_v35, 0.0  ;;  %v4814_v52 = vmul.f32 0.2, %v4742_v35  ;;  %v4823_v55 = vmul.f32 0.2, %v4751_v17  ;;  %v4721_v30 = vmul.f32 %v9906_v50, %v4681_v7  ;;  %v4684_v7 = vld [vmem:[#allocation2 + $0xc0] sm:$0xff] }
 0x37e   : > { %vm4787_vm3 = vcmp.ge.f32.partialorder %v4751_v17, 0.0  ;;  %v4832_v60 = vmul.f32 0.2, %v4760_v40  ;;  %v4841_v44 = vmul.f32 0.2, %v4769_v18  ;;  %v4730_v13 = vmul.f32 %v9906_v50, %v4690_v58  ;;  %v4693_v58 = vld [vmem:[#allocation2 + $0x108] sm:$0xff] }
 0x37f   : > { %7519 = vmatmul.msk.f32.gmra.mxu0 %vm756_vm6, %v4849_v5  ;;  %vm4796_vm4 = vcmp.ge.f32.partialorder %v4760_v40, 0.0  ;;  %vm4805_vm5 = vcmp.ge.f32.partialorder %v4769_v18, 0.0  ;;  %v4743_v32 = vadd.f32 %v9911_v24, %v4703_v26  ;;  %v4850_v25 = vsel %vm4778_vm2, %v4742_v35, %v4814_v52  ;;  %v4677_v26 = vld [vmem:[#allocation2 + $0x88] sm:$0xff] }
 0x380   : > { %7528 = vmatmul.msk.f32.gmra.mxu1 %vm756_vm6, %v4858_v14  ;;  %7537 = vmatmul.msk.f32.gmra.mxu2 %vm756_vm6, %v4867_v6  ;;  %v4859_v45 = vsel %vm4787_vm3, %v4751_v17, %v4823_v55  ;;  %v4752_v53 = vadd.f32 %v9911_v24, %v4712_v54  ;;  %v4868_v2 = vsel %vm4796_vm4, %v4760_v40, %v4832_v60  ;;  %v4666_v17 = vld [vmem:[#allocation2 + $0x30] sm:$0xff]  ;;  %v4695_v60 = vld [vmem:[#allocation2 + $0x118] sm:$0xff] }
 0x381   : > { %7546 = vmatmul.msk.f32.gmra.mxu3 %vm756_vm6, %v4876_v37  ;;  %v4877_v63 = vsel %vm4805_vm5, %v4769_v18, %v4841_v44  ;;  %v4761_v43 = vadd.f32 %v9911_v24, %v4721_v30  ;;  %v4770_v3 = vadd.f32 %v9911_v24, %v4730_v13  ;;  %vm4779_vm7 = vcmp.ge.f32.partialorder %v4743_v32, 0.0  ;;  %v4686_v30 = vld [vmem:[#allocation2 + $0xd0] sm:$0xff] }
 0x382   : > { %v4704_v48 = vmul.f32 %v9906_v50, %v4664_v27  ;;  %v4815_v19 = vmul.f32 0.2, %v4743_v32  ;;  %vm4788_vm8 = vcmp.ge.f32.partialorder %v4752_v53, 0.0  ;;  %v4824_v51 = vmul.f32 0.2, %v4752_v53 }
 0x383   : > { %v4713_v34 = vmul.f32 %v9906_v50, %v4673_v9  ;;  %v4833_v38 = vmul.f32 0.2, %v4761_v43  ;;  %v4842_v41 = vmul.f32 0.2, %v4770_v3  ;;  %v4722_v0 = vmul.f32 %v9906_v50, %v4682_v57 }
 0x384   : > { %v4731_v36 = vmul.f32 %v9906_v50, %v4691_v59  ;;  %vm4797_vm9 = vcmp.ge.f32.partialorder %v4761_v43, 0.0  ;;  %vm4806_vm10 = vcmp.ge.f32.partialorder %v4770_v3, 0.0  ;;  %v4744_v62 = vadd.f32 %v9911_v24, %v4704_v48 }
 0x385   : > { %v4851_v10 = vsel %vm4779_vm7, %v4743_v32, %v4815_v19  ;;  %v4860_v22 = vsel %vm4788_vm8, %v4752_v53, %v4824_v51  ;;  %v4753_v42 = vadd.f32 %v9911_v24, %v4713_v34  ;;  %v4869_v28 = vsel %vm4797_vm9, %v4761_v43, %v4833_v38 }
 0x386   : > { %v4878_v33 = vsel %vm4806_vm10, %v4770_v3, %v4842_v41  ;;  %v4762_v1 = vadd.f32 %v9911_v24, %v4722_v0  ;;  %v4771_v12 = vadd.f32 %v9911_v24, %v4731_v36  ;;  %vm4780_vm11 = vcmp.ge.f32.partialorder %v4744_v62, 0.0  ;;  %v4667_v36 = vld [vmem:[#allocation2 + $0x38] sm:$0xff] }
 0x387   : > { %7520 = vmatmul.msk.f32.gmra.mxu0 %vm756_vm6, %v4850_v25  ;;  %v4705_v31 = vmul.f32 %v9906_v50, %v4665_v47  ;;  %v4816_v29 = vmul.f32 0.2, %v4744_v62  ;;  %vm4789_vm12 = vcmp.ge.f32.partialorder %v4753_v42, 0.0  ;;  %v4825_v11 = vmul.f32 0.2, %v4753_v42 }
 0x388   : > { %7529 = vmatmul.msk.f32.gmra.mxu1 %vm756_vm6, %v4859_v45  ;;  %7538 = vmatmul.msk.f32.gmra.mxu2 %vm756_vm6, %v4868_v2  ;;  %v4714_v4 = vmul.f32 %v9906_v50, %v4674_v56  ;;  %v4834_v61 = vmul.f32 0.2, %v4762_v1  ;;  %v4843_v23 = vmul.f32 0.2, %v4771_v12  ;;  %v4723_v15 = vmul.f32 %v9906_v50, %v4683_v20  ;;  %v4885_v25 = vld [vmem:[#allocation3] sm:$0x1] }
 0x389   : > { %7547 = vmatmul.msk.f32.gmra.mxu3 %vm756_vm6, %v4877_v63  ;;  %v4732_v39 = vmul.f32 %v9906_v50, %v4692_v46  ;;  %vm4798_vm13 = vcmp.ge.f32.partialorder %v4762_v1, 0.0  ;;  %vm4807_vm14 = vcmp.ge.f32.partialorder %v4771_v12, 0.0  ;;  %v4745_v16 = vadd.f32 %v9911_v24, %v4705_v31  ;;  %7727 = vpush %v4885_v25 }
 0x38a   : > { %v4852_v5 = vsel %vm4780_vm11, %v4744_v62, %v4816_v29  ;;  %v4861_v14 = vsel %vm4789_vm12, %v4753_v42, %v4825_v11  ;;  %v4754_v35 = vadd.f32 %v9911_v24, %v4714_v4  ;;  %v4708_v8 = vmul.f32 %v9906_v50, %v4668_v21  ;;  %v4676_v62 = vld [vmem:[#allocation2 + $0x80] sm:$0xff] }
 0x38b   : > { %v4870_v6 = vsel %vm4798_vm13, %v4762_v1, %v4834_v61  ;;  %v4879_v37 = vsel %vm4807_vm14, %v4771_v12, %v4843_v23  ;;  %v4763_v40 = vadd.f32 %v9911_v24, %v4723_v15  ;;  %v4772_v18 = vadd.f32 %v9911_v24, %v4732_v39 }
 0x38c   : > { %vm4781_vm15 = vcmp.ge.f32.partialorder %v4745_v16, 0.0  ;;  %v4817_v54 = vmul.f32 0.2, %v4745_v16  ;;  %v4706_v52 = vmul.f32 %v9906_v50, %v4666_v17  ;;  %v4715_v55 = vmul.f32 %v9906_v50, %v4675_v49 }
 0x38d   : > { %vm4790_vm0 = vcmp.ge.f32.partialorder %v4754_v35, 0.0  ;;  %v4826_v44 = vmul.f32 0.2, %v4754_v35  ;;  %v4724_v13 = vmul.f32 %v9906_v50, %v4684_v7  ;;  %v9990_v32 = vadd.f32 %v9911_v24, %v4708_v8 }
 0x38e   : > { %v4835_v45 = vmul.f32 0.2, %v4763_v40  ;;  %v4844_v53 = vmul.f32 0.2, %v4772_v18  ;;  %v4733_v27 = vmul.f32 %v9906_v50, %v4693_v58  ;;  %v4717_v2 = vmul.f32 %v9906_v50, %v4677_v26 }
 0x38f   : > { %7521 = vmatmul.msk.f32.gmra.mxu0 %vm756_vm6, %v4851_v10  ;;  %vm4799_vm1 = vcmp.ge.f32.partialorder %v4763_v40, 0.0  ;;  %vm4808_vm2 = vcmp.ge.f32.partialorder %v4772_v18, 0.0  ;;  %v4726_v63 = vmul.f32 %v9906_v50, %v4686_v30  ;;  %v4735_v43 = vmul.f32 %v9906_v50, %v4695_v60  ;;  %v4685_v10 = vld [vmem:[#allocation2 + $0xc8] sm:$0xff] }
 0x390   : > { %7530 = vmatmul.msk.f32.gmra.mxu1 %vm756_vm6, %v4860_v22  ;;  %7539 = vmatmul.msk.f32.gmra.mxu2 %vm756_vm6, %v4869_v28  ;;  %v4746_v3 = vadd.f32 %v9911_v24, %v4706_v52  ;;  %v4755_v9 = vadd.f32 %v9911_v24, %v4715_v55  ;;  %v9999_v57 = vadd.f32 %v9911_v24, %v4717_v2  ;;  %v4694_v22 = vld [vmem:[#allocation2 + $0x110] sm:$0xff]  ;;  %v4820_v17 = vmul.f32 0.2, %v9990_v32 }
 0x391   : > { %7548 = vmatmul.msk.f32.gmra.mxu3 %vm756_vm6, %v4878_v33  ;;  %v4853_v59 = vsel %vm4781_vm15, %v4745_v16, %v4817_v54  ;;  %v4862_v48 = vsel %vm4790_vm0, %v4754_v35, %v4826_v44  ;;  %v10004_v19 = vadd.f32 %v9911_v24, %v4726_v63  ;;  %v10007_v51 = vadd.f32 %v9911_v24, %v4735_v43 }
 0x392   : > { %v4871_v34 = vsel %vm4799_vm1, %v4763_v40, %v4835_v45  ;;  %v4880_v38 = vsel %vm4808_vm2, %v4772_v18, %v4844_v53  ;;  %v4764_v41 = vadd.f32 %v9911_v24, %v4724_v13  ;;  %v4773_v0 = vadd.f32 %v9911_v24, %v4733_v27 }
 0x393   : > { %vm4782_vm3 = vcmp.ge.f32.partialorder %v4746_v3, 0.0  ;;  %v4818_v42 = vmul.f32 0.2, %v4746_v3  ;;  %vm4791_vm4 = vcmp.ge.f32.partialorder %v4755_v9, 0.0  ;;  %v4827_v47 = vmul.f32 0.2, %v4755_v9 }
 0x394   : > { %v4707_v28 = vmul.f32 %v9906_v50, %v4667_v36  ;;  %v4716_v33 = vmul.f32 %v9906_v50, %v4676_v62  ;;  %v4836_v1 = vmul.f32 0.2, %v4764_v41  ;;  %v4845_v12 = vmul.f32 0.2, %v4773_v0 }
 0x395   : > { %v4725_v56 = vmul.f32 %v9906_v50, %v4685_v10  ;;  %v4734_v20 = vmul.f32 %v9906_v50, %v4694_v22  ;;  %vm4800_vm5 = vcmp.ge.f32.partialorder %v4764_v41, 0.0  ;;  %vm4809_vm7 = vcmp.ge.f32.partialorder %v4773_v0, 0.0 }
 0x396   : > { %v4854_v46 = vsel %vm4782_vm3, %v4746_v3, %v4818_v42  ;;  %v4863_v31 = vsel %vm4791_vm4, %v4755_v9, %v4827_v47  ;;  %v4747_v29 = vadd.f32 %v9911_v24, %v4707_v28  ;;  %v4756_v11 = vadd.f32 %v9911_v24, %v4716_v33 }
 0x397   : > { %7522 = vmatmul.msk.f32.gmra.mxu0 %vm756_vm6, %v4852_v5  ;;  %v4872_v4 = vsel %vm4800_vm5, %v4764_v41, %v4836_v1  ;;  %v4881_v61 = vsel %vm4809_vm7, %v4773_v0, %v4845_v12  ;;  %v4765_v23 = vadd.f32 %v9911_v24, %v4725_v56  ;;  %v4774_v15 = vadd.f32 %v9911_v24, %v4734_v20 }
 0x398   : > { %7531 = vmatmul.msk.f32.gmra.mxu1 %vm756_vm6, %v4861_v14  ;;  %7540 = vmatmul.msk.f32.gmra.mxu2 %vm756_vm6, %v4870_v6  ;;  %v4819_v50 = vmul.f32 0.2, %v4747_v29  ;;  %v4828_v39 = vmul.f32 0.2, %v4756_v11  ;;  %vm4783_vm8 = vcmp.ge.f32.partialorder %v4747_v29, 0.0  ;;  %vm4792_vm9 = vcmp.ge.f32.partialorder %v4756_v11, 0.0 }
 0x399   : > { %7549 = vmatmul.msk.f32.gmra.mxu3 %vm756_vm6, %v4879_v37  ;;  %v4837_v21 = vmul.f32 0.2, %v4765_v23  ;;  %v4846_v16 = vmul.f32 0.2, %v4774_v15  ;;  %vm4801_vm10 = vcmp.ge.f32.partialorder %v4765_v23, 0.0  ;;  %vm4810_vm11 = vcmp.ge.f32.partialorder %v4774_v15, 0.0 }
 0x39a   : > { %v4855_v5 = vsel %vm4783_vm8, %v4747_v29, %v4819_v50  ;;  %v4864_v14 = vsel %vm4792_vm9, %v4756_v11, %v4828_v39  ;;  %v4829_v49 = vmul.f32 0.2, %v9999_v57  ;;  %vm4784_vm12 = vcmp.ge.f32.partialorder %v9990_v32, 0.0 }
 0x39b   : > { %v4873_v35 = vsel %vm4801_vm10, %v4765_v23, %v4837_v21  ;;  %v4882_v24 = vsel %vm4810_vm11, %v4774_v15, %v4846_v16  ;;  %vm4793_vm13 = vcmp.ge.f32.partialorder %v9999_v57, 0.0  ;;  %v4838_v8 = vmul.f32 0.2, %v10004_v19 }
 0x39c   : > { %v4847_v6 = vmul.f32 0.2, %v10007_v51  ;;  %vm4802_vm14 = vcmp.ge.f32.partialorder %v10004_v19, 0.0  ;;  %vm4811_vm15 = vcmp.ge.f32.partialorder %v10007_v51, 0.0  ;;  %v4856_v37 = vsel %vm4784_vm12, %v9990_v32, %v4820_v17 }
 0x39d   : > { %v4865_v40 = vsel %vm4793_vm13, %v9999_v57, %v4829_v49  ;;  %v4874_v18 = vsel %vm4802_vm14, %v10004_v19, %v4838_v8  ;;  %v7993_v58 = vmov 0   ;;  %vm5800_vm0 = vcmask 195712  }
 0x39e   : > { %v4883_v7 = vsel %vm4811_vm15, %v10007_v51, %v4847_v6  ;;  %7787 = vset.pattern.permute.xlu0 %v7993_v58  ;;  %7788 = vset.pattern.permute.xlu1 %v7993_v58  ;;  %vm5877_vm1 = vcmask 1041409   ;;  %vm5879_vm2 = vcmask 1042434   ;;  %vm5881_vm3 = vcmask 1043459  }
 0x39f   : > { %7523 = vmatmul.msk.f32.gmra.mxu0 %vm756_vm6, %v4853_v59  ;;  %7789 = vset.pattern.permute.xlu2 %v7993_v58  ;;  %vm5883_vm4 = vcmask 1044484   ;;  %vm5885_vm5 = vcmask 1045509   ;;  %vm5887_vm7 = vcmask 1046534   ;;  %vm5889_vm8 = vcmask 1047559  }
 0x3a0   : > { %7532 = vmatmul.msk.f32.gmra.mxu1 %vm756_vm6, %v4862_v48  ;;  %7541 = vmatmul.msk.f32.gmra.mxu2 %vm756_vm6, %v4871_v34  ;;  %vm5900_vm9 = vcmask 146432  }
 0x3a1   : > { %7550 = vmatmul.msk.f32.gmra.mxu3 %vm756_vm6, %v4880_v38 }
 0x3a7   : > { %7524 = vmatmul.msk.f32.gmra.mxu0 %vm756_vm6, %v4854_v46 }
 0x3a8   : > { %7533 = vmatmul.msk.f32.gmra.mxu1 %vm756_vm6, %v4863_v31  ;;  %7542 = vmatmul.msk.f32.gmra.mxu2 %vm756_vm6, %v4872_v4 }
 0x3a9   : > { %7551 = vmatmul.msk.f32.gmra.mxu3 %vm756_vm6, %v4881_v61 }
 0x3af   : > { %7525 = vmatmul.msk.f32.gmra.mxu0 %vm756_vm6, %v4855_v5 }
 0x3b0   : > { %7534 = vmatmul.msk.f32.gmra.mxu1 %vm756_vm6, %v4864_v14  ;;  %7543 = vmatmul.msk.f32.gmra.mxu2 %vm756_vm6, %v4873_v35 }
 0x3b1   : > { %7552 = vmatmul.msk.f32.gmra.mxu3 %vm756_vm6, %v4882_v24 }
 0x3b7   : > { %7526 = vmatmul.msk.f32.gmra.mxu0 %vm756_vm6, %v4856_v37 }
 0x3b8   : > { %7535 = vmatmul.msk.f32.gmra.mxu1 %vm756_vm6, %v4865_v40  ;;  %7544 = vmatmul.msk.f32.gmra.mxu2 %vm756_vm6, %v4874_v18 }
 0x3b9   : > { %7553 = vmatmul.msk.f32.gmra.mxu3 %vm756_vm6, %v4883_v7  ;;  %vm5796_vm6 = vcmask 130112  }
 0x3ba   : > { %s7728_s26 = spop %7727 }
 0x3bb   : > { %v10047_v26 = vstv %s7728_s26 }
 0x3f4   : > { %v5016_v54 = vpop.f32.mrf.mxu0 }
 0x3f5   : > { %v10050_v52 = vadd.f32 %v5016_v54, %v10047_v26  ;;  %v5043_v29 = vpop.f32.mrf.mxu1 }
 0x3f6   : > { %v10113_v40 = vadd.f32 %v5043_v29, %v10047_v26 }
 0x3f7   : > { %v5340_v55 = vrot.slane %v10050_v52, 2  ;;  %v5341_v30 = vrot.slane %v10050_v52, 4  ;;  %v5342_v60 = vrot.slane %v10050_v52, 6  ;;  %5448 = vst [vmem:[#allocation1] ss:$4 sm:$0xff] %v10050_v52 }
 0x3f8   : > { %v5367_v7 = vrot.slane %v10113_v40, 2 }
 0x3f9   : > { %5450 = vst [vmem:[#allocation1 + $0x1] ss:$4 sm:$0xff] %v5340_v55  ;;  %v5368_v55 = vrot.slane %v10113_v40, 4 }
 0x3fa   : > { %5452 = vst [vmem:[#allocation1 + $0x2] ss:$4 sm:$0xff] %v5341_v30  ;;  %v5369_v30 = vrot.slane %v10113_v40, 6 }
 0x3fb   : > { %5454 = vst [vmem:[#allocation1 + $0x3] ss:$4 sm:$0xff] %v5342_v60 }
 0x3fc   : > { %v5019_v44 = vpop.f32.mrf.mxu0 }
 0x3fd   : > { %v10057_v13 = vadd.f32 %v5019_v44, %v10047_v26  ;;  %v5046_v23 = vpop.f32.mrf.mxu1 }
 0x3fe   : > { %v10117_v58 = vadd.f32 %v5046_v23, %v10047_v26 }
 0x3ff   : > { %5456 = vst [vmem:[#allocation1 + $0x20] ss:$4 sm:$0xff] %v10057_v13  ;;  %v5343_v32 = vrot.slane %v10057_v13, 2  ;;  %v5344_v25 = vrot.slane %v10057_v13, 4  ;;  %v5345_v45 = vrot.slane %v10057_v13, 6 }
 0x400   : > { %v5370_v44 = vrot.slane %v10117_v58, 2 }
 0x401   : > { %5458 = vst [vmem:[#allocation1 + $0x21] ss:$4 sm:$0xff] %v5343_v32  ;;  %v5371_v32 = vrot.slane %v10117_v58, 4 }
 0x402   : > { %v5463_v53 = vld.sshfl [vmem:[#allocation1] sm:$0xff pattern:$0x73625140]  ;;  %5460 = vst [vmem:[#allocation1 + $0x22] ss:$4 sm:$0xff] %v5344_v25  ;;  %v5372_v25 = vrot.slane %v10117_v58, 6 }
 0x403   : > { %5648 = vperm.xlu0 %7787, %v5463_v53   ;;  %5462 = vst [vmem:[#allocation1 + $0x23] ss:$4 sm:$0xff] %v5345_v45 }
 0x404   : > { %v5022_v27 = vpop.f32.mrf.mxu0 }
 0x405   : > { %v10064_v2 = vadd.f32 %v5022_v27, %v10047_v26  ;;  %v5049_v24 = vpop.f32.mrf.mxu1 }
 0x406   : > { %v10127_v45 = vadd.f32 %v5049_v24, %v10047_v26 }
 0x407   : > { %5465 = vst [vmem:[#allocation1] ss:$4 sm:$0xff] %v10064_v2  ;;  %v5346_v63 = vrot.slane %v10064_v2, 2  ;;  %v5347_v43 = vrot.slane %v10064_v2, 4  ;;  %v5348_v3 = vrot.slane %v10064_v2, 6 }
 0x40a   : > { %v5464_v9 = vld.sshfl [vmem:[#allocation1 + $0x20] sm:$0xff pattern:$0x73625140] }
 0x40b   : > { %5467 = vst [vmem:[#allocation1 + $0x20] ss:$4 sm:$0xff] %v5346_v63  ;;  %5651 = vperm.xlu0 %7787, %v5464_v9   ;;  %v5373_v63 = vrot.slane %v10127_v45, 2 }
 0x40c   : > { %5468 = vst [vmem:[#allocation1 + $0x21] ss:$4 sm:$0xff] %v5347_v43  ;;  %v5025_v59 = vpop.f32.mrf.mxu0 }
 0x40d   : > { %5469 = vst [vmem:[#allocation1 + $0x22] ss:$4 sm:$0xff] %v5348_v3  ;;  %v10071_v48 = vadd.f32 %v5025_v59, %v10047_v26  ;;  %v5052_v37 = vpop.f32.mrf.mxu1  ;;  %v5374_v3 = vrot.slane %v10127_v45, 4 }
 0x40e   : > { %v5466_v57 = vld.sshfl [vmem:[#allocation1] sm:$0xff pattern:$0x73625140]  ;;  %v10132_v43 = vadd.f32 %v5052_v37, %v10047_v26 }
 0x40f   : > { %5654 = vperm.xlu1 %7788, %v5466_v57   ;;  %5470 = vst [vmem:[#allocation1 + $0x23] ss:$4 sm:$0xff] %v10071_v48  ;;  %v5349_v19 = vrot.slane %v10071_v48, 2  ;;  %v5350_v34 = vrot.slane %v10071_v48, 4  ;;  %v5351_v38 = vrot.slane %v10071_v48, 6  ;;  %v5375_v57 = vrot.slane %v10127_v45, 6 }
 0x410   : > { %v5376_v59 = vrot.slane %v10132_v43, 2 }
 0x411   : > { %5472 = vst [vmem:[#allocation1] ss:$4 sm:$0xff] %v5349_v19  ;;  %v5377_v19 = vrot.slane %v10132_v43, 4 }
 0x412   : > { %5473 = vst [vmem:[#allocation1 + $0x1] ss:$4 sm:$0xff] %v5350_v34  ;;  %v5378_v34 = vrot.slane %v10132_v43, 6 }
 0x413   : > { %5474 = vst [vmem:[#allocation1 + $0x2] ss:$4 sm:$0xff] %v5351_v38 }
 0x414   : > { %v5028_v51 = vpop.f32.mrf.mxu0 }
 0x415   : > { %v10078_v36 = vadd.f32 %v5028_v51, %v10047_v26  ;;  %v5055_v60 = vpop.f32.mrf.mxu1 }
 0x416   : > { %v5471_v41 = vld.sshfl [vmem:[#allocation1 + $0x20] sm:$0xff pattern:$0x73625140]  ;;  %v10141_v38 = vadd.f32 %v5055_v60, %v10047_v26 }
 0x417   : > { %5657 = vperm.xlu1 %7788, %v5471_v41   ;;  %v5352_v62 = vrot.slane %v10078_v36, 2  ;;  %5475 = vst [vmem:[#allocation1 + $0x3] ss:$4 sm:$0xff] %v10078_v36  ;;  %v5353_v10 = vrot.slane %v10078_v36, 4  ;;  %v5354_v28 = vrot.slane %v10078_v36, 6  ;;  %v5070_v41 = vpop.f32.mrf.mxu2 }
 0x419   : > { %5476 = vst [vmem:[#allocation1 + $0x20] ss:$4 sm:$0xff] %v5352_v62  ;;  %v5379_v62 = vrot.slane %v10141_v38, 2 }
 0x41c   : > { %v5031_v0 = vpop.f32.mrf.mxu0 }
 0x41d   : > { %v10084_v42 = vadd.f32 %v5031_v0, %v10047_v26  ;;  %v5058_v27 = vpop.f32.mrf.mxu1 }
 0x41e   : > { %v5477_v22 = vld.sshfl [vmem:[#allocation1] sm:$0xff pattern:$0x73625140] }
 0x41f   : > { %5479 = vst [vmem:[#allocation1] ss:$4 sm:$0xff] %v5353_v10  ;;  %5660 = vperm.xlu2 %7789, %v5477_v22   ;;  %v5355_v12 = vrot.slane %v10084_v42, 2  ;;  %v5356_v56 = vrot.slane %v10084_v42, 4  ;;  %v5357_v20 = vrot.slane %v10084_v42, 6  ;;  %v10146_v22 = vadd.f32 %v5058_v27, %v10047_v26 }
 0x420   : > { %v5478_v33 = vld.sshfl [vmem:[#allocation1 + $0x20] sm:$0xff pattern:$0x73625140]  ;;  %5480 = vst [vmem:[#allocation1 + $0x1] ss:$4 sm:$0xff] %v5354_v28  ;;  %v5381_v28 = vrot.slane %v10141_v38, 6 }
 0x421   : > { %5481 = vst [vmem:[#allocation1 + $0x2] ss:$4 sm:$0xff] %v10084_v42  ;;  %v5384_v29 = vrot.slane %v10146_v22, 6 }
 0x422   : > { %5482 = vst [vmem:[#allocation1 + $0x3] ss:$4 sm:$0xff] %v5355_v12  ;;  %v5382_v12 = vrot.slane %v10146_v22, 2 }
 0x423   : > { %5483 = vst [vmem:[#allocation1 + $0x20] ss:$4 sm:$0xff] %v5356_v56 }
 0x424   : > { %v5034_v47 = vpop.f32.mrf.mxu0  ;;  %5484 = vst [vmem:[#allocation1 + $0x21] ss:$4 sm:$0xff] %v5357_v20  ;;  %v5073_v20 = vpop.f32.mrf.mxu2 }
 0x425   : > { %v10088_v1 = vadd.f32 %v5034_v47, %v10047_v26  ;;  %v5061_v0 = vpop.f32.mrf.mxu1  ;;  %v5380_v47 = vrot.slane %v10141_v38, 4  ;;  %v10180_v60 = vadd.f32 %v5073_v20, %v10047_v26  ;;  %v5097_v20 = vpop.f32.mrf.mxu3 }
 0x426   : > { %v10152_v56 = vadd.f32 %v5061_v0, %v10047_v26 }
 0x427   : > { %5485 = vst [vmem:[#allocation1 + $0x22] ss:$4 sm:$0xff] %v10088_v1  ;;  %5663 = vperm.xlu2 %7789, %v5478_v33   ;;  %v5358_v11 = vrot.slane %v10088_v1, 2  ;;  %v5359_v4 = vrot.slane %v10088_v1, 4  ;;  %v5360_v15 = vrot.slane %v10088_v1, 6  ;;  %v5397_v27 = vrot.slane %v10180_v60, 2 }
 0x429   : > { %v5487_v46 = vld.sshfl [vmem:[#allocation1] sm:$0xff pattern:$0x73625140]  ;;  %5486 = vst [vmem:[#allocation1 + $0x23] ss:$4 sm:$0xff] %v5358_v11 }
 0x42a   : > { %5666 = vperm.xlu0 %7787, %v5487_v46   ;;  %5489 = vst [vmem:[#allocation1] ss:$4 sm:$0xff] %v5359_v4  ;;  %v5383_v46 = vrot.slane %v10146_v22, 4  ;;  %v5385_v4 = vrot.slane %v10152_v56, 2 }
 0x42c   : > { %v5037_v31 = vpop.f32.mrf.mxu0 }
 0x42d   : > { %v10099_v39 = vadd.f32 %v5037_v31, %v10047_v26  ;;  %v5064_v31 = vpop.f32.mrf.mxu1 }
 0x42f   : > { %v5361_v5 = vrot.slane %v10099_v39, 2  ;;  %v5362_v14 = vrot.slane %v10099_v39, 4  ;;  %v5363_v35 = vrot.slane %v10099_v39, 6 }
 0x430   : > { %v5488_v50 = vld.sshfl [vmem:[#allocation1 + $0x20] sm:$0xff pattern:$0x73625140] }
 0x431   : > { %v5490_v21 = vld.sshfl [vmem:[#allocation1] sm:$0xff pattern:$0x73625140]  ;;  %5491 = vst [vmem:[#allocation1 + $0x20] ss:$4 sm:$0xff] %v5360_v15  ;;  %5669 = vperm.xlu1 %7788, %v5488_v50   ;;  %v10161_v15 = vadd.f32 %v5064_v31, %v10047_v26  ;;  %v5076_v50 = vpop.f32.mrf.mxu2 }
 0x432   : > { %5492 = vst [vmem:[#allocation1 + $0x21] ss:$4 sm:$0xff] %v10099_v39  ;;  %5672 = vperm.xlu2 %7789, %v5490_v21  }
 0x433   : > { %5493 = vst [vmem:[#allocation1 + $0x22] ss:$4 sm:$0xff] %v5361_v5  ;;  %v5387_v5 = vrot.slane %v10152_v56, 6 }
 0x434   : > { %v5040_v61 = vpop.f32.mrf.mxu0  ;;  %5494 = vst [vmem:[#allocation1 + $0x23] ss:$4 sm:$0xff] %v5362_v14 }
 0x435   : > { %v10102_v16 = vadd.f32 %v5040_v61, %v10047_v26  ;;  %5496 = vst [vmem:[#allocation1] ss:$4 sm:$0xff] %v5363_v35  ;;  %v5386_v61 = vrot.slane %v10152_v56, 4  ;;  %v5067_v21 = vpop.f32.mrf.mxu1  ;;  %v5388_v35 = vrot.slane %v10161_v15, 2 }
 0x436   : > { %v10166_v24 = vadd.f32 %v5067_v21, %v10047_v26 }
 0x437   : > { %5497 = vst [vmem:[#allocation1 + $0x1] ss:$4 sm:$0xff] %v10102_v16  ;;  %v5364_v49 = vrot.slane %v10102_v16, 2  ;;  %v5365_v8 = vrot.slane %v10102_v16, 4  ;;  %v5366_v6 = vrot.slane %v10102_v16, 6 }
 0x438   : > { %v5392_v37 = vrot.slane %v10166_v24, 4 }
 0x439   : > { %5498 = vst [vmem:[#allocation1 + $0x2] ss:$4 sm:$0xff] %v5364_v49  ;;  %v5390_v49 = vrot.slane %v10161_v15, 6 }
 0x43a   : > { %5499 = vst [vmem:[#allocation1 + $0x3] ss:$4 sm:$0xff] %v5365_v8 }
 0x43b   : > { %v5495_v17 = vld.sshfl [vmem:[#allocation1 + $0x20] sm:$0xff pattern:$0x73625140] }
 0x43c   : > { %5675 = vperm.xlu0 %7787, %v5495_v17   ;;  %5500 = vst [vmem:[#allocation1 + $0x20] ss:$4 sm:$0xff] %v5366_v6  ;;  %v5389_v17 = vrot.slane %v10161_v15, 4  ;;  %v5391_v6 = vrot.slane %v10166_v24, 2 }
 0x441   : > { %v5501_v18 = vld.sshfl [vmem:[#allocation1] sm:$0xff pattern:$0x73625140] }
 0x442   : > { %5678 = vperm.xlu1 %7788, %v5501_v18   ;;  %5503 = vst [vmem:[#allocation1] ss:$4 sm:$0xff] %v10113_v40  ;;  %v5079_v18 = vpop.f32.mrf.mxu2 }
 0x443   : > { %v5502_v54 = vld.sshfl [vmem:[#allocation1 + $0x20] sm:$0xff pattern:$0x73625140]  ;;  %5504 = vst [vmem:[#allocation1 + $0x1] ss:$4 sm:$0xff] %v5367_v7  ;;  %v5393_v7 = vrot.slane %v10166_v24, 6 }
 0x444   : > { %5681 = vperm.xlu2 %7789, %v5502_v54   ;;  %5505 = vst [vmem:[#allocation1 + $0x2] ss:$4 sm:$0xff] %v5368_v55  ;;  %v10176_v54 = vadd.f32 %v5070_v41, %v10047_v26 }
 0x445   : > { %5506 = vst [vmem:[#allocation1 + $0x3] ss:$4 sm:$0xff] %v5369_v30 }
 0x446   : > { %5507 = vst [vmem:[#allocation1 + $0x20] ss:$4 sm:$0xff] %v10117_v58  ;;  %v5394_v30 = vrot.slane %v10176_v54, 2 }
 0x447   : > { %5508 = vst [vmem:[#allocation1 + $0x21] ss:$4 sm:$0xff] %v5370_v44 }
 0x448   : > { %5509 = vst [vmem:[#allocation1 + $0x22] ss:$4 sm:$0xff] %v5371_v32  ;;  %v5395_v32 = vrot.slane %v10176_v54, 4 }
 0x449   : > { %5510 = vst [vmem:[#allocation1 + $0x23] ss:$4 sm:$0xff] %v5372_v25  ;;  %v5396_v25 = vrot.slane %v10176_v54, 6 }
 0x44c   : > { %v5511_v53 = vld.sshfl [vmem:[#allocation1] sm:$0xff pattern:$0x73625140] }
 0x44d   : > { %5513 = vst [vmem:[#allocation1] ss:$4 sm:$0xff] %v10127_v45  ;;  %5684 = vperm.xlu0 %7787, %v5511_v53   ;;  %v5082_v53 = vpop.f32.mrf.mxu2 }
 0x450   : > { %v5512_v9 = vld.sshfl [vmem:[#allocation1 + $0x20] sm:$0xff pattern:$0x73625140] }
 0x451   : > { %5515 = vst [vmem:[#allocation1 + $0x20] ss:$4 sm:$0xff] %v5373_v63  ;;  %5687 = vperm.xlu1 %7788, %v5512_v9   ;;  %v5399_v9 = vrot.slane %v10180_v60, 6 }
 0x452   : > { %5516 = vst [vmem:[#allocation1 + $0x21] ss:$4 sm:$0xff] %v5374_v3  ;;  %v5398_v3 = vrot.slane %v10180_v60, 4 }
 0x453   : > { %5517 = vst [vmem:[#allocation1 + $0x22] ss:$4 sm:$0xff] %v5375_v57  ;;  %v10190_v57 = vadd.f32 %v5076_v50, %v10047_v26 }
 0x454   : > { %v5514_v51 = vld.sshfl [vmem:[#allocation1] sm:$0xff pattern:$0x73625140]  ;;  %5518 = vst [vmem:[#allocation1 + $0x23] ss:$4 sm:$0xff] %v10132_v43 }
 0x455   : > { %5520 = vst [vmem:[#allocation1] ss:$4 sm:$0xff] %v5376_v59  ;;  %5690 = vperm.xlu2 %7789, %v5514_v51   ;;  %v5400_v51 = vrot.slane %v10190_v57, 2  ;;  %v5401_v41 = vrot.slane %v10190_v57, 4 }
 0x456   : > { %5521 = vst [vmem:[#allocation1 + $0x1] ss:$4 sm:$0xff] %v5377_v19  ;;  %v5085_v19 = vpop.f32.mrf.mxu2 }
 0x457   : > { %5522 = vst [vmem:[#allocation1 + $0x2] ss:$4 sm:$0xff] %v5378_v34  ;;  %v10195_v34 = vadd.f32 %v5079_v18, %v10047_v26 }
 0x458   : > { %5523 = vst [vmem:[#allocation1 + $0x3] ss:$4 sm:$0xff] %v10141_v38 }
 0x45b   : > { %v5519_v10 = vld.sshfl [vmem:[#allocation1 + $0x20] sm:$0xff pattern:$0x73625140] }
 0x45c   : > { %5524 = vst [vmem:[#allocation1 + $0x20] ss:$4 sm:$0xff] %v5379_v62  ;;  %5693 = vperm.xlu0 %7787, %v5519_v10   ;;  %v5402_v62 = vrot.slane %v10190_v57, 6  ;;  %v5403_v10 = vrot.slane %v10195_v34, 2 }
 0x45f   : > { %v5525_v33 = vld.sshfl [vmem:[#allocation1] sm:$0xff pattern:$0x73625140] }
 0x460   : > { %5527 = vst [vmem:[#allocation1] ss:$4 sm:$0xff] %v5380_v47  ;;  %5696 = vperm.xlu1 %7788, %v5525_v33   ;;  %v5404_v47 = vrot.slane %v10195_v34, 4  ;;  %v5405_v33 = vrot.slane %v10195_v34, 6 }
 0x461   : > { %5528 = vst [vmem:[#allocation1 + $0x1] ss:$4 sm:$0xff] %v5381_v28 }
 0x462   : > { %5529 = vst [vmem:[#allocation1 + $0x2] ss:$4 sm:$0xff] %v10146_v22 }
 0x463   : > { %v5526_v11 = vld.sshfl [vmem:[#allocation1 + $0x20] sm:$0xff pattern:$0x73625140]  ;;  %5530 = vst [vmem:[#allocation1 + $0x3] ss:$4 sm:$0xff] %v5382_v12  ;;  %v10204_v12 = vadd.f32 %v5082_v53, %v10047_v26 }
 0x464   : > { %5531 = vst [vmem:[#allocation1 + $0x20] ss:$4 sm:$0xff] %v5383_v46  ;;  %5699 = vperm.xlu2 %7789, %v5526_v11   ;;  %v5088_v46 = vpop.f32.mrf.mxu2  ;;  %v10209_v11 = vadd.f32 %v5085_v19, %v10047_v26 }
 0x465   : > { %5532 = vst [vmem:[#allocation1 + $0x21] ss:$4 sm:$0xff] %v5384_v29  ;;  %v5406_v31 = vrot.slane %v10204_v12, 2  ;;  %v10215_v21 = vadd.f32 %v5088_v46, %v10047_v26 }
 0x466   : > { %5533 = vst [vmem:[#allocation1 + $0x22] ss:$4 sm:$0xff] %v10152_v56  ;;  %v5409_v50 = vrot.slane %v10209_v11, 2 }
 0x467   : > { %5534 = vst [vmem:[#allocation1 + $0x23] ss:$4 sm:$0xff] %v5385_v4  ;;  %v5407_v4 = vrot.slane %v10204_v12, 4 }
 0x46a   : > { %v5535_v23 = vld.sshfl [vmem:[#allocation1] sm:$0xff pattern:$0x73625140] }
 0x46b   : > { %5537 = vst [vmem:[#allocation1] ss:$4 sm:$0xff] %v5386_v61  ;;  %5702 = vperm.xlu0 %7787, %v5535_v23   ;;  %v5408_v61 = vrot.slane %v10204_v12, 6 }
 0x46e   : > { %v5536_v14 = vld.sshfl [vmem:[#allocation1 + $0x20] sm:$0xff pattern:$0x73625140] }
 0x46f   : > { %5539 = vst [vmem:[#allocation1 + $0x20] ss:$4 sm:$0xff] %v5387_v5  ;;  %5705 = vperm.xlu1 %7788, %v5536_v14   ;;  %v5100_v5 = vpop.f32.mrf.mxu3  ;;  %v5410_v14 = vrot.slane %v10209_v11, 4 }
 0x470   : > { %5540 = vst [vmem:[#allocation1 + $0x21] ss:$4 sm:$0xff] %v10161_v15 }
 0x471   : > { %5541 = vst [vmem:[#allocation1 + $0x22] ss:$4 sm:$0xff] %v5388_v35  ;;  %v5091_v35 = vpop.f32.mrf.mxu2 }
 0x472   : > { %v5538_v8 = vld.sshfl [vmem:[#allocation1] sm:$0xff pattern:$0x73625140]  ;;  %5542 = vst [vmem:[#allocation1 + $0x23] ss:$4 sm:$0xff] %v5389_v17  ;;  %v5411_v17 = vrot.slane %v10209_v11, 6  ;;  %v10224_v18 = vadd.f32 %v5091_v35, %v10047_v26 }
 0x473   : > { %5544 = vst [vmem:[#allocation1] ss:$4 sm:$0xff] %v5390_v49  ;;  %5708 = vperm.xlu2 %7789, %v5538_v8   ;;  %v5412_v8 = vrot.slane %v10215_v21, 2 }
 0x474   : > { %5545 = vst [vmem:[#allocation1 + $0x1] ss:$4 sm:$0xff] %v10166_v24  ;;  %v5416_v53 = vrot.slane %v10224_v18, 4 }
 0x475   : > { %5546 = vst [vmem:[#allocation1 + $0x2] ss:$4 sm:$0xff] %v5391_v6  ;;  %v5413_v6 = vrot.slane %v10215_v21, 4 }
 0x476   : > { %5547 = vst [vmem:[#allocation1 + $0x3] ss:$4 sm:$0xff] %v5392_v37 }
 0x479   : > { %v5543_v55 = vld.sshfl [vmem:[#allocation1 + $0x20] sm:$0xff pattern:$0x73625140] }
 0x47a   : > { %5548 = vst [vmem:[#allocation1 + $0x20] ss:$4 sm:$0xff] %v5393_v7  ;;  %5711 = vperm.xlu0 %7787, %v5543_v55   ;;  %v5103_v7 = vpop.f32.mrf.mxu3  ;;  %v5094_v55 = vpop.f32.mrf.mxu2 }
 0x47b   : > { %v10265_v35 = vadd.f32 %v5103_v7, %v10047_v26 }
 0x47d   : > { %v5549_v44 = vld.sshfl [vmem:[#allocation1] sm:$0xff pattern:$0x73625140]  ;;  %v5429_v7 = vrot.slane %v10265_v35, 6 }
 0x47e   : > { %5551 = vst [vmem:[#allocation1] ss:$4 sm:$0xff] %v10176_v54  ;;  %5714 = vperm.xlu1 %7788, %v5549_v44  }
 0x47f   : > { %5552 = vst [vmem:[#allocation1 + $0x1] ss:$4 sm:$0xff] %v5394_v30  ;;  %v5414_v30 = vrot.slane %v10215_v21, 6 }
 0x480   : > { %5553 = vst [vmem:[#allocation1 + $0x2] ss:$4 sm:$0xff] %v5395_v32  ;;  %v5415_v32 = vrot.slane %v10224_v18, 2 }
 0x481   : > { %v5550_v63 = vld.sshfl [vmem:[#allocation1 + $0x20] sm:$0xff pattern:$0x73625140]  ;;  %5554 = vst [vmem:[#allocation1 + $0x3] ss:$4 sm:$0xff] %v5396_v25  ;;  %v10229_v25 = vadd.f32 %v5094_v55, %v10047_v26 }
 0x482   : > { %5555 = vst [vmem:[#allocation1 + $0x20] ss:$4 sm:$0xff] %v10180_v60  ;;  %5717 = vperm.xlu2 %7789, %v5550_v63  }
 0x483   : > { %5556 = vst [vmem:[#allocation1 + $0x21] ss:$4 sm:$0xff] %v5397_v27  ;;  %v5417_v27 = vrot.slane %v10224_v18, 6  ;;  %v5420_v19 = vrot.slane %v10229_v25, 6 }
 0x484   : > { %5557 = vst [vmem:[#allocation1 + $0x22] ss:$4 sm:$0xff] %v5398_v3  ;;  %v5418_v3 = vrot.slane %v10229_v25, 2 }
 0x485   : > { %5558 = vst [vmem:[#allocation1 + $0x23] ss:$4 sm:$0xff] %v5399_v9  ;;  %v5419_v9 = vrot.slane %v10229_v25, 4 }
 0x488   : > { %v5559_v59 = vld.sshfl [vmem:[#allocation1] sm:$0xff pattern:$0x73625140] }
 0x489   : > { %5561 = vst [vmem:[#allocation1] ss:$4 sm:$0xff] %v10190_v57  ;;  %5720 = vperm.xlu0 %7787, %v5559_v59   ;;  %v5106_v59 = vpop.f32.mrf.mxu3 }
 0x48c   : > { %v5560_v0 = vld.sshfl [vmem:[#allocation1 + $0x20] sm:$0xff pattern:$0x73625140] }
 0x48d   : > { %5563 = vst [vmem:[#allocation1 + $0x20] ss:$4 sm:$0xff] %v5400_v51  ;;  %5723 = vperm.xlu1 %7788, %v5560_v0   ;;  %v10239_v51 = vadd.f32 %v5097_v20, %v10047_v26  ;;  %v10241_v0 = vpop.permute.xlu0 %5648 }
 0x48e   : > { %5564 = vst [vmem:[#allocation1 + $0x21] ss:$4 sm:$0xff] %v5401_v41 }
 0x48f   : > { %5565 = vst [vmem:[#allocation1 + $0x22] ss:$4 sm:$0xff] %v5402_v62  ;;  %v10243_v62 = vpop.permute.xlu2 %5660  ;;  %v5422_v46 = vrot.slane %v10239_v51, 4  ;;  %v5423_v20 = vrot.slane %v10239_v51, 6 }
 0x490   : > { %v5562_v28 = vld.sshfl [vmem:[#allocation1] sm:$0xff pattern:$0x73625140]  ;;  %5566 = vst [vmem:[#allocation1 + $0x23] ss:$4 sm:$0xff] %v10195_v34 }
 0x491   : > { %5568 = vst [vmem:[#allocation1] ss:$4 sm:$0xff] %v5403_v10  ;;  %5726 = vperm.xlu2 %7789, %v5562_v28   ;;  %v10245_v10 = vpop.permute.xlu1 %5654  ;;  %v10249_v28 = vadd.f32 %v5100_v5, %v10047_v26 }
 0x492   : > { %5569 = vst [vmem:[#allocation1 + $0x1] ss:$4 sm:$0xff] %v5404_v47  ;;  %v5421_v47 = vrot.slane %v10239_v51, 2 }
 0x493   : > { %5570 = vst [vmem:[#allocation1 + $0x2] ss:$4 sm:$0xff] %v5405_v33 }
 0x494   : > { %5571 = vst [vmem:[#allocation1 + $0x3] ss:$4 sm:$0xff] %v10204_v12 }
 0x497   : > { %v5567_v29 = vld.sshfl [vmem:[#allocation1 + $0x20] sm:$0xff pattern:$0x73625140]  ;;  %v10260_v5 = vpop.permute.xlu2 %5663 }
 0x498   : > { %5572 = vst [vmem:[#allocation1 + $0x20] ss:$4 sm:$0xff] %v5406_v31  ;;  %5729 = vperm.xlu0 %7787, %v5567_v29   ;;  %v5109_v31 = vpop.f32.mrf.mxu3  ;;  %v5424_v29 = vrot.slane %v10249_v28, 2 }
 0x49b   : > { %v5573_v23 = vld.sshfl [vmem:[#allocation1] sm:$0xff pattern:$0x73625140] }
 0x49c   : > { %5575 = vst [vmem:[#allocation1] ss:$4 sm:$0xff] %v5407_v4  ;;  %5732 = vperm.xlu1 %7788, %v5573_v23   ;;  %v5426_v23 = vrot.slane %v10249_v28, 6 }
 0x49d   : > { %5576 = vst [vmem:[#allocation1 + $0x1] ss:$4 sm:$0xff] %v5408_v61  ;;  %v5425_v61 = vrot.slane %v10249_v28, 4 }
 0x49e   : > { %5577 = vst [vmem:[#allocation1 + $0x2] ss:$4 sm:$0xff] %v10209_v11 }
 0x49f   : > { %v5574_v49 = vld.sshfl [vmem:[#allocation1 + $0x20] sm:$0xff pattern:$0x73625140]  ;;  %5578 = vst [vmem:[#allocation1 + $0x3] ss:$4 sm:$0xff] %v5409_v50  ;;  %v10258_v50 = vpop.permute.xlu0 %5651 }
 0x4a0   : > { %5579 = vst [vmem:[#allocation1 + $0x20] ss:$4 sm:$0xff] %v5410_v14  ;;  %5735 = vperm.xlu2 %7789, %v5574_v49   ;;  %v10262_v14 = vpop.permute.xlu1 %5657  ;;  %v5112_v49 = vpop.f32.mrf.mxu3 }
 0x4a1   : > { %5580 = vst [vmem:[#allocation1 + $0x21] ss:$4 sm:$0xff] %v5411_v17 }
 0x4a2   : > { %5581 = vst [vmem:[#allocation1 + $0x22] ss:$4 sm:$0xff] %v10215_v21 }
 0x4a3   : > { %5582 = vst [vmem:[#allocation1 + $0x23] ss:$4 sm:$0xff] %v5412_v8  ;;  %v5124_v8 = vsub.f32 0.0, %v10050_v52 }
 0x4a5   : > { %v5160_v52 = vmul.f32 1.442695, %v5124_v8 }
 0x4a6   : > { %v5583_v37 = vld.sshfl [vmem:[#allocation1] sm:$0xff pattern:$0x73625140] }
 0x4a7   : > { %5585 = vst [vmem:[#allocation1] ss:$4 sm:$0xff] %v5413_v6  ;;  %5738 = vperm.xlu0 %7787, %v5583_v37   ;;  %v5427_v6 = vrot.slane %v10265_v35, 2  ;;  %v10271_v37 = vadd.f32 %v5106_v59, %v10047_v26  ;;  %v10273_v55 = vpop.permute.xlu0 %5666  ;;  %7792 = vpow2.f32 %v5160_v52 }
 0x4a9   : > { %v5432_v59 = vrot.slane %v10271_v37, 6 }
 0x4aa   : > { %v5584_v44 = vld.sshfl [vmem:[#allocation1 + $0x20] sm:$0xff pattern:$0x73625140] }
 0x4ab   : > { %5587 = vst [vmem:[#allocation1 + $0x20] ss:$4 sm:$0xff] %v5414_v30  ;;  %5741 = vperm.xlu1 %7788, %v5584_v44   ;;  %v5428_v30 = vrot.slane %v10265_v35, 4 }
 0x4ac   : > { %5588 = vst [vmem:[#allocation1 + $0x21] ss:$4 sm:$0xff] %v10224_v18 }
 0x4ad   : > { %5589 = vst [vmem:[#allocation1 + $0x22] ss:$4 sm:$0xff] %v5415_v32  ;;  %v10276_v32 = vpop.permute.xlu2 %5672 }
 0x4ae   : > { %v5586_v63 = vld.sshfl [vmem:[#allocation1] sm:$0xff pattern:$0x73625140]  ;;  %5590 = vst [vmem:[#allocation1 + $0x23] ss:$4 sm:$0xff] %v5416_v53  ;;  %v10279_v53 = vpop.permute.xlu1 %5669 }
 0x4af   : > { %5592 = vst [vmem:[#allocation1] ss:$4 sm:$0xff] %v5417_v27  ;;  %5744 = vperm.xlu2 %7789, %v5586_v63   ;;  %v5125_v27 = vsub.f32 0.0, %v10057_v13  ;;  %v5430_v63 = vrot.slane %v10271_v37, 2 }
 0x4b0   : > { %5593 = vst [vmem:[#allocation1 + $0x1] ss:$4 sm:$0xff] %v10229_v25 }
 0x4b1   : > { %5594 = vst [vmem:[#allocation1 + $0x2] ss:$4 sm:$0xff] %v5418_v3  ;;  %v5431_v3 = vrot.slane %v10271_v37, 4  ;;  %v5162_v13 = vmul.f32 1.442695, %v5125_v27 }
 0x4b2   : > { %5595 = vst [vmem:[#allocation1 + $0x3] ss:$4 sm:$0xff] %v5419_v9 }
 0x4b3   : > { %7794 = vpow2.f32 %v5162_v13 }
 0x4b5   : > { %v5591_v41 = vld.sshfl [vmem:[#allocation1 + $0x20] sm:$0xff pattern:$0x73625140] }
 0x4b6   : > { %5596 = vst [vmem:[#allocation1 + $0x20] ss:$4 sm:$0xff] %v5420_v19  ;;  %5747 = vperm.xlu0 %7787, %v5591_v41   ;;  %v10287_v19 = vadd.f32 %v5109_v31, %v10047_v26  ;;  %v10289_v41 = vpop.permute.xlu0 %5675  ;;  %v10298_v31 = vadd.f32 %v5112_v49, %v10047_v26 }
 0x4b8   : > { %10793 = vst [vmem:[#allocation7_spill] sm:$0xff] %v10287_v19  ;;  %v5437_v27 = vrot.slane %v10298_v31, 4 }
 0x4b9   : > { %v5597_v33 = vld.sshfl [vmem:[#allocation1] sm:$0xff pattern:$0x73625140]  ;;  %10794 = vst [vmem:[#allocation8_spill] sm:$0xff] %v10298_v31 }
 0x4ba   : > { %5599 = vst [vmem:[#allocation1] ss:$4 sm:$0xff] %v10239_v51  ;;  %5750 = vperm.xlu1 %7788, %v5597_v33   ;;  %v10292_v33 = vpop.permute.xlu2 %5681 }
 0x4bb   : > { %5600 = vst [vmem:[#allocation1 + $0x1] ss:$4 sm:$0xff] %v5421_v47  ;;  %v5115_v47 = vpop.f32.mrf.mxu3 }
 0x4bc   : > { %5601 = vst [vmem:[#allocation1 + $0x2] ss:$4 sm:$0xff] %v5422_v46  ;;  %v10294_v46 = vpop.permute.xlu1 %5678  ;;  %v10309_v49 = vadd.f32 %v5115_v47, %v10047_v26 }
 0x4bd   : > { %v5598_v4 = vld.sshfl [vmem:[#allocation1 + $0x20] sm:$0xff pattern:$0x73625140]  ;;  %5602 = vst [vmem:[#allocation1 + $0x3] ss:$4 sm:$0xff] %v5423_v20  ;;  %v5433_v20 = vrot.slane %v10287_v19, 2 }
 0x4be   : > { %5603 = vst [vmem:[#allocation1 + $0x20] ss:$4 sm:$0xff] %v10249_v28  ;;  %5753 = vperm.xlu2 %7789, %v5598_v4   ;;  %v7793_v4 = vpop.eup %7792  ;;  %v5439_v47 = vrot.slane %v10309_v49, 2 }
 0x4bf   : > { %5604 = vst [vmem:[#allocation1 + $0x21] ss:$4 sm:$0xff] %v5424_v29  ;;  %v7795_v52 = vpop.eup %7794 }
 0x4c0   : > { %5605 = vst [vmem:[#allocation1 + $0x22] ss:$4 sm:$0xff] %v5425_v61  ;;  %v5126_v61 = vsub.f32 0.0, %v10064_v2  ;;  %v5233_v13 = vadd.f32 1.0, %v7795_v52 }
 0x4c1   : > { %5606 = vst [vmem:[#allocation1 + $0x23] ss:$4 sm:$0xff] %v5426_v23  ;;  %v5434_v23 = vrot.slane %v10287_v19, 4 }
 0x4c2   : > { %10795 = vst [vmem:[#allocation9_spill] sm:$0xff] %v10309_v49  ;;  %v5164_v2 = vmul.f32 1.442695, %v5126_v61 }
 0x4c4   : > { %v5607_v17 = vld.sshfl [vmem:[#allocation1] sm:$0xff pattern:$0x73625140] }
 0x4c5   : > { %5609 = vst [vmem:[#allocation1] ss:$4 sm:$0xff] %v10265_v35  ;;  %5756 = vperm.xlu0 %7787, %v5607_v17   ;;  %v5435_v17 = vrot.slane %v10287_v19, 6 }
 0x4c8   : > { %v5608_v44 = vld.sshfl [vmem:[#allocation1 + $0x20] sm:$0xff pattern:$0x73625140] }
 0x4c9   : > { %5611 = vst [vmem:[#allocation1 + $0x20] ss:$4 sm:$0xff] %v5427_v6  ;;  %5759 = vperm.xlu1 %7788, %v5608_v44   ;;  %v10303_v6 = vpop.permute.xlu0 %5684  ;;  %v5232_v44 = vadd.f32 1.0, %v7793_v4 }
 0x4ca   : > { %5612 = vst [vmem:[#allocation1 + $0x21] ss:$4 sm:$0xff] %v5428_v30  ;;  %v10305_v30 = vpop.permute.xlu2 %5690 }
 0x4cb   : > { %5613 = vst [vmem:[#allocation1 + $0x22] ss:$4 sm:$0xff] %v5429_v7  ;;  %v5436_v7 = vrot.slane %v10298_v31, 2  ;;  %7796 = vrcp.f32 %v5232_v44 }
 0x4cc   : > { %v5610_v9 = vld.sshfl [vmem:[#allocation1] sm:$0xff pattern:$0x73625140]  ;;  %5614 = vst [vmem:[#allocation1 + $0x23] ss:$4 sm:$0xff] %v10271_v37  ;;  %7798 = vpow2.f32 %v5164_v2 }
 0x4cd   : > { %5616 = vst [vmem:[#allocation1] ss:$4 sm:$0xff] %v5430_v63  ;;  %5762 = vperm.xlu2 %7789, %v5610_v9   ;;  %v5118_v63 = vpop.f32.mrf.mxu3  ;;  %7800 = vrcp.f32 %v5233_v13 }
 0x4ce   : > { %5617 = vst [vmem:[#allocation1 + $0x1] ss:$4 sm:$0xff] %v5431_v3  ;;  %v5438_v3 = vrot.slane %v10298_v31, 6  ;;  %v10327_v44 = vadd.f32 %v5118_v63, %v10047_v26 }
 0x4cf   : > { %5618 = vst [vmem:[#allocation1 + $0x2] ss:$4 sm:$0xff] %v5432_v59  ;;  %v10314_v59 = vpop.permute.xlu1 %5687 }
 0x4d0   : > { %5619 = vst [vmem:[#allocation1 + $0x3] ss:$4 sm:$0xff] %v10287_v19 }
 0x4d1   : > { %v10319_v4 = vpop.permute.xlu0 %5693  ;;  %10796 = vst [vmem:[#allocation10_spill] sm:$0xff] %v10327_v44 }
 0x4d3   : > { %v5615_v29 = vld.sshfl [vmem:[#allocation1 + $0x20] sm:$0xff pattern:$0x73625140] }
 0x4d4   : > { %5620 = vst [vmem:[#allocation1 + $0x20] ss:$4 sm:$0xff] %v5433_v20  ;;  %5765 = vperm.xlu0 %7787, %v5615_v29   ;;  %v5791_v20 = vlaneseq  ;;  %v5440_v29 = vrot.slane %v10309_v49, 4 }
 0x4d5   : > { %v5121_v52 = vpop.f32.mrf.mxu3 }
 0x4d6   : > { %v10331_v2 = vand.u32 127, %v5791_v20 }
 0x4d7   : > { %v5621_v8 = vld.sshfl [vmem:[#allocation1] sm:$0xff pattern:$0x73625140] }
 0x4d8   : > { %5623 = vst [vmem:[#allocation1] ss:$4 sm:$0xff] %v5434_v23  ;;  %5768 = vperm.xlu1 %7788, %v5621_v8   ;;  %v10321_v23 = vpop.permute.xlu2 %5699  ;;  %v5127_v8 = vsub.f32 0.0, %v10071_v48  ;;  %v5793_v20 = vperm.slane %v10241_v0, %v10331_v2 }
 0x4d9   : > { %5624 = vst [vmem:[#allocation1 + $0x1] ss:$4 sm:$0xff] %v5435_v17  ;;  %v10323_v17 = vpop.eup %7796 }
 0x4da   : > { %5625 = vst [vmem:[#allocation1 + $0x2] ss:$4 sm:$0xff] %v10298_v31  ;;  %v10343_v31 = vadd.f32 %v5121_v52, %v10047_v26  ;;  %v10354_v26 = vadd.s32 4294967280, %v10331_v2  ;;  %v5802_v52 = vperm.slane %v10262_v14, %v10331_v2 }
 0x4db   : > { %v5622_v9 = vld.sshfl [vmem:[#allocation1 + $0x20] sm:$0xff pattern:$0x73625140]  ;;  %5626 = vst [vmem:[#allocation1 + $0x3] ss:$4 sm:$0xff] %v5436_v7  ;;  %v10329_v7 = vpop.permute.xlu1 %5696 }
 0x4dc   : > { %5627 = vst [vmem:[#allocation1 + $0x20] ss:$4 sm:$0xff] %v5437_v27  ;;  %5771 = vperm.xlu2 %7789, %v5622_v9   ;;  %v7799_v27 = vpop.eup %7798  ;;  %v5443_v9 = vrot.slane %v10327_v44, 4 }
 0x4dd   : > { %5628 = vst [vmem:[#allocation1 + $0x21] ss:$4 sm:$0xff] %v5438_v3  ;;  %v5441_v3 = vrot.slane %v10309_v49, 6  ;;  %v10338_v48 = vpop.eup %7800 }
 0x4de   : > { %5629 = vst [vmem:[#allocation1 + $0x22] ss:$4 sm:$0xff] %v10309_v49  ;;  %v10346_v49 = vadd.f32 1.0, %v7799_v27  ;;  %v5128_v27 = vsub.f32 0.0, %v10078_v36 }
 0x4df   : > { %5630 = vst [vmem:[#allocation1 + $0x23] ss:$4 sm:$0xff] %v5439_v47  ;;  %v10336_v47 = vadd.s32 4294967288, %v10331_v2 }
 0x4e0   : > { %v10361_v63 = vpop.permute.xlu2 %5708 }
 0x4e1   : > { %v5795_v19 = vperm.slane %v10258_v50, %v10336_v47  ;;  %v5445_v50 = vrot.slane %v10343_v31, 2  ;;  %v5808_v14 = vperm.slane %v10279_v53, %v10336_v47  ;;  %v5807_v53 = vperm.slane %v10273_v55, %v10331_v2 }
 0x4e2   : > { %v5631_v61 = vld.sshfl [vmem:[#allocation1] sm:$0xff pattern:$0x73625140]  ;;  %v5813_v36 = vperm.slane %v10294_v46, %v10336_v47  ;;  %v5812_v46 = vperm.slane %v10289_v41, %v10331_v2  ;;  %v5822_v41 = vperm.slane %v10319_v4, %v10331_v2 }
 0x4e3   : > { %5633 = vst [vmem:[#allocation1] ss:$4 sm:$0xff] %v5440_v29  ;;  %5774 = vperm.xlu0 %7787, %v5631_v61   ;;  %v5166_v29 = vmul.f32 1.442695, %v5127_v8  ;;  %v5442_v61 = vrot.slane %v10327_v44, 2  ;;  %v5444_v8 = vrot.slane %v10327_v44, 6  ;;  %v5797_v0 = vsel %vm5796_vm6, %v5795_v19, %v5793_v20 }
 0x4e4   : > { %v5818_v19 = vperm.slane %v10314_v59, %v10336_v47  ;;  %v5810_v20 = vperm.slane %v10276_v32, %v10354_v26  ;;  %v5809_v55 = vsel %vm5796_vm6, %v5808_v14, %v5807_v53  ;;  %v5814_v14 = vsel %vm5796_vm6, %v5813_v36, %v5812_v46 }
 0x4e5   : > { %7802 = vpow2.f32 %v5166_v29  ;;  %v5799_v29 = vperm.slane %v10245_v10, %v10354_v26  ;;  %v5817_v10 = vperm.slane %v10303_v6, %v10331_v2  ;;  %v5168_v6 = vmul.f32 1.442695, %v5128_v27 }
 0x4e6   : > { %v5632_v13 = vld.sshfl [vmem:[#allocation1 + $0x20] sm:$0xff pattern:$0x73625140]  ;;  %v10797_v46 = vrot.slane %v10323_v17, 2 }
 0x4e7   : > { %5635 = vst [vmem:[#allocation1 + $0x20] ss:$4 sm:$0xff] %v5441_v3  ;;  %5777 = vperm.xlu1 %7788, %v5632_v13   ;;  %v5703_v3 = vpop.permute.xlu0 %5702  ;;  %v5801_v32 = vsel %vm5800_vm0, %v5799_v29, %v5797_v0  ;;  %v5819_v53 = vsel %vm5796_vm6, %v5818_v19, %v5817_v10  ;;  %v5820_v0 = vperm.slane %v10305_v30, %v10354_v26  ;;  %7804 = vpow2.f32 %v5168_v6 }
 0x4e8   : > { %5636 = vst [vmem:[#allocation1 + $0x21] ss:$4 sm:$0xff] %v10327_v44  ;;  %v5447_v44 = vrot.slane %v10343_v31, 6  ;;  %v5827_v59 = vperm.slane %v5703_v3, %v10331_v2  ;;  %v5129_v3 = vsub.f32 0.0, %v10084_v42  ;;  %v5718_v36 = vpop.permute.xlu2 %5717  ;;  %v5830_v30 = vperm.slane %v10361_v63, %v10354_v26 }
 0x4e9   : > { %5637 = vst [vmem:[#allocation1 + $0x22] ss:$4 sm:$0xff] %v5442_v61  ;;  %v5803_v61 = vperm.slane %v10243_v62, %v10336_v47  ;;  %v5821_v19 = vsel %vm5800_vm0, %v5820_v0, %v5819_v53  ;;  %v5943_v53 = vrot.slane %v10338_v48, 4  ;;  %7806 = vrcp.f32 %v10346_v49 }
 0x4ea   : > { %v5634_v13 = vld.sshfl [vmem:[#allocation1] sm:$0xff pattern:$0x73625140]  ;;  %5638 = vst [vmem:[#allocation1 + $0x23] ss:$4 sm:$0xff] %v5443_v9  ;;  %v5446_v9 = vrot.slane %v10343_v31, 4 }
 0x4eb   : > { %5640 = vst [vmem:[#allocation1] ss:$4 sm:$0xff] %v5444_v8  ;;  %5780 = vperm.xlu2 %7789, %v5634_v13   ;;  %v5804_v62 = vsel %vm5796_vm6, %v5803_v61, %v5802_v52  ;;  %v5706_v8 = vpop.permute.xlu1 %5705  ;;  %v5805_v13 = vperm.slane %v10260_v5, %v10354_v26  ;;  %v5823_v52 = vperm.slane %v10329_v7, %v10336_v47  ;;  %v7803_v61 = vpop.eup %7802  ;;  %v10800_v0 = vrot.slane %v10338_v48, 2 }
 0x4ec   : > { %5641 = vst [vmem:[#allocation1 + $0x1] ss:$4 sm:$0xff] %v10343_v31  ;;  %v5815_v7 = vperm.slane %v10292_v33, %v10354_v26  ;;  %v5825_v33 = vperm.slane %v10321_v23, %v10354_v26 }
 0x4ed   : > { %5642 = vst [vmem:[#allocation1 + $0x2] ss:$4 sm:$0xff] %v5445_v50  ;;  %v5806_v5 = vsel %vm5800_vm0, %v5805_v13, %v5804_v62  ;;  %v5828_v50 = vperm.slane %v5706_v8, %v10336_v47  ;;  %v5811_v62 = vsel %vm5800_vm0, %v5810_v20, %v5809_v55  ;;  %v5824_v29 = vsel %vm5796_vm6, %v5823_v52, %v5822_v41  ;;  %v7805_v49 = vpop.eup %7804 }
 0x4ee   : > { %5643 = vst [vmem:[#allocation1 + $0x3] ss:$4 sm:$0xff] %v5446_v9  ;;  %v5878_v27 = vsel %vm5877_vm1, %v5806_v5, %v5801_v32  ;;  %v5826_v20 = vsel %vm5800_vm0, %v5825_v33, %v5824_v29  ;;  %v5835_v5 = vperm.slane %v5718_v36, %v10354_v26  ;;  %v10799_v41 = vrot.slane %v10323_v17, 6 }
 0x4ef   : > { %v5712_v4 = vpop.permute.xlu0 %5711  ;;  %v5829_v8 = vsel %vm5796_vm6, %v5828_v50, %v5827_v59  ;;  %v5880_v42 = vsel %vm5879_vm2, %v5811_v62, %v5878_v27  ;;  %v5235_v50 = vadd.f32 1.0, %v7803_v61  ;;  %v10798_v59 = vrot.slane %v10323_v17, 4 }
 0x4f0   : > { %v5832_v23 = vperm.slane %v5712_v4, %v10331_v2  ;;  %v5831_v63 = vsel %vm5800_vm0, %v5830_v30, %v5829_v8  ;;  %v5170_v61 = vmul.f32 1.442695, %v5129_v3  ;;  %v5944_v27 = vrot.slane %v10338_v48, 6  ;;  %v7807_v4 = vpop.eup %7806 }
 0x4f1   : > { %v5639_v9 = vld.sshfl [vmem:[#allocation1 + $0x20] sm:$0xff pattern:$0x73625140]  ;;  %7808 = vrcp.f32 %v5235_v50  ;;  %v5236_v33 = vadd.f32 1.0, %v7805_v49  ;;  %v5945_v36 = vrot.slane %v7807_v4, 2  ;;  %v5946_v8 = vrot.slane %v7807_v4, 4 }
 0x4f2   : > { %5644 = vst [vmem:[#allocation1 + $0x20] ss:$4 sm:$0xff] %v5447_v44  ;;  %5783 = vperm.xlu0 %7787, %v5639_v9   ;;  %v5816_v44 = vsel %vm5800_vm0, %v5815_v7, %v5814_v14  ;;  %7810 = vpow2.f32 %v5170_v61 }
 0x4f3   : > { %v5715_v10 = vpop.permute.xlu1 %5714  ;;  %v5882_v52 = vsel %vm5881_vm3, %v5816_v44, %v5880_v42  ;;  %v5947_v42 = vrot.slane %v7807_v4, 6 }
 0x4f4   : > { %v5833_v55 = vperm.slane %v5715_v10, %v10336_v47  ;;  %v5884_v9 = vsel %vm5883_vm4, %v5821_v19, %v5882_v52  ;;  %v5131_v19 = vsub.f32 0.0, %v10099_v39 }
 0x4f5   : > { %v5645_v13 = vld.sshfl [vmem:[#allocation1] sm:$0xff pattern:$0x73625140]  ;;  %v5886_v7 = vsel %vm5885_vm5, %v5826_v20, %v5884_v9 }
 0x4f6   : > { %6047 = vst [vmem:[#allocation1] ss:$4 sm:$0xff] %v10323_v17  ;;  %5786 = vperm.xlu1 %7788, %v5645_v13   ;;  %v5834_v32 = vsel %vm5796_vm6, %v5833_v55, %v5832_v23  ;;  %v5888_v6 = vsel %vm5887_vm7, %v5831_v63, %v5886_v7  ;;  %v5130_v17 = vsub.f32 0.0, %v10088_v1  ;;  %v5174_v52 = vmul.f32 1.442695, %v5131_v19 }
 0x4f7   : > { %6049 = vst [vmem:[#allocation1 + $0x1] ss:$4 sm:$0xff] %v10797_v46  ;;  %v5836_v62 = vsel %vm5800_vm0, %v5835_v5, %v5834_v32  ;;  %v7809_v1 = vpop.eup %7808  ;;  %v5132_v5 = vsub.f32 0.0, %v10102_v16 }
 0x4f8   : > { %6051 = vst [vmem:[#allocation1 + $0x2] ss:$4 sm:$0xff] %v10798_v59  ;;  %v5890_v29 = vsel %vm5889_vm8, %v5836_v62, %v5888_v6  ;;  %v5172_v3 = vmul.f32 1.442695, %v5130_v17  ;;  %v5948_v30 = vrot.slane %v7809_v1, 2  ;;  %v5949_v20 = vrot.slane %v7809_v1, 4 }
 0x4f9   : > { %v5646_v14 = vld.sshfl [vmem:[#allocation1 + $0x20] sm:$0xff pattern:$0x73625140]  ;;  %6053 = vst [vmem:[#allocation1 + $0x3] ss:$4 sm:$0xff] %v10799_v41  ;;  %v5950_v46 = vrot.slane %v7809_v1, 6 }
 0x4fa   : > { %6055 = vst [vmem:[#allocation1 + $0x20] ss:$4 sm:$0xff] %v10338_v48  ;;  %5789 = vperm.xlu2 %7789, %v5646_v14   ;;  %7812 = vpow2.f32 %v5172_v3  ;;  %v7811_v48 = vpop.eup %7810  ;;  %v5176_v50 = vmul.f32 1.442695, %v5132_v5  ;;  %v5133_v14 = vsub.f32 0.0, %v10113_v40 }
 0x4fb   : > { %6057 = vst [vmem:[#allocation1 + $0x21] ss:$4 sm:$0xff] %v10800_v0  ;;  %7814 = vrcp.f32 %v5236_v33  ;;  %v5237_v10 = vadd.f32 1.0, %v7811_v48  ;;  %v5135_v48 = vsub.f32 0.0, %v10127_v45 }
 0x4fc   : > { %6059 = vst [vmem:[#allocation1 + $0x22] ss:$4 sm:$0xff] %v5943_v53  ;;  %v5178_v53 = vmul.f32 1.442695, %v5133_v14 }
 0x4fd   : > { %6061 = vst [vmem:[#allocation1 + $0x23] ss:$4 sm:$0xff] %v5944_v27  ;;  %7816 = vrcp.f32 %v5237_v10  ;;  %v5134_v27 = vsub.f32 0.0, %v10117_v58 }
 0x4fe   : > { %5901 = vst.msk [vmem:[%s8095_s11] sm:$0xff] %vm5900_vm9, %v5890_v29  ;;  %7818 = vpow2.f32 %v5174_v52 }
 0x500   : > { %v6062_v44 = vld.sshfl [vmem:[#allocation1] sm:$0xff pattern:$0x73625140]  ;;  %v7813_v55 = vpop.eup %7812 }
 0x501   : > { %6064 = vst [vmem:[#allocation1] ss:$4 sm:$0xff] %v7807_v4  ;;  %6247 = vperm.xlu0 %7787, %v6062_v44   ;;  %v7815_v63 = vpop.eup %7814  ;;  %v5238_v39 = vadd.f32 1.0, %v7813_v55  ;;  %v5180_v44 = vmul.f32 1.442695, %v5134_v27  ;;  %v5136_v55 = vsub.f32 0.0, %v10132_v43  ;;  %v10455_v43 = vpop.permute.xlu2 %5726 }
 0x502   : > { %v5951_v59 = vrot.slane %v7815_v63, 2  ;;  %v5953_v16 = vrot.slane %v7815_v63, 6  ;;  %v5952_v61 = vrot.slane %v7815_v63, 4 }
 0x503   : > { %7820 = vrcp.f32 %v5238_v39  ;;  %v7817_v32 = vpop.eup %7816  ;;  %v10451_v39 = vpop.permute.xlu0 %5720 }
 0x504   : > { %v6063_v13 = vld.sshfl [vmem:[#allocation1 + $0x20] sm:$0xff pattern:$0x73625140]  ;;  %7822 = vpow2.f32 %v5176_v50  ;;  %v7819_v41 = vpop.eup %7818  ;;  %v5954_v62 = vrot.slane %v7817_v32, 2  ;;  %v5955_v17 = vrot.slane %v7817_v32, 4  ;;  %v5956_v49 = vrot.slane %v7817_v32, 6 }
 0x505   : > { %6066 = vst [vmem:[#allocation1 + $0x20] ss:$4 sm:$0xff] %v5945_v36  ;;  %6250 = vperm.xlu1 %7788, %v6063_v13   ;;  %v5239_v0 = vadd.f32 1.0, %v7819_v41  ;;  %v5184_v50 = vmul.f32 1.442695, %v5136_v55 }
 0x506   : > { %6067 = vst [vmem:[#allocation1 + $0x21] ss:$4 sm:$0xff] %v5946_v8 }
 0x507   : > { %6068 = vst [vmem:[#allocation1 + $0x22] ss:$4 sm:$0xff] %v5947_v42  ;;  %7824 = vrcp.f32 %v5239_v0 }
 0x508   : > { %v6065_v23 = vld.sshfl [vmem:[#allocation1] sm:$0xff pattern:$0x73625140]  ;;  %6069 = vst [vmem:[#allocation1 + $0x23] ss:$4 sm:$0xff] %v7809_v1  ;;  %7826 = vpow2.f32 %v5178_v53 }
 0x509   : > { %6071 = vst [vmem:[#allocation1] ss:$4 sm:$0xff] %v5948_v30  ;;  %6253 = vperm.xlu2 %7789, %v6065_v23   ;;  %v7821_v6 = vpop.eup %7820  ;;  %v5182_v23 = vmul.f32 1.442695, %v5135_v48 }
 0x50a   : > { %6072 = vst [vmem:[#allocation1 + $0x1] ss:$4 sm:$0xff] %v5949_v20  ;;  %v7823_v29 = vpop.eup %7822  ;;  %v5957_v40 = vrot.slane %v7821_v6, 2  ;;  %v5958_v33 = vrot.slane %v7821_v6, 4  ;;  %v5959_v8 = vrot.slane %v7821_v6, 6 }
 0x50b   : > { %6073 = vst [vmem:[#allocation1 + $0x2] ss:$4 sm:$0xff] %v5950_v46  ;;  %v5240_v4 = vadd.f32 1.0, %v7823_v29 }
 0x50c   : > { %6074 = vst [vmem:[#allocation1 + $0x3] ss:$4 sm:$0xff] %v7815_v63 }
 0x50d   : > { %7828 = vrcp.f32 %v5240_v4  ;;  %v7825_v1 = vpop.eup %7824 }
 0x50e   : > { %7830 = vpow2.f32 %v5180_v44  ;;  %v7827_v36 = vpop.eup %7826  ;;  %v5960_v42 = vrot.slane %v7825_v1, 2  ;;  %v5961_v10 = vrot.slane %v7825_v1, 4  ;;  %v5962_v46 = vrot.slane %v7825_v1, 6 }
 0x50f   : > { %v6070_v9 = vld.sshfl [vmem:[#allocation1 + $0x20] sm:$0xff pattern:$0x73625140]  ;;  %v5241_v30 = vadd.f32 1.0, %v7827_v36  ;;  %v5139_v36 = vsub.f32 0.0, %v10152_v56 }
 0x510   : > { %6075 = vst [vmem:[#allocation1 + $0x20] ss:$4 sm:$0xff] %v5951_v59  ;;  %6256 = vperm.xlu0 %7787, %v6070_v9   ;;  %v10453_v59 = vpop.permute.xlu1 %5723  ;;  %v5137_v9 = vsub.f32 0.0, %v10141_v38 }
 0x511   : > { %7832 = vrcp.f32 %v5241_v30 }
 0x512   : > { %7834 = vpow2.f32 %v5182_v23 }
 0x513   : > { %v6076_v7 = vld.sshfl [vmem:[#allocation1] sm:$0xff pattern:$0x73625140]  ;;  %v7829_v19 = vpop.eup %7828 }
 0x514   : > { %6079 = vst [vmem:[#allocation1 + $0x1] ss:$4 sm:$0xff] %v5953_v16  ;;  %6259 = vperm.xlu1 %7788, %v6076_v7   ;;  %v7831_v20 = vpop.eup %7830  ;;  %v5963_v5 = vrot.slane %v7829_v19, 2  ;;  %v5964_v63 = vrot.slane %v7829_v19, 4  ;;  %v5186_v7 = vmul.f32 1.442695, %v5137_v9 }
 0x515   : > { %6080 = vst [vmem:[#allocation1 + $0x2] ss:$4 sm:$0xff] %v7817_v32  ;;  %v5242_v45 = vadd.f32 1.0, %v7831_v20  ;;  %v5965_v32 = vrot.slane %v7829_v19, 6 }
 0x516   : > { %6081 = vst [vmem:[#allocation1 + $0x3] ss:$4 sm:$0xff] %v5954_v62 }
 0x517   : > { %v6077_v3 = vld.sshfl [vmem:[#allocation1 + $0x20] sm:$0xff pattern:$0x73625140]  ;;  %6078 = vst [vmem:[#allocation1] ss:$4 sm:$0xff] %v5952_v61  ;;  %7836 = vrcp.f32 %v5242_v45  ;;  %v7833_v16 = vpop.eup %7832  ;;  %v5142_v45 = vsub.f32 0.0, %v10176_v54 }
 0x518   : > { %6082 = vst [vmem:[#allocation1 + $0x20] ss:$4 sm:$0xff] %v5955_v17  ;;  %6262 = vperm.xlu2 %7789, %v6077_v3   ;;  %7838 = vpow2.f32 %v5184_v50  ;;  %v7835_v41 = vpop.eup %7834  ;;  %v5966_v62 = vrot.slane %v7833_v16, 2  ;;  %v10458_v17 = vpop.permute.xlu0 %5729  ;;  %v5968_v29 = vrot.slane %v7833_v16, 6 }
 0x519   : > { %6083 = vst [vmem:[#allocation1 + $0x21] ss:$4 sm:$0xff] %v5956_v49  ;;  %v5243_v27 = vadd.f32 1.0, %v7835_v41  ;;  %v10460_v0 = vpop.permute.xlu1 %5732  ;;  %v5138_v49 = vsub.f32 0.0, %v10146_v22  ;;  %7840 = vpow2.f32 %v5186_v7  ;;  %v5196_v54 = vmul.f32 1.442695, %v5142_v45 }
 0x51a   : > { %6084 = vst [vmem:[#allocation1 + $0x22] ss:$4 sm:$0xff] %v7821_v6  ;;  %v5967_v6 = vrot.slane %v7833_v16, 4 }
 0x51b   : > { %6085 = vst [vmem:[#allocation1 + $0x23] ss:$4 sm:$0xff] %v5957_v40  ;;  %v10463_v40 = vpop.permute.xlu2 %5735  ;;  %7842 = vrcp.f32 %v5243_v27 }
 0x51d   : > { %v7837_v61 = vpop.eup %7836 }
 0x51e   : > { %v6086_v58 = vld.sshfl [vmem:[#allocation1] sm:$0xff pattern:$0x73625140]  ;;  %v7839_v38 = vpop.eup %7838  ;;  %v5969_v3 = vrot.slane %v7837_v61, 2  ;;  %v5970_v44 = vrot.slane %v7837_v61, 4 }
 0x51f   : > { %6265 = vperm.xlu0 %7787, %v6086_v58   ;;  %6088 = vst [vmem:[#allocation1] ss:$4 sm:$0xff] %v5958_v33  ;;  %v5244_v33 = vadd.f32 1.0, %v7839_v38  ;;  %v5971_v58 = vrot.slane %v7837_v61, 6  ;;  %v7841_v22 = vpop.eup %7840 }
 0x520   : > { %v10466_v48 = vpop.permute.xlu0 %5738  ;;  %v5245_v30 = vadd.f32 1.0, %v7841_v22 }
 0x521   : > { %7844 = vrcp.f32 %v5244_v33 }
 0x522   : > { %v6087_v13 = vld.sshfl [vmem:[#allocation1 + $0x20] sm:$0xff pattern:$0x73625140] }
 0x523   : > { %6268 = vperm.xlu1 %7788, %v6087_v13   ;;  %6090 = vst [vmem:[#allocation1 + $0x20] ss:$4 sm:$0xff] %v5959_v8  ;;  %v5190_v8 = vmul.f32 1.442695, %v5139_v36  ;;  %v7843_v13 = vpop.eup %7842 }
 0x524   : > { %6091 = vst [vmem:[#allocation1 + $0x21] ss:$4 sm:$0xff] %v7825_v1  ;;  %v5188_v1 = vmul.f32 1.442695, %v5138_v49  ;;  %v5972_v20 = vrot.slane %v7843_v13, 2  ;;  %v5973_v23 = vrot.slane %v7843_v13, 4 }
 0x525   : > { %6092 = vst [vmem:[#allocation1 + $0x22] ss:$4 sm:$0xff] %v5960_v42  ;;  %v10468_v42 = vpop.permute.xlu1 %5741  ;;  %v5143_v49 = vsub.f32 0.0, %v10180_v60 }
 0x526   : > { %6093 = vst [vmem:[#allocation1 + $0x23] ss:$4 sm:$0xff] %v5961_v10  ;;  %v6089_v52 = vld.sshfl [vmem:[#allocation1] sm:$0xff pattern:$0x73625140]  ;;  %7846 = vpow2.f32 %v5188_v1  ;;  %v10470_v10 = vpop.permute.xlu2 %5744 }
 0x527   : > { %6271 = vperm.xlu2 %7789, %v6089_v52   ;;  %6095 = vst [vmem:[#allocation1] ss:$4 sm:$0xff] %v5962_v46  ;;  %7848 = vpow2.f32 %v5190_v8  ;;  %v7845_v56 = vpop.eup %7844  ;;  %v5974_v52 = vrot.slane %v7843_v13, 6  ;;  %v5198_v8 = vmul.f32 1.442695, %v5143_v49 }
 0x528   : > { %6096 = vst [vmem:[#allocation1 + $0x1] ss:$4 sm:$0xff] %v7829_v19  ;;  %7850 = vrcp.f32 %v5245_v30  ;;  %v5976_v50 = vrot.slane %v7845_v56, 4  ;;  %v5977_v7 = vrot.slane %v7845_v56, 6 }
 0x529   : > { %6097 = vst [vmem:[#allocation1 + $0x2] ss:$4 sm:$0xff] %v5963_v5  ;;  %v5140_v5 = vsub.f32 0.0, %v10161_v15  ;;  %v5141_v15 = vsub.f32 0.0, %v10166_v24 }
 0x52a   : > { %6098 = vst [vmem:[#allocation1 + $0x3] ss:$4 sm:$0xff] %v5964_v63  ;;  %v5975_v63 = vrot.slane %v7845_v56, 2 }
 0x52b   : > { %v5194_v27 = vmul.f32 1.442695, %v5141_v15 }
 0x52c   : > { %v7847_v46 = vpop.eup %7846 }
 0x52d   : > { %v6094_v14 = vld.sshfl [vmem:[#allocation1 + $0x20] sm:$0xff pattern:$0x73625140]  ;;  %v5246_v9 = vadd.f32 1.0, %v7847_v46  ;;  %v7849_v41 = vpop.eup %7848 }
 0x52e   : > { %6274 = vperm.xlu0 %7787, %v6094_v14   ;;  %6099 = vst [vmem:[#allocation1 + $0x20] ss:$4 sm:$0xff] %v5965_v32  ;;  %v10474_v32 = vpop.permute.xlu0 %5747 }
 0x52f   : > { %7852 = vrcp.f32 %v5246_v9 }
 0x531   : > { %v6100_v53 = vld.sshfl [vmem:[#allocation1] sm:$0xff pattern:$0x73625140] }
 0x532   : > { %6277 = vperm.xlu1 %7788, %v6100_v53   ;;  %6102 = vst [vmem:[#allocation1] ss:$4 sm:$0xff] %v7833_v16  ;;  %v10476_v16 = vpop.permute.xlu1 %5750  ;;  %v7851_v53 = vpop.eup %7850 }
 0x533   : > { %6103 = vst [vmem:[#allocation1 + $0x1] ss:$4 sm:$0xff] %v5966_v62  ;;  %v5192_v62 = vmul.f32 1.442695, %v5140_v5  ;;  %v5978_v38 = vrot.slane %v7851_v53, 2 }
 0x534   : > { %6104 = vst [vmem:[#allocation1 + $0x2] ss:$4 sm:$0xff] %v5967_v6  ;;  %v5247_v6 = vadd.f32 1.0, %v7849_v41  ;;  %v5144_v41 = vsub.f32 0.0, %v10190_v57 }
 0x535   : > { %v6101_v4 = vld.sshfl [vmem:[#allocation1 + $0x20] sm:$0xff pattern:$0x73625140]  ;;  %6105 = vst [vmem:[#allocation1 + $0x3] ss:$4 sm:$0xff] %v5968_v29  ;;  %7854 = vpow2.f32 %v5192_v62  ;;  %v5145_v62 = vsub.f32 0.0, %v10195_v34 }
 0x536   : > { %6280 = vperm.xlu2 %7789, %v6101_v4   ;;  %6106 = vst [vmem:[#allocation1 + $0x20] ss:$4 sm:$0xff] %v7837_v61  ;;  %v10479_v61 = vpop.permute.xlu2 %5753  ;;  %7856 = vpow2.f32 %v5196_v54  ;;  %v5979_v4 = vrot.slane %v7851_v53, 4 }
 0x537   : > { %6107 = vst [vmem:[#allocation1 + $0x21] ss:$4 sm:$0xff] %v5969_v3  ;;  %7858 = vrcp.f32 %v5247_v6  ;;  %v10481_v24 = vpop.permute.xlu0 %5756  ;;  %v7853_v3 = vpop.eup %7852 }
 0x538   : > { %6108 = vst [vmem:[#allocation1 + $0x22] ss:$4 sm:$0xff] %v5970_v44  ;;  %7860 = vpow2.f32 %v5194_v27  ;;  %v5982_v30 = vrot.slane %v7853_v3, 4 }
 0x539   : > { %6109 = vst [vmem:[#allocation1 + $0x23] ss:$4 sm:$0xff] %v5971_v58  ;;  %v5980_v58 = vrot.slane %v7851_v53, 6  ;;  %7862 = vpow2.f32 %v5198_v8 }
 0x53b   : > { %v10484_v44 = vpop.permute.xlu1 %5759  ;;  %v7855_v33 = vpop.eup %7854 }
 0x53c   : > { %v6110_v19 = vld.sshfl [vmem:[#allocation1] sm:$0xff pattern:$0x73625140]  ;;  %v7857_v22 = vpop.eup %7856 }
 0x53d   : > { %6283 = vperm.xlu0 %7787, %v6110_v19   ;;  %6112 = vst [vmem:[#allocation1] ss:$4 sm:$0xff] %v7843_v13  ;;  %v5981_v13 = vrot.slane %v7853_v3, 2  ;;  %v7859_v19 = vpop.eup %7858 }
 0x53e   : > { %v10486_v1 = vpop.permute.xlu2 %5762  ;;  %v7861_v60 = vpop.eup %7860  ;;  %v5984_v46 = vrot.slane %v7859_v19, 2  ;;  %v5986_v15 = vrot.slane %v7859_v19, 6 }
 0x540   : > { %v6111_v55 = vld.sshfl [vmem:[#allocation1 + $0x20] sm:$0xff pattern:$0x73625140] }
 0x541   : > { %6286 = vperm.xlu1 %7788, %v6111_v55   ;;  %6114 = vst [vmem:[#allocation1 + $0x20] ss:$4 sm:$0xff] %v5972_v20  ;;  %v5248_v20 = vadd.f32 1.0, %v7855_v33  ;;  %v5250_v55 = vadd.f32 1.0, %v7857_v22  ;;  %v5202_v33 = vmul.f32 1.442695, %v5145_v62 }
 0x542   : > { %6115 = vst [vmem:[#allocation1 + $0x21] ss:$4 sm:$0xff] %v5973_v23 }
 0x543   : > { %6116 = vst [vmem:[#allocation1 + $0x22] ss:$4 sm:$0xff] %v5974_v52  ;;  %7864 = vrcp.f32 %v5248_v20  ;;  %v5249_v52 = vadd.f32 1.0, %v7861_v60  ;;  %v5837_v20 = vperm.slane %v10451_v39, %v10331_v2  ;;  %v5848_v60 = vperm.slane %v10468_v42, %v10336_v47 }
 0x544   : > { %6117 = vst [vmem:[#allocation1 + $0x23] ss:$4 sm:$0xff] %v7845_v56  ;;  %v6113_v14 = vld.sshfl [vmem:[#allocation1] sm:$0xff pattern:$0x73625140]  ;;  %v5983_v56 = vrot.slane %v7853_v3, 6  ;;  %7866 = vrcp.f32 %v5250_v55  ;;  %v5853_v55 = vperm.slane %v10476_v16, %v10336_v47  ;;  %v5840_v39 = vperm.slane %v10455_v43, %v10354_v26 }
 0x545   : > { %6289 = vperm.xlu2 %7789, %v6113_v14   ;;  %6119 = vst [vmem:[#allocation1] ss:$4 sm:$0xff] %v5975_v63  ;;  %v5985_v63 = vrot.slane %v7859_v19, 4  ;;  %7868 = vrcp.f32 %v5249_v52  ;;  %v7863_v14 = vpop.eup %7862  ;;  %v5858_v42 = vperm.slane %v10484_v44, %v10336_v47  ;;  %v5852_v16 = vperm.slane %v10474_v32, %v10331_v2 }
 0x546   : > { %6120 = vst [vmem:[#allocation1 + $0x1] ss:$4 sm:$0xff] %v5976_v50  ;;  %v10488_v5 = vpop.permute.xlu0 %5765  ;;  %v10492_v50 = vpop.permute.xlu2 %5771  ;;  %v5251_v54 = vadd.f32 1.0, %v7863_v14  ;;  %v5850_v32 = vperm.slane %v10470_v10, %v10354_v26 }
 0x547   : > { %6121 = vst [vmem:[#allocation1 + $0x2] ss:$4 sm:$0xff] %v5977_v7 }
 0x548   : > { %6122 = vst [vmem:[#allocation1 + $0x3] ss:$4 sm:$0xff] %v7851_v53  ;;  %7870 = vrcp.f32 %v5251_v54 }
 0x549   : > { %v7865_v7 = vpop.eup %7864 }
 0x54a   : > { %v10490_v45 = vpop.permute.xlu1 %5768  ;;  %v10496_v53 = vpop.eup %7866  ;;  %v5989_v34 = vrot.slane %v7865_v7, 6 }
 0x54b   : > { %v6118_v29 = vld.sshfl [vmem:[#allocation1 + $0x20] sm:$0xff pattern:$0x73625140]  ;;  %v7869_v49 = vpop.eup %7868 }
 0x54c   : > { %6292 = vperm.xlu0 %7787, %v6118_v29   ;;  %6123 = vst [vmem:[#allocation1 + $0x20] ss:$4 sm:$0xff] %v5978_v38  ;;  %v5200_v38 = vmul.f32 1.442695, %v5144_v41  ;;  %v5987_v29 = vrot.slane %v7865_v7, 2  ;;  %v5990_v8 = vrot.slane %v7869_v49, 2  ;;  %v5862_v41 = vperm.slane %v10488_v5, %v10331_v2 }
 0x54e   : > { %7872 = vpow2.f32 %v5200_v38  ;;  %v10534_v52 = vpop.eup %7870 }
 0x54f   : > { %v6124_v36 = vld.sshfl [vmem:[#allocation1] sm:$0xff pattern:$0x73625140]  ;;  %7874 = vpow2.f32 %v5202_v33 }
 0x550   : > { %6295 = vperm.xlu1 %7788, %v6124_v36   ;;  %6126 = vst [vmem:[#allocation1] ss:$4 sm:$0xff] %v5979_v4  ;;  %v5993_v4 = vrot.slane %v10496_v53, 2  ;;  %v5994_v36 = vrot.slane %v10496_v53, 4 }
 0x551   : > { %6127 = vst [vmem:[#allocation1 + $0x1] ss:$4 sm:$0xff] %v5980_v58  ;;  %v10503_v58 = vpop.permute.xlu2 %5780 }
 0x552   : > { %6128 = vst [vmem:[#allocation1 + $0x2] ss:$4 sm:$0xff] %v7853_v3  ;;  %v5988_v3 = vrot.slane %v7865_v7, 4 }
 0x553   : > { %v6125_v23 = vld.sshfl [vmem:[#allocation1 + $0x20] sm:$0xff pattern:$0x73625140]  ;;  %6129 = vst [vmem:[#allocation1 + $0x3] ss:$4 sm:$0xff] %v5981_v13  ;;  %v5991_v13 = vrot.slane %v7869_v49, 4 }
 0x554   : > { %6298 = vperm.xlu2 %7789, %v6125_v23   ;;  %6130 = vst [vmem:[#allocation1 + $0x20] ss:$4 sm:$0xff] %v5982_v30  ;;  %v5838_v30 = vperm.slane %v10453_v59, %v10336_v47  ;;  %v5146_v23 = vsub.f32 0.0, %v10204_v12  ;;  %v5992_v59 = vrot.slane %v7869_v49, 6  ;;  %v5845_v12 = vperm.slane %v10463_v40, %v10354_v26  ;;  %v7873_v14 = vpop.eup %7872 }
 0x555   : > { %6131 = vst [vmem:[#allocation1 + $0x21] ss:$4 sm:$0xff] %v5983_v56  ;;  %v10498_v27 = vpop.permute.xlu0 %5774  ;;  %v5847_v56 = vperm.slane %v10466_v48, %v10331_v2  ;;  %v5857_v48 = vperm.slane %v10481_v24, %v10331_v2  ;;  %v7875_v38 = vpop.eup %7874 }
 0x556   : > { %6132 = vst [vmem:[#allocation1 + $0x22] ss:$4 sm:$0xff] %v7859_v19  ;;  %v5843_v19 = vperm.slane %v10460_v0, %v10336_v47  ;;  %v5842_v0 = vperm.slane %v10458_v17, %v10331_v2  ;;  %v5839_v43 = vsel %vm5796_vm6, %v5838_v30, %v5837_v20  ;;  %v5867_v40 = vperm.slane %v10498_v27, %v10331_v2 }
 0x557   : > { %6133 = vst [vmem:[#allocation1 + $0x23] ss:$4 sm:$0xff] %v5984_v46  ;;  %v5863_v46 = vperm.slane %v10490_v45, %v10336_v47  ;;  %v5849_v44 = vsel %vm5796_vm6, %v5848_v60, %v5847_v56  ;;  %v5854_v45 = vsel %vm5796_vm6, %v5853_v55, %v5852_v16  ;;  %v5859_v27 = vsel %vm5796_vm6, %v5858_v42, %v5857_v48 }
 0x558   : > { %v5844_v17 = vsel %vm5796_vm6, %v5843_v19, %v5842_v0  ;;  %v5851_v10 = vsel %vm5800_vm0, %v5850_v32, %v5849_v44  ;;  %v5252_v30 = vadd.f32 1.0, %v7873_v14  ;;  %v5997_v48 = vrot.slane %v10534_v52, 4 }
 0x559   : > { %v10500_v57 = vpop.permute.xlu1 %5777  ;;  %v5846_v54 = vsel %vm5800_vm0, %v5845_v12, %v5844_v17  ;;  %v5864_v5 = vsel %vm5796_vm6, %v5863_v46, %v5862_v41  ;;  %v5148_v17 = vsub.f32 0.0, %v10215_v21 }
 0x55a   : > { %v6134_v9 = vld.sshfl [vmem:[#allocation1] sm:$0xff pattern:$0x73625140]  ;;  %v5868_v24 = vperm.slane %v10500_v57, %v10336_v47  ;;  %v5841_v57 = vsel %vm5800_vm0, %v5840_v39, %v5839_v43  ;;  %v5996_v39 = vrot.slane %v10534_v52, 2 }
 0x55b   : > { %6301 = vperm.xlu0 %7787, %v6134_v9   ;;  %6136 = vst [vmem:[#allocation1] ss:$4 sm:$0xff] %v5985_v63  ;;  %v5208_v43 = vmul.f32 1.442695, %v5148_v17  ;;  %v5154_v17 = vsub.f32 0.0, %v10271_v37  ;;  %v10801_v37 = vld [vmem:[#allocation7_spill] sm:$0xff] }
 0x55e   : > { %v6135_v6 = vld.sshfl [vmem:[#allocation1 + $0x20] sm:$0xff pattern:$0x73625140] }
 0x55f   : > { %6304 = vperm.xlu1 %7788, %v6135_v6   ;;  %6138 = vst [vmem:[#allocation1 + $0x20] ss:$4 sm:$0xff] %v5986_v15  ;;  %v5204_v15 = vmul.f32 1.442695, %v5146_v23  ;;  %v5855_v6 = vperm.slane %v10479_v61, %v10354_v26  ;;  %v5865_v61 = vperm.slane %v10492_v50, %v10354_v26  ;;  %v5995_v50 = vrot.slane %v10496_v53, 6 }
 0x560   : > { %6139 = vst [vmem:[#allocation1 + $0x21] ss:$4 sm:$0xff] %v7865_v7  ;;  %v5147_v23 = vsub.f32 0.0, %v10209_v11 }
 0x561   : > { %6140 = vst [vmem:[#allocation1 + $0x22] ss:$4 sm:$0xff] %v5987_v29  ;;  %v5860_v29 = vperm.slane %v10486_v1, %v10354_v26  ;;  %v5856_v33 = vsel %vm5800_vm0, %v5855_v6, %v5854_v45  ;;  %v5870_v1 = vperm.slane %v10503_v58, %v10354_v26  ;;  %v5866_v60 = vsel %vm5800_vm0, %v5865_v61, %v5864_v5 }
 0x562   : > { %6141 = vst [vmem:[#allocation1 + $0x23] ss:$4 sm:$0xff] %v5988_v3  ;;  %v6137_v22 = vld.sshfl [vmem:[#allocation1] sm:$0xff pattern:$0x73625140]  ;;  %7876 = vpow2.f32 %v5204_v15  ;;  %v5149_v45 = vsub.f32 0.0, %v10224_v18 }
 0x563   : > { %6307 = vperm.xlu2 %7789, %v6137_v22   ;;  %6143 = vst [vmem:[#allocation1] ss:$4 sm:$0xff] %v5989_v34  ;;  %v5869_v34 = vsel %vm5796_vm6, %v5868_v24, %v5867_v40  ;;  %v5891_v22 = vsel %vm5877_vm1, %v5846_v54, %v5841_v57  ;;  %7878 = vrcp.f32 %v5252_v30 }
 0x564   : > { %6144 = vst [vmem:[#allocation1 + $0x1] ss:$4 sm:$0xff] %v7869_v49  ;;  %v5784_v63 = vpop.permute.xlu0 %5783  ;;  %v5790_v49 = vpop.permute.xlu2 %5789  ;;  %v5892_v20 = vsel %vm5879_vm2, %v5851_v10, %v5891_v22  ;;  %v5871_v58 = vsel %vm5800_vm0, %v5870_v1, %v5869_v34 }
 0x565   : > { %6145 = vst [vmem:[#allocation1 + $0x2] ss:$4 sm:$0xff] %v5990_v8  ;;  %v5872_v3 = vperm.slane %v5784_v63, %v10331_v2  ;;  %v5861_v8 = vsel %vm5800_vm0, %v5860_v29, %v5859_v27  ;;  %v5875_v56 = vperm.slane %v5790_v49, %v10354_v26  ;;  %v5893_v0 = vsel %vm5881_vm3, %v5856_v33, %v5892_v20 }
 0x566   : > { %6146 = vst [vmem:[#allocation1 + $0x3] ss:$4 sm:$0xff] %v5991_v13  ;;  %v5894_v55 = vsel %vm5883_vm4, %v5861_v8, %v5893_v0  ;;  %v5210_v27 = vmul.f32 1.442695, %v5149_v45 }
 0x567   : > { %v5895_v42 = vsel %vm5885_vm5, %v5866_v60, %v5894_v55 }
 0x568   : > { %v5787_v9 = vpop.permute.xlu1 %5786  ;;  %v5896_v12 = vsel %vm5887_vm7, %v5871_v58, %v5895_v42  ;;  %v7877_v46 = vpop.eup %7876 }
 0x569   : > { %v6142_v7 = vld.sshfl [vmem:[#allocation1 + $0x20] sm:$0xff pattern:$0x73625140]  ;;  %v5873_v62 = vperm.slane %v5787_v9, %v10336_v47  ;;  %v7879_v44 = vpop.eup %7878  ;;  %v5254_v40 = vadd.f32 1.0, %v7877_v46 }
 0x56a   : > { %6310 = vperm.xlu0 %7787, %v6142_v7   ;;  %6147 = vst [vmem:[#allocation1 + $0x20] ss:$4 sm:$0xff] %v5992_v59  ;;  %v6000_v21 = vrot.slane %v7879_v44, 4  ;;  %v6001_v32 = vrot.slane %v7879_v44, 6 }
 0x56b   : > { %v5874_v19 = vsel %vm5796_vm6, %v5873_v62, %v5872_v3  ;;  %v5151_v3 = vsub.f32 0.0, %v10239_v51 }
 0x56c   : > { %v5876_v59 = vsel %vm5800_vm0, %v5875_v56, %v5874_v19 }
 0x56d   : > { %v6148_v13 = vld.sshfl [vmem:[#allocation1] sm:$0xff pattern:$0x73625140]  ;;  %v5897_v16 = vsel %vm5889_vm8, %v5876_v59, %v5896_v12  ;;  %v5214_v22 = vmul.f32 1.442695, %v5151_v3  ;;  %v5153_v59 = vsub.f32 0.0, %v10265_v35 }
 0x56e   : > { %6313 = vperm.xlu1 %7788, %v6148_v13   ;;  %6150 = vst [vmem:[#allocation1] ss:$4 sm:$0xff] %v10496_v53  ;;  %v5998_v53 = vrot.slane %v10534_v52, 6  ;;  %v5152_v13 = vsub.f32 0.0, %v10249_v28 }
 0x56f   : > { %6151 = vst [vmem:[#allocation1 + $0x1] ss:$4 sm:$0xff] %v5993_v4  ;;  %v5253_v4 = vadd.f32 1.0, %v7875_v38  ;;  %v5150_v38 = vsub.f32 0.0, %v10229_v25 }
 0x570   : > { %6152 = vst [vmem:[#allocation1 + $0x2] ss:$4 sm:$0xff] %v5994_v36  ;;  %v5206_v36 = vmul.f32 1.442695, %v5147_v23  ;;  %v5216_v23 = vmul.f32 1.442695, %v5152_v13 }
 0x571   : > { %v6149_v11 = vld.sshfl [vmem:[#allocation1 + $0x20] sm:$0xff pattern:$0x73625140]  ;;  %6153 = vst [vmem:[#allocation1 + $0x3] ss:$4 sm:$0xff] %v5995_v50  ;;  %7880 = vrcp.f32 %v5253_v4 }
 0x572   : > { %6316 = vperm.xlu2 %7789, %v6149_v11   ;;  %6154 = vst [vmem:[#allocation1 + $0x20] ss:$4 sm:$0xff] %v10534_v52  ;;  %7882 = vpow2.f32 %v5206_v36  ;;  %v5999_v52 = vrot.slane %v7879_v44, 2  ;;  %v5212_v29 = vmul.f32 1.442695, %v5150_v38 }
 0x573   : > { %6155 = vst [vmem:[#allocation1 + $0x21] ss:$4 sm:$0xff] %v5996_v39  ;;  %7884 = vpow2.f32 %v5208_v43  ;;  %v5218_v36 = vmul.f32 1.442695, %v5153_v59  ;;  %v10597_v46 = vpop.permute.xlu0 %6247  ;;  %v10804_v59 = vld [vmem:[#allocation10_spill] sm:$0xff] }
 0x574   : > { %6156 = vst [vmem:[#allocation1 + $0x22] ss:$4 sm:$0xff] %v5997_v48  ;;  %7886 = vrcp.f32 %v5254_v40 }
 0x575   : > { %6157 = vst [vmem:[#allocation1 + $0x23] ss:$4 sm:$0xff] %v5998_v53 }
 0x576   : > { %5902 = vst.msk [vmem:[%s8095_s11 + $0x8] sm:$0xff] %vm5900_vm9, %v5897_v16 }
 0x577   : > { %v7881_v63 = vpop.eup %7880 }
 0x578   : > { %v6158_v24 = vld.sshfl [vmem:[#allocation1] sm:$0xff pattern:$0x73625140]  ;;  %v7883_v14 = vpop.eup %7882  ;;  %v6002_v41 = vrot.slane %v7881_v63, 2  ;;  %v6003_v7 = vrot.slane %v7881_v63, 4  ;;  %v6004_v6 = vrot.slane %v7881_v63, 6 }
 0x579   : > { %6319 = vperm.xlu0 %7787, %v6158_v24   ;;  %6160 = vst [vmem:[#allocation1] ss:$4 sm:$0xff] %v7879_v44  ;;  %v5255_v62 = vadd.f32 1.0, %v7883_v14  ;;  %v7885_v54 = vpop.eup %7884  ;;  %v10599_v44 = vpop.permute.xlu2 %6253 }
 0x57a   : > { %v7887_v10 = vpop.eup %7886  ;;  %v5256_v18 = vadd.f32 1.0, %v7885_v54 }
 0x57b   : > { %7888 = vrcp.f32 %v5255_v62  ;;  %v6005_v5 = vrot.slane %v7887_v10, 2  ;;  %v6006_v25 = vrot.slane %v7887_v10, 4  ;;  %v6007_v61 = vrot.slane %v7887_v10, 6 }
 0x57c   : > { %v6159_v9 = vld.sshfl [vmem:[#allocation1 + $0x20] sm:$0xff pattern:$0x73625140]  ;;  %7890 = vpow2.f32 %v5210_v27 }
 0x57d   : > { %6322 = vperm.xlu1 %7788, %v6159_v9   ;;  %6162 = vst [vmem:[#allocation1 + $0x20] ss:$4 sm:$0xff] %v5999_v52  ;;  %7892 = vrcp.f32 %v5256_v18  ;;  %v5220_v52 = vmul.f32 1.442695, %v5154_v17 }
 0x57e   : > { %6163 = vst [vmem:[#allocation1 + $0x21] ss:$4 sm:$0xff] %v6000_v21  ;;  %7894 = vpow2.f32 %v5212_v29  ;;  %v5155_v21 = vsub.f32 0.0, %v10801_v37 }
 0x57f   : > { %6164 = vst [vmem:[#allocation1 + $0x22] ss:$4 sm:$0xff] %v6001_v32 }
 0x580   : > { %6165 = vst [vmem:[#allocation1 + $0x23] ss:$4 sm:$0xff] %v7881_v63  ;;  %v6161_v15 = vld.sshfl [vmem:[#allocation1] sm:$0xff pattern:$0x73625140]  ;;  %v10601_v63 = vpop.permute.xlu1 %6250 }
 0x581   : > { %6325 = vperm.xlu2 %7789, %v6161_v15   ;;  %6167 = vst [vmem:[#allocation1] ss:$4 sm:$0xff] %v6002_v41  ;;  %v7889_v57 = vpop.eup %7888  ;;  %v5222_v41 = vmul.f32 1.442695, %v5155_v21  ;;  %v10606_v15 = vpop.permute.xlu2 %6262 }
 0x582   : > { %6168 = vst [vmem:[#allocation1 + $0x1] ss:$4 sm:$0xff] %v6003_v7  ;;  %v7891_v33 = vpop.eup %7890  ;;  %v6008_v8 = vrot.slane %v7889_v57, 2  ;;  %v6009_v19 = vrot.slane %v7889_v57, 4  ;;  %v6010_v60 = vrot.slane %v7889_v57, 6  ;;  %v10604_v7 = vpop.permute.xlu0 %6256 }
 0x583   : > { %6169 = vst [vmem:[#allocation1 + $0x2] ss:$4 sm:$0xff] %v6004_v6  ;;  %v7893_v1 = vpop.eup %7892  ;;  %v5257_v30 = vadd.f32 1.0, %v7891_v33 }
 0x584   : > { %6170 = vst [vmem:[#allocation1 + $0x3] ss:$4 sm:$0xff] %v7887_v10  ;;  %v7895_v20 = vpop.eup %7894  ;;  %v6011_v56 = vrot.slane %v7893_v1, 2  ;;  %v6012_v0 = vrot.slane %v7893_v1, 4  ;;  %v6013_v39 = vrot.slane %v7893_v1, 6 }
 0x585   : > { %7896 = vrcp.f32 %v5257_v30  ;;  %v5258_v50 = vadd.f32 1.0, %v7895_v20 }
 0x586   : > { %7898 = vpow2.f32 %v5214_v22  ;;  %v10803_v22 = vld [vmem:[#allocation9_spill] sm:$0xff] }
 0x587   : > { %v6166_v49 = vld.sshfl [vmem:[#allocation1 + $0x20] sm:$0xff pattern:$0x73625140]  ;;  %7900 = vrcp.f32 %v5258_v50 }
 0x588   : > { %6328 = vperm.xlu0 %7787, %v6166_v49   ;;  %6171 = vst [vmem:[#allocation1 + $0x20] ss:$4 sm:$0xff] %v6005_v5  ;;  %7902 = vpow2.f32 %v5216_v23  ;;  %v10608_v54 = vpop.permute.xlu1 %6259  ;;  %v10802_v5 = vld [vmem:[#allocation8_spill] sm:$0xff] }
 0x589   : > { %v5156_v49 = vsub.f32 0.0, %v10802_v5  ;;  %v10614_v13 = vpop.permute.xlu2 %6271 }
 0x58b   : > { %v6172_v34 = vld.sshfl [vmem:[#allocation1] sm:$0xff pattern:$0x73625140]  ;;  %v7897_v58 = vpop.eup %7896 }
 0x58c   : > { %6331 = vperm.xlu1 %7788, %v6172_v34   ;;  %6174 = vst [vmem:[#allocation1] ss:$4 sm:$0xff] %v6006_v25  ;;  %v7899_v55 = vpop.eup %7898  ;;  %v6014_v11 = vrot.slane %v7897_v58, 2  ;;  %v6015_v12 = vrot.slane %v7897_v58, 4  ;;  %v6016_v16 = vrot.slane %v7897_v58, 6 }
 0x58d   : > { %6175 = vst [vmem:[#allocation1 + $0x1] ss:$4 sm:$0xff] %v6007_v61  ;;  %v7901_v48 = vpop.eup %7900  ;;  %v5259_v4 = vadd.f32 1.0, %v7899_v55  ;;  %v5224_v34 = vmul.f32 1.442695, %v5156_v49 }
 0x58e   : > { %6176 = vst [vmem:[#allocation1 + $0x2] ss:$4 sm:$0xff] %v7889_v57  ;;  %v7903_v53 = vpop.eup %7902  ;;  %v6017_v35 = vrot.slane %v7901_v48, 2  ;;  %v6018_v40 = vrot.slane %v7901_v48, 4  ;;  %v6019_v9 = vrot.slane %v7901_v48, 6 }
 0x58f   : > { %v6173_v51 = vld.sshfl [vmem:[#allocation1 + $0x20] sm:$0xff pattern:$0x73625140]  ;;  %6177 = vst [vmem:[#allocation1 + $0x3] ss:$4 sm:$0xff] %v6008_v8  ;;  %7904 = vrcp.f32 %v5259_v4  ;;  %v5260_v24 = vadd.f32 1.0, %v7903_v53 }
 0x590   : > { %6334 = vperm.xlu2 %7789, %v6173_v51   ;;  %6178 = vst [vmem:[#allocation1 + $0x20] ss:$4 sm:$0xff] %v6009_v19  ;;  %7906 = vpow2.f32 %v5218_v36  ;;  %v5157_v8 = vsub.f32 0.0, %v10803_v22 }
 0x591   : > { %6179 = vst [vmem:[#allocation1 + $0x21] ss:$4 sm:$0xff] %v6010_v60  ;;  %7908 = vrcp.f32 %v5260_v24 }
 0x592   : > { %6180 = vst [vmem:[#allocation1 + $0x22] ss:$4 sm:$0xff] %v7893_v1  ;;  %7910 = vpow2.f32 %v5220_v52  ;;  %v10612_v1 = vpop.permute.xlu0 %6265  ;;  %v5226_v30 = vmul.f32 1.442695, %v5157_v8 }
 0x593   : > { %6181 = vst [vmem:[#allocation1 + $0x23] ss:$4 sm:$0xff] %v6011_v56  ;;  %7912 = vpow2.f32 %v5222_v41 }
 0x595   : > { %v7905_v32 = vpop.eup %7904  ;;  %v10616_v20 = vpop.permute.xlu1 %6268 }
 0x596   : > { %v6182_v28 = vld.sshfl [vmem:[#allocation1] sm:$0xff pattern:$0x73625140]  ;;  %v7907_v45 = vpop.eup %7906  ;;  %v6020_v62 = vrot.slane %v7905_v32, 2  ;;  %v6021_v38 = vrot.slane %v7905_v32, 4  ;;  %v6022_v29 = vrot.slane %v7905_v32, 6 }
 0x597   : > { %6337 = vperm.xlu0 %7787, %v6182_v28   ;;  %6184 = vst [vmem:[#allocation1] ss:$4 sm:$0xff] %v6012_v0  ;;  %v7909_v27 = vpop.eup %7908  ;;  %v5261_v10 = vadd.f32 1.0, %v7907_v45 }
 0x598   : > { %v7911_v18 = vpop.eup %7910  ;;  %v6023_v3 = vrot.slane %v7909_v27, 2  ;;  %v6024_v25 = vrot.slane %v7909_v27, 4  ;;  %v6025_v61 = vrot.slane %v7909_v27, 6 }
 0x599   : > { %7914 = vrcp.f32 %v5261_v10  ;;  %v5262_v33 = vadd.f32 1.0, %v7911_v18  ;;  %v7913_v19 = vpop.eup %7912 }
 0x59a   : > { %v6183_v42 = vld.sshfl [vmem:[#allocation1 + $0x20] sm:$0xff pattern:$0x73625140]  ;;  %v5263_v56 = vadd.f32 1.0, %v7913_v19 }
 0x59b   : > { %6340 = vperm.xlu1 %7788, %v6183_v42   ;;  %6186 = vst [vmem:[#allocation1 + $0x20] ss:$4 sm:$0xff] %v6013_v39  ;;  %7916 = vrcp.f32 %v5262_v33  ;;  %v5158_v39 = vsub.f32 0.0, %v10804_v59  ;;  %v5159_v42 = vsub.f32 0.0, %v10343_v31 }
 0x59c   : > { %6187 = vst [vmem:[#allocation1 + $0x21] ss:$4 sm:$0xff] %v7897_v58  ;;  %7918 = vpow2.f32 %v5224_v34 }
 0x59d   : > { %6188 = vst [vmem:[#allocation1 + $0x22] ss:$4 sm:$0xff] %v6014_v11  ;;  %7920 = vpow2.f32 %v5226_v30  ;;  %v5230_v24 = vmul.f32 1.442695, %v5159_v42 }
 0x59e   : > { %6189 = vst [vmem:[#allocation1 + $0x23] ss:$4 sm:$0xff] %v6015_v12  ;;  %v6185_v43 = vld.sshfl [vmem:[#allocation1] sm:$0xff pattern:$0x73625140]  ;;  %7922 = vrcp.f32 %v5263_v56  ;;  %v10622_v12 = vpop.permute.xlu2 %6280 }
 0x59f   : > { %6343 = vperm.xlu2 %7789, %v6185_v43   ;;  %6191 = vst [vmem:[#allocation1] ss:$4 sm:$0xff] %v6016_v16  ;;  %v7915_v60 = vpop.eup %7914 }
 0x5a0   : > { %6192 = vst [vmem:[#allocation1 + $0x1] ss:$4 sm:$0xff] %v7901_v48  ;;  %v6026_v50 = vrot.slane %v7915_v60, 2  ;;  %v6027_v0 = vrot.slane %v7915_v60, 4  ;;  %v6028_v55 = vrot.slane %v7915_v60, 6  ;;  %v10620_v11 = vpop.permute.xlu0 %6274 }
 0x5a1   : > { %6193 = vst [vmem:[#allocation1 + $0x2] ss:$4 sm:$0xff] %v6017_v35  ;;  %v7917_v23 = vpop.eup %7916  ;;  %v5228_v35 = vmul.f32 1.442695, %v5158_v39  ;;  %v6395_v39 = vperm.slane %v10604_v7, %v10331_v2 }
 0x5a2   : > { %6194 = vst [vmem:[#allocation1 + $0x3] ss:$4 sm:$0xff] %v6018_v40  ;;  %v7919_v58 = vpop.eup %7918  ;;  %v6029_v48 = vrot.slane %v7917_v23, 2  ;;  %v6030_v4 = vrot.slane %v7917_v23, 4  ;;  %v6031_v43 = vrot.slane %v7917_v23, 6 }
 0x5a3   : > { %v5264_v36 = vadd.f32 1.0, %v7919_v58  ;;  %v7921_v16 = vpop.eup %7920 }
 0x5a4   : > { %v10624_v53 = vpop.permute.xlu1 %6277  ;;  %v7923_v31 = vpop.eup %7922  ;;  %v5265_v40 = vadd.f32 1.0, %v7921_v16 }
 0x5a5   : > { %v6190_v14 = vld.sshfl [vmem:[#allocation1 + $0x20] sm:$0xff pattern:$0x73625140]  ;;  %7924 = vrcp.f32 %v5264_v36  ;;  %v6032_v52 = vrot.slane %v7923_v31, 2  ;;  %v6033_v45 = vrot.slane %v7923_v31, 4 }
 0x5a6   : > { %6346 = vperm.xlu0 %7787, %v6190_v14   ;;  %6195 = vst [vmem:[#allocation1 + $0x20] ss:$4 sm:$0xff] %v6019_v9  ;;  %7926 = vpow2.f32 %v5228_v35  ;;  %v10628_v21 = vpop.permute.xlu2 %6289 }
 0x5a7   : > { %7928 = vpow2.f32 %v5230_v24  ;;  %v6403_v24 = vperm.slane %v10614_v13, %v10354_v26 }
 0x5a8   : > { %7930 = vrcp.f32 %v5265_v40  ;;  %v6393_v40 = vperm.slane %v10599_v44, %v10354_v26 }
 0x5a9   : > { %v6196_v6 = vld.sshfl [vmem:[#allocation1] sm:$0xff pattern:$0x73625140] }
 0x5aa   : > { %6349 = vperm.xlu1 %7788, %v6196_v6   ;;  %6198 = vst [vmem:[#allocation1] ss:$4 sm:$0xff] %v7905_v32 }
 0x5ab   : > { %6199 = vst [vmem:[#allocation1 + $0x1] ss:$4 sm:$0xff] %v6020_v62  ;;  %v7925_v32 = vpop.eup %7924  ;;  %v6034_v62 = vrot.slane %v7923_v31, 6 }
 0x5ac   : > { %6200 = vst [vmem:[#allocation1 + $0x2] ss:$4 sm:$0xff] %v6021_v38  ;;  %v7927_v41 = vpop.eup %7926  ;;  %v6035_v38 = vrot.slane %v7925_v32, 2  ;;  %v6036_v18 = vrot.slane %v7925_v32, 4 }
 0x5ad   : > { %v6197_v57 = vld.sshfl [vmem:[#allocation1 + $0x20] sm:$0xff pattern:$0x73625140]  ;;  %6201 = vst [vmem:[#allocation1 + $0x3] ss:$4 sm:$0xff] %v6022_v29  ;;  %v6037_v29 = vrot.slane %v7925_v32, 6 }
 0x5ae   : > { %6352 = vperm.xlu2 %7789, %v6197_v57   ;;  %6202 = vst [vmem:[#allocation1 + $0x20] ss:$4 sm:$0xff] %v7909_v27  ;;  %v7929_v27 = vpop.eup %7928  ;;  %v5266_v5 = vadd.f32 1.0, %v7927_v41  ;;  %v10634_v33 = vpop.permute.xlu2 %6298 }
 0x5af   : > { %6203 = vst [vmem:[#allocation1 + $0x21] ss:$4 sm:$0xff] %v6023_v3  ;;  %v10626_v37 = vpop.permute.xlu0 %6283  ;;  %v7931_v10 = vpop.eup %7930  ;;  %v5267_v49 = vadd.f32 1.0, %v7929_v27  ;;  %v6418_v41 = vperm.slane %v10634_v33, %v10354_v26 }
 0x5b0   : > { %6204 = vst [vmem:[#allocation1 + $0x22] ss:$4 sm:$0xff] %v6024_v25  ;;  %v6038_v25 = vrot.slane %v7931_v10, 2  ;;  %7932 = vrcp.f32 %v5266_v5  ;;  %v6039_v34 = vrot.slane %v7931_v10, 4 }
 0x5b1   : > { %6205 = vst [vmem:[#allocation1 + $0x23] ss:$4 sm:$0xff] %v6025_v61  ;;  %7934 = vrcp.f32 %v5267_v49 }
 0x5b3   : > { %v10630_v14 = vpop.permute.xlu1 %6286 }
 0x5b4   : > { %v6206_v51 = vld.sshfl [vmem:[#allocation1] sm:$0xff pattern:$0x73625140] }
 0x5b5   : > { %6355 = vperm.xlu0 %7787, %v6206_v51   ;;  %6208 = vst [vmem:[#allocation1] ss:$4 sm:$0xff] %v7915_v60  ;;  %v6040_v60 = vrot.slane %v7931_v10, 6  ;;  %v6396_v51 = vperm.slane %v10608_v54, %v10336_v47  ;;  %v6406_v54 = vperm.slane %v10624_v53, %v10336_v47 }
 0x5b6   : > { %v7933_v8 = vpop.eup %7932 }
 0x5b7   : > { %v10636_v30 = vpop.eup %7934  ;;  %v6042_v59 = vrot.slane %v7933_v8, 4  ;;  %v6043_v42 = vrot.slane %v7933_v8, 6  ;;  %v6397_v7 = vsel %vm5796_vm6, %v6396_v51, %v6395_v39 }
 0x5b8   : > { %v6207_v28 = vld.sshfl [vmem:[#allocation1 + $0x20] sm:$0xff pattern:$0x73625140] }
 0x5b9   : > { %6358 = vperm.xlu1 %7788, %v6207_v28   ;;  %6210 = vst [vmem:[#allocation1 + $0x20] ss:$4 sm:$0xff] %v6026_v50  ;;  %v6391_v50 = vperm.slane %v10601_v63, %v10336_v47  ;;  %v6400_v28 = vperm.slane %v10612_v1, %v10331_v2  ;;  %v6410_v1 = vperm.slane %v10626_v37, %v10331_v2 }
 0x5ba   : > { %6211 = vst [vmem:[#allocation1 + $0x21] ss:$4 sm:$0xff] %v6027_v0  ;;  %v6401_v0 = vperm.slane %v10616_v20, %v10336_v47  ;;  %v6411_v20 = vperm.slane %v10630_v14, %v10336_v47  ;;  %v6408_v37 = vperm.slane %v10622_v12, %v10354_v26  ;;  %v6413_v14 = vperm.slane %v10628_v21, %v10354_v26 }
 0x5bb   : > { %6212 = vst [vmem:[#allocation1 + $0x22] ss:$4 sm:$0xff] %v6028_v55  ;;  %v6041_v55 = vrot.slane %v7933_v8, 2 }
 0x5bc   : > { %6213 = vst [vmem:[#allocation1 + $0x23] ss:$4 sm:$0xff] %v7917_v23  ;;  %v6209_v17 = vld.sshfl [vmem:[#allocation1] sm:$0xff pattern:$0x73625140]  ;;  %v6390_v23 = vperm.slane %v10597_v46, %v10331_v2  ;;  %v6044_v46 = vrot.slane %v10636_v30, 2 }
 0x5bd   : > { %6361 = vperm.xlu2 %7789, %v6209_v17   ;;  %6215 = vst [vmem:[#allocation1] ss:$4 sm:$0xff] %v6029_v48  ;;  %v6308_v56 = vpop.permute.xlu2 %6307  ;;  %v6398_v48 = vperm.slane %v10606_v15, %v10354_v26  ;;  %v6402_v17 = vsel %vm5796_vm6, %v6401_v0, %v6400_v28  ;;  %v6045_v15 = vrot.slane %v10636_v30, 4 }
 0x5be   : > { %6216 = vst [vmem:[#allocation1 + $0x1] ss:$4 sm:$0xff] %v6030_v4  ;;  %v10632_v57 = vpop.permute.xlu0 %6292  ;;  %v6405_v4 = vperm.slane %v10620_v11, %v10331_v2  ;;  %v6392_v36 = vsel %vm5796_vm6, %v6391_v50, %v6390_v23  ;;  %v6404_v13 = vsel %vm5800_vm0, %v6403_v24, %v6402_v17  ;;  %v6423_v21 = vperm.slane %v6308_v56, %v10354_v26 }
 0x5bf   : > { %6217 = vst [vmem:[#allocation1 + $0x2] ss:$4 sm:$0xff] %v6031_v43 }
 0x5c0   : > { %6218 = vst [vmem:[#allocation1 + $0x3] ss:$4 sm:$0xff] %v7923_v31  ;;  %v6407_v11 = vsel %vm5796_vm6, %v6406_v54, %v6405_v4  ;;  %v6415_v31 = vperm.slane %v10632_v57, %v10331_v2 }
 0x5c1   : > { %v6409_v44 = vsel %vm5800_vm0, %v6408_v37, %v6407_v11 }
 0x5c2   : > { %v6296_v61 = vpop.permute.xlu1 %6295 }
 0x5c3   : > { %v6214_v9 = vld.sshfl [vmem:[#allocation1 + $0x20] sm:$0xff pattern:$0x73625140]  ;;  %v6416_v53 = vperm.slane %v6296_v61, %v10336_v47 }
 0x5c4   : > { %6364 = vperm.xlu0 %7787, %v6214_v9   ;;  %6219 = vst [vmem:[#allocation1 + $0x20] ss:$4 sm:$0xff] %v6032_v52  ;;  %v6399_v52 = vsel %vm5800_vm0, %v6398_v48, %v6397_v7  ;;  %v6412_v9 = vsel %vm5796_vm6, %v6411_v20, %v6410_v1 }
 0x5c5   : > { %v6414_v27 = vsel %vm5800_vm0, %v6413_v14, %v6412_v9 }
 0x5c7   : > { %v6220_v6 = vld.sshfl [vmem:[#allocation1] sm:$0xff pattern:$0x73625140] }
 0x5c8   : > { %6367 = vperm.xlu1 %7788, %v6220_v6   ;;  %6222 = vst [vmem:[#allocation1] ss:$4 sm:$0xff] %v6033_v45  ;;  %v6394_v45 = vsel %vm5800_vm0, %v6393_v40, %v6392_v36 }
 0x5c9   : > { %6223 = vst [vmem:[#allocation1 + $0x1] ss:$4 sm:$0xff] %v6034_v62  ;;  %v6470_v6 = vsel %vm5877_vm1, %v6399_v52, %v6394_v45 }
 0x5ca   : > { %6224 = vst [vmem:[#allocation1 + $0x2] ss:$4 sm:$0xff] %v7925_v32  ;;  %v6417_v32 = vsel %vm5796_vm6, %v6416_v53, %v6415_v31 }
 0x5cb   : > { %v6221_v3 = vld.sshfl [vmem:[#allocation1 + $0x20] sm:$0xff pattern:$0x73625140]  ;;  %6225 = vst [vmem:[#allocation1 + $0x3] ss:$4 sm:$0xff] %v6035_v38 }
 0x5cc   : > { %6370 = vperm.xlu2 %7789, %v6221_v3   ;;  %6226 = vst [vmem:[#allocation1 + $0x20] ss:$4 sm:$0xff] %v6036_v18  ;;  %v6317_v38 = vpop.permute.xlu2 %6316  ;;  %v6471_v18 = vsel %vm5879_vm2, %v6404_v13, %v6470_v6 }
 0x5cd   : > { %6227 = vst [vmem:[#allocation1 + $0x21] ss:$4 sm:$0xff] %v6037_v29  ;;  %v6302_v19 = vpop.permute.xlu0 %6301  ;;  %v6419_v29 = vsel %vm5800_vm0, %v6418_v41, %v6417_v32  ;;  %v6472_v49 = vsel %vm5881_vm3, %v6409_v44, %v6471_v18 }
 0x5ce   : > { %6228 = vst [vmem:[#allocation1 + $0x22] ss:$4 sm:$0xff] %v7931_v10  ;;  %v6420_v35 = vperm.slane %v6302_v19, %v10331_v2  ;;  %v6046_v10 = vrot.slane %v10636_v30, 6  ;;  %v6473_v61 = vsel %vm5883_vm4, %v6414_v27, %v6472_v49 }
 0x5cf   : > { %6229 = vst [vmem:[#allocation1 + $0x23] ss:$4 sm:$0xff] %v6038_v25 }
 0x5d1   : > { %v6305_v63 = vpop.permute.xlu1 %6304 }
 0x5d2   : > { %v6230_v22 = vld.sshfl [vmem:[#allocation1] sm:$0xff pattern:$0x73625140]  ;;  %v6421_v43 = vperm.slane %v6305_v63, %v10336_v47 }
 0x5d3   : > { %6373 = vperm.xlu0 %7787, %v6230_v22   ;;  %6232 = vst [vmem:[#allocation1] ss:$4 sm:$0xff] %v6039_v34  ;;  %v6428_v34 = vperm.slane %v6317_v38, %v10354_v26  ;;  %v6474_v22 = vsel %vm5885_vm5, %v6419_v29, %v6473_v61 }
 0x5d4   : > { %v6422_v12 = vsel %vm5796_vm6, %v6421_v43, %v6420_v35 }
 0x5d5   : > { %v6424_v57 = vsel %vm5800_vm0, %v6423_v21, %v6422_v12 }
 0x5d6   : > { %v6231_v58 = vld.sshfl [vmem:[#allocation1 + $0x20] sm:$0xff pattern:$0x73625140]  ;;  %v6475_v19 = vsel %vm5887_vm7, %v6424_v57, %v6474_v22 }
 0x5d7   : > { %6376 = vperm.xlu1 %7788, %v6231_v58   ;;  %6234 = vst [vmem:[#allocation1 + $0x20] ss:$4 sm:$0xff] %v6040_v60 }
 0x5d8   : > { %6235 = vst [vmem:[#allocation1 + $0x21] ss:$4 sm:$0xff] %v7933_v8 }
 0x5d9   : > { %6236 = vst [vmem:[#allocation1 + $0x22] ss:$4 sm:$0xff] %v6041_v55 }
 0x5da   : > { %6237 = vst [vmem:[#allocation1 + $0x23] ss:$4 sm:$0xff] %v6042_v59  ;;  %v6233_v16 = vld.sshfl [vmem:[#allocation1] sm:$0xff pattern:$0x73625140] }
 0x5db   : > { %6379 = vperm.xlu2 %7789, %v6233_v16   ;;  %6239 = vst [vmem:[#allocation1] ss:$4 sm:$0xff] %v6043_v42  ;;  %v6326_v23 = vpop.permute.xlu2 %6325 }
 0x5dc   : > { %6240 = vst [vmem:[#allocation1 + $0x1] ss:$4 sm:$0xff] %v10636_v30  ;;  %v6311_v62 = vpop.permute.xlu0 %6310  ;;  %v6433_v21 = vperm.slane %v6326_v23, %v10354_v26 }
 0x5dd   : > { %6241 = vst [vmem:[#allocation1 + $0x2] ss:$4 sm:$0xff] %v6044_v46  ;;  %v6425_v25 = vperm.slane %v6311_v62, %v10331_v2 }
 0x5de   : > { %6242 = vst [vmem:[#allocation1 + $0x3] ss:$4 sm:$0xff] %v6045_v15 }
 0x5e0   : > { %v6314_v5 = vpop.permute.xlu1 %6313 }
 0x5e1   : > { %v6238_v3 = vld.sshfl [vmem:[#allocation1 + $0x20] sm:$0xff pattern:$0x73625140]  ;;  %v6426_v33 = vperm.slane %v6314_v5, %v10336_v47 }
 0x5e2   : > { %6382 = vperm.xlu0 %7787, %v6238_v3   ;;  %6243 = vst [vmem:[#allocation1 + $0x20] ss:$4 sm:$0xff] %v6046_v10 }
 0x5e3   : > { %v6427_v8 = vsel %vm5796_vm6, %v6426_v33, %v6425_v25 }
 0x5e4   : > { %v6429_v30 = vsel %vm5800_vm0, %v6428_v34, %v6427_v8 }
 0x5e5   : > { %v6244_v60 = vld.sshfl [vmem:[#allocation1] sm:$0xff pattern:$0x73625140]  ;;  %v6476_v51 = vsel %vm5889_vm8, %v6429_v30, %v6475_v19 }
 0x5e6   : > { %6385 = vperm.xlu1 %7788, %v6244_v60   ;;  %6486 = vst.msk [vmem:[%s8100_s28] sm:$0xff] %vm5900_vm9, %v6476_v51 }
 0x5e9   : > { %v6245_v56 = vld.sshfl [vmem:[#allocation1 + $0x20] sm:$0xff pattern:$0x73625140] }
 0x5ea   : > { %6388 = vperm.xlu2 %7789, %v6245_v56   ;;  %v6335_v58 = vpop.permute.xlu2 %6334 }
 0x5eb   : > { %v6320_v50 = vpop.permute.xlu0 %6319  ;;  %v6438_v32 = vperm.slane %v6335_v58, %v10354_v26 }
 0x5ec   : > { %v6430_v24 = vperm.slane %v6320_v50, %v10331_v2 }
 0x5ef   : > { %v6323_v0 = vpop.permute.xlu1 %6322 }
 0x5f0   : > { %v6431_v15 = vperm.slane %v6323_v0, %v10336_v47 }
 0x5f2   : > { %v6432_v12 = vsel %vm5796_vm6, %v6431_v15, %v6430_v24 }
 0x5f3   : > { %v6434_v3 = vsel %vm5800_vm0, %v6433_v21, %v6432_v12 }
 0x5f9   : > { %v6344_v39 = vpop.permute.xlu2 %6343 }
 0x5fa   : > { %v6329_v28 = vpop.permute.xlu0 %6328  ;;  %v6443_v62 = vperm.slane %v6344_v39, %v10354_v26 }
 0x5fb   : > { %v6435_v11 = vperm.slane %v6329_v28, %v10331_v2 }
 0x5fe   : > { %v6332_v55 = vpop.permute.xlu1 %6331 }
 0x5ff   : > { %v6436_v17 = vperm.slane %v6332_v55, %v10336_v47 }
 0x601   : > { %v6437_v9 = vsel %vm5796_vm6, %v6436_v17, %v6435_v11 }
 0x602   : > { %v6439_v38 = vsel %vm5800_vm0, %v6438_v32, %v6437_v9 }
 0x603   : > { %v6477_v34 = vsel %vm5877_vm1, %v6439_v38, %v6434_v3 }
 0x608   : > { %v6353_v42 = vpop.permute.xlu2 %6352 }
 0x609   : > { %v6338_v59 = vpop.permute.xlu0 %6337  ;;  %v6448_v10 = vperm.slane %v6353_v42, %v10354_v26 }
 0x60a   : > { %v6440_v35 = vperm.slane %v6338_v59, %v10331_v2 }
 0x60d   : > { %v6341_v54 = vpop.permute.xlu1 %6340 }
 0x60e   : > { %v6441_v43 = vperm.slane %v6341_v54, %v10336_v47 }
 0x610   : > { %v6442_v45 = vsel %vm5796_vm6, %v6441_v43, %v6440_v35 }
 0x611   : > { %v6444_v29 = vsel %vm5800_vm0, %v6443_v62, %v6442_v45 }
 0x612   : > { %v6478_v30 = vsel %vm5879_vm2, %v6444_v29, %v6477_v34 }
 0x617   : > { %v6362_v1 = vpop.permute.xlu2 %6361 }
 0x618   : > { %v6347_v63 = vpop.permute.xlu0 %6346  ;;  %v6453_v5 = vperm.slane %v6362_v1, %v10354_v26 }
 0x619   : > { %v6445_v13 = vperm.slane %v6347_v63, %v10331_v2 }
 0x61c   : > { %v6350_v46 = vpop.permute.xlu1 %6349 }
 0x61d   : > { %v6446_v31 = vperm.slane %v6350_v46, %v10336_v47 }
 0x61f   : > { %v6447_v6 = vsel %vm5796_vm6, %v6446_v31, %v6445_v13 }
 0x620   : > { %v6449_v57 = vsel %vm5800_vm0, %v6448_v10, %v6447_v6 }
 0x621   : > { %v6479_v56 = vsel %vm5881_vm3, %v6449_v57, %v6478_v30 }
 0x626   : > { %v6371_v4 = vpop.permute.xlu2 %6370 }
 0x627   : > { %v6356_v20 = vpop.permute.xlu0 %6355  ;;  %v6458_v25 = vperm.slane %v6371_v4, %v10354_v26 }
 0x628   : > { %v6450_v37 = vperm.slane %v6356_v20, %v10331_v2 }
 0x62b   : > { %v6359_v48 = vpop.permute.xlu1 %6358 }
 0x62c   : > { %v6451_v52 = vperm.slane %v6359_v48, %v10336_v47 }
 0x62e   : > { %v6452_v18 = vsel %vm5796_vm6, %v6451_v52, %v6450_v37 }
 0x62f   : > { %v6454_v22 = vsel %vm5800_vm0, %v6453_v5, %v6452_v18 }
 0x630   : > { %v6480_v28 = vsel %vm5883_vm4, %v6454_v22, %v6479_v56 }
 0x635   : > { %v6380_v16 = vpop.permute.xlu2 %6379 }
 0x636   : > { %v6365_v7 = vpop.permute.xlu0 %6364  ;;  %v6463_v8 = vperm.slane %v6380_v16, %v10354_v26 }
 0x637   : > { %v6455_v27 = vperm.slane %v6365_v7, %v10331_v2 }
 0x63a   : > { %v6368_v53 = vpop.permute.xlu1 %6367 }
 0x63b   : > { %v6456_v14 = vperm.slane %v6368_v53, %v10336_v47 }
 0x63d   : > { %v6457_v49 = vsel %vm5796_vm6, %v6456_v14, %v6455_v27 }
 0x63e   : > { %v6459_v60 = vsel %vm5800_vm0, %v6458_v25, %v6457_v49 }
 0x63f   : > { %v6481_v55 = vsel %vm5885_vm5, %v6459_v60, %v6480_v28 }
 0x644   : > { %v6389_v19 = vpop.permute.xlu2 %6388 }
 0x645   : > { %v6374_v36 = vpop.permute.xlu0 %6373  ;;  %v6468_v58 = vperm.slane %v6389_v19, %v10354_v26 }
 0x646   : > { %v6460_v41 = vperm.slane %v6374_v36, %v10331_v2 }
 0x649   : > { %v6377_v40 = vpop.permute.xlu1 %6376 }
 0x64a   : > { %v6461_v44 = vperm.slane %v6377_v40, %v10336_v47 }
 0x64c   : > { %v6462_v33 = vsel %vm5796_vm6, %v6461_v44, %v6460_v41 }
 0x64d   : > { %v6464_v50 = vsel %vm5800_vm0, %v6463_v8, %v6462_v33 }
 0x64e   : > { %v6482_v39 = vsel %vm5887_vm7, %v6464_v50, %v6481_v55 }
 0x654   : > { %v6383_v61 = vpop.permute.xlu0 %6382 }
 0x655   : > { %v6465_v23 = vperm.slane %v6383_v61, %v10331_v2 }
 0x658   : > { %v6386_v51 = vpop.permute.xlu1 %6385 }
 0x659   : > { %v6466_v0 = vperm.slane %v6386_v51, %v10336_v47 }
 0x65b   : > { %v6467_v59 = vsel %vm5796_vm6, %v6466_v0, %v6465_v23 }
 0x65c   : > { %v6469_v54 = vsel %vm5800_vm0, %v6468_v58, %v6467_v59 }
 0x65d   : > { %v6483_v63 = vsel %vm5889_vm8, %v6469_v54, %v6482_v39 }
 0x65e   : > { %6487 = vst.msk [vmem:[%s8100_s28 + $0x8] sm:$0xff] %vm5900_vm9, %v6483_v63 }
 0x65f PF: > { %s20_s9 = sadd.s32 1, %s7990_s9   ;;  %s10805_s11 = sld [smem:[#allocation4_spill]] }
 0x660   : > { %p17_p11 = scmp.ge.s32.totalorder %s20_s9, 98   ;;  %s10806_s19 = sld [smem:[#allocation5_spill]] }
 0x661   : > { %s10807_s20 = sld [smem:[#allocation6_spill]]  ;;  %s10808_s26 = smov %s7978_s29 }
 0x662   : > { %s10809_s27 = smov %s7982_s30  ;;  %s10810_s28 = smov %s7986_s8 }
 0x663   :  { %19 = sbr.rel (!%p17_p11) target bundleno = 4 (0x4), region = 117 }
 0x665   : > { %s10811_s29 = smov %s10805_s11 }
 0x666   : > { %s10812_s30 = smov %s10806_s19 }
 0x667   : > { %s10813_s8 = smov %s10807_s20 }

</bundles_post_ra>
